<compile_context>
chip_gen: v7x
topology: tpu7x:2x2x1
jax: 0.10.0
libtpu: 0.0.40
codegen_flags: <defaults>
</compile_context>

<pallas_src>
import jax
import jax.numpy as jnp
import numpy as np
from jax import lax
from jax.experimental import pallas as pl
from jax.experimental.pallas import tpu as pltpu


# Shapes fixed by the module (Linear(65536,10) + pool-to-32 => 64ch, 64x64).
CIN = 64
COUT = 64
HIMG = 64
WIMG = 64
WV = 72                  # wide row width (64 valid cols + pad), multiple of 8
HP = HIMG + 2            # 66 padded rows
TR = 4                   # conv rows per inner tile (-> 2 pooled rows)
NTILES = HIMG // TR      # 16 row tiles per image


# ----------------------------------------------------------------------------
# Kernel 1: conv3x3 (K folded to 3*Cin=192) + bias + ReLU + 2x2 max pool.
# One image per grid step; row tiles via an in-kernel pl.loop.
# ----------------------------------------------------------------------------
def conv_relu_pool_kernel(x_ref, w_ref, b_ref, o_ref):
    # x_ref: (1, 66*72, 192) bf16 -- padded image, rows flattened (h*72 + u),
    #                                lanes = kw*64 + cin  (kw-folded im2col)
    # w_ref: (3, 192, 64) bf16    -- per-kh weight, K index = kw*64 + cin
    # b_ref: (1, 64) f32
    # o_ref: (1, 1024, 64) f32    -- pooled output, row = hp*32 + wp, lane = cout
    bias = b_ref[...]                                        # (1, 64)

    @pl.loop(0, NTILES)
    def _tile(t):
        # 3 sublane-aligned matmuls, K = 3*Cin = 192, f32 register accumulator.
        acc = jnp.zeros((TR * WV, COUT), jnp.float32)        # (288, 64) ~ 74 KB
        for kh in range(3):
            start = pl.multiple_of(t * (TR * WV) + kh * WV, 8)
            patch = x_ref[0, pl.ds(start, TR * WV), :]       # (288, 192) bf16
            acc = acc + jnp.dot(patch, w_ref[kh],
                                preferred_element_type=jnp.float32)
        acc = jnp.maximum(acc + bias, 0.0)                   # bias + ReLU

        # 2x2 / stride-2 max pool.
        # H pairs are WV rows apart (aligned slices); W pairs are adjacent rows.
        h0 = jnp.maximum(acc[0 * WV:1 * WV], acc[1 * WV:2 * WV])  # pooled row 2t
        h1 = jnp.maximum(acc[2 * WV:3 * WV], acc[3 * WV:4 * WV])  # pooled row 2t+1

        def wpool(h):                                        # (72, 64) -> (32, 64)
            v = h[:WIMG].reshape(WIMG // 2, 2, COUT)
            return jnp.maximum(v[:, 0, :], v[:, 1, :])

        row0 = pl.multiple_of(t * 64, 8)                     # (2t)   * 32
        row1 = pl.multiple_of(t * 64 + 32, 8)                # (2t+1) * 32
        o_ref[0, pl.ds(row0, 32), :] = wpool(h0)
        o_ref[0, pl.ds(row1, 32), :] = wpool(h1)


def conv_relu_pool(x_prep, w_conv, b_conv):
    # x_prep: (N, 4752, 192) bf16; w_conv: (3, 192, 64) bf16; b_conv: (1, 64) f32
    N = x_prep.shape[0]
    R = HP * WV
    return pl.pallas_call(
        conv_relu_pool_kernel,
        out_shape=jax.ShapeDtypeStruct((N, 32 * 32, COUT), jnp.float32),
        grid=(N,),
        in_specs=[
            pl.BlockSpec((1, R, 3 * CIN), lambda n: (n, 0, 0)),
            pl.BlockSpec((3, 3 * CIN, COUT), lambda n: (0, 0, 0)),
            pl.BlockSpec((1, COUT), lambda n: (0, 0)),
        ],
        out_specs=pl.BlockSpec((1, 32 * 32, COUT), lambda n: (n, 0, 0)),
        compiler_params=pltpu.CompilerParams(
            dimension_semantics=("parallel",)),
    )(x_prep, w_conv, b_conv)


# ----------------------------------------------------------------------------
# Kernel 2: Linear(65536 -> 10) + softmax.  Single grid step, whole (10, K)
# lane-dense weight resident in VMEM, contraction K-with-K (transposed B).
# ----------------------------------------------------------------------------
def fc_softmax_kernel(x_ref, w_ref, b_ref, o_ref):
    # x_ref: (N, 65536) f32; w_ref: (10, 65536) f32; b_ref: (1, 10); o_ref: (N, 10)
    logits = lax.dot_general(
        x_ref[...], w_ref[...],
        dimension_numbers=(((1,), (1,)), ((), ())),
        preferred_element_type=jnp.float32) + b_ref[...]
    m = jnp.max(logits, axis=-1, keepdims=True)
    e = jnp.exp(logits - m)
    o_ref[...] = e / jnp.sum(e, axis=-1, keepdims=True)


def fc_softmax(x_flat, w_fc, b_fc):
    N, K = x_flat.shape
    O = w_fc.shape[0]
    return pl.pallas_call(
        fc_softmax_kernel,
        out_shape=jax.ShapeDtypeStruct((N, O), jnp.float32),
        grid=(1,),
        in_specs=[
            pl.BlockSpec((N, K), lambda i: (0, 0)),
            pl.BlockSpec((O, K), lambda i: (0, 0)),
            pl.BlockSpec((1, O), lambda i: (0, 0)),
        ],
        out_specs=pl.BlockSpec((N, O), lambda i: (0, 0)),
        compiler_params=pltpu.CompilerParams(
            dimension_semantics=("arbitrary",),
            vmem_limit_bytes=32 * 1024 * 1024),
    )(x_flat, w_fc, b_fc)


# ----------------------------------------------------------------------------
# One-time parameter re-layout (hoisted out of the per-call forward).
# ----------------------------------------------------------------------------
def prepare_params(w_conv_pt, b_conv, w_fc_pt, b_fc):
    # Conv: OIHW -> (kh, kw*Cin + ci, co), bf16 for the MXU.
    w_conv_k = (jnp.transpose(w_conv_pt, (2, 3, 1, 0))       # (3, 3, Cin, Cout)
                .reshape(3, 3 * CIN, COUT)
                .astype(jnp.bfloat16))
    b_conv_k = b_conv.reshape(1, COUT).astype(jnp.float32)
    # FC: reorder PyTorch CHW-flatten -> HWC-flatten (matches pooled layout),
    # kept as (10, 65536) so K is the lane-dense dimension.
    w_fc_k = (w_fc_pt.reshape(10, COUT, 32, 32)
              .transpose(0, 2, 3, 1)
              .reshape(10, COUT * 32 * 32)
              .astype(jnp.float32))
    b_fc_k = b_fc.reshape(1, 10).astype(jnp.float32)
    return w_conv_k, b_conv_k, w_fc_k, b_fc_k


@jax.jit
def net_forward(x_nchw, w_conv_k, b_conv_k, w_fc_k, b_fc_k):
    N = x_nchw.shape[0]
    # Input prep (fused XLA pass): NCHW -> padded NHWC, fold the three kw taps
    # into the channel dim (K = 3*Cin = 192), cast to bf16.
    x = jnp.transpose(x_nchw, (0, 2, 3, 1)).astype(jnp.bfloat16)   # (N,64,64,64)
    x = jnp.pad(x, ((0, 0), (1, 1), (1, WV + 1 - WIMG), (0, 0)))   # (N,66,74,64)
    x = jnp.concatenate([x[:, :, kw:kw + WV, :] for kw in range(3)],
                        axis=-1)                                   # (N,66,72,192)
    x = x.reshape(N, HP * WV, 3 * CIN)                             # (N,4752,192)

    pooled = conv_relu_pool(x, w_conv_k, b_conv_k)   # (N, 1024, 64), HWC order
    flat = pooled.reshape(N, 32 * 32 * COUT)         # (N, 65536)
    return fc_softmax(flat, w_fc_k, b_fc_k)


# ----------------------------------------------------------------------------
# Pure-JAX reference (PyTorch semantics, NCHW, f32) for verification.
# ----------------------------------------------------------------------------
def reference(x_nchw, w_conv_pt, b_conv, w_fc_pt, b_fc):
    y = lax.conv_general_dilated(
        x_nchw, w_conv_pt, window_strides=(1, 1), padding=((1, 1), (1, 1)),
        dimension_numbers=("NCHW", "OIHW", "NCHW"))
    y = jax.nn.relu(y + b_conv[None, :, None, None])
    N, C, H, W = y.shape
    y = y.reshape(N, C, H // 2, 2, W // 2, 2).max(axis=(3, 5))   # adaptive->32
    flat = y.reshape(N, -1)                                      # CHW flatten
    logits = flat @ w_fc_pt.T + b_fc
    return jax.nn.softmax(logits, axis=1)


if __name__ == "__main__":
    N = 2
    KFC, OUT = COUT * 32 * 32, 10

    key = jax.random.PRNGKey(0)
    k1, k2, k3, k4, k5 = jax.random.split(key, 5)

    conv_bound = 1.0 / np.sqrt(CIN * 3 * 3)
    fc_bound = 1.0 / np.sqrt(KFC)
    w_conv_pt = jax.random.uniform(k1, (COUT, CIN, 3, 3), jnp.float32,
                                   -conv_bound, conv_bound)
    b_conv = jax.random.uniform(k2, (COUT,), jnp.float32, -conv_bound, conv_bound)
    w_fc_pt = jax.random.uniform(k3, (OUT, KFC), jnp.float32, -fc_bound, fc_bound)
    b_fc = jax.random.uniform(k4, (OUT,), jnp.float32, -fc_bound, fc_bound)
    x_nchw = jax.random.normal(k5, (N, CIN, HIMG, WIMG), jnp.float32)

    # One-time parameter re-layout (hoisted out of the forward pass).
    params = prepare_params(w_conv_pt, b_conv, w_fc_pt, b_fc)

    out = net_forward(x_nchw, *params)
    out = jax.block_until_ready(out)

    ref = reference(x_nchw, w_conv_pt, b_conv, w_fc_pt, b_fc)
    # bf16 MXU inputs in the conv (per perf review) -> slightly relaxed
    # tolerance vs the pure-f32 reference.
    np.testing.assert_allclose(np.asarray(out), np.asarray(ref),
                               rtol=1e-2, atol=3e-3)
    assert out.shape == (N, OUT)
    assert np.allclose(np.asarray(out).sum(axis=1), 1.0, atol=1e-5)

    print("KERNEL_OK")
</pallas_src>

<mosaic_0001>
module attributes {stable_mosaic.version = 11 : i64} {
  func.func @conv_relu_pool_kernel(%arg0: i32, %arg1: memref<1x4752x192xbf16, #tpu.memory_space<vmem>>, %arg2: memref<3x192x64xbf16, #tpu.memory_space<vmem>>, %arg3: memref<1x64xf32, #tpu.memory_space<vmem>>, %arg4: memref<1x1024x64xf32, #tpu.memory_space<vmem>>) attributes {dimension_semantics = [#tpu.dimension_semantics<parallel>], iteration_bounds = array<i64: 2>, scalar_prefetch = 0 : i64, scratch_operands = 0 : i64, tpu.core_type = #tpu.core_type<tc>, window_params = [{transform_indices = @transform_0, window_bounds = array<i64: 1, 4752, 192>}, {pipeline_mode = #tpu.pipeline_mode<synchronous>, transform_indices = @transform_1, window_bounds = array<i64: 3, 192, 64>}, {pipeline_mode = #tpu.pipeline_mode<synchronous>, transform_indices = @transform_2, window_bounds = array<i64: 1, 64>}, {transform_indices = @transform_3, window_bounds = array<i64: 1, 1024, 64>}]} {
    %c0 = arith.constant 0 : index
    %c0_0 = arith.constant 0 : index
    %0 = vector.load %arg3[%c0, %c0_0] : memref<1x64xf32, #tpu.memory_space<vmem>>, vector<1x64xf32>
    %c0_i32 = arith.constant 0 : i32
    %c16_i32 = arith.constant 16 : i32
    %1 = arith.addi %c0_i32, %c16_i32 : i32
    %c1_i32 = arith.constant 1 : i32
    scf.for %arg5 = %c0_i32 to %1 step %c1_i32  : i32 {
      %c1_i32_2 = arith.constant 1 : i32
      %2 = arith.muli %arg5, %c1_i32_2 : i32
      %c0_i32_3 = arith.constant 0 : i32
      %3 = arith.addi %c0_i32_3, %2 : i32
      %cst = arith.constant 0.000000e+00 : f32
      %4 = vector.broadcast %cst : f32 to vector<288x64xf32>
      %c288_i32 = arith.constant 288 : i32
      %5 = arith.muli %3, %c288_i32 : i32
      %c0_i32_4 = arith.constant 0 : i32
      %6 = arith.addi %5, %c0_i32_4 : i32
      %7 = tpu.assume_multiple %6, 8 : i32
      %c0_5 = arith.constant 0 : index
      %8 = arith.index_cast %7 : i32 to index
      %c0_6 = arith.constant 0 : index
      %9 = vector.load %arg1[%c0_5, %8, %c0_6] : memref<1x4752x192xbf16, #tpu.memory_space<vmem>>, vector<1x288x192xbf16>
      %10 = vector.shape_cast %9 : vector<1x288x192xbf16> to vector<288x192xbf16>
      %c0_7 = arith.constant 0 : index
      %c0_8 = arith.constant 0 : index
      %c0_9 = arith.constant 0 : index
      %11 = vector.load %arg2[%c0_7, %c0_8, %c0_9] : memref<3x192x64xbf16, #tpu.memory_space<vmem>>, vector<1x192x64xbf16>
      %12 = vector.shape_cast %11 : vector<1x192x64xbf16> to vector<192x64xbf16>
      %cst_10 = arith.constant dense<0.000000e+00> : vector<288x64xf32>
      %13 = tpu.matmul %10, %12, %cst_10 {dimension_numbers = #tpu.dot_dimension_numbers<[1], [0], [0], [1], [0, 0, 1, 1], [], []>} : vector<288x192xbf16>, vector<192x64xbf16>, vector<288x64xf32> -> vector<288x64xf32>
      %14 = arith.addf %4, %13 : vector<288x64xf32>
      %c288_i32_11 = arith.constant 288 : i32
      %15 = arith.muli %3, %c288_i32_11 : i32
      %c72_i32 = arith.constant 72 : i32
      %16 = arith.addi %15, %c72_i32 : i32
      %17 = tpu.assume_multiple %16, 8 : i32
      %c0_12 = arith.constant 0 : index
      %18 = arith.index_cast %17 : i32 to index
      %c0_13 = arith.constant 0 : index
      %19 = vector.load %arg1[%c0_12, %18, %c0_13] : memref<1x4752x192xbf16, #tpu.memory_space<vmem>>, vector<1x288x192xbf16>
      %20 = vector.shape_cast %19 : vector<1x288x192xbf16> to vector<288x192xbf16>
      %c1 = arith.constant 1 : index
      %c0_14 = arith.constant 0 : index
      %c0_15 = arith.constant 0 : index
      %21 = vector.load %arg2[%c1, %c0_14, %c0_15] : memref<3x192x64xbf16, #tpu.memory_space<vmem>>, vector<1x192x64xbf16>
      %22 = vector.shape_cast %21 : vector<1x192x64xbf16> to vector<192x64xbf16>
      %cst_16 = arith.constant dense<0.000000e+00> : vector<288x64xf32>
      %23 = tpu.matmul %20, %22, %cst_16 {dimension_numbers = #tpu.dot_dimension_numbers<[1], [0], [0], [1], [0, 0, 1, 1], [], []>} : vector<288x192xbf16>, vector<192x64xbf16>, vector<288x64xf32> -> vector<288x64xf32>
      %24 = arith.addf %14, %23 : vector<288x64xf32>
      %c288_i32_17 = arith.constant 288 : i32
      %25 = arith.muli %3, %c288_i32_17 : i32
      %c144_i32 = arith.constant 144 : i32
      %26 = arith.addi %25, %c144_i32 : i32
      %27 = tpu.assume_multiple %26, 8 : i32
      %c0_18 = arith.constant 0 : index
      %28 = arith.index_cast %27 : i32 to index
      %c0_19 = arith.constant 0 : index
      %29 = vector.load %arg1[%c0_18, %28, %c0_19] : memref<1x4752x192xbf16, #tpu.memory_space<vmem>>, vector<1x288x192xbf16>
      %30 = vector.shape_cast %29 : vector<1x288x192xbf16> to vector<288x192xbf16>
      %c2 = arith.constant 2 : index
      %c0_20 = arith.constant 0 : index
      %c0_21 = arith.constant 0 : index
      %31 = vector.load %arg2[%c2, %c0_20, %c0_21] : memref<3x192x64xbf16, #tpu.memory_space<vmem>>, vector<1x192x64xbf16>
      %32 = vector.shape_cast %31 : vector<1x192x64xbf16> to vector<192x64xbf16>
      %cst_22 = arith.constant dense<0.000000e+00> : vector<288x64xf32>
      %33 = tpu.matmul %30, %32, %cst_22 {dimension_numbers = #tpu.dot_dimension_numbers<[1], [0], [0], [1], [0, 0, 1, 1], [], []>} : vector<288x192xbf16>, vector<192x64xbf16>, vector<288x64xf32> -> vector<288x64xf32>
      %34 = arith.addf %24, %33 : vector<288x64xf32>
      %35 = vector.broadcast %0 : vector<1x64xf32> to vector<288x64xf32>
      %36 = arith.addf %34, %35 : vector<288x64xf32>
      %cst_23 = arith.constant 0.000000e+00 : f32
      %37 = vector.broadcast %cst_23 : f32 to vector<288x64xf32>
      %38 = arith.maximumf %36, %37 : vector<288x64xf32>
      %39 = vector.extract_strided_slice %38 {offsets = [0, 0], sizes = [72, 64], strides = [1, 1]} : vector<288x64xf32> to vector<72x64xf32>
      %40 = vector.extract_strided_slice %38 {offsets = [72, 0], sizes = [72, 64], strides = [1, 1]} : vector<288x64xf32> to vector<72x64xf32>
      %41 = arith.maximumf %39, %40 : vector<72x64xf32>
      %42 = vector.extract_strided_slice %38 {offsets = [144, 0], sizes = [72, 64], strides = [1, 1]} : vector<288x64xf32> to vector<72x64xf32>
      %43 = vector.extract_strided_slice %38 {offsets = [216, 0], sizes = [72, 64], strides = [1, 1]} : vector<288x64xf32> to vector<72x64xf32>
      %44 = arith.maximumf %42, %43 : vector<72x64xf32>
      %c64_i32 = arith.constant 64 : i32
      %45 = arith.muli %3, %c64_i32 : i32
      %46 = tpu.assume_multiple %45, 8 : i32
      %c64_i32_24 = arith.constant 64 : i32
      %47 = arith.muli %3, %c64_i32_24 : i32
      %c32_i32 = arith.constant 32 : i32
      %48 = arith.addi %47, %c32_i32 : i32
      %49 = tpu.assume_multiple %48, 8 : i32
      %50 = vector.extract_strided_slice %41 {offsets = [0, 0], sizes = [64, 64], strides = [1, 1]} : vector<72x64xf32> to vector<64x64xf32>
      %51 = vector.shape_cast %50 : vector<64x64xf32> to vector<32x2x64xf32>
      %52 = vector.extract_strided_slice %51 {offsets = [0, 0, 0], sizes = [32, 1, 64], strides = [1, 1, 1]} : vector<32x2x64xf32> to vector<32x1x64xf32>
      %53 = vector.shape_cast %52 : vector<32x1x64xf32> to vector<32x64xf32>
      %54 = vector.extract_strided_slice %51 {offsets = [0, 1, 0], sizes = [32, 1, 64], strides = [1, 1, 1]} : vector<32x2x64xf32> to vector<32x1x64xf32>
      %55 = vector.shape_cast %54 : vector<32x1x64xf32> to vector<32x64xf32>
      %56 = arith.maximumf %53, %55 : vector<32x64xf32>
      %c0_25 = arith.constant 0 : index
      %57 = arith.index_cast %46 : i32 to index
      %c0_26 = arith.constant 0 : index
      %58 = vector.load %arg4[%c0_25, %57, %c0_26] : memref<1x1024x64xf32, #tpu.memory_space<vmem>>, vector<1x32x64xf32>
      %59 = vector.shape_cast %58 : vector<1x32x64xf32> to vector<32x64xf32>
      %60 = vector.shape_cast %56 : vector<32x64xf32> to vector<1x32x64xf32>
      tpu.vector_store %arg4[%c0_25, %57, %c0_26], %60 {strides = array<i32>} : memref<1x1024x64xf32, #tpu.memory_space<vmem>>, vector<1x32x64xf32>,
      %61 = vector.extract_strided_slice %44 {offsets = [0, 0], sizes = [64, 64], strides = [1, 1]} : vector<72x64xf32> to vector<64x64xf32>
      %62 = vector.shape_cast %61 : vector<64x64xf32> to vector<32x2x64xf32>
      %63 = vector.extract_strided_slice %62 {offsets = [0, 0, 0], sizes = [32, 1, 64], strides = [1, 1, 1]} : vector<32x2x64xf32> to vector<32x1x64xf32>
      %64 = vector.shape_cast %63 : vector<32x1x64xf32> to vector<32x64xf32>
      %65 = vector.extract_strided_slice %62 {offsets = [0, 1, 0], sizes = [32, 1, 64], strides = [1, 1, 1]} : vector<32x2x64xf32> to vector<32x1x64xf32>
      %66 = vector.shape_cast %65 : vector<32x1x64xf32> to vector<32x64xf32>
      %67 = arith.maximumf %64, %66 : vector<32x64xf32>
      %c0_27 = arith.constant 0 : index
      %68 = arith.index_cast %49 : i32 to index
      %c0_28 = arith.constant 0 : index
      %69 = vector.load %arg4[%c0_27, %68, %c0_28] : memref<1x1024x64xf32, #tpu.memory_space<vmem>>, vector<1x32x64xf32>
      %70 = vector.shape_cast %69 : vector<1x32x64xf32> to vector<32x64xf32>
      %71 = vector.shape_cast %67 : vector<32x64xf32> to vector<1x32x64xf32>
      tpu.vector_store %arg4[%c0_27, %68, %c0_28], %71 {strides = array<i32>} : memref<1x1024x64xf32, #tpu.memory_space<vmem>>, vector<1x32x64xf32>,
    }
    %c16_i32_1 = arith.constant 16 : i32
    return
  }
  func.func @transform_0(%arg0: i32) -> (i32, i32, i32) {
    %c0_i32 = arith.constant 0 : i32
    %c0_i32_0 = arith.constant 0 : i32
    %c0_i32_1 = arith.constant 0 : i32
    return %arg0, %c0_i32, %c0_i32_0 : i32, i32, i32
  }
  func.func @transform_1(%arg0: i32) -> (i32, i32, i32) {
    %c0_i32 = arith.constant 0 : i32
    %c0_i32_0 = arith.constant 0 : i32
    %c0_i32_1 = arith.constant 0 : i32
    %c0_i32_2 = arith.constant 0 : i32
    return %c0_i32, %c0_i32_0, %c0_i32_1 : i32, i32, i32
  }
  func.func @transform_2(%arg0: i32) -> (i32, i32) {
    %c0_i32 = arith.constant 0 : i32
    %c0_i32_0 = arith.constant 0 : i32
    %c0_i32_1 = arith.constant 0 : i32
    return %c0_i32, %c0_i32_0 : i32, i32
  }
  func.func @transform_3(%arg0: i32) -> (i32, i32, i32) {
    %c0_i32 = arith.constant 0 : i32
    %c0_i32_0 = arith.constant 0 : i32
    %c0_i32_1 = arith.constant 0 : i32
    return %arg0, %c0_i32, %c0_i32_0 : i32, i32, i32
  }
}

module attributes {stable_mosaic.version = 11 : i64} {
  func.func @fc_softmax_kernel(%arg0: i32, %arg1: memref<2x65536xf32, #tpu.memory_space<vmem>>, %arg2: memref<10x65536xf32, #tpu.memory_space<vmem>>, %arg3: memref<1x10xf32, #tpu.memory_space<vmem>>, %arg4: memref<2x10xf32, #tpu.memory_space<vmem>>) attributes {dimension_semantics = [#tpu.dimension_semantics<arbitrary>], iteration_bounds = array<i64: 1>, scalar_prefetch = 0 : i64, scratch_operands = 0 : i64, tpu.core_type = #tpu.core_type<tc>, window_params = [{pipeline_mode = #tpu.pipeline_mode<synchronous>, transform_indices = @transform_0, window_bounds = array<i64: 2, 65536>}, {pipeline_mode = #tpu.pipeline_mode<synchronous>, transform_indices = @transform_1, window_bounds = array<i64: 10, 65536>}, {pipeline_mode = #tpu.pipeline_mode<synchronous>, transform_indices = @transform_2, window_bounds = array<i64: 1, 10>}, {pipeline_mode = #tpu.pipeline_mode<synchronous>, transform_indices = @transform_3, window_bounds = array<i64: 2, 10>}]} {
    %c0 = arith.constant 0 : index
    %c0_0 = arith.constant 0 : index
    %0 = vector.load %arg1[%c0, %c0_0] : memref<2x65536xf32, #tpu.memory_space<vmem>>, vector<2x65536xf32>
    %c0_1 = arith.constant 0 : index
    %c0_2 = arith.constant 0 : index
    %1 = vector.load %arg2[%c0_1, %c0_2] : memref<10x65536xf32, #tpu.memory_space<vmem>>, vector<10x65536xf32>
    %cst = arith.constant dense<0.000000e+00> : vector<2x10xf32>
    %2 = tpu.matmul %0, %1, %cst {dimension_numbers = #tpu.dot_dimension_numbers<[1], [1], [0], [0], [0, 0, 1, 0], [], []>} : vector<2x65536xf32>, vector<10x65536xf32>, vector<2x10xf32> -> vector<2x10xf32>
    %c0_3 = arith.constant 0 : index
    %c0_4 = arith.constant 0 : index
    %3 = vector.load %arg3[%c0_3, %c0_4] : memref<1x10xf32, #tpu.memory_space<vmem>>, vector<1x10xf32>
    %4 = vector.broadcast %3 : vector<1x10xf32> to vector<2x10xf32>
    %5 = arith.addf %2, %4 : vector<2x10xf32>
    %cst_5 = arith.constant dense<0xFF800000> : vector<2xf32>
    %6 = vector.multi_reduction <maximumf>, %5, %cst_5 [1] : vector<2x10xf32> to vector<2xf32>
    %7 = vector.shape_cast %6 : vector<2xf32> to vector<2x1xf32>
    %8 = vector.broadcast %7 : vector<2x1xf32> to vector<2x10xf32>
    %9 = arith.subf %5, %8 : vector<2x10xf32>
    %10 = math.exp %9 : vector<2x10xf32>
    %cst_6 = arith.constant dense<0.000000e+00> : vector<2xf32>
    %11 = vector.multi_reduction <add>, %10, %cst_6 [1] : vector<2x10xf32> to vector<2xf32>
    %12 = vector.shape_cast %11 : vector<2xf32> to vector<2x1xf32>
    %13 = vector.broadcast %12 : vector<2x1xf32> to vector<2x10xf32>
    %14 = arith.divf %10, %13 : vector<2x10xf32>
    %c0_7 = arith.constant 0 : index
    %c0_8 = arith.constant 0 : index
    %15 = vector.load %arg4[%c0_7, %c0_8] : memref<2x10xf32, #tpu.memory_space<vmem>>, vector<2x10xf32>
    tpu.vector_store %arg4[%c0_7, %c0_8], %14 {strides = array<i32>} : memref<2x10xf32, #tpu.memory_space<vmem>>, vector<2x10xf32>,
    return
  }
  func.func @transform_0(%arg0: i32) -> (i32, i32) {
    %c0_i32 = arith.constant 0 : i32
    %c0_i32_0 = arith.constant 0 : i32
    %c0_i32_1 = arith.constant 0 : i32
    return %c0_i32, %c0_i32_0 : i32, i32
  }
  func.func @transform_1(%arg0: i32) -> (i32, i32) {
    %c0_i32 = arith.constant 0 : i32
    %c0_i32_0 = arith.constant 0 : i32
    %c0_i32_1 = arith.constant 0 : i32
    return %c0_i32, %c0_i32_0 : i32, i32
  }
  func.func @transform_2(%arg0: i32) -> (i32, i32) {
    %c0_i32 = arith.constant 0 : i32
    %c0_i32_0 = arith.constant 0 : i32
    %c0_i32_1 = arith.constant 0 : i32
    return %c0_i32, %c0_i32_0 : i32, i32
  }
  func.func @transform_3(%arg0: i32) -> (i32, i32) {
    %c0_i32 = arith.constant 0 : i32
    %c0_i32_0 = arith.constant 0 : i32
    %c0_i32_1 = arith.constant 0 : i32
    return %c0_i32, %c0_i32_0 : i32, i32
  }
}

</mosaic_0001>

<bundles_post_ra>
// kernel: net_forward.2
= control target key start
LH: loop header
LB: loop body
LE: loop exit
PB: predicated region body
PF: predicated region fallthrough
CT: control target
= control target key end

     0   :  { %s3579_s12 = smov 0   ;;  %s4341_s0 = inlined_call_operand.vmem [shape: bf16[2,4752,192], index: 0, kind: input, shape index: {}]   ;;  %s4342_s1 = inlined_call_operand.vmem [shape: bf16[3,192,64], index: 1, kind: input, shape index: {}]   ;;  %s4343_s2 = inlined_call_operand.vmem [shape: f32[1,64], index: 2, kind: input, shape index: {}]   ;;  %s4344_s3 = inlined_call_operand.vmem [shape: f32[2,1024,64], index: 3, kind: output, shape index: {}]  }
   0x1 LB: > { %s2963_s13 = sadd.s32 4294967295, %s3551_s12   ;;  %p2967_p0 = scmp.ge.s32.totalorder %s3551_s12, 1  ;;  %s3551_s12 = sphi %s3579_s12, %s13_s12  }
   0x2   : > { %p137_p1 = scmp.lt.s32.totalorder %s3551_s12, 3 }
   0x4   : > { %p138_p2 = pnand %p2967_p0, %p137_p1 }
   0x5   : > { %p161_p3 = scmp.lt.s32.totalorder (!%p138_p2), %s2963_s13, 1  ;;  %v3590_v0 = vld [vmem:[%s4343_s2] ss:$0 sm:$0xff] (!%p138_p2)  ;;  %s3602_s24 = smov (!%p138_p2), 0  }
   0x6   : > { %141 = sbr.rel (%p138_p2) target bundleno = 523 (0x20b), region = 32 }
   0xd   : > { %s4346_s13 = smov (!%p161_p3, %s2963_s13), 1 }
   0xe   : > { %s3324_s16 = smul.u32 4752, %s4346_s13  ;;  %s3296_s17 = sshll.u32 %s4346_s13, 10 }
   0xf   : > { %s3595_s20 = scalar_lea.vmem %s4344_s3, %s3296_s17 }
  0x10   : > { %s3600_s23 = scalar_lea.vmem %s4341_s0, %s3324_s16 }
  0x11 LB: >> { %v3343_v1 = vld [vmem:[%s4342_s1 + $0x60] sm:$0xff]   ;;  %v3557_v2 = vmov 0   ;;  %v3344_v3 = vld [vmem:[%s4342_s1 + $0x68] sm:$0xff]   ;;  %s3616_s29 = smul.u32 288, %s3555_s24  ;;  %v3345_v4 = vld [vmem:[%s4342_s1 + $0x70] sm:$0xff]   ;;  %vm546_vm0 = vcmask 523264   ;;  %s3555_s24 = sphi %s3602_s24, %s178_s24  }
  0x12   : >> { %601 = vmatprep.subr.bf16.mxu0 %v3557_v2  ;;  %3300 = vmatprep.subr.bf16.mxu1 %v3557_v2  ;;  %v3346_v5 = vld [vmem:[%s4342_s1 + $0x78] sm:$0xff]   ;;  %v3347_v7 = vld [vmem:[%s4342_s1 + $0x80] sm:$0xff]   ;;  %v3348_v9 = vld [vmem:[%s4342_s1 + $0x88] sm:$0xff]   ;;  %vm2347_vm1 = vcmask 1041409   ;;  %vm2349_vm2 = vcmask 1042434   ;;  %vm2351_vm3 = vcmask 1043459  }
  0x13   : >> { %602 = vmatpush1.bf16.msra.mxu0 %v3343_v1  ;;  %3312 = vmatpush1.bf16.msra.mxu1 %v3343_v1  ;;  %s245_s30 = sadd.s32 72, %s3616_s29  ;;  %v3349_v10 = vld [vmem:[%s4342_s1 + $0x90] sm:$0xff]   ;;  %v3350_v11 = vld [vmem:[%s4342_s1 + $0x98] sm:$0xff]   ;;  %v3351_v12 = vld [vmem:[%s4342_s1 + $0xa0] sm:$0xff]   ;;  %s1235_s15 = sadd.s32 144, %s3616_s29  ;;  %vm2353_vm4 = vcmask 1044484  }
  0x14   : >> { %603 = vmatprep.subr.bf16.mxu0 %v3557_v2  ;;  %3301 = vmatprep.subr.bf16.mxu1 %v3557_v2  ;;  %s246_s4 = sshra.s32 %s245_s30, 3  ;;  %v3352_v13 = vld [vmem:[%s4342_s1 + $0xa8] sm:$0xff]   ;;  %v3353_v14 = vld [vmem:[%s4342_s1 + $0xb0] sm:$0xff]   ;;  %v3354_v15 = vld [vmem:[%s4342_s1 + $0xb8] sm:$0xff]   ;;  %s180_s18 = sshra.s32 %s3616_s29, 3  ;;  %vm2355_vm5 = vcmask 1045509  }
  0x15   : >> { %s3298_s7 = sshll.u32 %s246_s4, 3  ;;  %v3361_v18 = vld [vmem:[%s4342_s1] sm:$0xff]   ;;  %v3367_v22 = vld [vmem:[%s4342_s1 + $0x8] sm:$0xff]   ;;  %v3371_v26 = vld [vmem:[%s4342_s1 + $0x10] sm:$0xff]   ;;  %s1236_s19 = sshra.s32 %s1235_s15, 3  ;;  %vm2357_vm6 = vcmask 1046534  }
  0x16   : >> { %s3630_s10 = scalar_lea.vmem %s3600_s23, %s3298_s7  ;;  %v3362_v19 = vld [vmem:[%s4342_s1 + $0xc0] sm:$0xff]   ;;  %v3370_v23 = vld [vmem:[%s4342_s1 + $0xc8] sm:$0xff]   ;;  %v3376_v29 = vld [vmem:[%s4342_s1 + $0xd0] sm:$0xff]   ;;  %s3297_s25 = sshll.u32 %s180_s18, 3  ;;  %vm2359_vm7 = vcmask 1047559  }
  0x17   : >> { %604 = vmatpush1.bf16.msra.mxu0 %v3344_v3  ;;  %3313 = vmatpush1.bf16.msra.mxu1 %v3344_v3  ;;  %v3357_v6 = vld [vmem:[%s3630_s10 + $0x4] ss:$8 sps:$4 sm:$0xff]   ;;  %v3360_v8 = vld [vmem:[%s3630_s10 + $0x94] ss:$8 sps:$4 sm:$0xff]   ;;  %v3355_v16 = vld [vmem:[%s3630_s10] ss:$8 sps:$4 sm:$0xff]   ;;  %s3724_s4 = scalar_lea.vmem %s3600_s23, %s3297_s25 }
  0x18   : >> { %605 = vmatprep.subr.bf16.mxu0 %v3557_v2  ;;  %3302 = vmatprep.subr.bf16.mxu1 %v3557_v2  ;;  %v3358_v17 = vld [vmem:[%s3630_s10 + $0x90] ss:$8 sps:$4 sm:$0xff]   ;;  %v3363_v20 = vld [vmem:[%s3630_s10 + $0x14] ss:$8 sps:$4 sm:$0xff]   ;;  %v3365_v21 = vld [vmem:[%s3630_s10 + $0xa4] ss:$8 sps:$4 sm:$0xff]  }
  0x19   : >> { %3047 = vmatprep.mubr.msk.bf16.mxu0 %vm546_vm0, %v3357_v6  ;;  %3056 = vmatprep.mubr.msk.bf16.mxu1 %vm546_vm0, %v3360_v8  ;;  %v3368_v24 = vld [vmem:[%s3630_s10 + $0x10] ss:$8 sps:$4 sm:$0xff]   ;;  %v3369_v25 = vld [vmem:[%s3630_s10 + $0xa0] ss:$8 sps:$4 sm:$0xff]   ;;  %v3372_v27 = vld [vmem:[%s3630_s10 + $0x24] ss:$8 sps:$4 sm:$0xff]  }
  0x1a   : >> { %v3374_v28 = vld [vmem:[%s3630_s10 + $0xb4] ss:$8 sps:$4 sm:$0xff]   ;;  %s3299_s29 = sshll.u32 %s1236_s19, 3  ;;  %v3377_v31 = vld [vmem:[%s3630_s10 + $0x20] ss:$8 sps:$4 sm:$0xff]  }
  0x1b   : >> { %606 = vmatpush1.bf16.msra.mxu0 %v3345_v4  ;;  %3314 = vmatpush1.bf16.msra.mxu1 %v3345_v4  ;;  %v3379_v30 = vld [vmem:[%s4342_s1 + $0x18] sm:$0xff]   ;;  %s3730_s5 = scalar_lea.vmem %s3600_s23, %s3299_s29  ;;  %v3383_v35 = vld [vmem:[%s3630_s10 + $0xc4] ss:$8 sps:$4 sm:$0xff]   ;;  %v3386_v41 = vld [vmem:[%s3630_s10 + $0xc0] ss:$8 sps:$4 sm:$0xff]  }
  0x1c   : >> { %607 = vmatprep.subr.bf16.mxu0 %v3557_v2  ;;  %3303 = vmatprep.subr.bf16.mxu1 %v3557_v2  ;;  %v3380_v32 = vld [vmem:[%s4342_s1 + $0xd8] sm:$0xff]   ;;  %v3387_v36 = vld [vmem:[%s4342_s1 + $0x20] sm:$0xff]   ;;  %v3393_v39 = vld [vmem:[%s4342_s1 + $0x28] sm:$0xff]  }
  0x1d   : >> { %v3378_v33 = vld [vmem:[%s3630_s10 + $0xb0] ss:$8 sps:$4 sm:$0xff]   ;;  %v3381_v34 = vld [vmem:[%s3630_s10 + $0x34] ss:$8 sps:$4 sm:$0xff]   ;;  %v3388_v37 = vld [vmem:[%s4342_s1 + $0xe0] sm:$0xff]  }
  0x1e   : >> { %v3385_v38 = vld [vmem:[%s3630_s10 + $0x30] ss:$8 sps:$4 sm:$0xff]   ;;  %v3396_v40 = vld [vmem:[%s4342_s1 + $0xe8] sm:$0xff]   ;;  %v3391_v43 = vld [vmem:[%s3630_s10 + $0xd4] ss:$8 sps:$4 sm:$0xff]  }
  0x1f   : >> { %608 = vmatpush1.bf16.msra.mxu0 %v3346_v5  ;;  %3315 = vmatpush1.bf16.msra.mxu1 %v3346_v5  ;;  %v3389_v42 = vld [vmem:[%s3630_s10 + $0x44] ss:$8 sps:$4 sm:$0xff]   ;;  %v3397_v44 = vld [vmem:[%s4342_s1 + $0x30] sm:$0xff]   ;;  %v3394_v46 = vld [vmem:[%s3630_s10 + $0x40] ss:$8 sps:$4 sm:$0xff]  }
  0x20   : >> { %609 = vmatprep.subr.bf16.mxu0 %v3557_v2  ;;  %3304 = vmatprep.subr.bf16.mxu1 %v3557_v2  ;;  %v3402_v45 = vld [vmem:[%s4342_s1 + $0xf0] sm:$0xff]   ;;  %v3405_v47 = vld [vmem:[%s4342_s1 + $0x38] sm:$0xff]   ;;  %v3400_v51 = vld [vmem:[%s3630_s10 + $0xe4] ss:$8 sps:$4 sm:$0xff]  }
  0x21   : >> { %v3406_v48 = vld [vmem:[%s4342_s1 + $0xf8] sm:$0xff]   ;;  %v3413_v52 = vld [vmem:[%s4342_s1 + $0x40] sm:$0xff]   ;;  %v3419_v55 = vld [vmem:[%s4342_s1 + $0x48] sm:$0xff]  }
  0x22   : >> { %v3395_v49 = vld [vmem:[%s3630_s10 + $0xd0] ss:$8 sps:$4 sm:$0xff]   ;;  %v3398_v50 = vld [vmem:[%s3630_s10 + $0x54] ss:$8 sps:$4 sm:$0xff]   ;;  %v3414_v53 = vld [vmem:[%s4342_s1 + $0x100] sm:$0xff]  }
  0x23   : >> { %610 = vmatpush1.bf16.msra.mxu0 %v3347_v7  ;;  %3316 = vmatpush1.bf16.msra.mxu1 %v3347_v7  ;;  %v3403_v54 = vld [vmem:[%s3630_s10 + $0x50] ss:$8 sps:$4 sm:$0xff]   ;;  %v3422_v56 = vld [vmem:[%s4342_s1 + $0x108] sm:$0xff]   ;;  %v3409_v59 = vld [vmem:[%s3630_s10 + $0xf4] ss:$8 sps:$4 sm:$0xff]  }
  0x24   : >> { %611 = vmatprep.subr.bf16.mxu0 %v3557_v2  ;;  %3305 = vmatprep.subr.bf16.mxu1 %v3557_v2  ;;  %v3404_v57 = vld [vmem:[%s3630_s10 + $0xe0] ss:$8 sps:$4 sm:$0xff]   ;;  %v3407_v58 = vld [vmem:[%s3630_s10 + $0x64] ss:$8 sps:$4 sm:$0xff]   ;;  %v3423_v60 = vld [vmem:[%s4342_s1 + $0x50] sm:$0xff]  }
  0x25   : >> { %v3428_v61 = vld [vmem:[%s4342_s1 + $0x110] sm:$0xff]   ;;  %v3431_v62 = vld [vmem:[%s4342_s1 + $0x58] sm:$0xff]   ;;  %v3411_v1 = vld [vmem:[%s3630_s10 + $0x60] ss:$8 sps:$4 sm:$0xff]  }
  0x26   : >> { %v3432_v63 = vld [vmem:[%s4342_s1 + $0x118] sm:$0xff]   ;;  %v3417_v5 = vld [vmem:[%s3630_s10 + $0x104] ss:$8 sps:$4 sm:$0xff]   ;;  %v3421_v7 = vld [vmem:[%s3630_s10 + $0x100] ss:$8 sps:$4 sm:$0xff]  }
  0x27   : >> { %612 = vmatpush1.bf16.msra.mxu0 %v3348_v9  ;;  %3317 = vmatpush1.bf16.msra.mxu1 %v3348_v9  ;;  %v3412_v3 = vld [vmem:[%s3630_s10 + $0xf0] ss:$8 sps:$4 sm:$0xff]   ;;  %v3415_v4 = vld [vmem:[%s3630_s10 + $0x74] ss:$8 sps:$4 sm:$0xff]   ;;  %v3429_v9 = vld [vmem:[%s3630_s10 + $0x80] ss:$8 sps:$4 sm:$0xff]  }
  0x28   : >> { %613 = vmatprep.subr.bf16.mxu0 %v3557_v2  ;;  %3306 = vmatprep.subr.bf16.mxu1 %v3557_v2  ;;  %v3420_v6 = vld [vmem:[%s3630_s10 + $0x70] ss:$8 sps:$4 sm:$0xff]   ;;  %v3426_v8 = vld [vmem:[%s3630_s10 + $0x114] ss:$8 sps:$4 sm:$0xff]  }
  0x2b   : >> { %614 = vmatpush1.bf16.msra.mxu0 %v3349_v10  ;;  %3318 = vmatpush1.bf16.msra.mxu1 %v3349_v10  ;;  %v3430_v10 = vld [vmem:[%s3630_s10 + $0x110] ss:$8 sps:$4 sm:$0xff]  }
  0x2c   : >> { %615 = vmatprep.subr.bf16.mxu0 %v3557_v2  ;;  %3307 = vmatprep.subr.bf16.mxu1 %v3557_v2 }
  0x2f   : >> { %616 = vmatpush1.bf16.msra.mxu0 %v3350_v11  ;;  %3319 = vmatpush1.bf16.msra.mxu1 %v3350_v11  ;;  %v3435_v11 = vld [vmem:[%s3724_s4 + $0x4] ss:$8 sps:$4 sm:$0xff]  }
  0x30   : >> { %617 = vmatprep.subr.bf16.mxu0 %v3557_v2  ;;  %3308 = vmatprep.subr.bf16.mxu1 %v3557_v2 }
  0x33   : >> { %618 = vmatpush1.bf16.msra.mxu0 %v3351_v12  ;;  %3320 = vmatpush1.bf16.msra.mxu1 %v3351_v12  ;;  %v3438_v12 = vld [vmem:[%s3730_s5 + $0x4] ss:$8 sps:$4 sm:$0xff]  }
  0x34   : >> { %619 = vmatprep.subr.bf16.mxu0 %v3557_v2  ;;  %3309 = vmatprep.subr.bf16.mxu1 %v3557_v2 }
  0x37   : >> { %620 = vmatpush1.bf16.msra.mxu0 %v3352_v13  ;;  %3321 = vmatpush1.bf16.msra.mxu1 %v3352_v13  ;;  %v3433_v13 = vld [vmem:[%s3724_s4] ss:$8 sps:$4 sm:$0xff]  }
  0x38   : >> { %621 = vmatprep.subr.bf16.mxu0 %v3557_v2  ;;  %3310 = vmatprep.subr.bf16.mxu1 %v3557_v2 }
  0x3b   : >> { %622 = vmatpush1.bf16.msra.mxu0 %v3353_v14  ;;  %3322 = vmatpush1.bf16.msra.mxu1 %v3353_v14  ;;  %v3436_v14 = vld [vmem:[%s3730_s5] ss:$8 sps:$4 sm:$0xff]  }
  0x3c   : >> { %623 = vmatprep.subr.bf16.mxu0 %v3557_v2  ;;  %3311 = vmatprep.subr.bf16.mxu1 %v3557_v2 }
  0x3f   : >> { %624 = vmatpush1.bf16.msra.mxu0 %v3354_v15  ;;  %3323 = vmatpush1.bf16.msra.mxu1 %v3354_v15  ;;  %v3439_v15 = vld [vmem:[%s3724_s4 + $0x14] ss:$8 sps:$4 sm:$0xff]  }
  0x40   : >> { %1062 = vmatprep.subr.bf16.mxu1 %v3557_v2  ;;  %1590 = vmatprep.subr.bf16.mxu0 %v3557_v2 }
  0x42   : >> { %634 = vmatmul.mubr.bf16.vlgmr.msra.gmra.mrb[0].mxu0 %v3355_v16  ;;  %704 = vmatmul.mubr.bf16.vlgmr.msra.gmra.mrb[0].mxu1 %v3358_v17  ;;  %v3441_v16 = vld [vmem:[%s3730_s5 + $0x14] ss:$8 sps:$4 sm:$0xff]   ;;  %v3443_v17 = vld [vmem:[%s3724_s4 + $0x10] ss:$8 sps:$4 sm:$0xff]  }
  0x43   : >> { %1063 = vmatpush1.bf16.msra.mxu1 %v3361_v18  ;;  %1591 = vmatpush1.bf16.msra.mxu0 %v3362_v19  ;;  %v3444_v18 = vld [vmem:[%s3730_s5 + $0x10] ss:$8 sps:$4 sm:$0xff]   ;;  %v3445_v19 = vld [vmem:[%s3724_s4 + $0x24] ss:$8 sps:$4 sm:$0xff]  }
  0x44   : >> { %1064 = vmatprep.subr.bf16.mxu1 %v3557_v2  ;;  %3048 = vmatprep.mubr.msk.bf16.mxu0 %vm546_vm0, %v3363_v20  ;;  %v3447_v20 = vld [vmem:[%s3730_s5 + $0x24] ss:$8 sps:$4 sm:$0xff]  }
  0x45   : >> { %3057 = vmatprep.mubr.msk.bf16.mxu1 %vm546_vm0, %v3365_v21  ;;  %1592 = vmatprep.subr.bf16.mxu0 %v3557_v2  ;;  %v3449_v21 = vld [vmem:[%s3724_s4 + $0x20] ss:$8 sps:$4 sm:$0xff]  }
  0x47   : >> { %1065 = vmatpush1.bf16.msra.mxu1 %v3367_v22  ;;  %1593 = vmatpush1.bf16.msra.mxu0 %v3370_v23  ;;  %v3450_v22 = vld [vmem:[%s3730_s5 + $0x20] ss:$8 sps:$4 sm:$0xff]   ;;  %v3451_v23 = vld [vmem:[%s3724_s4 + $0x34] ss:$8 sps:$4 sm:$0xff]  }
  0x48   : >> { %1066 = vmatprep.subr.bf16.mxu1 %v3557_v2  ;;  %1594 = vmatprep.subr.bf16.mxu0 %v3557_v2 }
  0x4a   : >> { %642 = vmatmul.mubr.bf16.gmra.mrb[4].mxu0 %v3368_v24  ;;  %712 = vmatmul.mubr.bf16.gmra.mrb[4].mxu1 %v3369_v25  ;;  %v3453_v24 = vld [vmem:[%s3730_s5 + $0x34] ss:$8 sps:$4 sm:$0xff]   ;;  %v3455_v25 = vld [vmem:[%s3724_s4 + $0x30] ss:$8 sps:$4 sm:$0xff]  }
  0x4b   : >> { %1067 = vmatpush1.bf16.msra.mxu1 %v3371_v26  ;;  %3049 = vmatprep.mubr.msk.bf16.mxu0 %vm546_vm0, %v3372_v27  ;;  %v3456_v26 = vld [vmem:[%s3730_s5 + $0x30] ss:$8 sps:$4 sm:$0xff]   ;;  %v3457_v27 = vld [vmem:[%s3724_s4 + $0x44] ss:$8 sps:$4 sm:$0xff]  }
  0x4c   : >> { %3058 = vmatprep.mubr.msk.bf16.mxu1 %vm546_vm0, %v3374_v28  ;;  %1595 = vmatpush1.bf16.msra.mxu0 %v3376_v29  ;;  %v3459_v28 = vld [vmem:[%s3730_s5 + $0x44] ss:$8 sps:$4 sm:$0xff]   ;;  %v3461_v29 = vld [vmem:[%s3724_s4 + $0x40] ss:$8 sps:$4 sm:$0xff]  }
  0x4d   : >> { %1068 = vmatprep.subr.bf16.mxu1 %v3557_v2  ;;  %1596 = vmatprep.subr.bf16.mxu0 %v3557_v2 }
  0x4f   : >> { %1069 = vmatpush1.bf16.msra.mxu1 %v3379_v30  ;;  %v3462_v30 = vld [vmem:[%s3730_s5 + $0x40] ss:$8 sps:$4 sm:$0xff]  }
  0x50   : >> { %1597 = vmatpush1.bf16.msra.mxu0 %v3380_v32  ;;  %1070 = vmatprep.subr.bf16.mxu1 %v3557_v2  ;;  %v3465_v32 = vld [vmem:[%s3730_s5 + $0x54] ss:$8 sps:$4 sm:$0xff]  }
  0x51   : >> { %1598 = vmatprep.subr.bf16.mxu0 %v3557_v2 }
  0x52   : >> { %650 = vmatmul.mubr.bf16.gmra.mrb[8].mxu0 %v3377_v31  ;;  %720 = vmatmul.mubr.bf16.gmra.mrb[8].mxu1 %v3378_v33  ;;  %v3463_v31 = vld [vmem:[%s3724_s4 + $0x54] ss:$8 sps:$4 sm:$0xff]   ;;  %v3467_v33 = vld [vmem:[%s3724_s4 + $0x50] ss:$8 sps:$4 sm:$0xff]  }
  0x53   : >> { %3050 = vmatprep.mubr.msk.bf16.mxu0 %vm546_vm0, %v3381_v34  ;;  %3059 = vmatprep.mubr.msk.bf16.mxu1 %vm546_vm0, %v3383_v35  ;;  %v3468_v34 = vld [vmem:[%s3730_s5 + $0x50] ss:$8 sps:$4 sm:$0xff]   ;;  %v3469_v35 = vld [vmem:[%s3724_s4 + $0x64] ss:$8 sps:$4 sm:$0xff]  }
  0x54   : >> { %1071 = vmatpush1.bf16.msra.mxu1 %v3387_v36  ;;  %1599 = vmatpush1.bf16.msra.mxu0 %v3388_v37  ;;  %v3471_v36 = vld [vmem:[%s3730_s5 + $0x64] ss:$8 sps:$4 sm:$0xff]   ;;  %v3473_v37 = vld [vmem:[%s3724_s4 + $0x60] ss:$8 sps:$4 sm:$0xff]  }
  0x55   : >> { %1072 = vmatprep.subr.bf16.mxu1 %v3557_v2  ;;  %1600 = vmatprep.subr.bf16.mxu0 %v3557_v2 }
  0x58   : >> { %1073 = vmatpush1.bf16.msra.mxu1 %v3393_v39  ;;  %1601 = vmatpush1.bf16.msra.mxu0 %v3396_v40  ;;  %v3475_v39 = vld [vmem:[%s3724_s4 + $0x74] ss:$8 sps:$4 sm:$0xff]  }
  0x59   : >> { %1074 = vmatprep.subr.bf16.mxu1 %v3557_v2  ;;  %1602 = vmatprep.subr.bf16.mxu0 %v3557_v2  ;;  %v3477_v40 = vld [vmem:[%s3730_s5 + $0x74] ss:$8 sps:$4 sm:$0xff]  }
  0x5a   : >> { %658 = vmatmul.mubr.bf16.gmra.mrb[12].mxu0 %v3385_v38  ;;  %728 = vmatmul.mubr.bf16.gmra.mrb[12].mxu1 %v3386_v41  ;;  %v3474_v38 = vld [vmem:[%s3730_s5 + $0x60] ss:$8 sps:$4 sm:$0xff]   ;;  %v3479_v41 = vld [vmem:[%s3724_s4 + $0x70] ss:$8 sps:$4 sm:$0xff]  }
  0x5b   : >> { %3051 = vmatprep.mubr.msk.bf16.mxu0 %vm546_vm0, %v3389_v42  ;;  %3060 = vmatprep.mubr.msk.bf16.mxu1 %vm546_vm0, %v3391_v43  ;;  %v3480_v42 = vld [vmem:[%s3730_s5 + $0x70] ss:$8 sps:$4 sm:$0xff]   ;;  %v3481_v43 = vld [vmem:[%s3724_s4 + $0x84] ss:$8 sps:$4 sm:$0xff]  }
  0x5c   : >> { %1075 = vmatpush1.bf16.msra.mxu1 %v3397_v44  ;;  %1603 = vmatpush1.bf16.msra.mxu0 %v3402_v45  ;;  %v3483_v44 = vld [vmem:[%s3730_s5 + $0x84] ss:$8 sps:$4 sm:$0xff]   ;;  %v3485_v45 = vld [vmem:[%s3724_s4 + $0x80] ss:$8 sps:$4 sm:$0xff]  }
  0x5d   : >> { %1076 = vmatprep.subr.bf16.mxu1 %v3557_v2  ;;  %1604 = vmatprep.subr.bf16.mxu0 %v3557_v2 }
  0x60   : >> { %1077 = vmatpush1.bf16.msra.mxu1 %v3405_v47  ;;  %1605 = vmatpush1.bf16.msra.mxu0 %v3406_v48  ;;  %v3487_v47 = vld [vmem:[%s3724_s4 + $0x94] ss:$8 sps:$4 sm:$0xff]  }
  0x61   : >> { %1078 = vmatprep.subr.bf16.mxu1 %v3557_v2  ;;  %1606 = vmatprep.subr.bf16.mxu0 %v3557_v2  ;;  %v3489_v48 = vld [vmem:[%s3730_s5 + $0x94] ss:$8 sps:$4 sm:$0xff]  }
  0x62   : >> { %666 = vmatmul.mubr.bf16.gmra.mrb[16].mxu0 %v3394_v46  ;;  %736 = vmatmul.mubr.bf16.gmra.mrb[16].mxu1 %v3395_v49  ;;  %v3486_v46 = vld [vmem:[%s3730_s5 + $0x80] ss:$8 sps:$4 sm:$0xff]   ;;  %v3491_v49 = vld [vmem:[%s3724_s4 + $0x90] ss:$8 sps:$4 sm:$0xff]  }
  0x63   : >> { %3052 = vmatprep.mubr.msk.bf16.mxu0 %vm546_vm0, %v3398_v50  ;;  %3061 = vmatprep.mubr.msk.bf16.mxu1 %vm546_vm0, %v3400_v51  ;;  %v3492_v50 = vld [vmem:[%s3730_s5 + $0x90] ss:$8 sps:$4 sm:$0xff]   ;;  %v3493_v51 = vld [vmem:[%s3724_s4 + $0xa4] ss:$8 sps:$4 sm:$0xff]  }
  0x64   : >> { %1079 = vmatpush1.bf16.msra.mxu1 %v3413_v52  ;;  %1607 = vmatpush1.bf16.msra.mxu0 %v3414_v53  ;;  %v3495_v52 = vld [vmem:[%s3730_s5 + $0xa4] ss:$8 sps:$4 sm:$0xff]   ;;  %v3497_v53 = vld [vmem:[%s3724_s4 + $0xa0] ss:$8 sps:$4 sm:$0xff]  }
  0x65   : >> { %1080 = vmatprep.subr.bf16.mxu1 %v3557_v2  ;;  %1608 = vmatprep.subr.bf16.mxu0 %v3557_v2 }
  0x68   : >> { %1081 = vmatpush1.bf16.msra.mxu1 %v3419_v55  ;;  %1609 = vmatpush1.bf16.msra.mxu0 %v3422_v56  ;;  %v3499_v55 = vld [vmem:[%s3724_s4 + $0xb4] ss:$8 sps:$4 sm:$0xff]  }
  0x69   : >> { %1082 = vmatprep.subr.bf16.mxu1 %v3557_v2  ;;  %1610 = vmatprep.subr.bf16.mxu0 %v3557_v2  ;;  %v3501_v56 = vld [vmem:[%s3730_s5 + $0xb4] ss:$8 sps:$4 sm:$0xff]  }
  0x6a   : >> { %673 = vmatmul.mubr.bf16.gmra.mrb[20].mxu0 %v3403_v54  ;;  %743 = vmatmul.mubr.bf16.gmra.mrb[20].mxu1 %v3404_v57  ;;  %v3498_v54 = vld [vmem:[%s3730_s5 + $0xa0] ss:$8 sps:$4 sm:$0xff]   ;;  %v3503_v57 = vld [vmem:[%s3724_s4 + $0xb0] ss:$8 sps:$4 sm:$0xff]  }
  0x6b   : >> { %3053 = vmatprep.mubr.msk.bf16.mxu0 %vm546_vm0, %v3407_v58  ;;  %3062 = vmatprep.mubr.msk.bf16.mxu1 %vm546_vm0, %v3409_v59  ;;  %v3504_v58 = vld [vmem:[%s3730_s5 + $0xb0] ss:$8 sps:$4 sm:$0xff]   ;;  %v3505_v59 = vld [vmem:[%s3724_s4 + $0xc4] ss:$8 sps:$4 sm:$0xff]  }
  0x6c   : >> { %1083 = vmatpush1.bf16.msra.mxu1 %v3423_v60  ;;  %1611 = vmatpush1.bf16.msra.mxu0 %v3428_v61  ;;  %v3507_v60 = vld [vmem:[%s3730_s5 + $0xc4] ss:$8 sps:$4 sm:$0xff]   ;;  %v3509_v61 = vld [vmem:[%s3724_s4 + $0xc0] ss:$8 sps:$4 sm:$0xff]  }
  0x6d   : >> { %1084 = vmatprep.subr.bf16.mxu1 %v3557_v2  ;;  %1612 = vmatprep.subr.bf16.mxu0 %v3557_v2  ;;  %v3424_v2 = vld [vmem:[%s3630_s10 + $0x84] ss:$8 sps:$4 sm:$0xff]   ;;  %s3224_s10 = sshll.u32 %s3555_s24, 6  ;;  %s178_s24 = sadd.s32 1, %s3555_s24  }
  0x6e   : >> { %p175_p4 = scmp.ge.s32.totalorder %s178_s24, 16  }
  0x70   : >> { %1085 = vmatpush1.bf16.msra.mxu1 %v3431_v62  ;;  %1613 = vmatpush1.bf16.msra.mxu0 %v3432_v63  ;;  %v3510_v62 = vld [vmem:[%s3730_s5 + $0xc0] ss:$8 sps:$4 sm:$0xff]   ;;  %v3511_v63 = vld [vmem:[%s3724_s4 + $0xd4] ss:$8 sps:$4 sm:$0xff]  }
  0x72   : >> { %681 = vmatmul.mubr.bf16.gmra.mrb[24].mxu0 %v3411_v1  ;;  %751 = vmatmul.mubr.bf16.gmra.mrb[24].mxu1 %v3412_v3  ;;  %v3513_v1 = vld [vmem:[%s3730_s5 + $0xd4] ss:$8 sps:$4 sm:$0xff]   ;;  %v3515_v3 = vld [vmem:[%s3724_s4 + $0xd0] ss:$8 sps:$4 sm:$0xff]  }
  0x73   : >> { %3054 = vmatprep.mubr.msk.bf16.mxu0 %vm546_vm0, %v3415_v4  ;;  %3063 = vmatprep.mubr.msk.bf16.mxu1 %vm546_vm0, %v3417_v5  ;;  %v3516_v4 = vld [vmem:[%s3730_s5 + $0xd0] ss:$8 sps:$4 sm:$0xff]   ;;  %v3517_v5 = vld [vmem:[%s3724_s4 + $0xe4] ss:$8 sps:$4 sm:$0xff]  }
  0x7a   : >> { %689 = vmatmul.mubr.bf16.gmra.mrb[28].mxu0 %v3420_v6  ;;  %759 = vmatmul.mubr.bf16.gmra.mrb[28].mxu1 %v3421_v7  ;;  %v3519_v6 = vld [vmem:[%s3730_s5 + $0xe4] ss:$8 sps:$4 sm:$0xff]   ;;  %v3521_v7 = vld [vmem:[%s3724_s4 + $0xe0] ss:$8 sps:$4 sm:$0xff]  }
  0x7b   : >> { %3055 = vmatprep.mubr.msk.bf16.mxu0 %vm546_vm0, %v3424_v2  ;;  %3064 = vmatprep.mubr.msk.bf16.mxu1 %vm546_vm0, %v3426_v8  ;;  %v3522_v2 = vld [vmem:[%s3730_s5 + $0xe0] ss:$8 sps:$4 sm:$0xff]   ;;  %v3523_v8 = vld [vmem:[%s3724_s4 + $0xf4] ss:$8 sps:$4 sm:$0xff]  }
  0x82   : >> { %697 = vmatmul.mubr.bf16.gmra.mrb[32].mxu0 %v3429_v9  ;;  %767 = vmatmul.mubr.bf16.gmra.mrb[32].mxu1 %v3430_v10  ;;  %v3525_v9 = vld [vmem:[%s3730_s5 + $0xf4] ss:$8 sps:$4 sm:$0xff]   ;;  %v3527_v10 = vld [vmem:[%s3724_s4 + $0xf0] ss:$8 sps:$4 sm:$0xff]  }
  0x83   : >> { %3113 = vmatprep.mubr.msk.bf16.mxu1 %vm546_vm0, %v3435_v11  ;;  %3205 = vmatprep.mubr.msk.bf16.mxu0 %vm546_vm0, %v3438_v12  ;;  %v3528_v11 = vld [vmem:[%s3730_s5 + $0xf0] ss:$8 sps:$4 sm:$0xff]   ;;  %v3529_v12 = vld [vmem:[%s3724_s4 + $0x104] ss:$8 sps:$4 sm:$0xff]  }
  0x8a   : >> { %1095 = vmatmul.mubr.bf16.vlgmr.msra.gmra.mrb[36].mxu1 %v3433_v13  ;;  %1623 = vmatmul.mubr.bf16.vlgmr.msra.gmra.mrb[36].mxu0 %v3436_v14  ;;  %v3531_v13 = vld [vmem:[%s3730_s5 + $0x104] ss:$8 sps:$4 sm:$0xff]   ;;  %v3533_v14 = vld [vmem:[%s3724_s4 + $0x100] ss:$8 sps:$4 sm:$0xff]  }
  0x8b   : >> { %3114 = vmatprep.mubr.msk.bf16.mxu1 %vm546_vm0, %v3439_v15  ;;  %3206 = vmatprep.mubr.msk.bf16.mxu0 %vm546_vm0, %v3441_v16  ;;  %v3534_v15 = vld [vmem:[%s3730_s5 + $0x100] ss:$8 sps:$4 sm:$0xff]   ;;  %v3535_v16 = vld [vmem:[%s3724_s4 + $0x114] ss:$8 sps:$4 sm:$0xff]  }
  0x92   : >> { %1103 = vmatmul.mubr.bf16.gmra.mrb[40].mxu1 %v3443_v17  ;;  %1631 = vmatmul.mubr.bf16.gmra.mrb[40].mxu0 %v3444_v18  ;;  %v3537_v17 = vld [vmem:[%s3730_s5 + $0x114] ss:$8 sps:$4 sm:$0xff]   ;;  %v3539_v18 = vld [vmem:[%s3724_s4 + $0x110] ss:$8 sps:$4 sm:$0xff]   ;;  %s4073_s4 = scalar_lea.vmem %s3595_s20, %s3224_s10 }
  0x93   : >> { %3115 = vmatprep.mubr.msk.bf16.mxu1 %vm546_vm0, %v3445_v19  ;;  %3207 = vmatprep.mubr.msk.bf16.mxu0 %vm546_vm0, %v3447_v20  ;;  %v3540_v19 = vld [vmem:[%s3730_s5 + $0x110] ss:$8 sps:$4 sm:$0xff]  }
  0x9a   : >> { %1111 = vmatmul.mubr.bf16.gmra.mrb[44].mxu1 %v3449_v21  ;;  %1639 = vmatmul.mubr.bf16.gmra.mrb[44].mxu0 %v3450_v22 }
  0x9b   : >> { %3116 = vmatprep.mubr.msk.bf16.mxu1 %vm546_vm0, %v3451_v23  ;;  %3208 = vmatprep.mubr.msk.bf16.mxu0 %vm546_vm0, %v3453_v24 }
  0xa2   : >> { %1119 = vmatmul.mubr.bf16.gmra.mrb[48].mxu1 %v3455_v25  ;;  %1647 = vmatmul.mubr.bf16.gmra.mrb[48].mxu0 %v3456_v26 }
  0xa3   : >> { %3117 = vmatprep.mubr.msk.bf16.mxu1 %vm546_vm0, %v3457_v27  ;;  %3209 = vmatprep.mubr.msk.bf16.mxu0 %vm546_vm0, %v3459_v28 }
  0xaa   : >> { %1127 = vmatmul.mubr.bf16.gmra.mrb[52].mxu1 %v3461_v29  ;;  %1655 = vmatmul.mubr.bf16.gmra.mrb[52].mxu0 %v3462_v30 }
  0xab   : >> { %3118 = vmatprep.mubr.msk.bf16.mxu1 %vm546_vm0, %v3463_v31  ;;  %3210 = vmatprep.mubr.msk.bf16.mxu0 %vm546_vm0, %v3465_v32 }
  0xb2   : >> { %1134 = vmatmul.mubr.bf16.gmra.mrb[56].mxu1 %v3467_v33  ;;  %1662 = vmatmul.mubr.bf16.gmra.mrb[56].mxu0 %v3468_v34 }
  0xb3   : >> { %3119 = vmatprep.mubr.msk.bf16.mxu1 %vm546_vm0, %v3469_v35  ;;  %3211 = vmatprep.mubr.msk.bf16.mxu0 %vm546_vm0, %v3471_v36 }
  0xba   : >> { %1142 = vmatmul.mubr.bf16.gmra.mrb[60].mxu1 %v3473_v37  ;;  %1670 = vmatmul.mubr.bf16.gmra.mrb[60].mxu0 %v3474_v38 }
  0xbb   : >> { %3120 = vmatprep.mubr.msk.bf16.mxu1 %vm546_vm0, %v3475_v39  ;;  %3212 = vmatprep.mubr.msk.bf16.mxu0 %vm546_vm0, %v3477_v40 }
  0xc2   : >> { %1150 = vmatmul.mubr.bf16.gmra.mrb[64].mxu1 %v3479_v41  ;;  %1678 = vmatmul.mubr.bf16.gmra.mrb[64].mxu0 %v3480_v42 }
  0xc3   : >> { %3121 = vmatprep.mubr.msk.bf16.mxu1 %vm546_vm0, %v3481_v43  ;;  %3213 = vmatprep.mubr.msk.bf16.mxu0 %vm546_vm0, %v3483_v44 }
  0xca   : >> { %1158 = vmatmul.mubr.bf16.gmra.mrb[68].mxu1 %v3485_v45  ;;  %1686 = vmatmul.mubr.bf16.gmra.mrb[68].mxu0 %v3486_v46 }
  0xcb   : >> { %3122 = vmatprep.mubr.msk.bf16.mxu1 %vm546_vm0, %v3487_v47  ;;  %3214 = vmatprep.mubr.msk.bf16.mxu0 %vm546_vm0, %v3489_v48 }
  0xd2   : >> { %1165 = vmatmul.mubr.bf16.gmra.mrb[72].mxu1 %v3491_v49  ;;  %1693 = vmatmul.mubr.bf16.gmra.mrb[72].mxu0 %v3492_v50 }
  0xd3   : >> { %3123 = vmatprep.mubr.msk.bf16.mxu1 %vm546_vm0, %v3493_v51  ;;  %3215 = vmatprep.mubr.msk.bf16.mxu0 %vm546_vm0, %v3495_v52 }
  0xda   : >> { %1173 = vmatmul.mubr.bf16.gmra.mrb[76].mxu1 %v3497_v53  ;;  %1701 = vmatmul.mubr.bf16.gmra.mrb[76].mxu0 %v3498_v54 }
  0xdb   : >> { %3124 = vmatprep.mubr.msk.bf16.mxu1 %vm546_vm0, %v3499_v55  ;;  %3216 = vmatprep.mubr.msk.bf16.mxu0 %vm546_vm0, %v3501_v56 }
  0xe2   : >> { %1181 = vmatmul.mubr.bf16.gmra.mrb[80].mxu1 %v3503_v57  ;;  %1709 = vmatmul.mubr.bf16.gmra.mrb[80].mxu0 %v3504_v58 }
  0xe3   : >> { %3125 = vmatprep.mubr.msk.bf16.mxu1 %vm546_vm0, %v3505_v59  ;;  %3217 = vmatprep.mubr.msk.bf16.mxu0 %vm546_vm0, %v3507_v60 }
  0xea   : >> { %1189 = vmatmul.mubr.bf16.gmra.mrb[84].mxu1 %v3509_v61  ;;  %1717 = vmatmul.mubr.bf16.gmra.mrb[84].mxu0 %v3510_v62 }
  0xeb   : >> { %3126 = vmatprep.mubr.msk.bf16.mxu1 %vm546_vm0, %v3511_v63  ;;  %3218 = vmatprep.mubr.msk.bf16.mxu0 %vm546_vm0, %v3513_v1 }
  0xf2   : >> { %1197 = vmatmul.mubr.bf16.gmra.mrb[88].mxu1 %v3515_v3  ;;  %1725 = vmatmul.mubr.bf16.gmra.mrb[88].mxu0 %v3516_v4 }
  0xf3   : >> { %3127 = vmatprep.mubr.msk.bf16.mxu1 %vm546_vm0, %v3517_v5  ;;  %3219 = vmatprep.mubr.msk.bf16.mxu0 %vm546_vm0, %v3519_v6 }
  0xfa   : >> { %1204 = vmatmul.mubr.bf16.gmra.mrb[92].mxu1 %v3521_v7  ;;  %1732 = vmatmul.mubr.bf16.gmra.mrb[92].mxu0 %v3522_v2 }
  0xfb   : >> { %3128 = vmatprep.mubr.msk.bf16.mxu1 %vm546_vm0, %v3523_v8  ;;  %3220 = vmatprep.mubr.msk.bf16.mxu0 %vm546_vm0, %v3525_v9 }
 0x102   : >> { %1212 = vmatmul.mubr.bf16.gmra.mrb[96].mxu1 %v3527_v10  ;;  %1740 = vmatmul.mubr.bf16.gmra.mrb[96].mxu0 %v3528_v11 }
 0x103   : >> { %3129 = vmatprep.mubr.msk.bf16.mxu1 %vm546_vm0, %v3529_v12  ;;  %3221 = vmatprep.mubr.msk.bf16.mxu0 %vm546_vm0, %v3531_v13 }
 0x10a   : >> { %1220 = vmatmul.mubr.bf16.gmra.mrb[100].mxu1 %v3533_v14  ;;  %1748 = vmatmul.mubr.bf16.gmra.mrb[100].mxu0 %v3534_v15 }
 0x10b   : >> { %3130 = vmatprep.mubr.msk.bf16.mxu1 %vm546_vm0, %v3535_v16  ;;  %3222 = vmatprep.mubr.msk.bf16.mxu0 %vm546_vm0, %v3537_v17 }
 0x112   : >> { %1228 = vmatmul.mubr.bf16.gmra.mrb[104].mxu1 %v3539_v18  ;;  %1756 = vmatmul.mubr.bf16.gmra.mrb[104].mxu0 %v3540_v19 }
 0x115   : >> { %v3940_v20 = vpop.f32.mrb[0].mxu0  ;;  %v3942_v21 = vpop.f32.mrb[0].mxu1 }
 0x116   : >> { %v637_v22 = vpop.f32.mrb[1].mxu0  ;;  %v707_v23 = vpop.f32.mrb[1].mxu1 }
 0x117   : >> { %v3944_v24 = vpop.f32.mrb[2].mxu0  ;;  %v3946_v25 = vpop.f32.mrb[2].mxu1 }
 0x118   : >> { %v640_v26 = vpop.f32.mrb[3].mxu0  ;;  %v710_v27 = vpop.f32.mrb[3].mxu1 }
 0x11d   : >> { %v3948_v28 = vpop.f32.mrb[4].mxu0  ;;  %v3950_v29 = vpop.f32.mrb[4].mxu1 }
 0x11e   : >> { %v645_v30 = vpop.f32.mrb[5].mxu0  ;;  %v715_v31 = vpop.f32.mrb[5].mxu1 }
 0x11f   : >> { %v3952_v32 = vpop.f32.mrb[6].mxu0  ;;  %v3954_v33 = vpop.f32.mrb[6].mxu1 }
 0x120   : >> { %v648_v34 = vpop.f32.mrb[7].mxu0  ;;  %v718_v35 = vpop.f32.mrb[7].mxu1 }
 0x125   : >> { %v3956_v36 = vpop.f32.mrb[8].mxu0  ;;  %v3958_v37 = vpop.f32.mrb[8].mxu1 }
 0x126   : >> { %v653_v38 = vpop.f32.mrb[9].mxu0  ;;  %v723_v39 = vpop.f32.mrb[9].mxu1 }
 0x127   : >> { %v3960_v40 = vpop.f32.mrb[10].mxu0  ;;  %v3962_v41 = vpop.f32.mrb[10].mxu1 }
 0x128   : >> { %v656_v42 = vpop.f32.mrb[11].mxu0  ;;  %v726_v43 = vpop.f32.mrb[11].mxu1 }
 0x12d   : >> { %v3964_v44 = vpop.f32.mrb[12].mxu0  ;;  %v3966_v45 = vpop.f32.mrb[12].mxu1 }
 0x12e   : >> { %v661_v46 = vpop.f32.mrb[13].mxu0  ;;  %v731_v47 = vpop.f32.mrb[13].mxu1 }
 0x12f   : >> { %v3968_v48 = vpop.f32.mrb[14].mxu0  ;;  %v3970_v49 = vpop.f32.mrb[14].mxu1 }
 0x130   : >> { %v664_v50 = vpop.f32.mrb[15].mxu0  ;;  %v734_v51 = vpop.f32.mrb[15].mxu1 }
 0x135   : >> { %v667_v52 = vpop.f32.mrb[16].mxu0  ;;  %v737_v53 = vpop.f32.mrb[16].mxu1 }
 0x136   : >> { %v668_v54 = vpop.f32.mrb[17].mxu0  ;;  %v738_v55 = vpop.f32.mrb[17].mxu1 }
 0x137   : >> { %v3972_v56 = vpop.f32.mrb[18].mxu0  ;;  %v3974_v57 = vpop.f32.mrb[18].mxu1 }
 0x138   : >> { %v671_v58 = vpop.f32.mrb[19].mxu0  ;;  %v741_v59 = vpop.f32.mrb[19].mxu1 }
 0x13d   : >> { %v3976_v60 = vpop.f32.mrb[20].mxu0  ;;  %v3978_v61 = vpop.f32.mrb[20].mxu1 }
 0x13e   : >> { %v676_v62 = vpop.f32.mrb[21].mxu0  ;;  %v746_v63 = vpop.f32.mrb[21].mxu1 }
 0x13f   : >> { %v3980_v1 = vpop.f32.mrb[22].mxu0  ;;  %v3982_v3 = vpop.f32.mrb[22].mxu1 }
 0x140   : >> { %v679_v4 = vpop.f32.mrb[23].mxu0  ;;  %v749_v5 = vpop.f32.mrb[23].mxu1 }
 0x145   : >> { %v3984_v6 = vpop.f32.mrb[24].mxu0  ;;  %v3986_v7 = vpop.f32.mrb[24].mxu1 }
 0x146   : >> { %v684_v2 = vpop.f32.mrb[25].mxu0  ;;  %v754_v8 = vpop.f32.mrb[25].mxu1 }
 0x147   : >> { %v3988_v9 = vpop.f32.mrb[26].mxu0  ;;  %v3990_v10 = vpop.f32.mrb[26].mxu1 }
 0x148   : >> { %v687_v11 = vpop.f32.mrb[27].mxu0  ;;  %v757_v12 = vpop.f32.mrb[27].mxu1 }
 0x14d   : >> { %v3992_v13 = vpop.f32.mrb[28].mxu0  ;;  %v3994_v14 = vpop.f32.mrb[28].mxu1 }
 0x14e   : >> { %v692_v15 = vpop.f32.mrb[29].mxu0  ;;  %v762_v16 = vpop.f32.mrb[29].mxu1 }
 0x14f   : >> { %v3996_v17 = vpop.f32.mrb[30].mxu0  ;;  %v3998_v18 = vpop.f32.mrb[30].mxu1 }
 0x150   : >> { %v695_v19 = vpop.f32.mrb[31].mxu0  ;;  %v765_v22 = vpop.f32.mrb[31].mxu1 }
 0x155   : >> { %v4000_v23 = vpop.f32.mrb[32].mxu0  ;;  %v4002_v26 = vpop.f32.mrb[32].mxu1 }
 0x156   : >> { %v700_v27 = vpop.f32.mrb[33].mxu0  ;;  %v770_v30 = vpop.f32.mrb[33].mxu1 }
 0x157   : >> { %v701_v31 = vpop.f32.mrb[34].mxu0  ;;  %v771_v34 = vpop.f32.mrb[34].mxu1 }
 0x158   : >> { %v702_v35 = vpop.f32.mrb[35].mxu0  ;;  %v772_v38 = vpop.f32.mrb[35].mxu1 }
 0x15d   : >> { %v1096_v39 = vpop.f32.mrb[36].mxu1  ;;  %v1624_v42 = vpop.f32.mrb[36].mxu0 }
 0x15e   : >> { %v1097_v43 = vadd.f32 %v1096_v39, %v3940_v20  ;;  %v1098_v46 = vpop.f32.mrb[37].mxu1  ;;  %v1626_v47 = vpop.f32.mrb[37].mxu0 }
 0x15f   : >> { %v1099_v50 = vpop.f32.mrb[38].mxu1  ;;  %v1627_v51 = vpop.f32.mrb[38].mxu0 }
 0x160   : >> { %v1763_v52 = vadd.f32 %v1624_v42, %v1097_v43  ;;  %v1100_v53 = vadd.f32 %v1099_v50, %v3944_v24  ;;  %v1101_v54 = vpop.f32.mrb[39].mxu1  ;;  %v1629_v55 = vpop.f32.mrb[39].mxu0 }
 0x162   : >> { %v1764_v58 = vadd.f32 %v1627_v51, %v1100_v53 }
 0x165   : >> { %v1104_v59 = vpop.f32.mrb[40].mxu1  ;;  %v1632_v62 = vpop.f32.mrb[40].mxu0 }
 0x166   : >> { %v1105_v63 = vadd.f32 %v1104_v59, %v3948_v28  ;;  %v1106_v4 = vpop.f32.mrb[41].mxu1  ;;  %v1634_v5 = vpop.f32.mrb[41].mxu0 }
 0x167   : >> { %v1107_v2 = vpop.f32.mrb[42].mxu1  ;;  %v1635_v8 = vpop.f32.mrb[42].mxu0 }
 0x168   : >> { %v1765_v11 = vadd.f32 %v1632_v62, %v1105_v63  ;;  %v1108_v20 = vadd.f32 %v1107_v2, %v3952_v32  ;;  %v1109_v12 = vpop.f32.mrb[43].mxu1  ;;  %v1637_v15 = vpop.f32.mrb[43].mxu0  ;;  %v3558_v2 = vmov 1983009808  }
 0x16a   : >> { %v1766_v16 = vadd.f32 %v1635_v8, %v1108_v20  ;;  %v1893_v8 = vunpack.c.l.s4 %v3558_v2  ;;  %v1895_v20 = vlaneseq }
 0x16d   : >> { %v1112_v19 = vpop.f32.mrb[44].mxu1  ;;  %v1640_v22 = vpop.f32.mrb[44].mxu0 }
 0x16e   : >> { %v1113_v24 = vadd.f32 %v1112_v19, %v3956_v36  ;;  %v1114_v27 = vpop.f32.mrb[45].mxu1  ;;  %v1642_v30 = vpop.f32.mrb[45].mxu0 }
 0x16f   : >> { %v1115_v31 = vpop.f32.mrb[46].mxu1  ;;  %v1643_v34 = vpop.f32.mrb[46].mxu0  ;;  %v1894_v27 = vunpack.c.0.s8 %v1893_v8  ;;  %v1896_v30 = vshrl.u32 %v1895_v20, 7 }
 0x170   : >> { %v1767_v35 = vadd.f32 %v1640_v22, %v1113_v24  ;;  %v1116_v28 = vadd.f32 %v1115_v31, %v3960_v40  ;;  %v1117_v38 = vpop.f32.mrb[47].mxu1  ;;  %v1645_v39 = vpop.f32.mrb[47].mxu0  ;;  %v1801_v24 = vadd.f32 %v3590_v0, %v1763_v52  ;;  %v4023_v52 = vadd.f32 %v3590_v0, %v1766_v16 }
 0x172   : >> { %v1768_v42 = vadd.f32 %v1643_v34, %v1116_v28  ;;  %v1833_v38 = vmax.f32 %v1801_v24, 0.0 }
 0x175   : >> { %v1120_v43 = vpop.f32.mrb[48].mxu1  ;;  %v1648_v46 = vpop.f32.mrb[48].mxu0 }
 0x176   : >> { %v1121_v32 = vadd.f32 %v1120_v43, %v3964_v44  ;;  %v1122_v47 = vpop.f32.mrb[49].mxu1  ;;  %v1650_v50 = vpop.f32.mrb[49].mxu0  ;;  %v4017_v43 = vsub.s32 %v1894_v27, %v1896_v30 }
 0x177   : >> { %v1123_v51 = vpop.f32.mrb[50].mxu1  ;;  %v1651_v53 = vpop.f32.mrb[50].mxu0  ;;  %v1803_v50 = vadd.f32 %v3590_v0, %v1765_v11 }
 0x178   : >> { %v1769_v54 = vadd.f32 %v1648_v46, %v1121_v32  ;;  %v1124_v36 = vadd.f32 %v1123_v51, %v3968_v48  ;;  %v1125_v55 = vpop.f32.mrb[51].mxu1  ;;  %v1653_v59 = vpop.f32.mrb[51].mxu0 }
 0x179   : >> { %v4025_v55 = vsub.s32 0, %v1896_v30  ;;  %v1835_v20 = vmax.f32 %v1803_v50, 0.0 }
 0x17a   : >> { %v4012_v62 = vadd.f32 %v1651_v53, %v1124_v36  ;;  %v4035_v11 = vadd.f32 %v3590_v0, %v1769_v54 }
 0x17d   : >> { %v1128_v63 = vpop.f32.mrb[52].mxu1  ;;  %v1656_v40 = vpop.f32.mrb[52].mxu0 }
 0x17e   : >> { %v1129_v4 = vpop.f32.mrb[53].mxu1  ;;  %v1657_v5 = vpop.f32.mrb[53].mxu0 }
 0x17f   : >> { %v1130_v12 = vpop.f32.mrb[54].mxu1  ;;  %v1658_v44 = vpop.f32.mrb[54].mxu0 }
 0x180   : >> { %v1131_v15 = vadd.f32 %v1130_v12, %v3972_v56  ;;  %v1132_v19 = vpop.f32.mrb[55].mxu1  ;;  %v1660_v22 = vpop.f32.mrb[55].mxu0  ;;  %v1802_v56 = vadd.f32 %v3590_v0, %v1764_v58  ;;  %v4032_v58 = vadd.f32 %v3590_v0, %v1768_v42  ;;  %v1836_v12 = vmax.f32 %v4023_v52, 0.0 }
 0x181   : >> { %v1839_v22 = vmax.f32 %v4035_v11, 0.0 }
 0x182   : >> { %v1771_v48 = vadd.f32 %v1658_v44, %v1131_v15  ;;  %v1838_v19 = vmax.f32 %v4032_v58, 0.0 }
 0x184   : >> { %v1809_v31 = vadd.f32 %v3590_v0, %v1771_v48 }
 0x185   : >> { %v1135_v34 = vpop.f32.mrb[56].mxu1  ;;  %v1663_v28 = vpop.f32.mrb[56].mxu0 }
 0x186   : >> { %v1841_v39 = vmax.f32 %v1809_v31, 0.0  ;;  %v1136_v46 = vadd.f32 %v1135_v34, %v3976_v60  ;;  %v1137_v32 = vpop.f32.mrb[57].mxu1  ;;  %v1665_v47 = vpop.f32.mrb[57].mxu0  ;;  %v4029_v60 = vadd.f32 %v3590_v0, %v1767_v35 }
 0x187   : >> { %v1138_v51 = vpop.f32.mrb[58].mxu1  ;;  %v1666_v53 = vpop.f32.mrb[58].mxu0 }
 0x188   : >> { %v1865_v36 = vmax.f32 %v1833_v38, %v1841_v39  ;;  %v1772_v59 = vadd.f32 %v1663_v28, %v1136_v46  ;;  %v1139_v63 = vadd.f32 %v1138_v51, %v3980_v1  ;;  %v1140_v40 = vpop.f32.mrb[59].mxu1  ;;  %v1668_v4 = vpop.f32.mrb[59].mxu0  ;;  %v1834_v1 = vmax.f32 %v1802_v56, 0.0 }
 0x189   : >> { %v1837_v54 = vmax.f32 %v4029_v60, 0.0  ;;  %v4047_v46 = vadd.f32 %v3590_v0, %v4012_v62 }
 0x18a   : >> { %v1891_v16 = vcombine.high %v1865_v36, %v1865_v36  ;;  %v1898_v5 = vrot.slane %v1865_v36, %v4017_v43  ;;  %v1810_v2 = vadd.f32 %v3590_v0, %v1772_v59  ;;  %v1773_v8 = vadd.f32 %v1666_v53, %v1139_v63 }
 0x18c   : >> { %v1905_v35 = vrot.slane %v1891_v16, %v4017_v43  ;;  %v1906_v42 = vcombine.high %v1898_v5, %v1898_v5  ;;  %v3225_v44 = vrot.slane %v1898_v5, 9  ;;  %v1842_v15 = vmax.f32 %v1810_v2, 0.0 }
 0x18d   : >> { %v1811_v24 = vadd.f32 %v3590_v0, %v1773_v8  ;;  %v1143_v48 = vpop.f32.mrb[60].mxu1  ;;  %v1671_v27 = vpop.f32.mrb[60].mxu0 }
 0x18e   : >> { %v1907_v30 = vcombine.high %v1905_v35, %v1905_v35  ;;  %v3226_v31 = vrot.slane %v1906_v42, 9  ;;  %v3227_v34 = vrot.slane %v1905_v35, 9  ;;  %v2155_v28 = vmax.f32 %v1898_v5, %v3225_v44  ;;  %v1145_v38 = vpop.f32.mrb[61].mxu1  ;;  %v1673_v39 = vpop.f32.mrb[61].mxu0 }
 0x18f   : >> { %v1866_v32 = vmax.f32 %v1834_v1, %v1842_v15  ;;  %v1843_v47 = vmax.f32 %v1811_v24, 0.0  ;;  %v1144_v56 = vadd.f32 %v1143_v48, %v3984_v6  ;;  %v1146_v50 = vpop.f32.mrb[62].mxu1  ;;  %v4050_v51 = vpop.f32.mrb[62].mxu0 }
 0x190   : >> { %v3228_v53 = vrot.slane %v1907_v30, 9  ;;  %v2156_v36 = vmax.f32 %v1906_v42, %v3226_v31  ;;  %v2157_v59 = vmax.f32 %v1905_v35, %v3227_v34  ;;  %v2222_v63 = vrot.slane %v2155_v28, %v4025_v55  ;;  %v1148_v40 = vpop.f32.mrb[63].mxu1  ;;  %v1676_v4 = vpop.f32.mrb[63].mxu0 }
 0x191   : >> { %v1908_v16 = vcombine.high %v1866_v32, %v1866_v32  ;;  %v1915_v62 = vrot.slane %v1866_v32, %v4017_v43  ;;  %v1867_v5 = vmax.f32 %v1835_v20, %v1843_v47  ;;  %v1774_v2 = vadd.f32 %v1671_v27, %v1144_v56 }
 0x192   : >> { %v2158_v8 = vmax.f32 %v1907_v30, %v3228_v53  ;;  %v2226_v6 = vrot.slane %v2156_v36, %v4025_v55  ;;  %v2230_v1 = vrot.slane %v2157_v59, %v4025_v55  ;;  %v1147_v42 = vadd.f32 %v1146_v50, %v3988_v9 }
 0x193   : >> { %v1922_v35 = vrot.slane %v1908_v16, %v4017_v43  ;;  %v1923_v44 = vcombine.high %v1915_v62, %v1915_v62  ;;  %v3229_v15 = vrot.slane %v1915_v62, 9  ;;  %v1925_v24 = vcombine.high %v1867_v5, %v1867_v5 }
 0x194   : >> { %v2234_v48 = vrot.slane %v2158_v8, %v4025_v55  ;;  %v2348_v31 = vsel %vm2347_vm1, %v2226_v6, %v2222_v63  ;;  %v1932_v20 = vrot.slane %v1867_v5, %v4017_v43  ;;  %v1812_v27 = vadd.f32 %v3590_v0, %v1774_v2 }
 0x195   : >> { %v2350_v30 = vsel %vm2349_vm2, %v2230_v1, %v2348_v31  ;;  %v1924_v34 = vcombine.high %v1922_v35, %v1922_v35  ;;  %v3230_v28 = vrot.slane %v1923_v44, 9  ;;  %v3231_v38 = vrot.slane %v1922_v35, 9  ;;  %v1151_v9 = vpop.f32.mrb[64].mxu1  ;;  %v1679_v39 = vpop.f32.mrb[64].mxu0 }
 0x196   : >> { %v2159_v32 = vmax.f32 %v1915_v62, %v3229_v15  ;;  %v2352_v47 = vsel %vm2351_vm3, %v2234_v48, %v2350_v30  ;;  %v1939_v56 = vrot.slane %v1925_v24, %v4017_v43  ;;  %v1940_v50 = vcombine.high %v1932_v20, %v1932_v20  ;;  %v1153_v53 = vpop.f32.mrb[65].mxu1  ;;  %v1681_v36 = vpop.f32.mrb[65].mxu0 }
 0x197   : >> { %v3232_v59 = vrot.slane %v1924_v34, 9  ;;  %v2160_v63 = vmax.f32 %v1923_v44, %v3230_v28  ;;  %v2161_v40 = vmax.f32 %v1922_v35, %v3231_v38  ;;  %v3233_v4 = vrot.slane %v1932_v20, 9  ;;  %v1154_v16 = vpop.f32.mrb[66].mxu1  ;;  %v1682_v5 = vpop.f32.mrb[66].mxu0 }
 0x198   : >> { %v2238_v2 = vrot.slane %v2159_v32, %v4025_v55  ;;  %v1941_v8 = vcombine.high %v1939_v56, %v1939_v56  ;;  %v3234_v6 = vrot.slane %v1940_v50, 9  ;;  %v3235_v62 = vrot.slane %v1939_v56, 9  ;;  %v1156_v1 = vpop.f32.mrb[67].mxu1  ;;  %v1684_v15 = vpop.f32.mrb[67].mxu0 }
 0x199   : >> { %v2162_v48 = vmax.f32 %v1924_v34, %v3232_v59  ;;  %v2242_v24 = vrot.slane %v2160_v63, %v4025_v55  ;;  %v2246_v31 = vrot.slane %v2161_v40, %v4025_v55  ;;  %v2163_v30 = vmax.f32 %v1932_v20, %v3233_v4 }
 0x19a   : >> { %v2354_v35 = vsel %vm2353_vm4, %v2238_v2, %v2352_v47  ;;  %v3236_v44 = vrot.slane %v1941_v8, 9  ;;  %v2164_v28 = vmax.f32 %v1940_v50, %v3234_v6  ;;  %v2165_v38 = vmax.f32 %v1939_v56, %v3235_v62 }
 0x19b   : >> { %v2250_v53 = vrot.slane %v2162_v48, %v4025_v55  ;;  %v2356_v32 = vsel %vm2355_vm5, %v2242_v24, %v2354_v35  ;;  %v2254_v36 = vrot.slane %v2163_v30, %v4025_v55  ;;  %v1844_v34 = vmax.f32 %v1812_v27, 0.0 }
 0x19c   : >> { %v2358_v59 = vsel %vm2357_vm6, %v2246_v31, %v2356_v32  ;;  %v2166_v63 = vmax.f32 %v1941_v8, %v3236_v44  ;;  %v2258_v20 = vrot.slane %v2164_v28, %v4025_v55  ;;  %v2262_v47 = vrot.slane %v2165_v38, %v4025_v55 }
 0x19d   : >> { %v2360_v50 = vsel %vm2359_vm7, %v2250_v53, %v2358_v59  ;;  %v1868_v56 = vmax.f32 %v1836_v12, %v1844_v34  ;;  %v1775_v40 = vadd.f32 %v4050_v51, %v1147_v42  ;;  %v1152_v4 = vadd.f32 %v1151_v9, %v3992_v13  ;;  %v1159_v2 = vpop.f32.mrb[68].mxu1  ;;  %v1687_v6 = vpop.f32.mrb[68].mxu0 }
 0x19e   : >> { %2387 = vst.msk [vmem:[%s4073_s4] sm:$0xff] %vm546_vm0, %v2360_v50  ;;  %v2266_v27 = vrot.slane %v2166_v63, %v4025_v55  ;;  %v2361_v8 = vsel %vm2347_vm1, %v2258_v20, %v2254_v36  ;;  %v1155_v62 = vadd.f32 %v1154_v16, %v3996_v17  ;;  %v1160_v1 = vadd.f32 %v1159_v2, %v4000_v23  ;;  %v1161_v15 = vpop.f32.mrb[69].mxu1  ;;  %v1689_v48 = vpop.f32.mrb[69].mxu0 }
 0x19f   : >> { %v2362_v52 = vsel %vm2349_vm2, %v2262_v47, %v2361_v8  ;;  %v1942_v12 = vcombine.high %v1868_v56, %v1868_v56  ;;  %v1949_v51 = vrot.slane %v1868_v56, %v4017_v43  ;;  %v1813_v13 = vadd.f32 %v3590_v0, %v1775_v40  ;;  %v1162_v42 = vpop.f32.mrb[70].mxu1  ;;  %v1690_v9 = vpop.f32.mrb[70].mxu0 }
 0x1a0   : >> { %v1840_v24 = vmax.f32 %v4047_v46, 0.0  ;;  %v1776_v31 = vadd.f32 %v1679_v39, %v1152_v4  ;;  %v1777_v30 = vadd.f32 %v1682_v5, %v1155_v62  ;;  %v1778_v35 = vadd.f32 %v1687_v6, %v1160_v1  ;;  %v1163_v44 = vpop.f32.mrb[71].mxu1  ;;  %v1691_v17 = vpop.f32.mrb[71].mxu0 }
 0x1a1   : >> { %v1956_v23 = vrot.slane %v1942_v12, %v4017_v43  ;;  %v1957_v16 = vcombine.high %v1949_v51, %v1949_v51  ;;  %v3237_v28 = vrot.slane %v1949_v51, 9  ;;  %v1845_v38 = vmax.f32 %v1813_v13, 0.0 }
 0x1a2   : >> { %v2363_v53 = vsel %vm2351_vm3, %v2266_v27, %v2362_v52  ;;  %v1814_v32 = vadd.f32 %v3590_v0, %v1776_v31  ;;  %v1815_v36 = vadd.f32 %v3590_v0, %v1777_v30  ;;  %v4099_v34 = vadd.f32 %v3590_v0, %v1778_v35 }
 0x1a3   : >> { %v1958_v59 = vcombine.high %v1956_v23, %v1956_v23  ;;  %v3238_v39 = vrot.slane %v1957_v16, 9  ;;  %v3239_v5 = vrot.slane %v1956_v23, 9  ;;  %v2167_v63 = vmax.f32 %v1949_v51, %v3237_v28 }
 0x1a4   : >> { %v1869_v20 = vmax.f32 %v1837_v54, %v1845_v38  ;;  %v1846_v47 = vmax.f32 %v1814_v32, 0.0  ;;  %v1847_v50 = vmax.f32 %v1815_v36, 0.0  ;;  %v1848_v56 = vmax.f32 %v4099_v34, 0.0 }
 0x1a5   : >> { %v3240_v40 = vrot.slane %v1958_v59, 9  ;;  %v2168_v4 = vmax.f32 %v1957_v16, %v3238_v39  ;;  %v2169_v2 = vmax.f32 %v1956_v23, %v3239_v5  ;;  %v2270_v6 = vrot.slane %v2167_v63, %v4025_v55  ;;  %v4105_v27 = vpop.f32.mrb[72].mxu1  ;;  %v4107_v8 = vpop.f32.mrb[72].mxu0 }
 0x1a6   : >> { %v1959_v62 = vcombine.high %v1869_v20, %v1869_v20  ;;  %v1966_v1 = vrot.slane %v1869_v20, %v4017_v43  ;;  %v1870_v60 = vmax.f32 %v1838_v19, %v1846_v47  ;;  %v1871_v54 = vmax.f32 %v1839_v22, %v1847_v50  ;;  %v1168_v15 = vpop.f32.mrb[73].mxu1  ;;  %v1696_v48 = vpop.f32.mrb[73].mxu0 }
 0x1a7   : >> { %v2170_v52 = vmax.f32 %v1958_v59, %v3240_v40  ;;  %v2274_v12 = vrot.slane %v2168_v4, %v4025_v55  ;;  %v2278_v51 = vrot.slane %v2169_v2, %v4025_v55  ;;  %v2364_v13 = vsel %vm2353_vm4, %v2270_v6, %v2363_v53  ;;  %v4117_v42 = vpop.f32.mrb[74].mxu1  ;;  %v4119_v9 = vpop.f32.mrb[74].mxu0 }
 0x1a8   : >> { %v1973_v31 = vrot.slane %v1959_v62, %v4017_v43  ;;  %v1974_v58 = vcombine.high %v1966_v1, %v1966_v1  ;;  %v3241_v19 = vrot.slane %v1966_v1, 9  ;;  %v1976_v11 = vcombine.high %v1870_v60, %v1870_v60  ;;  %v1171_v22 = vpop.f32.mrb[75].mxu1  ;;  %v1699_v30 = vpop.f32.mrb[75].mxu0 }
 0x1a9   : >> { %v2282_v35 = vrot.slane %v2170_v52, %v4025_v55  ;;  %v2365_v44 = vsel %vm2355_vm5, %v2274_v12, %v2364_v13  ;;  %v1983_v17 = vrot.slane %v1870_v60, %v4017_v43  ;;  %v1993_v23 = vcombine.high %v1871_v54, %v1871_v54 }
 0x1aa   : >> { %v2366_v16 = vsel %vm2357_vm6, %v2278_v51, %v2365_v44  ;;  %v1975_v28 = vcombine.high %v1973_v31, %v1973_v31  ;;  %v3242_v38 = vrot.slane %v1974_v58, 9  ;;  %v3243_v53 = vrot.slane %v1973_v31, 9 }
 0x1ab   : >> { %v2367_v32 = vsel %vm2359_vm7, %v2282_v35, %v2366_v16  ;;  %v2171_v36 = vmax.f32 %v1966_v1, %v3241_v19  ;;  %v1990_v59 = vrot.slane %v1976_v11, %v4017_v43  ;;  %v1991_v39 = vcombine.high %v1983_v17, %v1983_v17 }
 0x1ac   : >> { %2388 = vst.msk [vmem:[%s4073_s4 + $0x8] sm:$0xff] %vm546_vm0, %v2367_v32  ;;  %v3244_v5 = vrot.slane %v1975_v28, 9  ;;  %v2172_v63 = vmax.f32 %v1974_v58, %v3242_v38  ;;  %v2173_v20 = vmax.f32 %v1973_v31, %v3243_v53  ;;  %v3245_v47 = vrot.slane %v1983_v17, 9 }
 0x1ad   : >> { %v2286_v50 = vrot.slane %v2171_v36, %v4025_v55  ;;  %v1992_v40 = vcombine.high %v1990_v59, %v1990_v59  ;;  %v3246_v4 = vrot.slane %v1991_v39, 9  ;;  %v3247_v2 = vrot.slane %v1990_v59, 9  ;;  %v4131_v6 = vpop.f32.mrb[76].mxu1  ;;  %v4133_v62 = vpop.f32.mrb[76].mxu0 }
 0x1ae   : >> { %v2174_v60 = vmax.f32 %v1975_v28, %v3244_v5  ;;  %v2290_v1 = vrot.slane %v2172_v63, %v4025_v55  ;;  %v2294_v15 = vrot.slane %v2173_v20, %v4025_v55  ;;  %v2175_v48 = vmax.f32 %v1983_v17, %v3245_v47  ;;  %v1176_v52 = vpop.f32.mrb[77].mxu1  ;;  %v1704_v12 = vpop.f32.mrb[77].mxu0 }
 0x1af   : >> { %v3248_v51 = vrot.slane %v1992_v40, 9  ;;  %v2176_v13 = vmax.f32 %v1991_v39, %v3246_v4  ;;  %v2177_v31 = vmax.f32 %v1990_v59, %v3247_v2  ;;  %v2000_v58 = vrot.slane %v1871_v54, %v4017_v43  ;;  %v4138_v19 = vpop.f32.mrb[78].mxu1  ;;  %v4140_v11 = vpop.f32.mrb[78].mxu0 }
 0x1b0   : >> { %v2298_v22 = vrot.slane %v2174_v60, %v4025_v55  ;;  %v2368_v30 = vsel %vm2347_vm1, %v2290_v1, %v2286_v50  ;;  %v2302_v35 = vrot.slane %v2175_v48, %v4025_v55  ;;  %v2007_v44 = vrot.slane %v1993_v23, %v4017_v43  ;;  %v1179_v17 = vpop.f32.mrb[79].mxu1  ;;  %v1707_v16 = vpop.f32.mrb[79].mxu0 }
 0x1b1   : >> { %v2369_v28 = vsel %vm2349_vm2, %v2294_v15, %v2368_v30  ;;  %v2178_v38 = vmax.f32 %v1992_v40, %v3248_v51  ;;  %v2306_v53 = vrot.slane %v2176_v13, %v4025_v55  ;;  %v2310_v54 = vrot.slane %v2177_v31, %v4025_v55 }
 0x1b2   : >> { %v2370_v32 = vsel %vm2351_vm3, %v2298_v22, %v2369_v28  ;;  %v2008_v36 = vcombine.high %v2000_v58, %v2000_v58  ;;  %v2009_v59 = vcombine.high %v2007_v44, %v2007_v44  ;;  %v3249_v39 = vrot.slane %v2000_v58, 9 }
 0x1b3   : >> { %v2314_v5 = vrot.slane %v2178_v38, %v4025_v55  ;;  %v2371_v63 = vsel %vm2353_vm4, %v2302_v35, %v2370_v32  ;;  %v3251_v20 = vrot.slane %v2007_v44, 9  ;;  %v1872_v23 = vmax.f32 %v1840_v24, %v1848_v56 }
 0x1b4   : >> { %v2372_v47 = vsel %vm2355_vm5, %v2306_v53, %v2371_v63  ;;  %v3250_v50 = vrot.slane %v2008_v36, 9  ;;  %v3252_v40 = vrot.slane %v2009_v59, 9  ;;  %v2179_v4 = vmax.f32 %v2000_v58, %v3249_v39 }
 0x1b5   : >> { %v2373_v2 = vsel %vm2357_vm6, %v2310_v54, %v2372_v47  ;;  %v2181_v60 = vmax.f32 %v2007_v44, %v3251_v20  ;;  %v2010_v1 = vcombine.high %v1872_v23, %v1872_v23  ;;  %v2017_v15 = vrot.slane %v1872_v23, %v4017_v43  ;;  %v1182_v48 = vpop.f32.mrb[80].mxu1  ;;  %v1710_v52 = vpop.f32.mrb[80].mxu0 }
 0x1b6   : >> { %v2374_v12 = vsel %vm2359_vm7, %v2314_v5, %v2373_v2  ;;  %v2180_v34 = vmax.f32 %v2008_v36, %v3250_v50  ;;  %v2182_v51 = vmax.f32 %v2009_v59, %v3252_v40  ;;  %v2318_v46 = vrot.slane %v2179_v4, %v4025_v55  ;;  %v1184_v24 = vpop.f32.mrb[81].mxu1  ;;  %v1712_v56 = vpop.f32.mrb[81].mxu0 }
 0x1b7   : >> { %2389 = vst.msk [vmem:[%s4073_s4 + $0x10] sm:$0xff] %vm546_vm0, %v2374_v12  ;;  %v2326_v13 = vrot.slane %v2181_v60, %v4025_v55  ;;  %v2024_v31 = vrot.slane %v2010_v1, %v4017_v43  ;;  %v2025_v58 = vcombine.high %v2017_v15, %v2017_v15  ;;  %v3253_v22 = vrot.slane %v2017_v15, 9  ;;  %v1185_v30 = vpop.f32.mrb[82].mxu1  ;;  %v1713_v35 = vpop.f32.mrb[82].mxu0 }
 0x1b8   : >> { %v2322_v44 = vrot.slane %v2180_v34, %v4025_v55  ;;  %v2330_v17 = vrot.slane %v2182_v51, %v4025_v55  ;;  %v1167_v16 = vadd.f32 %v4105_v27, %v3942_v21  ;;  %v1170_v28 = vadd.f32 %v4117_v42, %v3946_v25  ;;  %v1187_v38 = vpop.f32.mrb[83].mxu1  ;;  %v1715_v53 = vpop.f32.mrb[83].mxu0 }
 0x1b9   : >> { %v2026_v54 = vcombine.high %v2024_v31, %v2024_v31  ;;  %v3254_v32 = vrot.slane %v2025_v58, 9  ;;  %v3255_v36 = vrot.slane %v2024_v31, 9  ;;  %v2183_v59 = vmax.f32 %v2017_v15, %v3253_v22 }
 0x1ba   : >> { %v2375_v39 = vsel %vm2347_vm1, %v2322_v44, %v2318_v46  ;;  %v1779_v5 = vadd.f32 %v4107_v8, %v1167_v16  ;;  %v1780_v63 = vadd.f32 %v4119_v9, %v1170_v28  ;;  %v1175_v20 = vadd.f32 %v4131_v6, %v3950_v29 }
 0x1bb   : >> { %v2376_v21 = vsel %vm2349_vm2, %v2326_v13, %v2375_v39  ;;  %v3256_v27 = vrot.slane %v2026_v54, 9  ;;  %v2184_v23 = vmax.f32 %v2025_v58, %v3254_v32  ;;  %v2185_v25 = vmax.f32 %v2024_v31, %v3255_v36 }
 0x1bc   : >> { %v2334_v42 = vrot.slane %v2183_v59, %v4025_v55  ;;  %v2377_v47 = vsel %vm2351_vm3, %v2330_v17, %v2376_v21  ;;  %v1781_v8 = vadd.f32 %v4133_v62, %v1175_v20  ;;  %v1178_v6 = vadd.f32 %v4138_v19, %v3954_v33 }
 0x1bd   : >> { %v2186_v50 = vmax.f32 %v2026_v54, %v3256_v27  ;;  %v2338_v40 = vrot.slane %v2184_v23, %v4025_v55  ;;  %v2342_v4 = vrot.slane %v2185_v25, %v4025_v55  ;;  %v1190_v9 = vpop.f32.mrb[84].mxu1  ;;  %v1718_v2 = vpop.f32.mrb[84].mxu0  ;;  %v1183_v34 = vadd.f32 %v1182_v48, %v3958_v37 }
 0x1be   : >> { %v2378_v29 = vsel %vm2353_vm4, %v2334_v42, %v2377_v47  ;;  %v1192_v60 = vpop.f32.mrb[85].mxu1  ;;  %v1720_v1 = vpop.f32.mrb[85].mxu0  ;;  %v1782_v24 = vadd.f32 %v4140_v11, %v1178_v6  ;;  %v1186_v56 = vadd.f32 %v1185_v30, %v3962_v41  ;;  %v1191_v13 = vadd.f32 %v1190_v9, %v3966_v45 }
 0x1bf   : >> { %v2346_v15 = vrot.slane %v2186_v50, %v4025_v55  ;;  %v2379_v12 = vsel %vm2355_vm5, %v2338_v40, %v2378_v29  ;;  %v1193_v51 = vpop.f32.mrb[86].mxu1  ;;  %v1721_v46 = vpop.f32.mrb[86].mxu0  ;;  %v1783_v58 = vadd.f32 %v1710_v52, %v1183_v34  ;;  %v1817_v54 = vadd.f32 %v3590_v0, %v1779_v5 }
 0x1c0   : >> { %v2380_v62 = vsel %vm2357_vm6, %v2342_v4, %v2379_v12  ;;  %v1195_v33 = vpop.f32.mrb[87].mxu1  ;;  %v1723_v19 = vpop.f32.mrb[87].mxu0  ;;  %v1194_v22 = vadd.f32 %v1193_v51, %v3970_v49  ;;  %v1784_v37 = vadd.f32 %v1713_v35, %v1186_v56  ;;  %v1785_v48 = vadd.f32 %v1718_v2, %v1191_v13 }
 0x1c1   : >> { %v2381_v31 = vsel %vm2359_vm7, %v2346_v15, %v2380_v62  ;;  %v1849_v35 = vmax.f32 %v1817_v54, 0.0  ;;  %v1818_v27 = vadd.f32 %v3590_v0, %v1780_v63  ;;  %v1819_v23 = vadd.f32 %v3590_v0, %v1781_v8 }
 0x1c2   : >> { %2390 = vst.msk [vmem:[%s4073_s4 + $0x18] sm:$0xff] %vm546_vm0, %v2381_v31  ;;  %v1786_v44 = vadd.f32 %v1721_v46, %v1194_v22  ;;  %v4207_v9 = vadd.f32 %v3590_v0, %v1783_v58 }
 0x1c3   : >> { %v1850_v6 = vmax.f32 %v1818_v27, 0.0  ;;  %v1851_v60 = vmax.f32 %v1819_v23, 0.0 }
 0x1c4   : >> { %v1853_v46 = vmax.f32 %v4207_v9, 0.0 }
 0x1c5   : >> { %v1198_v17 = vpop.f32.mrb[88].mxu1  ;;  %v1726_v16 = vpop.f32.mrb[88].mxu0 }
 0x1c6   : >> { %v1199_v28 = vpop.f32.mrb[89].mxu1  ;;  %v1727_v11 = vpop.f32.mrb[89].mxu0 }
 0x1c7   : >> { %v1200_v38 = vpop.f32.mrb[90].mxu1  ;;  %v1728_v41 = vpop.f32.mrb[90].mxu0 }
 0x1c8   : >> { %v1201_v45 = vadd.f32 %v1200_v38, %v3974_v57  ;;  %v1202_v30 = vpop.f32.mrb[91].mxu1  ;;  %v1730_v53 = vpop.f32.mrb[91].mxu0  ;;  %v4203_v57 = vadd.f32 %v3590_v0, %v1782_v24  ;;  %v4222_v24 = vadd.f32 %v3590_v0, %v1786_v44 }
 0x1ca   : >> { %v1787_v52 = vadd.f32 %v1728_v41, %v1201_v45  ;;  %v1852_v1 = vmax.f32 %v4203_v57, 0.0 }
 0x1cc   : >> { %v1825_v49 = vadd.f32 %v3590_v0, %v1787_v52 }
 0x1cd   : >> { %v1205_v32 = vpop.f32.mrb[92].mxu1  ;;  %v1733_v36 = vpop.f32.mrb[92].mxu0 }
 0x1ce   : >> { %v1857_v59 = vmax.f32 %v1825_v49, 0.0  ;;  %v1206_v39 = vadd.f32 %v1205_v32, %v3978_v61  ;;  %v1207_v20 = vpop.f32.mrb[93].mxu1  ;;  %v1735_v21 = vpop.f32.mrb[93].mxu0  ;;  %v4210_v61 = vadd.f32 %v3590_v0, %v1784_v37 }
 0x1cf   : >> { %v1208_v25 = vpop.f32.mrb[94].mxu1  ;;  %v1736_v5 = vpop.f32.mrb[94].mxu0 }
 0x1d0   : >> { %v1873_v42 = vmax.f32 %v1849_v35, %v1857_v59  ;;  %v1788_v47 = vadd.f32 %v1733_v36, %v1206_v39  ;;  %v1209_v50 = vadd.f32 %v1208_v25, %v3982_v3  ;;  %v1210_v40 = vpop.f32.mrb[95].mxu1  ;;  %v1738_v4 = vpop.f32.mrb[95].mxu0  ;;  %v4216_v3 = vadd.f32 %v3590_v0, %v1785_v48 }
 0x1d1   : >> { %v1854_v62 = vmax.f32 %v4210_v61, 0.0 }
 0x1d2   : >> { %v2399_v63 = vcombine.high %v1873_v42, %v1873_v42  ;;  %v2406_v8 = vrot.slane %v1873_v42, %v4017_v43  ;;  %v1826_v2 = vadd.f32 %v3590_v0, %v1788_v47  ;;  %v1789_v29 = vadd.f32 %v1736_v5, %v1209_v50 }
 0x1d3   : >> { %v1855_v17 = vmax.f32 %v4216_v3, 0.0 }
 0x1d4   : >> { %v2413_v15 = vrot.slane %v2399_v63, %v4017_v43  ;;  %v2414_v12 = vcombine.high %v2406_v8, %v2406_v8  ;;  %v3257_v34 = vrot.slane %v2406_v8, 9  ;;  %v1858_v51 = vmax.f32 %v1826_v2, 0.0 }
 0x1d5   : >> { %v1827_v56 = vadd.f32 %v3590_v0, %v1789_v29  ;;  %v1213_v13 = vpop.f32.mrb[96].mxu1  ;;  %v1741_v33 = vpop.f32.mrb[96].mxu0 }
 0x1d6   : >> { %v2415_v19 = vcombine.high %v2413_v15, %v2413_v15  ;;  %v3258_v31 = vrot.slane %v2414_v12, 9  ;;  %v3259_v58 = vrot.slane %v2413_v15, 9  ;;  %v2663_v22 = vmax.f32 %v2406_v8, %v3257_v34  ;;  %v1215_v37 = vpop.f32.mrb[97].mxu1  ;;  %v1743_v48 = vpop.f32.mrb[97].mxu0 }
 0x1d7   : >> { %v1874_v16 = vmax.f32 %v1850_v6, %v1858_v51  ;;  %v1859_v28 = vmax.f32 %v1827_v56, 0.0  ;;  %v1214_v11 = vadd.f32 %v1213_v13, %v3986_v7  ;;  %v1216_v38 = vpop.f32.mrb[98].mxu1  ;;  %v4227_v41 = vpop.f32.mrb[98].mxu0 }
 0x1d8   : >> { %v3260_v44 = vrot.slane %v2415_v19, 9  ;;  %v2664_v45 = vmax.f32 %v2414_v12, %v3258_v31  ;;  %v2665_v30 = vmax.f32 %v2413_v15, %v3259_v58  ;;  %v2730_v53 = vrot.slane %v2663_v22, %v4025_v55  ;;  %v1218_v54 = vpop.f32.mrb[99].mxu1  ;;  %v1746_v52 = vpop.f32.mrb[99].mxu0 }
 0x1d9   : >> { %v2416_v49 = vcombine.high %v1874_v16, %v1874_v16  ;;  %v2423_v32 = vrot.slane %v1874_v16, %v4017_v43  ;;  %v1875_v36 = vmax.f32 %v1851_v60, %v1859_v28  ;;  %v1790_v35 = vadd.f32 %v1741_v33, %v1214_v11 }
 0x1da   : >> { %v2666_v59 = vmax.f32 %v2415_v19, %v3260_v44  ;;  %v2734_v39 = vrot.slane %v2664_v45, %v4025_v55  ;;  %v2738_v7 = vrot.slane %v2665_v30, %v4025_v55  ;;  %v1217_v20 = vadd.f32 %v1216_v38, %v3990_v10 }
 0x1db   : >> { %v2430_v21 = vrot.slane %v2416_v49, %v4017_v43  ;;  %v2431_v27 = vcombine.high %v2423_v32, %v2423_v32  ;;  %v3261_v23 = vrot.slane %v2423_v32, 9  ;;  %v2433_v25 = vcombine.high %v1875_v36, %v1875_v36 }
 0x1dc   : >> { %v2742_v5 = vrot.slane %v2666_v59, %v4025_v55  ;;  %v2855_v42 = vsel %vm2347_vm1, %v2734_v39, %v2730_v53  ;;  %v2440_v47 = vrot.slane %v1875_v36, %v4017_v43  ;;  %v1828_v50 = vadd.f32 %v3590_v0, %v1790_v35 }
 0x1dd   : >> { %v2856_v40 = vsel %vm2349_vm2, %v2738_v7, %v2855_v42  ;;  %v2432_v4 = vcombine.high %v2430_v21, %v2430_v21  ;;  %v3262_v63 = vrot.slane %v2431_v27, 9  ;;  %v3263_v8 = vrot.slane %v2430_v21, 9  ;;  %v1221_v2 = vpop.f32.mrb[100].mxu1  ;;  %v1749_v10 = vpop.f32.mrb[100].mxu0 }
 0x1de   : >> { %v2667_v29 = vmax.f32 %v2423_v32, %v3261_v23  ;;  %v2857_v6 = vsel %vm2351_vm3, %v2742_v5, %v2856_v40  ;;  %v2447_v60 = vrot.slane %v2433_v25, %v4017_v43  ;;  %v2448_v15 = vcombine.high %v2440_v47, %v2440_v47  ;;  %v1223_v12 = vpop.f32.mrb[101].mxu1  ;;  %v1751_v34 = vpop.f32.mrb[101].mxu0 }
 0x1df   : >> { %v3264_v51 = vrot.slane %v2432_v4, 9  ;;  %v2668_v56 = vmax.f32 %v2431_v27, %v3262_v63  ;;  %v2669_v13 = vmax.f32 %v2430_v21, %v3263_v8  ;;  %v3265_v33 = vrot.slane %v2440_v47, 9  ;;  %v1224_v19 = vpop.f32.mrb[102].mxu1  ;;  %v1752_v31 = vpop.f32.mrb[102].mxu0 }
 0x1e0   : >> { %v2746_v58 = vrot.slane %v2667_v29, %v4025_v55  ;;  %v2449_v22 = vcombine.high %v2447_v60, %v2447_v60  ;;  %v3266_v37 = vrot.slane %v2448_v15, 9  ;;  %v3267_v48 = vrot.slane %v2447_v60, 9  ;;  %v1226_v16 = vpop.f32.mrb[103].mxu1  ;;  %v1754_v28 = vpop.f32.mrb[103].mxu0 }
 0x1e1   : >> { %v2670_v11 = vmax.f32 %v2432_v4, %v3264_v51  ;;  %v2750_v38 = vrot.slane %v2668_v56, %v4025_v55  ;;  %v2754_v44 = vrot.slane %v2669_v13, %v4025_v55  ;;  %v2671_v45 = vmax.f32 %v2440_v47, %v3265_v33 }
 0x1e2   : >> { %v2858_v30 = vsel %vm2353_vm4, %v2746_v58, %v2857_v6  ;;  %v3268_v53 = vrot.slane %v2449_v22, 9  ;;  %v2672_v54 = vmax.f32 %v2448_v15, %v3266_v37  ;;  %v2673_v52 = vmax.f32 %v2447_v60, %v3267_v48 }
 0x1e3   : >> { %v2758_v49 = vrot.slane %v2670_v11, %v4025_v55  ;;  %v2859_v32 = vsel %vm2355_vm5, %v2750_v38, %v2858_v30  ;;  %v2762_v36 = vrot.slane %v2671_v45, %v4025_v55  ;;  %v1860_v35 = vmax.f32 %v1828_v50, 0.0 }
 0x1e4   : >> { %v2860_v59 = vsel %vm2357_vm6, %v2754_v44, %v2859_v32  ;;  %v2674_v39 = vmax.f32 %v2449_v22, %v3268_v53  ;;  %v2766_v7 = vrot.slane %v2672_v54, %v4025_v55  ;;  %v2770_v21 = vrot.slane %v2673_v52, %v4025_v55 }
 0x1e5   : >> { %v2861_v27 = vsel %vm2359_vm7, %v2758_v49, %v2860_v59  ;;  %v1876_v23 = vmax.f32 %v1852_v1, %v1860_v35  ;;  %v1791_v25 = vadd.f32 %v4227_v41, %v1217_v20  ;;  %v1222_v5 = vadd.f32 %v1221_v2, %v3994_v14  ;;  %v1229_v42 = vpop.f32.mrb[104].mxu1  ;;  %v1757_v47 = vpop.f32.mrb[104].mxu0 }
 0x1e6   : >> { %3290 = vst.msk [vmem:[%s4073_s4 + $0x20] sm:$0xff] %vm546_vm0, %v2861_v27  ;;  %v2774_v50 = vrot.slane %v2674_v39, %v4025_v55  ;;  %v2862_v40 = vsel %vm2347_vm1, %v2766_v7, %v2762_v36  ;;  %v1225_v4 = vadd.f32 %v1224_v19, %v3998_v18  ;;  %v1230_v63 = vadd.f32 %v1229_v42, %v4002_v26  ;;  %v1231_v8 = vpop.f32.mrb[105].mxu1  ;;  %v1759_v29 = vpop.f32.mrb[105].mxu0 }
 0x1e7   : >> { %v2863_v57 = vsel %vm2349_vm2, %v2770_v21, %v2862_v40  ;;  %v2450_v1 = vcombine.high %v1876_v23, %v1876_v23  ;;  %v2457_v41 = vrot.slane %v1876_v23, %v4017_v43  ;;  %v1829_v14 = vadd.f32 %v3590_v0, %v1791_v25  ;;  %v1232_v20 = vpop.f32.mrb[106].mxu1  ;;  %v1760_v2 = vpop.f32.mrb[106].mxu0 }
 0x1e8   : >> { %v1856_v6 = vmax.f32 %v4222_v24, 0.0  ;;  %v1792_v60 = vadd.f32 %v1749_v10, %v1222_v5  ;;  %v1793_v15 = vadd.f32 %v1752_v31, %v1225_v4  ;;  %v1794_v12 = vadd.f32 %v1757_v47, %v1230_v63  ;;  %v1233_v34 = vpop.f32.mrb[107].mxu1  ;;  %v1761_v18 = vpop.f32.mrb[107].mxu0 }
 0x1e9   : >> { %v2464_v26 = vrot.slane %v2450_v1, %v4017_v43  ;;  %v2465_v51 = vcombine.high %v2457_v41, %v2457_v41  ;;  %v3269_v56 = vrot.slane %v2457_v41, 9  ;;  %v1861_v13 = vmax.f32 %v1829_v14, 0.0 }
 0x1ea   : >> { %v2864_v33 = vsel %vm2351_vm3, %v2774_v50, %v2863_v57  ;;  %v1830_v19 = vadd.f32 %v3590_v0, %v1792_v60  ;;  %v1831_v58 = vadd.f32 %v3590_v0, %v1793_v15  ;;  %v4272_v22 = vadd.f32 %v3590_v0, %v1794_v12 }
 0x1eb   : >> { %v2466_v37 = vcombine.high %v2464_v26, %v2464_v26  ;;  %v3270_v10 = vrot.slane %v2465_v51, 9  ;;  %v3271_v31 = vrot.slane %v2464_v26, 9  ;;  %v2675_v48 = vmax.f32 %v2457_v41, %v3269_v56 }
 0x1ec   : >> { %v1877_v16 = vmax.f32 %v1853_v46, %v1861_v13  ;;  %v1862_v28 = vmax.f32 %v1830_v19, 0.0  ;;  %v1863_v11 = vmax.f32 %v1831_v58, 0.0  ;;  %v1864_v38 = vmax.f32 %v4272_v22, 0.0 }
 0x1ed   : >> { %v3272_v44 = vrot.slane %v2466_v37, 9  ;;  %v2676_v45 = vmax.f32 %v2465_v51, %v3270_v10  ;;  %v2677_v30 = vmax.f32 %v2464_v26, %v3271_v31  ;;  %v2778_v53 = vrot.slane %v2675_v48, %v4025_v55 }
 0x1ee   : >> { %v2467_v54 = vcombine.high %v1877_v16, %v1877_v16  ;;  %v2474_v52 = vrot.slane %v1877_v16, %v4017_v43  ;;  %v1878_v49 = vmax.f32 %v1854_v62, %v1862_v28  ;;  %v1879_v32 = vmax.f32 %v1855_v17, %v1863_v11 }
 0x1ef   : >> { %v2678_v9 = vmax.f32 %v2466_v37, %v3272_v44  ;;  %v2782_v46 = vrot.slane %v2676_v45, %v4025_v55  ;;  %v2786_v36 = vrot.slane %v2677_v30, %v4025_v55  ;;  %v2865_v35 = vsel %vm2353_vm4, %v2778_v53, %v2864_v33 }
 0x1f0   : >> { %v2481_v59 = vrot.slane %v2467_v54, %v4017_v43  ;;  %v2482_v39 = vcombine.high %v2474_v52, %v2474_v52  ;;  %v3273_v7 = vrot.slane %v2474_v52, 9  ;;  %v2484_v21 = vcombine.high %v1878_v49, %v1878_v49 }
 0x1f1   : >> { %v2790_v27 = vrot.slane %v2678_v9, %v4025_v55  ;;  %v2866_v61 = vsel %vm2355_vm5, %v2782_v46, %v2865_v35  ;;  %v2491_v3 = vrot.slane %v1878_v49, %v4017_v43  ;;  %v2501_v62 = vcombine.high %v1879_v32, %v1879_v32 }
 0x1f2   : >> { %v2867_v17 = vsel %vm2357_vm6, %v2786_v36, %v2866_v61  ;;  %v2483_v23 = vcombine.high %v2481_v59, %v2481_v59  ;;  %v3274_v25 = vrot.slane %v2482_v39, 9  ;;  %v3275_v5 = vrot.slane %v2481_v59, 9 }
 0x1f3   : >> { %v2868_v42 = vsel %vm2359_vm7, %v2790_v27, %v2867_v17  ;;  %v2679_v47 = vmax.f32 %v2474_v52, %v3273_v7  ;;  %v2498_v50 = vrot.slane %v2484_v21, %v4017_v43  ;;  %v2499_v40 = vcombine.high %v2491_v3, %v2491_v3 }
 0x1f4   : >> { %3291 = vst.msk [vmem:[%s4073_s4 + $0x28] sm:$0xff] %vm546_vm0, %v2868_v42  ;;  %v3276_v4 = vrot.slane %v2483_v23, 9  ;;  %v2680_v63 = vmax.f32 %v2482_v39, %v3274_v25  ;;  %v2681_v8 = vmax.f32 %v2481_v59, %v3275_v5  ;;  %v3277_v29 = vrot.slane %v2491_v3, 9 }
 0x1f5   : >> { %v2794_v57 = vrot.slane %v2679_v47, %v4025_v55  ;;  %v2500_v1 = vcombine.high %v2498_v50, %v2498_v50  ;;  %v3278_v41 = vrot.slane %v2499_v40, 9  ;;  %v3279_v14 = vrot.slane %v2498_v50, 9 }
 0x1f6   : >> { %v2682_v20 = vmax.f32 %v2483_v23, %v3276_v4  ;;  %v2798_v2 = vrot.slane %v2680_v63, %v4025_v55  ;;  %v2802_v60 = vrot.slane %v2681_v8, %v4025_v55  ;;  %v2683_v15 = vmax.f32 %v2491_v3, %v3277_v29 }
 0x1f7   : >> { %v3280_v12 = vrot.slane %v2500_v1, 9  ;;  %v2684_v34 = vmax.f32 %v2499_v40, %v3278_v41  ;;  %v2685_v18 = vmax.f32 %v2498_v50, %v3279_v14  ;;  %v2508_v26 = vrot.slane %v1879_v32, %v4017_v43 }
 0x1f8   : >> { %v2806_v51 = vrot.slane %v2682_v20, %v4025_v55  ;;  %v2869_v56 = vsel %vm2347_vm1, %v2798_v2, %v2794_v57  ;;  %v2810_v13 = vrot.slane %v2683_v15, %v4025_v55  ;;  %v2515_v33 = vrot.slane %v2501_v62, %v4017_v43 }
 0x1f9   : >> { %v2870_v19 = vsel %vm2349_vm2, %v2802_v60, %v2869_v56  ;;  %v2686_v58 = vmax.f32 %v2500_v1, %v3280_v12  ;;  %v2814_v22 = vrot.slane %v2684_v34, %v4025_v55  ;;  %v2818_v37 = vrot.slane %v2685_v18, %v4025_v55 }
 0x1fa   : >> { %v2871_v10 = vsel %vm2351_vm3, %v2806_v51, %v2870_v19  ;;  %v2516_v31 = vcombine.high %v2508_v26, %v2508_v26  ;;  %v2517_v48 = vcombine.high %v2515_v33, %v2515_v33  ;;  %v3281_v16 = vrot.slane %v2508_v26, 9 }
 0x1fb   : >> { %v2822_v28 = vrot.slane %v2686_v58, %v4025_v55  ;;  %v2872_v11 = vsel %vm2353_vm4, %v2810_v13, %v2871_v10  ;;  %v3283_v44 = vrot.slane %v2515_v33, 9  ;;  %v1880_v45 = vmax.f32 %v1856_v6, %v1864_v38 }
 0x1fc   : >> { %v2873_v30 = vsel %vm2355_vm5, %v2814_v22, %v2872_v11  ;;  %v3282_v53 = vrot.slane %v2516_v31, 9  ;;  %v3284_v54 = vrot.slane %v2517_v48, 9  ;;  %v2687_v52 = vmax.f32 %v2508_v26, %v3281_v16 }
 0x1fd   : >> { %v2874_v49 = vsel %vm2357_vm6, %v2818_v37, %v2873_v30  ;;  %v2689_v32 = vmax.f32 %v2515_v33, %v3283_v44  ;;  %v2518_v9 = vcombine.high %v1880_v45, %v1880_v45  ;;  %v2525_v46 = vrot.slane %v1880_v45, %v4017_v43 }
 0x1fe   : >> { %v2875_v36 = vsel %vm2359_vm7, %v2822_v28, %v2874_v49  ;;  %v2688_v35 = vmax.f32 %v2516_v31, %v3282_v53  ;;  %v2690_v59 = vmax.f32 %v2517_v48, %v3284_v54  ;;  %v2826_v7 = vrot.slane %v2687_v52, %v4025_v55 }
 0x1ff   : >> { %3292 = vst.msk [vmem:[%s4073_s4 + $0x30] sm:$0xff] %vm546_vm0, %v2875_v36  ;;  %v2834_v24 = vrot.slane %v2689_v32, %v4025_v55  ;;  %v2532_v6 = vrot.slane %v2518_v9, %v4017_v43  ;;  %v2533_v38 = vcombine.high %v2525_v46, %v2525_v46  ;;  %v3285_v39 = vrot.slane %v2525_v46, 9 }
 0x200   : >> { %v2830_v21 = vrot.slane %v2688_v35, %v4025_v55  ;;  %v2838_v27 = vrot.slane %v2690_v59, %v4025_v55 }
 0x201   : >> { %v2534_v61 = vcombine.high %v2532_v6, %v2532_v6  ;;  %v3286_v3 = vrot.slane %v2533_v38, 9  ;;  %v3287_v62 = vrot.slane %v2532_v6, 9  ;;  %v2691_v17 = vmax.f32 %v2525_v46, %v3285_v39 }
 0x202   : >> { %v2876_v23 = vsel %vm2347_vm1, %v2830_v21, %v2826_v7 }
 0x203   : >> { %v2877_v25 = vsel %vm2349_vm2, %v2834_v24, %v2876_v23  ;;  %v3288_v5 = vrot.slane %v2534_v61, 9  ;;  %v2692_v42 = vmax.f32 %v2533_v38, %v3286_v3  ;;  %v2693_v43 = vmax.f32 %v2532_v6, %v3287_v62 }
 0x204   : >> { %v2842_v47 = vrot.slane %v2691_v17, %v4025_v55  ;;  %v2878_v50 = vsel %vm2351_vm3, %v2838_v27, %v2877_v25  ;;  %177 = sbr.rel (!%p175_p4) target bundleno = 17 (0x11), region = 76 }
 0x205   : >> { %v2694_v40 = vmax.f32 %v2534_v61, %v3288_v5  ;;  %v2846_v4 = vrot.slane %v2692_v42, %v4025_v55  ;;  %v2850_v63 = vrot.slane %v2693_v43, %v4025_v55 }
 0x206   : >> { %v2879_v8 = vsel %vm2353_vm4, %v2842_v47, %v2878_v50 }
 0x207   : >> { %v2854_v29 = vrot.slane %v2694_v40, %v4025_v55  ;;  %v2880_v57 = vsel %vm2355_vm5, %v2846_v4, %v2879_v8 }
 0x208   : >> { %v2881_v1 = vsel %vm2357_vm6, %v2850_v63, %v2880_v57 }
 0x209   : >> { %v2882_v41 = vsel %vm2359_vm7, %v2854_v29, %v2881_v1 }
 0x20a   : >> { %3293 = vst.msk [vmem:[%s4073_s4 + $0x38] sm:$0xff] %vm546_vm0, %v2882_v41 }
 0x20b PF: > { %s13_s12 = sadd.s32 1, %s3551_s12  }
 0x20c   : > { %p10_p5 = scmp.ge.s32.totalorder %s13_s12, 4  }
 0x20e   :  { %12 = sbr.rel (!%p10_p5) target bundleno = 1 (0x1), region = 87 }

// kernel: net_forward.3
= control target key start
LH: loop header
LB: loop body
LE: loop exit
PB: predicated region body
PF: predicated region fallthrough
CT: control target
= control target key end

     0   :  { %v1306_v3 = vlaneseq  ;;  %v23630_v8 = vmov 1983009808   ;;  %s27384_s0 = inlined_call_operand.vmem [shape: f32[2,65536], index: 0, kind: input, shape index: {}]   ;;  %s27385_s1 = inlined_call_operand.vmem [shape: f32[10,65536], index: 1, kind: input, shape index: {}]   ;;  %s27386_s2 = inlined_call_operand.vmem [shape: f32[1,10], index: 2, kind: input, shape index: {}]   ;;  %s27387_s3 = inlined_call_operand.hbm [shape: f32[2,10], index: 3, kind: output, shape index: {}]  }
   0x1   :  { %v144_v0 = vld [vmem:[%s27385_s1 + $0x8] sm:$0xff]  ;;  %v143_v2 = vld [vmem:[%s27385_s1] sm:$0xff]  ;;  %v1304_v9 = vunpack.c.l.s4 %v23630_v8  ;;  %v146_v19 = vld [vmem:[%s27385_s1 + $0x18] sm:$0xff] }
   0x2   :  { %v656_v1 = vld [vmem:[%s27385_s1 + $0x1008] sm:$0x3]  ;;  %v655_v5 = vld [vmem:[%s27385_s1 + $0x1000] sm:$0x3]  ;;  %v1307_v15 = vshrl.u32 %v1306_v3, 7  ;;  %v402_v24 = vld [vmem:[%s27385_s1 + $0x818] sm:$0xff] }
   0x3   :  { %v21938_v4 = vpack.c.bf16 %v656_v1, %v144_v0  ;;  %v400_v6 = vld [vmem:[%s27385_s1 + $0x808] sm:$0xff]  ;;  %v21940_v10 = vpack.c.bf16 %v655_v5, %v143_v2  ;;  %v399_v12 = vld [vmem:[%s27385_s1 + $0x800] sm:$0xff]  ;;  %v1305_v18 = vunpack.c.0.s8 %v1304_v9  ;;  %v658_v20 = vld [vmem:[%s27385_s1 + $0x1018] sm:$0x3] }
   0x4   :  { %v912_v7 = vld [vmem:[%s27385_s1 + $0x1808] sm:$0x3]  ;;  %v911_v13 = vld [vmem:[%s27385_s1 + $0x1800] sm:$0x3]  ;;  %v21942_v22 = vpack.c.bf16 %v658_v20, %v146_v19  ;;  %v145_v26 = vld [vmem:[%s27385_s1 + $0x10] sm:$0xff] }
   0x5   :  { %v22450_v11 = vpack.c.bf16 %v912_v7, %v400_v6  ;;  %v15_v14 = vld [vmem:[%s27384_s0] sm:$0xff]  ;;  %21939 = vmatprep.subr.bf16.mxu1 %v21938_v4  ;;  %v22452_v16 = vpack.c.bf16 %v911_v13, %v399_v12  ;;  %v23691_v25 = vsub.s32 %v1305_v18, %v1307_v15  ;;  %v914_v27 = vld [vmem:[%s27385_s1 + $0x1818] sm:$0x3]  ;;  %v657_v28 = vld [vmem:[%s27385_s1 + $0x1010] sm:$0x3] }
   0x6   :  { %v1302_v17 = vcombine.high %v15_v14, %v15_v14  ;;  %v79_v21 = vld [vmem:[%s27384_s0 + $0x200] sm:$0xff]  ;;  %21941 = vmatpush1.bf16.xpose.msra.mxu1 %v21940_v10  ;;  %v22454_v29 = vpack.c.bf16 %v914_v27, %v402_v24  ;;  %v401_v30 = vld [vmem:[%s27385_s1 + $0x810] sm:$0xff]  ;;  %v148_v35 = vld [vmem:[%s27385_s1 + $0x28] sm:$0xff]  ;;  %v21944_v42 = vpack.c.bf16 %v657_v28, %v145_v26 }
   0x7   :  { %22451 = vmatprep.subr.bf16.mxu0 %v22450_v11  ;;  %v2390_v23 = vcombine.high %v79_v21, %v79_v21  ;;  %21943 = vmatprep.subr.bf16.mxu1 %v21942_v22  ;;  %v913_v31 = vld [vmem:[%s27385_s1 + $0x1810] sm:$0x3]  ;;  %v1309_v32 = vrot.slane %v15_v14, %v23691_v25  ;;  %v2397_v33 = vrot.slane %v79_v21, %v23691_v25  ;;  %v660_v36 = vld [vmem:[%s27385_s1 + $0x1028] sm:$0x3]  ;;  %v147_v50 = vld [vmem:[%s27385_s1 + $0x20] sm:$0xff] }
   0x8   :  { %22453 = vmatpush1.bf16.xpose.msra.mxu0 %v22452_v16  ;;  %v1316_v34 = vrot.slane %v1302_v17, %v23691_v25  ;;  %v404_v38 = vld [vmem:[%s27385_s1 + $0x828] sm:$0xff]  ;;  %v22456_v43 = vpack.c.bf16 %v913_v31, %v401_v30  ;;  %v21946_v45 = vpack.c.bf16 %v660_v36, %v148_v35  ;;  %v659_v51 = vld [vmem:[%s27385_s1 + $0x1020] sm:$0x3]  ;;  %v150_v55 = vld [vmem:[%s27385_s1 + $0x38] sm:$0xff] }
   0x9   :  { %22455 = vmatprep.subr.bf16.mxu0 %v22454_v29  ;;  %v2404_v37 = vrot.slane %v2390_v23, %v23691_v25  ;;  %v916_v39 = vld [vmem:[%s27385_s1 + $0x1828] sm:$0x3]  ;;  %v1317_v40 = vcombine.high %v1309_v32, %v1309_v32  ;;  %v2405_v41 = vcombine.high %v2397_v33, %v2397_v33  ;;  %v403_v52 = vld [vmem:[%s27385_s1 + $0x820] sm:$0xff]  ;;  %v662_v56 = vld [vmem:[%s27385_s1 + $0x1038] sm:$0x3]  ;;  %v21948_v60 = vpack.c.bf16 %v659_v51, %v147_v50 }
   0xa   :  { %v1318_v44 = vcombine.high %v1316_v34, %v1316_v34  ;;  %v22458_v47 = vpack.c.bf16 %v916_v39, %v404_v38  ;;  %v16_v48 = vld [vmem:[%s27384_s0 + $0x8] sm:$0xff]  ;;  %v915_v53 = vld [vmem:[%s27385_s1 + $0x1820] sm:$0x3]  ;;  %v406_v58 = vld [vmem:[%s27385_s1 + $0x838] sm:$0xff]  ;;  %v21950_v63 = vpack.c.bf16 %v662_v56, %v150_v55 }
   0xb   :  { %4054 = vmatprep.mubr.f32.mxu1 %v1317_v40  ;;  %13014 = vmatprep.mubr.f32.mxu0 %v2405_v41  ;;  %v2406_v46 = vcombine.high %v2404_v37, %v2404_v37  ;;  %v80_v49 = vld [vmem:[%s27384_s0 + $0x208] sm:$0xff]  ;;  %v1326_v54 = vrot.slane %v16_v48, %v23691_v25  ;;  %v918_v59 = vld [vmem:[%s27385_s1 + $0x1838] sm:$0x3]  ;;  %v22460_v61 = vpack.c.bf16 %v915_v53, %v403_v52  ;;  %v149_v4 = vld [vmem:[%s27385_s1 + $0x30] sm:$0xff] }
   0xc   :  { %v2414_v57 = vrot.slane %v80_v49, %v23691_v25  ;;  %v1319_v0 = vcombine.high %v16_v48, %v16_v48  ;;  %v22462_v2 = vpack.c.bf16 %v918_v59, %v406_v58  ;;  %v2407_v3 = vcombine.high %v80_v49, %v80_v49  ;;  %v661_v5 = vld [vmem:[%s27385_s1 + $0x1030] sm:$0x3]  ;;  %v152_v9 = vld [vmem:[%s27385_s1 + $0x48] sm:$0xff]  ;;  %v151_v22 = vld [vmem:[%s27385_s1 + $0x40] sm:$0xff] }
   0xd   :  { %4055 = vmatmul.mubr.f32.vlgmr.msra.gmra.mrb[0].mxu1 %v1309_v32  ;;  %v1334_v62 = vcombine.high %v1326_v54, %v1326_v54  ;;  %v405_v6 = vld [vmem:[%s27385_s1 + $0x830] sm:$0xff]  ;;  %v664_v10 = vld [vmem:[%s27385_s1 + $0x1048] sm:$0x3]  ;;  %v21952_v14 = vpack.c.bf16 %v661_v5, %v149_v4  ;;  %v663_v23 = vld [vmem:[%s27385_s1 + $0x1040] sm:$0x3] }
   0xe   :  { %21945 = vmatpush1.bf16.xpose.msra.mxu1 %v21944_v42  ;;  %4124 = vmatprep.mubr.f32.mxu1 %v1318_v44  ;;  %v2422_v1 = vcombine.high %v2414_v57, %v2414_v57  ;;  %v917_v7 = vld [vmem:[%s27385_s1 + $0x1830] sm:$0x3]  ;;  %v1333_v8 = vrot.slane %v1319_v0, %v23691_v25  ;;  %v2421_v11 = vrot.slane %v2407_v3, %v23691_v25  ;;  %v408_v12 = vld [vmem:[%s27385_s1 + $0x848] sm:$0xff]  ;;  %v407_v24 = vld [vmem:[%s27385_s1 + $0x840] sm:$0xff] }
   0xf   :  { %13015 = vmatmul.mubr.f32.vlgmr.msra.gmra.mrb[0].mxu0 %v2397_v33  ;;  %21947 = vmatprep.subr.bf16.mxu1 %v21946_v45  ;;  %v920_v13 = vld [vmem:[%s27385_s1 + $0x1848] sm:$0x3]  ;;  %v22464_v15 = vpack.c.bf16 %v917_v7, %v405_v6  ;;  %v21954_v17 = vpack.c.bf16 %v664_v10, %v152_v9  ;;  %v17_v20 = vld [vmem:[%s27384_s0 + $0x10] sm:$0xff]  ;;  %v919_v26 = vld [vmem:[%s27385_s1 + $0x1840] sm:$0x3]  ;;  %v21956_v33 = vpack.c.bf16 %v663_v23, %v151_v22 }
  0x10   :  { %22457 = vmatpush1.bf16.xpose.msra.mxu0 %v22456_v43  ;;  %13084 = vmatprep.mubr.f32.mxu0 %v2406_v46  ;;  %v1335_v16 = vcombine.high %v1333_v8, %v1333_v8  ;;  %v2423_v18 = vcombine.high %v2421_v11, %v2421_v11  ;;  %v22466_v19 = vpack.c.bf16 %v920_v13, %v408_v12  ;;  %v81_v21 = vld [vmem:[%s27384_s0 + $0x210] sm:$0xff]  ;;  %v154_v28 = vld [vmem:[%s27385_s1 + $0x58] sm:$0xff]  ;;  %v156_v46 = vld [vmem:[%s27385_s1 + $0x68] sm:$0xff] }
  0x11   :  { %22459 = vmatprep.subr.bf16.mxu0 %v22458_v47  ;;  %v1343_v27 = vrot.slane %v17_v20, %v23691_v25  ;;  %v666_v29 = vld [vmem:[%s27385_s1 + $0x1058] sm:$0x3]  ;;  %v2431_v30 = vrot.slane %v81_v21, %v23691_v25  ;;  %v2424_v40 = vcombine.high %v81_v21, %v81_v21  ;;  %v153_v41 = vld [vmem:[%s27385_s1 + $0x50] sm:$0xff]  ;;  %v668_v47 = vld [vmem:[%s27385_s1 + $0x1068] sm:$0x3] }
  0x12   :  { %v410_v31 = vld [vmem:[%s27385_s1 + $0x858] sm:$0xff]  ;;  %v21958_v36 = vpack.c.bf16 %v666_v29, %v154_v28  ;;  %v665_v42 = vld [vmem:[%s27385_s1 + $0x1050] sm:$0x3]  ;;  %v412_v49 = vld [vmem:[%s27385_s1 + $0x868] sm:$0xff] }
  0x13   :  { %v922_v32 = vld [vmem:[%s27385_s1 + $0x1858] sm:$0x3]  ;;  %v1351_v35 = vcombine.high %v1343_v27, %v1343_v27  ;;  %v2439_v38 = vcombine.high %v2431_v30, %v2431_v30  ;;  %v409_v43 = vld [vmem:[%s27385_s1 + $0x850] sm:$0xff]  ;;  %v2438_v48 = vrot.slane %v2424_v40, %v23691_v25  ;;  %v924_v50 = vld [vmem:[%s27385_s1 + $0x1868] sm:$0x3]  ;;  %v21960_v51 = vpack.c.bf16 %v665_v42, %v153_v41 }
  0x14   :  { %v22470_v39 = vpack.c.bf16 %v922_v32, %v410_v31  ;;  %v921_v44 = vld [vmem:[%s27385_s1 + $0x1850] sm:$0x3]  ;;  %v22474_v56 = vpack.c.bf16 %v924_v50, %v412_v49  ;;  %v82_v58 = vld [vmem:[%s27384_s0 + $0x218] sm:$0xff]  ;;  %v155_v59 = vld [vmem:[%s27385_s1 + $0x60] sm:$0xff] }
  0x15   :  { %4125 = vmatmul.mubr.f32.vlgmr.msra.gmra.mrb[0].mxu1 %v1316_v34  ;;  %v22468_v34 = vpack.c.bf16 %v919_v26, %v407_v24  ;;  %v22472_v52 = vpack.c.bf16 %v921_v44, %v409_v43  ;;  %v2440_v55 = vcombine.high %v2438_v48, %v2438_v48  ;;  %v158_v0 = vld [vmem:[%s27385_s1 + $0x78] sm:$0xff]  ;;  %v2441_v12 = vcombine.high %v82_v58, %v82_v58  ;;  %v157_v13 = vld [vmem:[%s27385_s1 + $0x70] sm:$0xff]  ;;  %v416_v21 = vld [vmem:[%s27385_s1 + $0x888] sm:$0xff] }
  0x16   :  { %21949 = vmatpush1.bf16.xpose.msra.mxu1 %v21948_v60  ;;  %4194 = vmatprep.mubr.f32.mxu1 %v1334_v62  ;;  %v667_v60 = vld [vmem:[%s27385_s1 + $0x1060] sm:$0x3]  ;;  %v414_v3 = vld [vmem:[%s27385_s1 + $0x878] sm:$0xff]  ;;  %v928_v22 = vld [vmem:[%s27385_s1 + $0x1888] sm:$0x3] }
  0x17   :  { %13085 = vmatmul.mubr.f32.vlgmr.msra.gmra.mrb[0].mxu0 %v2404_v37  ;;  %21951 = vmatprep.subr.bf16.mxu1 %v21950_v63  ;;  %v1336_v37 = vcombine.high %v17_v20, %v17_v20  ;;  %v923_v62 = vld [vmem:[%s27385_s1 + $0x1860] sm:$0x3]  ;;  %v926_v4 = vld [vmem:[%s27385_s1 + $0x1878] sm:$0x3]  ;;  %v21964_v5 = vpack.c.bf16 %v667_v60, %v155_v59  ;;  %v2455_v20 = vrot.slane %v2441_v12, %v23691_v25  ;;  %v161_v50 = vld [vmem:[%s27385_s1 + $0x90] sm:$0xff] }
  0x18   :  { %22461 = vmatpush1.bf16.xpose.msra.mxu0 %v22460_v61  ;;  %13154 = vmatprep.mubr.f32.mxu0 %v2422_v1  ;;  %v411_v61 = vld [vmem:[%s27385_s1 + $0x860] sm:$0xff]  ;;  %v670_v1 = vld [vmem:[%s27385_s1 + $0x1078] sm:$0x3]  ;;  %v22482_v29 = vpack.c.bf16 %v928_v22, %v416_v21  ;;  %v932_v59 = vld [vmem:[%s27385_s1 + $0x18a8] sm:$0x3] }
  0x19   :  { %22463 = vmatprep.subr.bf16.mxu0 %v22462_v2  ;;  %v1350_v45 = vrot.slane %v1336_v37, %v23691_v25  ;;  %v2448_v2 = vrot.slane %v82_v58, %v23691_v25  ;;  %v22476_v6 = vpack.c.bf16 %v923_v62, %v411_v61  ;;  %v2457_v28 = vcombine.high %v2455_v20, %v2455_v20  ;;  %v83_v31 = vld [vmem:[%s27384_s0 + $0x220] sm:$0xff]  ;;  %v162_v37 = vld [vmem:[%s27385_s1 + $0x98] sm:$0xff]  ;;  %v420_v58 = vld [vmem:[%s27385_s1 + $0x8a8] sm:$0xff] }
  0x1a   :  { %v159_v32 = vld [vmem:[%s27385_s1 + $0x80] sm:$0xff]  ;;  %v418_v40 = vld [vmem:[%s27385_s1 + $0x898] sm:$0xff]  ;;  %v2458_v49 = vcombine.high %v83_v31, %v83_v31 }
  0x1b   :  { %v1352_v53 = vcombine.high %v1350_v45, %v1350_v45  ;;  %v2456_v10 = vcombine.high %v2448_v2, %v2448_v2  ;;  %v930_v41 = vld [vmem:[%s27385_s1 + $0x1898] sm:$0x3] }
  0x1d   :  { %4195 = vmatmul.mubr.f32.vlgmr.msra.gmra.mrb[0].mxu1 %v1326_v54  ;;  %v21962_v54 = vpack.c.bf16 %v668_v47, %v156_v46 }
  0x1e   :  { %21953 = vmatpush1.bf16.xpose.msra.mxu1 %v21952_v14  ;;  %4264 = vmatprep.mubr.f32.mxu1 %v1335_v16  ;;  %v669_v14 = vld [vmem:[%s27385_s1 + $0x1070] sm:$0x3] }
  0x1f   :  { %13155 = vmatmul.mubr.f32.vlgmr.msra.gmra.mrb[0].mxu0 %v2414_v57  ;;  %21955 = vmatprep.subr.bf16.mxu1 %v21954_v17  ;;  %v18_v57 = vld [vmem:[%s27384_s0 + $0x18] sm:$0xff]  ;;  %v925_v16 = vld [vmem:[%s27385_s1 + $0x1870] sm:$0x3]  ;;  %v21968_v23 = vpack.c.bf16 %v669_v14, %v157_v13 }
  0x20   :  { %22465 = vmatpush1.bf16.xpose.msra.mxu0 %v22464_v15  ;;  %13224 = vmatprep.mubr.f32.mxu0 %v2423_v18  ;;  %v1360_v63 = vrot.slane %v18_v57, %v23691_v25  ;;  %v1353_v9 = vcombine.high %v18_v57, %v18_v57  ;;  %v413_v15 = vld [vmem:[%s27385_s1 + $0x870] sm:$0xff]  ;;  %v160_v18 = vld [vmem:[%s27385_s1 + $0x88] sm:$0xff]  ;;  %v2472_v57 = vrot.slane %v2458_v49, %v23691_v25 }
  0x21   :  { %22467 = vmatprep.subr.bf16.mxu0 %v22466_v19  ;;  %v672_v19 = vld [vmem:[%s27385_s1 + $0x1088] sm:$0x3]  ;;  %v22480_v24 = vpack.c.bf16 %v925_v16, %v413_v15 }
  0x22   :  { %v1368_v7 = vcombine.high %v1360_v63, %v1360_v63  ;;  %v1367_v17 = vrot.slane %v1353_v9, %v23691_v25 }
  0x24   :  { %v1369_v26 = vcombine.high %v1367_v17, %v1367_v17 }
  0x25   :  { %4265 = vmatmul.mubr.f32.vlgmr.msra.gmra.mrb[0].mxu1 %v1333_v8  ;;  %v21966_v8 = vpack.c.bf16 %v670_v1, %v158_v0  ;;  %v2474_v0 = vcombine.high %v2472_v57, %v2472_v57  ;;  %v22490_v1 = vpack.c.bf16 %v932_v59, %v420_v58 }
  0x26   :  { %21957 = vmatpush1.bf16.xpose.msra.mxu1 %v21956_v33  ;;  %4334 = vmatprep.mubr.f32.mxu1 %v1351_v35  ;;  %v671_v33 = vld [vmem:[%s27385_s1 + $0x1080] sm:$0x3] }
  0x27   :  { %13225 = vmatmul.mubr.f32.vlgmr.msra.gmra.mrb[0].mxu0 %v2421_v11  ;;  %21959 = vmatprep.subr.bf16.mxu1 %v21958_v36  ;;  %v22478_v11 = vpack.c.bf16 %v926_v4, %v414_v3  ;;  %v927_v35 = vld [vmem:[%s27385_s1 + $0x1880] sm:$0x3]  ;;  %v21972_v42 = vpack.c.bf16 %v671_v33, %v159_v32  ;;  %v84_v3 = vld [vmem:[%s27384_s0 + $0x228] sm:$0xff] }
  0x28   :  { %22469 = vmatpush1.bf16.xpose.msra.mxu0 %v22468_v34  ;;  %13294 = vmatprep.mubr.f32.mxu0 %v2439_v38  ;;  %v415_v34 = vld [vmem:[%s27385_s1 + $0x880] sm:$0xff]  ;;  %v674_v38 = vld [vmem:[%s27385_s1 + $0x1098] sm:$0x3] }
  0x29   :  { %22471 = vmatprep.subr.bf16.mxu0 %v22470_v39  ;;  %v2465_v39 = vrot.slane %v83_v31, %v23691_v25  ;;  %v22484_v43 = vpack.c.bf16 %v927_v35, %v415_v34  ;;  %v163_v4 = vld [vmem:[%s27385_s1 + $0xa0] sm:$0xff] }
  0x2b   :  { %v2473_v47 = vcombine.high %v2465_v39, %v2465_v39 }
  0x2d   :  { %4335 = vmatmul.mubr.f32.vlgmr.msra.gmra.mrb[0].mxu1 %v1343_v27  ;;  %v21970_v27 = vpack.c.bf16 %v672_v19, %v160_v18 }
  0x2e   :  { %21961 = vmatpush1.bf16.xpose.msra.mxu1 %v21960_v51  ;;  %4404 = vmatprep.mubr.f32.mxu1 %v1352_v53  ;;  %v673_v51 = vld [vmem:[%s27385_s1 + $0x1090] sm:$0x3] }
  0x2f   :  { %13295 = vmatmul.mubr.f32.vlgmr.msra.gmra.mrb[0].mxu0 %v2431_v30  ;;  %21963 = vmatprep.subr.bf16.mxu1 %v21962_v54  ;;  %v19_v30 = vld [vmem:[%s27384_s0 + $0x20] sm:$0xff]  ;;  %v929_v53 = vld [vmem:[%s27385_s1 + $0x1890] sm:$0x3]  ;;  %v21976_v60 = vpack.c.bf16 %v673_v51, %v161_v50 }
  0x30   :  { %22473 = vmatpush1.bf16.xpose.msra.mxu0 %v22472_v52  ;;  %13364 = vmatprep.mubr.f32.mxu0 %v2440_v55  ;;  %v1377_v36 = vrot.slane %v19_v30, %v23691_v25  ;;  %v1370_v46 = vcombine.high %v19_v30, %v19_v30  ;;  %v417_v52 = vld [vmem:[%s27385_s1 + $0x890] sm:$0xff]  ;;  %v164_v55 = vld [vmem:[%s27385_s1 + $0xa8] sm:$0xff] }
  0x31   :  { %22475 = vmatprep.subr.bf16.mxu0 %v22474_v56  ;;  %v676_v56 = vld [vmem:[%s27385_s1 + $0x10a8] sm:$0x3]  ;;  %v22488_v61 = vpack.c.bf16 %v929_v53, %v417_v52 }
  0x32   :  { %v1385_v44 = vcombine.high %v1377_v36, %v1377_v36  ;;  %v1384_v54 = vrot.slane %v1370_v46, %v23691_v25 }
  0x34   :  { %v1386_v62 = vcombine.high %v1384_v54, %v1384_v54 }
  0x35   :  { %4405 = vmatmul.mubr.f32.vlgmr.msra.gmra.mrb[0].mxu1 %v1350_v45  ;;  %v21974_v45 = vpack.c.bf16 %v674_v38, %v162_v37 }
  0x36   :  { %21965 = vmatpush1.bf16.xpose.msra.mxu1 %v21964_v5  ;;  %4474 = vmatprep.mubr.f32.mxu1 %v1368_v7  ;;  %v675_v5 = vld [vmem:[%s27385_s1 + $0x10a0] sm:$0x3] }
  0x37   :  { %13365 = vmatmul.mubr.f32.vlgmr.msra.gmra.mrb[0].mxu0 %v2438_v48  ;;  %21967 = vmatprep.subr.bf16.mxu1 %v21966_v8  ;;  %v22486_v48 = vpack.c.bf16 %v930_v41, %v418_v40  ;;  %v931_v7 = vld [vmem:[%s27385_s1 + $0x18a0] sm:$0x3] }
  0x38   :  { %22477 = vmatpush1.bf16.xpose.msra.mxu0 %v22476_v6  ;;  %13434 = vmatprep.mubr.f32.mxu0 %v2456_v10  ;;  %v419_v6 = vld [vmem:[%s27385_s1 + $0x8a0] sm:$0xff] }
  0x39   :  { %22479 = vmatprep.subr.bf16.mxu0 %v22478_v11 }
  0x3d   :  { %4475 = vmatmul.mubr.f32.vlgmr.msra.gmra.mrb[0].mxu1 %v1360_v63  ;;  %v21978_v63 = vpack.c.bf16 %v676_v56, %v164_v55 }
  0x3e   :  { %21969 = vmatpush1.bf16.xpose.msra.mxu1 %v21968_v23  ;;  %4544 = vmatprep.mubr.f32.mxu1 %v1369_v26 }
  0x3f   :  { %13435 = vmatmul.mubr.f32.vlgmr.msra.gmra.mrb[0].mxu0 %v2448_v2  ;;  %21971 = vmatprep.subr.bf16.mxu1 %v21970_v27  ;;  %v20_v2 = vld [vmem:[%s27384_s0 + $0x28] sm:$0xff] }
  0x40   :  { %22481 = vmatpush1.bf16.xpose.msra.mxu0 %v22480_v24  ;;  %13504 = vmatprep.mubr.f32.mxu0 %v2457_v28  ;;  %v1394_v8 = vrot.slane %v20_v2, %v23691_v25 }
  0x41   :  { %22483 = vmatprep.subr.bf16.mxu0 %v22482_v29 }
  0x45   :  { %4545 = vmatmul.mubr.f32.vlgmr.msra.gmra.mrb[0].mxu1 %v1367_v17 }
  0x46   :  { %21973 = vmatpush1.bf16.xpose.msra.mxu1 %v21972_v42  ;;  %4614 = vmatprep.mubr.f32.mxu1 %v1385_v44 }
  0x47   :  { %13505 = vmatmul.mubr.f32.vlgmr.msra.gmra.mrb[0].mxu0 %v2455_v20  ;;  %21975 = vmatprep.subr.bf16.mxu1 %v21974_v45 }
  0x48   :  { %22485 = vmatpush1.bf16.xpose.msra.mxu0 %v22484_v43  ;;  %13574 = vmatprep.mubr.f32.mxu0 %v2473_v47 }
  0x49   :  { %22487 = vmatprep.subr.bf16.mxu0 %v22486_v48 }
  0x4d   :  { %4615 = vmatmul.mubr.f32.vlgmr.msra.gmra.mrb[0].mxu1 %v1377_v36 }
  0x4e   :  { %21977 = vmatpush1.bf16.xpose.msra.mxu1 %v21976_v60  ;;  %4684 = vmatprep.mubr.f32.mxu1 %v1386_v62 }
  0x4f   :  { %13575 = vmatmul.mubr.f32.vlgmr.msra.gmra.mrb[0].mxu0 %v2465_v39  ;;  %21979 = vmatprep.subr.bf16.mxu1 %v21978_v63 }
  0x50   :  { %22489 = vmatpush1.bf16.xpose.msra.mxu0 %v22488_v61 }
  0x51   :  { %8 = vsyncpa [#allocation3], 0  ;;  %13644 = vmatprep.mubr.f32.mxu0 %v2474_v0  ;;  %22491 = vmatprep.subr.bf16.mxu0 %v22490_v1  ;;  %v166_v9 = vld [vmem:[%s27385_s1 + $0xb8] sm:$0xff]  ;;  %v2482_v11 = vrot.slane %v84_v3, %v23691_v25  ;;  %v21980_v14 = vpack.c.bf16 %v675_v5, %v163_v4  ;;  %v22492_v15 = vpack.c.bf16 %v931_v7, %v419_v6  ;;  %v165_v22 = vld [vmem:[%s27385_s1 + $0xb0] sm:$0xff]  ;;  %vm21910_vm0 = vcmask 74752  }
  0x52   :  { %v678_v10 = vld [vmem:[%s27385_s1 + $0x10b8] sm:$0x3]  ;;  %v1402_v16 = vcombine.high %v1394_v8, %v1394_v8  ;;  %v1387_v18 = vcombine.high %v20_v2, %v20_v2  ;;  %v2475_v21 = vcombine.high %v84_v3, %v84_v3  ;;  %v677_v23 = vld [vmem:[%s27385_s1 + $0x10b0] sm:$0x3]  ;;  %v168_v28 = vld [vmem:[%s27385_s1 + $0xc8] sm:$0xff] }
  0x53   :  { %v422_v12 = vld [vmem:[%s27385_s1 + $0x8b8] sm:$0xff]  ;;  %v21982_v17 = vpack.c.bf16 %v678_v10, %v166_v9  ;;  %v2490_v19 = vcombine.high %v2482_v11, %v2482_v11  ;;  %v421_v24 = vld [vmem:[%s27385_s1 + $0x8b0] sm:$0xff]  ;;  %v680_v29 = vld [vmem:[%s27385_s1 + $0x10c8] sm:$0x3]  ;;  %v21984_v33 = vpack.c.bf16 %v677_v23, %v165_v22 }
  0x54   :  { %v934_v13 = vld [vmem:[%s27385_s1 + $0x18b8] sm:$0x3]  ;;  %v933_v26 = vld [vmem:[%s27385_s1 + $0x18b0] sm:$0x3]  ;;  %v1401_v27 = vrot.slane %v1387_v18, %v23691_v25  ;;  %v2489_v30 = vrot.slane %v2475_v21, %v23691_v25  ;;  %v424_v31 = vld [vmem:[%s27385_s1 + $0x8c8] sm:$0xff]  ;;  %v21986_v36 = vpack.c.bf16 %v680_v29, %v168_v28 }
  0x55   :  { %v22494_v20 = vpack.c.bf16 %v934_v13, %v422_v12  ;;  %4685 = vmatmul.mubr.f32.vlgmr.msra.gmra.mrb[0].mxu1 %v1384_v54  ;;  %v936_v32 = vld [vmem:[%s27385_s1 + $0x18c8] sm:$0x3]  ;;  %v22496_v34 = vpack.c.bf16 %v933_v26, %v421_v24  ;;  %v21_v39 = vld [vmem:[%s27384_s0 + $0x30] sm:$0xff]  ;;  %v167_v41 = vld [vmem:[%s27385_s1 + $0xc0] sm:$0xff] }
  0x56   :  { %21981 = vmatpush1.bf16.xpose.msra.mxu1 %v21980_v14  ;;  %4754 = vmatprep.mubr.f32.mxu1 %v1402_v16  ;;  %v1403_v35 = vcombine.high %v1401_v27, %v1401_v27  ;;  %v2491_v37 = vcombine.high %v2489_v30, %v2489_v30  ;;  %v22498_v38 = vpack.c.bf16 %v936_v32, %v424_v31  ;;  %v85_v40 = vld [vmem:[%s27384_s0 + $0x230] sm:$0xff]  ;;  %v679_v42 = vld [vmem:[%s27385_s1 + $0x10c0] sm:$0x3]  ;;  %v170_v46 = vld [vmem:[%s27385_s1 + $0xd8] sm:$0xff] }
  0x57   :  { %13645 = vmatmul.mubr.f32.vlgmr.msra.gmra.mrb[0].mxu0 %v2472_v57  ;;  %21983 = vmatprep.subr.bf16.mxu1 %v21982_v17  ;;  %v423_v43 = vld [vmem:[%s27385_s1 + $0x8c0] sm:$0xff]  ;;  %v1411_v45 = vrot.slane %v21_v39, %v23691_v25  ;;  %v682_v47 = vld [vmem:[%s27385_s1 + $0x10d8] sm:$0x3]  ;;  %v2499_v48 = vrot.slane %v85_v40, %v23691_v25  ;;  %v21988_v51 = vpack.c.bf16 %v679_v42, %v167_v41  ;;  %v169_v59 = vld [vmem:[%s27385_s1 + $0xd0] sm:$0xff] }
  0x58   :  { %22493 = vmatpush1.bf16.xpose.msra.mxu0 %v22492_v15  ;;  %13714 = vmatprep.mubr.f32.mxu0 %v2490_v19  ;;  %v935_v44 = vld [vmem:[%s27385_s1 + $0x18c0] sm:$0x3]  ;;  %v426_v49 = vld [vmem:[%s27385_s1 + $0x8d8] sm:$0xff]  ;;  %v21990_v54 = vpack.c.bf16 %v682_v47, %v170_v46  ;;  %v1404_v55 = vcombine.high %v21_v39, %v21_v39  ;;  %v2492_v58 = vcombine.high %v85_v40, %v85_v40  ;;  %v681_v60 = vld [vmem:[%s27385_s1 + $0x10d0] sm:$0x3] }
  0x59   :  { %22495 = vmatprep.subr.bf16.mxu0 %v22494_v20  ;;  %v938_v50 = vld [vmem:[%s27385_s1 + $0x18d8] sm:$0x3]  ;;  %v22500_v52 = vpack.c.bf16 %v935_v44, %v423_v43  ;;  %v1419_v53 = vcombine.high %v1411_v45, %v1411_v45  ;;  %v2507_v56 = vcombine.high %v2499_v48, %v2499_v48  ;;  %v425_v61 = vld [vmem:[%s27385_s1 + $0x8d0] sm:$0xff]  ;;  %v172_v0 = vld [vmem:[%s27385_s1 + $0xe8] sm:$0xff]  ;;  %v21992_v5 = vpack.c.bf16 %v681_v60, %v169_v59 }
  0x5a   :  { %v22502_v57 = vpack.c.bf16 %v938_v50, %v426_v49  ;;  %v937_v62 = vld [vmem:[%s27385_s1 + $0x18d0] sm:$0x3]  ;;  %v1418_v63 = vrot.slane %v1404_v55, %v23691_v25  ;;  %v684_v1 = vld [vmem:[%s27385_s1 + $0x10e8] sm:$0x3]  ;;  %v2506_v2 = vrot.slane %v2492_v58, %v23691_v25  ;;  %v86_v12 = vld [vmem:[%s27384_s0 + $0x238] sm:$0xff] }
  0x5b   :  { %v428_v3 = vld [vmem:[%s27385_s1 + $0x8e8] sm:$0xff]  ;;  %v22504_v6 = vpack.c.bf16 %v937_v62, %v425_v61  ;;  %v171_v13 = vld [vmem:[%s27385_s1 + $0xe0] sm:$0xff]  ;;  %v174_v18 = vld [vmem:[%s27385_s1 + $0xf8] sm:$0xff]  ;;  %v2516_v20 = vrot.slane %v86_v12, %v23691_v25  ;;  %v2509_v31 = vcombine.high %v86_v12, %v86_v12 }
  0x5c   :  { %v940_v4 = vld [vmem:[%s27385_s1 + $0x18e8] sm:$0x3]  ;;  %v1420_v7 = vcombine.high %v1418_v63, %v1418_v63  ;;  %v2508_v9 = vcombine.high %v2506_v2, %v2506_v2  ;;  %v683_v14 = vld [vmem:[%s27385_s1 + $0x10e0] sm:$0x3]  ;;  %v686_v19 = vld [vmem:[%s27385_s1 + $0x10f8] sm:$0x3] }
  0x5d   :  { %4755 = vmatmul.mubr.f32.vlgmr.msra.gmra.mrb[0].mxu1 %v1394_v8  ;;  %v21994_v8 = vpack.c.bf16 %v684_v1, %v172_v0  ;;  %v22506_v10 = vpack.c.bf16 %v940_v4, %v428_v3  ;;  %v427_v15 = vld [vmem:[%s27385_s1 + $0x8e0] sm:$0xff]  ;;  %v430_v21 = vld [vmem:[%s27385_s1 + $0x8f8] sm:$0xff]  ;;  %v21996_v23 = vpack.c.bf16 %v683_v14, %v171_v13  ;;  %v2524_v29 = vcombine.high %v2516_v20, %v2516_v20  ;;  %v173_v32 = vld [vmem:[%s27385_s1 + $0xf0] sm:$0xff] }
  0x5e   :  { %21985 = vmatpush1.bf16.xpose.msra.mxu1 %v21984_v33  ;;  %4824 = vmatprep.mubr.f32.mxu1 %v1403_v35  ;;  %v939_v16 = vld [vmem:[%s27385_s1 + $0x18e0] sm:$0x3]  ;;  %v942_v22 = vld [vmem:[%s27385_s1 + $0x18f8] sm:$0x3]  ;;  %v685_v33 = vld [vmem:[%s27385_s1 + $0x10f0] sm:$0x3]  ;;  %v2523_v39 = vrot.slane %v2509_v31, %v23691_v25 }
  0x5f   :  { %13715 = vmatmul.mubr.f32.vlgmr.msra.gmra.mrb[0].mxu0 %v2482_v11  ;;  %21987 = vmatprep.subr.bf16.mxu1 %v21986_v36  ;;  %v22_v11 = vld [vmem:[%s27384_s0 + $0x38] sm:$0xff]  ;;  %v22508_v24 = vpack.c.bf16 %v939_v16, %v427_v15  ;;  %v941_v35 = vld [vmem:[%s27385_s1 + $0x18f0] sm:$0x3]  ;;  %v432_v40 = vld [vmem:[%s27385_s1 + $0x908] sm:$0xff]  ;;  %v22000_v42 = vpack.c.bf16 %v685_v33, %v173_v32 }
  0x60   :  { %22497 = vmatpush1.bf16.xpose.msra.mxu0 %v22496_v34  ;;  %13784 = vmatprep.mubr.f32.mxu0 %v2491_v37  ;;  %v1428_v17 = vrot.slane %v22_v11, %v23691_v25  ;;  %v1421_v28 = vcombine.high %v22_v11, %v22_v11  ;;  %v429_v34 = vld [vmem:[%s27385_s1 + $0x8f0] sm:$0xff]  ;;  %v176_v37 = vld [vmem:[%s27385_s1 + $0x108] sm:$0xff]  ;;  %v2525_v46 = vcombine.high %v2523_v39, %v2523_v39  ;;  %v87_v49 = vld [vmem:[%s27384_s0 + $0x240] sm:$0xff] }
  0x61   :  { %22499 = vmatprep.subr.bf16.mxu0 %v22498_v38  ;;  %v688_v38 = vld [vmem:[%s27385_s1 + $0x1108] sm:$0x3]  ;;  %v22512_v43 = vpack.c.bf16 %v941_v35, %v429_v34  ;;  %v175_v50 = vld [vmem:[%s27385_s1 + $0x100] sm:$0xff]  ;;  %v178_v55 = vld [vmem:[%s27385_s1 + $0x118] sm:$0xff]  ;;  %v2526_v3 = vcombine.high %v87_v49, %v87_v49 }
  0x62   :  { %v1436_v26 = vcombine.high %v1428_v17, %v1428_v17  ;;  %v1435_v36 = vrot.slane %v1421_v28, %v23691_v25  ;;  %v944_v41 = vld [vmem:[%s27385_s1 + $0x1908] sm:$0x3]  ;;  %v434_v58 = vld [vmem:[%s27385_s1 + $0x918] sm:$0xff]  ;;  %v177_v4 = vld [vmem:[%s27385_s1 + $0x110] sm:$0xff] }
  0x63   :  { %v22514_v47 = vpack.c.bf16 %v944_v41, %v432_v40  ;;  %v946_v59 = vld [vmem:[%s27385_s1 + $0x1918] sm:$0x3]  ;;  %v2540_v11 = vrot.slane %v2526_v3, %v23691_v25  ;;  %v436_v12 = vld [vmem:[%s27385_s1 + $0x928] sm:$0xff]  ;;  %v181_v41 = vld [vmem:[%s27385_s1 + $0x130] sm:$0xff] }
  0x64   :  { %v1437_v44 = vcombine.high %v1435_v36, %v1435_v36  ;;  %v948_v13 = vld [vmem:[%s27385_s1 + $0x1928] sm:$0x3]  ;;  %v182_v28 = vld [vmem:[%s27385_s1 + $0x138] sm:$0xff] }
  0x65   :  { %4825 = vmatmul.mubr.f32.vlgmr.msra.gmra.mrb[0].mxu1 %v1401_v27  ;;  %v21998_v27 = vpack.c.bf16 %v686_v19, %v174_v18  ;;  %v2542_v18 = vcombine.high %v2540_v11, %v2540_v11  ;;  %v22522_v19 = vpack.c.bf16 %v948_v13, %v436_v12  ;;  %v438_v31 = vld [vmem:[%s27385_s1 + $0x938] sm:$0xff]  ;;  %v185_v13 = vld [vmem:[%s27385_s1 + $0x150] sm:$0xff] }
  0x66   :  { %21989 = vmatpush1.bf16.xpose.msra.mxu1 %v21988_v51  ;;  %4894 = vmatprep.mubr.f32.mxu1 %v1419_v53  ;;  %v687_v51 = vld [vmem:[%s27385_s1 + $0x1100] sm:$0x3]  ;;  %v950_v32 = vld [vmem:[%s27385_s1 + $0x1938] sm:$0x3] }
  0x67   :  { %13785 = vmatmul.mubr.f32.vlgmr.msra.gmra.mrb[0].mxu0 %v2489_v30  ;;  %21991 = vmatprep.subr.bf16.mxu1 %v21990_v54  ;;  %v22510_v30 = vpack.c.bf16 %v942_v22, %v430_v21  ;;  %v943_v53 = vld [vmem:[%s27385_s1 + $0x1900] sm:$0x3]  ;;  %v22004_v60 = vpack.c.bf16 %v687_v51, %v175_v50  ;;  %v88_v21 = vld [vmem:[%s27384_s0 + $0x248] sm:$0xff]  ;;  %v442_v3 = vld [vmem:[%s27385_s1 + $0x958] sm:$0xff] }
  0x68   :  { %22501 = vmatpush1.bf16.xpose.msra.mxu0 %v22500_v52  ;;  %13854 = vmatprep.mubr.f32.mxu0 %v2507_v56  ;;  %v431_v52 = vld [vmem:[%s27385_s1 + $0x900] sm:$0xff]  ;;  %v690_v56 = vld [vmem:[%s27385_s1 + $0x1118] sm:$0x3]  ;;  %v2543_v40 = vcombine.high %v88_v21, %v88_v21  ;;  %v952_v50 = vld [vmem:[%s27385_s1 + $0x1948] sm:$0x3] }
  0x69   :  { %22503 = vmatprep.subr.bf16.mxu0 %v22502_v57  ;;  %v2533_v57 = vrot.slane %v87_v49, %v23691_v25  ;;  %v22516_v61 = vpack.c.bf16 %v943_v53, %v431_v52  ;;  %v179_v22 = vld [vmem:[%s27385_s1 + $0x120] sm:$0xff]  ;;  %v440_v49 = vld [vmem:[%s27385_s1 + $0x948] sm:$0xff] }
  0x6b   :  { %v2541_v1 = vcombine.high %v2533_v57, %v2533_v57 }
  0x6d   :  { %4895 = vmatmul.mubr.f32.vlgmr.msra.gmra.mrb[0].mxu1 %v1411_v45  ;;  %v22002_v45 = vpack.c.bf16 %v688_v38, %v176_v37 }
  0x6e   :  { %21993 = vmatpush1.bf16.xpose.msra.mxu1 %v21992_v5  ;;  %4964 = vmatprep.mubr.f32.mxu1 %v1420_v7  ;;  %v689_v5 = vld [vmem:[%s27385_s1 + $0x1110] sm:$0x3] }
  0x6f   :  { %13855 = vmatmul.mubr.f32.vlgmr.msra.gmra.mrb[0].mxu0 %v2499_v48  ;;  %21995 = vmatprep.subr.bf16.mxu1 %v21994_v8  ;;  %v23_v48 = vld [vmem:[%s27384_s0 + $0x40] sm:$0xff]  ;;  %v945_v7 = vld [vmem:[%s27385_s1 + $0x1910] sm:$0x3]  ;;  %v22008_v14 = vpack.c.bf16 %v689_v5, %v177_v4  ;;  %v954_v4 = vld [vmem:[%s27385_s1 + $0x1958] sm:$0x3] }
  0x70   :  { %22505 = vmatpush1.bf16.xpose.msra.mxu0 %v22504_v6  ;;  %13924 = vmatprep.mubr.f32.mxu0 %v2508_v9  ;;  %v1445_v54 = vrot.slane %v23_v48, %v23691_v25  ;;  %v1438_v0 = vcombine.high %v23_v48, %v23_v48  ;;  %v433_v6 = vld [vmem:[%s27385_s1 + $0x910] sm:$0xff]  ;;  %v180_v9 = vld [vmem:[%s27385_s1 + $0x128] sm:$0xff]  ;;  %v2557_v48 = vrot.slane %v2543_v40, %v23691_v25  ;;  %v446_v40 = vld [vmem:[%s27385_s1 + $0x978] sm:$0xff] }
  0x71   :  { %22507 = vmatprep.subr.bf16.mxu0 %v22506_v10  ;;  %v692_v10 = vld [vmem:[%s27385_s1 + $0x1128] sm:$0x3]  ;;  %v22520_v15 = vpack.c.bf16 %v945_v7, %v433_v6 }
  0x72   :  { %v1453_v62 = vcombine.high %v1445_v54, %v1445_v54  ;;  %v1452_v8 = vrot.slane %v1438_v0, %v23691_v25  ;;  %v186_v0 = vld [vmem:[%s27385_s1 + $0x158] sm:$0xff] }
  0x74   :  { %v1454_v16 = vcombine.high %v1452_v8, %v1452_v8 }
  0x75   :  { %4965 = vmatmul.mubr.f32.vlgmr.msra.gmra.mrb[0].mxu1 %v1418_v63  ;;  %v22006_v63 = vpack.c.bf16 %v690_v56, %v178_v55  ;;  %v2559_v55 = vcombine.high %v2557_v48, %v2557_v48  ;;  %v22530_v56 = vpack.c.bf16 %v952_v50, %v440_v49  ;;  %v189_v50 = vld [vmem:[%s27385_s1 + $0x170] sm:$0xff] }
  0x76   :  { %21997 = vmatpush1.bf16.xpose.msra.mxu1 %v21996_v23  ;;  %5034 = vmatprep.mubr.f32.mxu1 %v1436_v26  ;;  %v691_v23 = vld [vmem:[%s27385_s1 + $0x1120] sm:$0x3] }
  0x77   :  { %13925 = vmatmul.mubr.f32.vlgmr.msra.gmra.mrb[0].mxu0 %v2506_v2  ;;  %21999 = vmatprep.subr.bf16.mxu1 %v21998_v27  ;;  %v22518_v2 = vpack.c.bf16 %v946_v59, %v434_v58  ;;  %v947_v26 = vld [vmem:[%s27385_s1 + $0x1920] sm:$0x3]  ;;  %v22012_v33 = vpack.c.bf16 %v691_v23, %v179_v22  ;;  %v89_v58 = vld [vmem:[%s27384_s0 + $0x250] sm:$0xff]  ;;  %v956_v22 = vld [vmem:[%s27385_s1 + $0x1968] sm:$0x3] }
  0x78   :  { %22509 = vmatpush1.bf16.xpose.msra.mxu0 %v22508_v24  ;;  %13994 = vmatprep.mubr.f32.mxu0 %v2524_v29  ;;  %v435_v24 = vld [vmem:[%s27385_s1 + $0x920] sm:$0xff]  ;;  %v694_v29 = vld [vmem:[%s27385_s1 + $0x1138] sm:$0x3]  ;;  %v2560_v12 = vcombine.high %v89_v58, %v89_v58 }
  0x79   :  { %22511 = vmatprep.subr.bf16.mxu0 %v22510_v30  ;;  %v2550_v30 = vrot.slane %v88_v21, %v23691_v25  ;;  %v22524_v34 = vpack.c.bf16 %v947_v26, %v435_v24  ;;  %v183_v59 = vld [vmem:[%s27385_s1 + $0x140] sm:$0xff]  ;;  %v444_v21 = vld [vmem:[%s27385_s1 + $0x968] sm:$0xff] }
  0x7b   :  { %v2558_v38 = vcombine.high %v2550_v30, %v2550_v30 }
  0x7d   :  { %5035 = vmatmul.mubr.f32.vlgmr.msra.gmra.mrb[0].mxu1 %v1428_v17  ;;  %v22010_v17 = vpack.c.bf16 %v692_v10, %v180_v9 }
  0x7e   :  { %22001 = vmatpush1.bf16.xpose.msra.mxu1 %v22000_v42  ;;  %5104 = vmatprep.mubr.f32.mxu1 %v1437_v44  ;;  %v693_v42 = vld [vmem:[%s27385_s1 + $0x1130] sm:$0x3] }
  0x7f   :  { %13995 = vmatmul.mubr.f32.vlgmr.msra.gmra.mrb[0].mxu0 %v2516_v20  ;;  %22003 = vmatprep.subr.bf16.mxu1 %v22002_v45  ;;  %v24_v20 = vld [vmem:[%s27384_s0 + $0x48] sm:$0xff]  ;;  %v949_v44 = vld [vmem:[%s27385_s1 + $0x1930] sm:$0x3]  ;;  %v22016_v51 = vpack.c.bf16 %v693_v42, %v181_v41  ;;  %v958_v41 = vld [vmem:[%s27385_s1 + $0x1978] sm:$0x3] }
  0x80   :  { %22513 = vmatpush1.bf16.xpose.msra.mxu0 %v22512_v43  ;;  %14064 = vmatprep.mubr.f32.mxu0 %v2525_v46  ;;  %v1462_v27 = vrot.slane %v24_v20, %v23691_v25  ;;  %v1455_v37 = vcombine.high %v24_v20, %v24_v20  ;;  %v437_v43 = vld [vmem:[%s27385_s1 + $0x930] sm:$0xff]  ;;  %v184_v46 = vld [vmem:[%s27385_s1 + $0x148] sm:$0xff]  ;;  %v2574_v20 = vrot.slane %v2560_v12, %v23691_v25  ;;  %v450_v12 = vld [vmem:[%s27385_s1 + $0x998] sm:$0xff] }
  0x81   :  { %22515 = vmatprep.subr.bf16.mxu0 %v22514_v47  ;;  %v696_v47 = vld [vmem:[%s27385_s1 + $0x1148] sm:$0x3]  ;;  %v22528_v52 = vpack.c.bf16 %v949_v44, %v437_v43 }
  0x82   :  { %v1470_v35 = vcombine.high %v1462_v27, %v1462_v27  ;;  %v1469_v45 = vrot.slane %v1455_v37, %v23691_v25  ;;  %v190_v37 = vld [vmem:[%s27385_s1 + $0x178] sm:$0xff] }
  0x84   :  { %v1471_v53 = vcombine.high %v1469_v45, %v1469_v45 }
  0x85   :  { %5105 = vmatmul.mubr.f32.vlgmr.msra.gmra.mrb[0].mxu1 %v1435_v36  ;;  %v22014_v36 = vpack.c.bf16 %v694_v29, %v182_v28  ;;  %v2576_v28 = vcombine.high %v2574_v20, %v2574_v20  ;;  %v22538_v29 = vpack.c.bf16 %v956_v22, %v444_v21  ;;  %v193_v22 = vld [vmem:[%s27385_s1 + $0x190] sm:$0xff] }
  0x86   :  { %22005 = vmatpush1.bf16.xpose.msra.mxu1 %v22004_v60  ;;  %5174 = vmatprep.mubr.f32.mxu1 %v1453_v62  ;;  %v695_v60 = vld [vmem:[%s27385_s1 + $0x1140] sm:$0x3] }
  0x87   :  { %14065 = vmatmul.mubr.f32.vlgmr.msra.gmra.mrb[0].mxu0 %v2523_v39  ;;  %22007 = vmatprep.subr.bf16.mxu1 %v22006_v63  ;;  %v22526_v39 = vpack.c.bf16 %v950_v32, %v438_v31  ;;  %v951_v62 = vld [vmem:[%s27385_s1 + $0x1940] sm:$0x3]  ;;  %v22020_v5 = vpack.c.bf16 %v695_v60, %v183_v59  ;;  %v90_v31 = vld [vmem:[%s27384_s0 + $0x258] sm:$0xff]  ;;  %v960_v59 = vld [vmem:[%s27385_s1 + $0x1988] sm:$0x3] }
  0x88   :  { %22517 = vmatpush1.bf16.xpose.msra.mxu0 %v22516_v61  ;;  %14134 = vmatprep.mubr.f32.mxu0 %v2541_v1  ;;  %v439_v61 = vld [vmem:[%s27385_s1 + $0x940] sm:$0xff]  ;;  %v698_v1 = vld [vmem:[%s27385_s1 + $0x1158] sm:$0x3]  ;;  %v2577_v49 = vcombine.high %v90_v31, %v90_v31 }
  0x89   :  { %22519 = vmatprep.subr.bf16.mxu0 %v22518_v2  ;;  %v2567_v2 = vrot.slane %v89_v58, %v23691_v25  ;;  %v22532_v6 = vpack.c.bf16 %v951_v62, %v439_v61  ;;  %v187_v32 = vld [vmem:[%s27385_s1 + $0x160] sm:$0xff]  ;;  %v448_v58 = vld [vmem:[%s27385_s1 + $0x988] sm:$0xff] }
  0x8b   :  { %v2575_v10 = vcombine.high %v2567_v2, %v2567_v2 }
  0x8d   :  { %5175 = vmatmul.mubr.f32.vlgmr.msra.gmra.mrb[0].mxu1 %v1445_v54  ;;  %v22018_v54 = vpack.c.bf16 %v696_v47, %v184_v46 }
  0x8e   :  { %22009 = vmatpush1.bf16.xpose.msra.mxu1 %v22008_v14  ;;  %5244 = vmatprep.mubr.f32.mxu1 %v1454_v16  ;;  %v697_v14 = vld [vmem:[%s27385_s1 + $0x1150] sm:$0x3] }
  0x8f   :  { %14135 = vmatmul.mubr.f32.vlgmr.msra.gmra.mrb[0].mxu0 %v2533_v57  ;;  %22011 = vmatprep.subr.bf16.mxu1 %v22010_v17  ;;  %v25_v57 = vld [vmem:[%s27384_s0 + $0x50] sm:$0xff]  ;;  %v22024_v23 = vpack.c.bf16 %v697_v14, %v185_v13  ;;  %v962_v13 = vld [vmem:[%s27385_s1 + $0x1998] sm:$0x3] }
  0x90   :  { %22521 = vmatpush1.bf16.xpose.msra.mxu0 %v22520_v15  ;;  %14204 = vmatprep.mubr.f32.mxu0 %v2542_v18  ;;  %v1479_v63 = vrot.slane %v25_v57, %v23691_v25  ;;  %v1472_v9 = vcombine.high %v25_v57, %v25_v57  ;;  %v441_v15 = vld [vmem:[%s27385_s1 + $0x950] sm:$0xff]  ;;  %v188_v18 = vld [vmem:[%s27385_s1 + $0x168] sm:$0xff]  ;;  %v2591_v57 = vrot.slane %v2577_v49, %v23691_v25  ;;  %v454_v49 = vld [vmem:[%s27385_s1 + $0x9b8] sm:$0xff] }
  0x91   :  { %22523 = vmatprep.subr.bf16.mxu0 %v22522_v19  ;;  %v953_v16 = vld [vmem:[%s27385_s1 + $0x1950] sm:$0x3]  ;;  %v700_v19 = vld [vmem:[%s27385_s1 + $0x1168] sm:$0x3] }
  0x92   :  { %v1487_v7 = vcombine.high %v1479_v63, %v1479_v63  ;;  %v1486_v17 = vrot.slane %v1472_v9, %v23691_v25  ;;  %v22536_v24 = vpack.c.bf16 %v953_v16, %v441_v15  ;;  %v194_v9 = vld [vmem:[%s27385_s1 + $0x198] sm:$0xff] }
  0x94   :  { %v1488_v26 = vcombine.high %v1486_v17, %v1486_v17 }
  0x95   :  { %5245 = vmatmul.mubr.f32.vlgmr.msra.gmra.mrb[0].mxu1 %v1452_v8  ;;  %v22022_v8 = vpack.c.bf16 %v698_v1, %v186_v0  ;;  %v2593_v0 = vcombine.high %v2591_v57, %v2591_v57  ;;  %v22546_v1 = vpack.c.bf16 %v960_v59, %v448_v58  ;;  %v197_v59 = vld [vmem:[%s27385_s1 + $0x1b0] sm:$0xff] }
  0x96   :  { %22013 = vmatpush1.bf16.xpose.msra.mxu1 %v22012_v33  ;;  %5314 = vmatprep.mubr.f32.mxu1 %v1470_v35  ;;  %v699_v33 = vld [vmem:[%s27385_s1 + $0x1160] sm:$0x3] }
  0x97   :  { %14205 = vmatmul.mubr.f32.vlgmr.msra.gmra.mrb[0].mxu0 %v2540_v11  ;;  %22015 = vmatprep.subr.bf16.mxu1 %v22014_v36  ;;  %v22534_v11 = vpack.c.bf16 %v954_v4, %v442_v3  ;;  %v955_v35 = vld [vmem:[%s27385_s1 + $0x1960] sm:$0x3]  ;;  %v22028_v42 = vpack.c.bf16 %v699_v33, %v187_v32  ;;  %v964_v32 = vld [vmem:[%s27385_s1 + $0x19a8] sm:$0x3] }
  0x98   :  { %22525 = vmatpush1.bf16.xpose.msra.mxu0 %v22524_v34  ;;  %14274 = vmatprep.mubr.f32.mxu0 %v2558_v38  ;;  %v443_v34 = vld [vmem:[%s27385_s1 + $0x960] sm:$0xff]  ;;  %v702_v38 = vld [vmem:[%s27385_s1 + $0x1178] sm:$0x3] }
  0x99   :  { %22527 = vmatprep.subr.bf16.mxu0 %v22526_v39  ;;  %v2584_v39 = vrot.slane %v90_v31, %v23691_v25  ;;  %v22540_v43 = vpack.c.bf16 %v955_v35, %v443_v34  ;;  %v91_v3 = vld [vmem:[%s27384_s0 + $0x260] sm:$0xff]  ;;  %v452_v31 = vld [vmem:[%s27385_s1 + $0x9a8] sm:$0xff] }
  0x9a   :  { %v191_v4 = vld [vmem:[%s27385_s1 + $0x180] sm:$0xff]  ;;  %v2594_v21 = vcombine.high %v91_v3, %v91_v3 }
  0x9b   :  { %v2592_v47 = vcombine.high %v2584_v39, %v2584_v39 }
  0x9d   :  { %5315 = vmatmul.mubr.f32.vlgmr.msra.gmra.mrb[0].mxu1 %v1462_v27  ;;  %v22026_v27 = vpack.c.bf16 %v700_v19, %v188_v18 }
  0x9e   :  { %22017 = vmatpush1.bf16.xpose.msra.mxu1 %v22016_v51  ;;  %5384 = vmatprep.mubr.f32.mxu1 %v1471_v53  ;;  %v701_v51 = vld [vmem:[%s27385_s1 + $0x1170] sm:$0x3] }
  0x9f   :  { %14275 = vmatmul.mubr.f32.vlgmr.msra.gmra.mrb[0].mxu0 %v2550_v30  ;;  %22019 = vmatprep.subr.bf16.mxu1 %v22018_v54  ;;  %v26_v30 = vld [vmem:[%s27384_s0 + $0x58] sm:$0xff]  ;;  %v957_v53 = vld [vmem:[%s27385_s1 + $0x1970] sm:$0x3]  ;;  %v22032_v60 = vpack.c.bf16 %v701_v51, %v189_v50 }
  0xa0   :  { %22529 = vmatpush1.bf16.xpose.msra.mxu0 %v22528_v52  ;;  %14344 = vmatprep.mubr.f32.mxu0 %v2559_v55  ;;  %v1496_v36 = vrot.slane %v26_v30, %v23691_v25  ;;  %v1489_v46 = vcombine.high %v26_v30, %v26_v30  ;;  %v445_v52 = vld [vmem:[%s27385_s1 + $0x970] sm:$0xff]  ;;  %v192_v55 = vld [vmem:[%s27385_s1 + $0x188] sm:$0xff]  ;;  %v2608_v30 = vrot.slane %v2594_v21, %v23691_v25  ;;  %v966_v50 = vld [vmem:[%s27385_s1 + $0x19b8] sm:$0x3] }
  0xa1   :  { %22531 = vmatprep.subr.bf16.mxu0 %v22530_v56  ;;  %v704_v56 = vld [vmem:[%s27385_s1 + $0x1188] sm:$0x3]  ;;  %v22544_v61 = vpack.c.bf16 %v957_v53, %v445_v52  ;;  %v458_v21 = vld [vmem:[%s27385_s1 + $0x9d8] sm:$0xff] }
  0xa2   :  { %v1504_v44 = vcombine.high %v1496_v36, %v1496_v36  ;;  %v1503_v54 = vrot.slane %v1489_v46, %v23691_v25  ;;  %v198_v46 = vld [vmem:[%s27385_s1 + $0x1b8] sm:$0xff] }
  0xa4   :  { %v1505_v62 = vcombine.high %v1503_v54, %v1503_v54 }
  0xa5   :  { %5385 = vmatmul.mubr.f32.vlgmr.msra.gmra.mrb[0].mxu1 %v1469_v45  ;;  %v22030_v45 = vpack.c.bf16 %v702_v38, %v190_v37  ;;  %v2610_v37 = vcombine.high %v2608_v30, %v2608_v30  ;;  %v22554_v38 = vpack.c.bf16 %v964_v32, %v452_v31  ;;  %v201_v32 = vld [vmem:[%s27385_s1 + $0x1d0] sm:$0xff] }
  0xa6   :  { %22021 = vmatpush1.bf16.xpose.msra.mxu1 %v22020_v5  ;;  %5454 = vmatprep.mubr.f32.mxu1 %v1487_v7  ;;  %v703_v5 = vld [vmem:[%s27385_s1 + $0x1180] sm:$0x3] }
  0xa7   :  { %14345 = vmatmul.mubr.f32.vlgmr.msra.gmra.mrb[0].mxu0 %v2557_v48  ;;  %22023 = vmatprep.subr.bf16.mxu1 %v22022_v8  ;;  %v22542_v48 = vpack.c.bf16 %v958_v41, %v446_v40  ;;  %v959_v7 = vld [vmem:[%s27385_s1 + $0x1980] sm:$0x3]  ;;  %v22036_v14 = vpack.c.bf16 %v703_v5, %v191_v4  ;;  %v92_v40 = vld [vmem:[%s27384_s0 + $0x268] sm:$0xff] }
  0xa8   :  { %22533 = vmatpush1.bf16.xpose.msra.mxu0 %v22532_v6  ;;  %14414 = vmatprep.mubr.f32.mxu0 %v2575_v10  ;;  %v447_v6 = vld [vmem:[%s27385_s1 + $0x980] sm:$0xff]  ;;  %v706_v10 = vld [vmem:[%s27385_s1 + $0x1198] sm:$0x3]  ;;  %v2611_v58 = vcombine.high %v92_v40, %v92_v40  ;;  %v968_v4 = vld [vmem:[%s27385_s1 + $0x19c8] sm:$0x3] }
  0xa9   :  { %22535 = vmatprep.subr.bf16.mxu0 %v22534_v11  ;;  %v2601_v11 = vrot.slane %v91_v3, %v23691_v25  ;;  %v22548_v15 = vpack.c.bf16 %v959_v7, %v447_v6  ;;  %v195_v41 = vld [vmem:[%s27385_s1 + $0x1a0] sm:$0xff]  ;;  %v456_v3 = vld [vmem:[%s27385_s1 + $0x9c8] sm:$0xff] }
  0xab   :  { %v2609_v19 = vcombine.high %v2601_v11, %v2601_v11 }
  0xad   :  { %5455 = vmatmul.mubr.f32.vlgmr.msra.gmra.mrb[0].mxu1 %v1479_v63  ;;  %v22034_v63 = vpack.c.bf16 %v704_v56, %v192_v55 }
  0xae   :  { %22025 = vmatpush1.bf16.xpose.msra.mxu1 %v22024_v23  ;;  %5524 = vmatprep.mubr.f32.mxu1 %v1488_v26  ;;  %v705_v23 = vld [vmem:[%s27385_s1 + $0x1190] sm:$0x3] }
  0xaf   :  { %14415 = vmatmul.mubr.f32.vlgmr.msra.gmra.mrb[0].mxu0 %v2567_v2  ;;  %22027 = vmatprep.subr.bf16.mxu1 %v22026_v27  ;;  %v27_v2 = vld [vmem:[%s27384_s0 + $0x60] sm:$0xff]  ;;  %v961_v26 = vld [vmem:[%s27385_s1 + $0x1990] sm:$0x3]  ;;  %v22040_v33 = vpack.c.bf16 %v705_v23, %v193_v22  ;;  %v970_v22 = vld [vmem:[%s27385_s1 + $0x19d8] sm:$0x3] }
  0xb0   :  { %22537 = vmatpush1.bf16.xpose.msra.mxu0 %v22536_v24  ;;  %14484 = vmatprep.mubr.f32.mxu0 %v2576_v28  ;;  %v1513_v8 = vrot.slane %v27_v2, %v23691_v25  ;;  %v1506_v18 = vcombine.high %v27_v2, %v27_v2  ;;  %v449_v24 = vld [vmem:[%s27385_s1 + $0x990] sm:$0xff]  ;;  %v196_v28 = vld [vmem:[%s27385_s1 + $0x1a8] sm:$0xff]  ;;  %v2625_v2 = vrot.slane %v2611_v58, %v23691_v25  ;;  %v462_v58 = vld [vmem:[%s27385_s1 + $0x9f8] sm:$0xff] }
  0xb1   :  { %22539 = vmatprep.subr.bf16.mxu0 %v22538_v29  ;;  %v708_v29 = vld [vmem:[%s27385_s1 + $0x11a8] sm:$0x3]  ;;  %v22552_v34 = vpack.c.bf16 %v961_v26, %v449_v24 }
  0xb2   :  { %v1521_v16 = vcombine.high %v1513_v8, %v1513_v8  ;;  %v1520_v27 = vrot.slane %v1506_v18, %v23691_v25  ;;  %v202_v18 = vld [vmem:[%s27385_s1 + $0x1d8] sm:$0xff] }
  0xb4   :  { %v1522_v35 = vcombine.high %v1520_v27, %v1520_v27 }
  0xb5   :  { %5525 = vmatmul.mubr.f32.vlgmr.msra.gmra.mrb[0].mxu1 %v1486_v17  ;;  %v22038_v17 = vpack.c.bf16 %v706_v10, %v194_v9  ;;  %v2627_v9 = vcombine.high %v2625_v2, %v2625_v2  ;;  %v22562_v10 = vpack.c.bf16 %v968_v4, %v456_v3  ;;  %v205_v4 = vld [vmem:[%s27385_s1 + $0x1f0] sm:$0xff] }
  0xb6   :  { %22029 = vmatpush1.bf16.xpose.msra.mxu1 %v22028_v42  ;;  %5594 = vmatprep.mubr.f32.mxu1 %v1504_v44  ;;  %v707_v42 = vld [vmem:[%s27385_s1 + $0x11a0] sm:$0x3] }
  0xb7   :  { %14485 = vmatmul.mubr.f32.vlgmr.msra.gmra.mrb[0].mxu0 %v2574_v20  ;;  %22031 = vmatprep.subr.bf16.mxu1 %v22030_v45  ;;  %v22550_v20 = vpack.c.bf16 %v962_v13, %v450_v12  ;;  %v963_v44 = vld [vmem:[%s27385_s1 + $0x19a0] sm:$0x3]  ;;  %v22044_v51 = vpack.c.bf16 %v707_v42, %v195_v41  ;;  %v93_v12 = vld [vmem:[%s27384_s0 + $0x270] sm:$0xff]  ;;  %v972_v41 = vld [vmem:[%s27385_s1 + $0x19e8] sm:$0x3] }
  0xb8   :  { %22541 = vmatpush1.bf16.xpose.msra.mxu0 %v22540_v43  ;;  %14554 = vmatprep.mubr.f32.mxu0 %v2592_v47  ;;  %v451_v43 = vld [vmem:[%s27385_s1 + $0x9a0] sm:$0xff]  ;;  %v710_v47 = vld [vmem:[%s27385_s1 + $0x11b8] sm:$0x3]  ;;  %v2628_v31 = vcombine.high %v93_v12, %v93_v12 }
  0xb9   :  { %22543 = vmatprep.subr.bf16.mxu0 %v22542_v48  ;;  %v2618_v48 = vrot.slane %v92_v40, %v23691_v25  ;;  %v22556_v52 = vpack.c.bf16 %v963_v44, %v451_v43  ;;  %v199_v13 = vld [vmem:[%s27385_s1 + $0x1c0] sm:$0xff]  ;;  %v460_v40 = vld [vmem:[%s27385_s1 + $0x9e8] sm:$0xff] }
  0xbb   :  { %v2626_v56 = vcombine.high %v2618_v48, %v2618_v48 }
  0xbd   :  { %5595 = vmatmul.mubr.f32.vlgmr.msra.gmra.mrb[0].mxu1 %v1496_v36  ;;  %v22042_v36 = vpack.c.bf16 %v708_v29, %v196_v28 }
  0xbe   :  { %22033 = vmatpush1.bf16.xpose.msra.mxu1 %v22032_v60  ;;  %5664 = vmatprep.mubr.f32.mxu1 %v1505_v62  ;;  %v709_v60 = vld [vmem:[%s27385_s1 + $0x11b0] sm:$0x3] }
  0xbf   :  { %14555 = vmatmul.mubr.f32.vlgmr.msra.gmra.mrb[0].mxu0 %v2584_v39  ;;  %22035 = vmatprep.subr.bf16.mxu1 %v22034_v63  ;;  %v28_v39 = vld [vmem:[%s27384_s0 + $0x68] sm:$0xff]  ;;  %v965_v62 = vld [vmem:[%s27385_s1 + $0x19b0] sm:$0x3]  ;;  %v22048_v5 = vpack.c.bf16 %v709_v60, %v197_v59  ;;  %v974_v59 = vld [vmem:[%s27385_s1 + $0x19f8] sm:$0x3] }
  0xc0   :  { %22545 = vmatpush1.bf16.xpose.msra.mxu0 %v22544_v61  ;;  %14624 = vmatprep.mubr.f32.mxu0 %v2593_v0  ;;  %v1530_v45 = vrot.slane %v28_v39, %v23691_v25  ;;  %v1523_v55 = vcombine.high %v28_v39, %v28_v39  ;;  %v453_v61 = vld [vmem:[%s27385_s1 + $0x9b0] sm:$0xff]  ;;  %v200_v0 = vld [vmem:[%s27385_s1 + $0x1c8] sm:$0xff]  ;;  %v2642_v39 = vrot.slane %v2628_v31, %v23691_v25  ;;  %v466_v31 = vld [vmem:[%s27385_s1 + $0xa18] sm:$0xff] }
  0xc1   :  { %22547 = vmatprep.subr.bf16.mxu0 %v22546_v1  ;;  %v712_v1 = vld [vmem:[%s27385_s1 + $0x11c8] sm:$0x3]  ;;  %v22560_v6 = vpack.c.bf16 %v965_v62, %v453_v61 }
  0xc2   :  { %v1538_v53 = vcombine.high %v1530_v45, %v1530_v45  ;;  %v1537_v63 = vrot.slane %v1523_v55, %v23691_v25  ;;  %v206_v55 = vld [vmem:[%s27385_s1 + $0x1f8] sm:$0xff] }
  0xc4   :  { %v1539_v7 = vcombine.high %v1537_v63, %v1537_v63 }
  0xc5   :  { %5665 = vmatmul.mubr.f32.vlgmr.msra.gmra.mrb[0].mxu1 %v1503_v54  ;;  %v22046_v54 = vpack.c.bf16 %v710_v47, %v198_v46  ;;  %v2644_v46 = vcombine.high %v2642_v39, %v2642_v39  ;;  %v22570_v47 = vpack.c.bf16 %v972_v41, %v460_v40  ;;  %v209_v41 = vld [vmem:[%s27385_s1 + $0x210] sm:$0xff] }
  0xc6   :  { %22037 = vmatpush1.bf16.xpose.msra.mxu1 %v22036_v14  ;;  %5734 = vmatprep.mubr.f32.mxu1 %v1521_v16  ;;  %v711_v14 = vld [vmem:[%s27385_s1 + $0x11c0] sm:$0x3] }
  0xc7   :  { %14625 = vmatmul.mubr.f32.vlgmr.msra.gmra.mrb[0].mxu0 %v2591_v57  ;;  %22039 = vmatprep.subr.bf16.mxu1 %v22038_v17  ;;  %v22558_v57 = vpack.c.bf16 %v966_v50, %v454_v49  ;;  %v967_v16 = vld [vmem:[%s27385_s1 + $0x19c0] sm:$0x3]  ;;  %v22052_v23 = vpack.c.bf16 %v711_v14, %v199_v13  ;;  %v94_v49 = vld [vmem:[%s27384_s0 + $0x278] sm:$0xff]  ;;  %v976_v13 = vld [vmem:[%s27385_s1 + $0x1a08] sm:$0x3] }
  0xc8   :  { %22549 = vmatpush1.bf16.xpose.msra.mxu0 %v22548_v15  ;;  %14694 = vmatprep.mubr.f32.mxu0 %v2609_v19  ;;  %v455_v15 = vld [vmem:[%s27385_s1 + $0x9c0] sm:$0xff]  ;;  %v714_v19 = vld [vmem:[%s27385_s1 + $0x11d8] sm:$0x3]  ;;  %v2645_v3 = vcombine.high %v94_v49, %v94_v49 }
  0xc9   :  { %22551 = vmatprep.subr.bf16.mxu0 %v22550_v20  ;;  %v2635_v20 = vrot.slane %v93_v12, %v23691_v25  ;;  %v22564_v24 = vpack.c.bf16 %v967_v16, %v455_v15  ;;  %v203_v50 = vld [vmem:[%s27385_s1 + $0x1e0] sm:$0xff]  ;;  %v464_v12 = vld [vmem:[%s27385_s1 + $0xa08] sm:$0xff] }
  0xcb   :  { %v2643_v29 = vcombine.high %v2635_v20, %v2635_v20 }
  0xcd   :  { %5735 = vmatmul.mubr.f32.vlgmr.msra.gmra.mrb[0].mxu1 %v1513_v8  ;;  %v22050_v8 = vpack.c.bf16 %v712_v1, %v200_v0 }
  0xce   :  { %22041 = vmatpush1.bf16.xpose.msra.mxu1 %v22040_v33  ;;  %5804 = vmatprep.mubr.f32.mxu1 %v1522_v35  ;;  %v713_v33 = vld [vmem:[%s27385_s1 + $0x11d0] sm:$0x3] }
  0xcf   :  { %14695 = vmatmul.mubr.f32.vlgmr.msra.gmra.mrb[0].mxu0 %v2601_v11  ;;  %22043 = vmatprep.subr.bf16.mxu1 %v22042_v36  ;;  %v29_v11 = vld [vmem:[%s27384_s0 + $0x70] sm:$0xff]  ;;  %v22056_v42 = vpack.c.bf16 %v713_v33, %v201_v32  ;;  %v978_v32 = vld [vmem:[%s27385_s1 + $0x1a18] sm:$0x3] }
  0xd0   :  { %22553 = vmatpush1.bf16.xpose.msra.mxu0 %v22552_v34  ;;  %14764 = vmatprep.mubr.f32.mxu0 %v2610_v37  ;;  %v1547_v17 = vrot.slane %v29_v11, %v23691_v25  ;;  %v1540_v28 = vcombine.high %v29_v11, %v29_v11  ;;  %v457_v34 = vld [vmem:[%s27385_s1 + $0x9d0] sm:$0xff]  ;;  %v204_v37 = vld [vmem:[%s27385_s1 + $0x1e8] sm:$0xff]  ;;  %v2659_v11 = vrot.slane %v2645_v3, %v23691_v25  ;;  %v470_v3 = vld [vmem:[%s27385_s1 + $0xa38] sm:$0xff] }
  0xd1   :  { %22555 = vmatprep.subr.bf16.mxu0 %v22554_v38  ;;  %v969_v35 = vld [vmem:[%s27385_s1 + $0x19d0] sm:$0x3]  ;;  %v716_v38 = vld [vmem:[%s27385_s1 + $0x11e8] sm:$0x3] }
  0xd2   :  { %v1555_v26 = vcombine.high %v1547_v17, %v1547_v17  ;;  %v1554_v36 = vrot.slane %v1540_v28, %v23691_v25  ;;  %v22568_v43 = vpack.c.bf16 %v969_v35, %v457_v34  ;;  %v210_v28 = vld [vmem:[%s27385_s1 + $0x218] sm:$0xff] }
  0xd4   :  { %v1556_v44 = vcombine.high %v1554_v36, %v1554_v36 }
  0xd5   :  { %5805 = vmatmul.mubr.f32.vlgmr.msra.gmra.mrb[0].mxu1 %v1520_v27  ;;  %v22054_v27 = vpack.c.bf16 %v714_v19, %v202_v18  ;;  %v2661_v18 = vcombine.high %v2659_v11, %v2659_v11  ;;  %v22578_v19 = vpack.c.bf16 %v976_v13, %v464_v12  ;;  %v213_v13 = vld [vmem:[%s27385_s1 + $0x230] sm:$0xff] }
  0xd6   :  { %22045 = vmatpush1.bf16.xpose.msra.mxu1 %v22044_v51  ;;  %5874 = vmatprep.mubr.f32.mxu1 %v1538_v53  ;;  %v715_v51 = vld [vmem:[%s27385_s1 + $0x11e0] sm:$0x3] }
  0xd7   :  { %14765 = vmatmul.mubr.f32.vlgmr.msra.gmra.mrb[0].mxu0 %v2608_v30  ;;  %22047 = vmatprep.subr.bf16.mxu1 %v22046_v54  ;;  %v22566_v30 = vpack.c.bf16 %v970_v22, %v458_v21  ;;  %v971_v53 = vld [vmem:[%s27385_s1 + $0x19e0] sm:$0x3]  ;;  %v22060_v60 = vpack.c.bf16 %v715_v51, %v203_v50  ;;  %v980_v50 = vld [vmem:[%s27385_s1 + $0x1a28] sm:$0x3] }
  0xd8   :  { %22557 = vmatpush1.bf16.xpose.msra.mxu0 %v22556_v52  ;;  %14834 = vmatprep.mubr.f32.mxu0 %v2626_v56  ;;  %v459_v52 = vld [vmem:[%s27385_s1 + $0x9e0] sm:$0xff]  ;;  %v718_v56 = vld [vmem:[%s27385_s1 + $0x11f8] sm:$0x3] }
  0xd9   :  { %22559 = vmatprep.subr.bf16.mxu0 %v22558_v57  ;;  %v2652_v57 = vrot.slane %v94_v49, %v23691_v25  ;;  %v22572_v61 = vpack.c.bf16 %v971_v53, %v459_v52  ;;  %v95_v21 = vld [vmem:[%s27384_s0 + $0x280] sm:$0xff]  ;;  %v468_v49 = vld [vmem:[%s27385_s1 + $0xa28] sm:$0xff] }
  0xda   :  { %v207_v22 = vld [vmem:[%s27385_s1 + $0x200] sm:$0xff]  ;;  %v2662_v40 = vcombine.high %v95_v21, %v95_v21 }
  0xdb   :  { %v2660_v1 = vcombine.high %v2652_v57, %v2652_v57 }
  0xdd   :  { %5875 = vmatmul.mubr.f32.vlgmr.msra.gmra.mrb[0].mxu1 %v1530_v45  ;;  %v22058_v45 = vpack.c.bf16 %v716_v38, %v204_v37 }
  0xde   :  { %22049 = vmatpush1.bf16.xpose.msra.mxu1 %v22048_v5  ;;  %5944 = vmatprep.mubr.f32.mxu1 %v1539_v7  ;;  %v717_v5 = vld [vmem:[%s27385_s1 + $0x11f0] sm:$0x3] }
  0xdf   :  { %14835 = vmatmul.mubr.f32.vlgmr.msra.gmra.mrb[0].mxu0 %v2618_v48  ;;  %22051 = vmatprep.subr.bf16.mxu1 %v22050_v8  ;;  %v30_v48 = vld [vmem:[%s27384_s0 + $0x78] sm:$0xff]  ;;  %v973_v7 = vld [vmem:[%s27385_s1 + $0x19f0] sm:$0x3]  ;;  %v22064_v14 = vpack.c.bf16 %v717_v5, %v205_v4 }
  0xe0   :  { %22561 = vmatpush1.bf16.xpose.msra.mxu0 %v22560_v6  ;;  %14904 = vmatprep.mubr.f32.mxu0 %v2627_v9  ;;  %v1564_v54 = vrot.slane %v30_v48, %v23691_v25  ;;  %v1557_v0 = vcombine.high %v30_v48, %v30_v48  ;;  %v461_v6 = vld [vmem:[%s27385_s1 + $0x9f0] sm:$0xff]  ;;  %v208_v9 = vld [vmem:[%s27385_s1 + $0x208] sm:$0xff]  ;;  %v2676_v48 = vrot.slane %v2662_v40, %v23691_v25  ;;  %v982_v4 = vld [vmem:[%s27385_s1 + $0x1a38] sm:$0x3] }
  0xe1   :  { %22563 = vmatprep.subr.bf16.mxu0 %v22562_v10  ;;  %v720_v10 = vld [vmem:[%s27385_s1 + $0x1208] sm:$0x3]  ;;  %v22576_v15 = vpack.c.bf16 %v973_v7, %v461_v6  ;;  %v474_v40 = vld [vmem:[%s27385_s1 + $0xa58] sm:$0xff] }
  0xe2   :  { %v1572_v62 = vcombine.high %v1564_v54, %v1564_v54  ;;  %v1571_v8 = vrot.slane %v1557_v0, %v23691_v25  ;;  %v214_v0 = vld [vmem:[%s27385_s1 + $0x238] sm:$0xff] }
  0xe4   :  { %v1573_v16 = vcombine.high %v1571_v8, %v1571_v8 }
  0xe5   :  { %5945 = vmatmul.mubr.f32.vlgmr.msra.gmra.mrb[0].mxu1 %v1537_v63  ;;  %v22062_v63 = vpack.c.bf16 %v718_v56, %v206_v55  ;;  %v2678_v55 = vcombine.high %v2676_v48, %v2676_v48  ;;  %v22586_v56 = vpack.c.bf16 %v980_v50, %v468_v49  ;;  %v217_v50 = vld [vmem:[%s27385_s1 + $0x250] sm:$0xff] }
  0xe6   :  { %22053 = vmatpush1.bf16.xpose.msra.mxu1 %v22052_v23  ;;  %6014 = vmatprep.mubr.f32.mxu1 %v1555_v26  ;;  %v719_v23 = vld [vmem:[%s27385_s1 + $0x1200] sm:$0x3] }
  0xe7   :  { %14905 = vmatmul.mubr.f32.vlgmr.msra.gmra.mrb[0].mxu0 %v2625_v2  ;;  %22055 = vmatprep.subr.bf16.mxu1 %v22054_v27  ;;  %v22574_v2 = vpack.c.bf16 %v974_v59, %v462_v58  ;;  %v975_v26 = vld [vmem:[%s27385_s1 + $0x1a00] sm:$0x3]  ;;  %v22068_v33 = vpack.c.bf16 %v719_v23, %v207_v22  ;;  %v96_v58 = vld [vmem:[%s27384_s0 + $0x288] sm:$0xff] }
  0xe8   :  { %22565 = vmatpush1.bf16.xpose.msra.mxu0 %v22564_v24  ;;  %14974 = vmatprep.mubr.f32.mxu0 %v2643_v29  ;;  %v463_v24 = vld [vmem:[%s27385_s1 + $0xa00] sm:$0xff]  ;;  %v722_v29 = vld [vmem:[%s27385_s1 + $0x1218] sm:$0x3]  ;;  %v2679_v12 = vcombine.high %v96_v58, %v96_v58  ;;  %v984_v22 = vld [vmem:[%s27385_s1 + $0x1a48] sm:$0x3] }
  0xe9   :  { %22567 = vmatprep.subr.bf16.mxu0 %v22566_v30  ;;  %v2669_v30 = vrot.slane %v95_v21, %v23691_v25  ;;  %v22580_v34 = vpack.c.bf16 %v975_v26, %v463_v24  ;;  %v211_v59 = vld [vmem:[%s27385_s1 + $0x220] sm:$0xff]  ;;  %v472_v21 = vld [vmem:[%s27385_s1 + $0xa48] sm:$0xff] }
  0xeb   :  { %v2677_v38 = vcombine.high %v2669_v30, %v2669_v30 }
  0xed   :  { %6015 = vmatmul.mubr.f32.vlgmr.msra.gmra.mrb[0].mxu1 %v1547_v17  ;;  %v22066_v17 = vpack.c.bf16 %v720_v10, %v208_v9 }
  0xee   :  { %22057 = vmatpush1.bf16.xpose.msra.mxu1 %v22056_v42  ;;  %6084 = vmatprep.mubr.f32.mxu1 %v1556_v44  ;;  %v721_v42 = vld [vmem:[%s27385_s1 + $0x1210] sm:$0x3] }
  0xef   :  { %14975 = vmatmul.mubr.f32.vlgmr.msra.gmra.mrb[0].mxu0 %v2635_v20  ;;  %22059 = vmatprep.subr.bf16.mxu1 %v22058_v45  ;;  %v31_v20 = vld [vmem:[%s27384_s0 + $0x80] sm:$0xff]  ;;  %v977_v44 = vld [vmem:[%s27385_s1 + $0x1a10] sm:$0x3]  ;;  %v22072_v51 = vpack.c.bf16 %v721_v42, %v209_v41  ;;  %v986_v41 = vld [vmem:[%s27385_s1 + $0x1a58] sm:$0x3] }
  0xf0   :  { %22569 = vmatpush1.bf16.xpose.msra.mxu0 %v22568_v43  ;;  %15044 = vmatprep.mubr.f32.mxu0 %v2644_v46  ;;  %v1581_v27 = vrot.slane %v31_v20, %v23691_v25  ;;  %v1574_v37 = vcombine.high %v31_v20, %v31_v20  ;;  %v465_v43 = vld [vmem:[%s27385_s1 + $0xa10] sm:$0xff]  ;;  %v212_v46 = vld [vmem:[%s27385_s1 + $0x228] sm:$0xff]  ;;  %v2693_v20 = vrot.slane %v2679_v12, %v23691_v25  ;;  %v478_v12 = vld [vmem:[%s27385_s1 + $0xa78] sm:$0xff] }
  0xf1   :  { %22571 = vmatprep.subr.bf16.mxu0 %v22570_v47  ;;  %v724_v47 = vld [vmem:[%s27385_s1 + $0x1228] sm:$0x3]  ;;  %v22584_v52 = vpack.c.bf16 %v977_v44, %v465_v43 }
  0xf2   :  { %v1589_v35 = vcombine.high %v1581_v27, %v1581_v27  ;;  %v1588_v45 = vrot.slane %v1574_v37, %v23691_v25  ;;  %v218_v37 = vld [vmem:[%s27385_s1 + $0x258] sm:$0xff] }
  0xf4   :  { %v1590_v53 = vcombine.high %v1588_v45, %v1588_v45 }
  0xf5   :  { %6085 = vmatmul.mubr.f32.vlgmr.msra.gmra.mrb[0].mxu1 %v1554_v36  ;;  %v22070_v36 = vpack.c.bf16 %v722_v29, %v210_v28  ;;  %v2695_v28 = vcombine.high %v2693_v20, %v2693_v20  ;;  %v22594_v29 = vpack.c.bf16 %v984_v22, %v472_v21  ;;  %v221_v22 = vld [vmem:[%s27385_s1 + $0x270] sm:$0xff] }
  0xf6   :  { %22061 = vmatpush1.bf16.xpose.msra.mxu1 %v22060_v60  ;;  %6154 = vmatprep.mubr.f32.mxu1 %v1572_v62  ;;  %v723_v60 = vld [vmem:[%s27385_s1 + $0x1220] sm:$0x3] }
  0xf7   :  { %15045 = vmatmul.mubr.f32.vlgmr.msra.gmra.mrb[0].mxu0 %v2642_v39  ;;  %22063 = vmatprep.subr.bf16.mxu1 %v22062_v63  ;;  %v22582_v39 = vpack.c.bf16 %v978_v32, %v466_v31  ;;  %v979_v62 = vld [vmem:[%s27385_s1 + $0x1a20] sm:$0x3]  ;;  %v22076_v5 = vpack.c.bf16 %v723_v60, %v211_v59  ;;  %v97_v31 = vld [vmem:[%s27384_s0 + $0x290] sm:$0xff]  ;;  %v988_v59 = vld [vmem:[%s27385_s1 + $0x1a68] sm:$0x3] }
  0xf8   :  { %22573 = vmatpush1.bf16.xpose.msra.mxu0 %v22572_v61  ;;  %15114 = vmatprep.mubr.f32.mxu0 %v2660_v1  ;;  %v467_v61 = vld [vmem:[%s27385_s1 + $0xa20] sm:$0xff]  ;;  %v726_v1 = vld [vmem:[%s27385_s1 + $0x1238] sm:$0x3]  ;;  %v2696_v49 = vcombine.high %v97_v31, %v97_v31 }
  0xf9   :  { %22575 = vmatprep.subr.bf16.mxu0 %v22574_v2  ;;  %v2686_v2 = vrot.slane %v96_v58, %v23691_v25  ;;  %v22588_v6 = vpack.c.bf16 %v979_v62, %v467_v61  ;;  %v215_v32 = vld [vmem:[%s27385_s1 + $0x240] sm:$0xff]  ;;  %v476_v58 = vld [vmem:[%s27385_s1 + $0xa68] sm:$0xff] }
  0xfb   :  { %v2694_v10 = vcombine.high %v2686_v2, %v2686_v2 }
  0xfd   :  { %6155 = vmatmul.mubr.f32.vlgmr.msra.gmra.mrb[0].mxu1 %v1564_v54  ;;  %v22074_v54 = vpack.c.bf16 %v724_v47, %v212_v46 }
  0xfe   :  { %22065 = vmatpush1.bf16.xpose.msra.mxu1 %v22064_v14  ;;  %6224 = vmatprep.mubr.f32.mxu1 %v1573_v16  ;;  %v725_v14 = vld [vmem:[%s27385_s1 + $0x1230] sm:$0x3] }
  0xff   :  { %15115 = vmatmul.mubr.f32.vlgmr.msra.gmra.mrb[0].mxu0 %v2652_v57  ;;  %22067 = vmatprep.subr.bf16.mxu1 %v22066_v17  ;;  %v32_v57 = vld [vmem:[%s27384_s0 + $0x88] sm:$0xff]  ;;  %v981_v16 = vld [vmem:[%s27385_s1 + $0x1a30] sm:$0x3]  ;;  %v22080_v23 = vpack.c.bf16 %v725_v14, %v213_v13  ;;  %v990_v13 = vld [vmem:[%s27385_s1 + $0x1a78] sm:$0x3] }
 0x100   :  { %22577 = vmatpush1.bf16.xpose.msra.mxu0 %v22576_v15  ;;  %15184 = vmatprep.mubr.f32.mxu0 %v2661_v18  ;;  %v1598_v63 = vrot.slane %v32_v57, %v23691_v25  ;;  %v1591_v9 = vcombine.high %v32_v57, %v32_v57  ;;  %v469_v15 = vld [vmem:[%s27385_s1 + $0xa30] sm:$0xff]  ;;  %v216_v18 = vld [vmem:[%s27385_s1 + $0x248] sm:$0xff]  ;;  %v2710_v57 = vrot.slane %v2696_v49, %v23691_v25  ;;  %v482_v49 = vld [vmem:[%s27385_s1 + $0xa98] sm:$0xff] }
 0x101   :  { %22579 = vmatprep.subr.bf16.mxu0 %v22578_v19  ;;  %v728_v19 = vld [vmem:[%s27385_s1 + $0x1248] sm:$0x3]  ;;  %v22592_v24 = vpack.c.bf16 %v981_v16, %v469_v15 }
 0x102   :  { %v1606_v7 = vcombine.high %v1598_v63, %v1598_v63  ;;  %v1605_v17 = vrot.slane %v1591_v9, %v23691_v25  ;;  %v222_v9 = vld [vmem:[%s27385_s1 + $0x278] sm:$0xff] }
 0x104   :  { %v1607_v26 = vcombine.high %v1605_v17, %v1605_v17 }
 0x105   :  { %6225 = vmatmul.mubr.f32.vlgmr.msra.gmra.mrb[0].mxu1 %v1571_v8  ;;  %v22078_v8 = vpack.c.bf16 %v726_v1, %v214_v0  ;;  %v2712_v0 = vcombine.high %v2710_v57, %v2710_v57  ;;  %v22602_v1 = vpack.c.bf16 %v988_v59, %v476_v58  ;;  %v225_v59 = vld [vmem:[%s27385_s1 + $0x290] sm:$0xff] }
 0x106   :  { %22069 = vmatpush1.bf16.xpose.msra.mxu1 %v22068_v33  ;;  %6294 = vmatprep.mubr.f32.mxu1 %v1589_v35  ;;  %v727_v33 = vld [vmem:[%s27385_s1 + $0x1240] sm:$0x3] }
 0x107   :  { %15185 = vmatmul.mubr.f32.vlgmr.msra.gmra.mrb[0].mxu0 %v2659_v11  ;;  %22071 = vmatprep.subr.bf16.mxu1 %v22070_v36  ;;  %v22590_v11 = vpack.c.bf16 %v982_v4, %v470_v3  ;;  %v983_v35 = vld [vmem:[%s27385_s1 + $0x1a40] sm:$0x3]  ;;  %v22084_v42 = vpack.c.bf16 %v727_v33, %v215_v32  ;;  %v98_v3 = vld [vmem:[%s27384_s0 + $0x298] sm:$0xff]  ;;  %v992_v32 = vld [vmem:[%s27385_s1 + $0x1a88] sm:$0x3] }
 0x108   :  { %22581 = vmatpush1.bf16.xpose.msra.mxu0 %v22580_v34  ;;  %15254 = vmatprep.mubr.f32.mxu0 %v2677_v38  ;;  %v471_v34 = vld [vmem:[%s27385_s1 + $0xa40] sm:$0xff]  ;;  %v730_v38 = vld [vmem:[%s27385_s1 + $0x1258] sm:$0x3]  ;;  %v2713_v21 = vcombine.high %v98_v3, %v98_v3 }
 0x109   :  { %22583 = vmatprep.subr.bf16.mxu0 %v22582_v39  ;;  %v2703_v39 = vrot.slane %v97_v31, %v23691_v25  ;;  %v22596_v43 = vpack.c.bf16 %v983_v35, %v471_v34  ;;  %v219_v4 = vld [vmem:[%s27385_s1 + $0x260] sm:$0xff]  ;;  %v480_v31 = vld [vmem:[%s27385_s1 + $0xa88] sm:$0xff] }
 0x10b   :  { %v2711_v47 = vcombine.high %v2703_v39, %v2703_v39 }
 0x10d   :  { %6295 = vmatmul.mubr.f32.vlgmr.msra.gmra.mrb[0].mxu1 %v1581_v27  ;;  %v22082_v27 = vpack.c.bf16 %v728_v19, %v216_v18 }
 0x10e   :  { %22073 = vmatpush1.bf16.xpose.msra.mxu1 %v22072_v51  ;;  %6364 = vmatprep.mubr.f32.mxu1 %v1590_v53  ;;  %v729_v51 = vld [vmem:[%s27385_s1 + $0x1250] sm:$0x3] }
 0x10f   :  { %15255 = vmatmul.mubr.f32.vlgmr.msra.gmra.mrb[0].mxu0 %v2669_v30  ;;  %22075 = vmatprep.subr.bf16.mxu1 %v22074_v54  ;;  %v33_v30 = vld [vmem:[%s27384_s0 + $0x90] sm:$0xff]  ;;  %v22088_v60 = vpack.c.bf16 %v729_v51, %v217_v50  ;;  %v994_v50 = vld [vmem:[%s27385_s1 + $0x1a98] sm:$0x3] }
 0x110   :  { %22585 = vmatpush1.bf16.xpose.msra.mxu0 %v22584_v52  ;;  %15324 = vmatprep.mubr.f32.mxu0 %v2678_v55  ;;  %v1615_v36 = vrot.slane %v33_v30, %v23691_v25  ;;  %v1608_v46 = vcombine.high %v33_v30, %v33_v30  ;;  %v473_v52 = vld [vmem:[%s27385_s1 + $0xa50] sm:$0xff]  ;;  %v220_v55 = vld [vmem:[%s27385_s1 + $0x268] sm:$0xff]  ;;  %v2727_v30 = vrot.slane %v2713_v21, %v23691_v25  ;;  %v486_v21 = vld [vmem:[%s27385_s1 + $0xab8] sm:$0xff] }
 0x111   :  { %22587 = vmatprep.subr.bf16.mxu0 %v22586_v56  ;;  %v985_v53 = vld [vmem:[%s27385_s1 + $0x1a50] sm:$0x3]  ;;  %v732_v56 = vld [vmem:[%s27385_s1 + $0x1268] sm:$0x3] }
 0x112   :  { %v1623_v44 = vcombine.high %v1615_v36, %v1615_v36  ;;  %v1622_v54 = vrot.slane %v1608_v46, %v23691_v25  ;;  %v22600_v61 = vpack.c.bf16 %v985_v53, %v473_v52  ;;  %v226_v46 = vld [vmem:[%s27385_s1 + $0x298] sm:$0xff] }
 0x114   :  { %v1624_v62 = vcombine.high %v1622_v54, %v1622_v54 }
 0x115   :  { %6365 = vmatmul.mubr.f32.vlgmr.msra.gmra.mrb[0].mxu1 %v1588_v45  ;;  %v22086_v45 = vpack.c.bf16 %v730_v38, %v218_v37  ;;  %v2729_v37 = vcombine.high %v2727_v30, %v2727_v30  ;;  %v22610_v38 = vpack.c.bf16 %v992_v32, %v480_v31  ;;  %v229_v32 = vld [vmem:[%s27385_s1 + $0x2b0] sm:$0xff] }
 0x116   :  { %22077 = vmatpush1.bf16.xpose.msra.mxu1 %v22076_v5  ;;  %6434 = vmatprep.mubr.f32.mxu1 %v1606_v7  ;;  %v731_v5 = vld [vmem:[%s27385_s1 + $0x1260] sm:$0x3] }
 0x117   :  { %15325 = vmatmul.mubr.f32.vlgmr.msra.gmra.mrb[0].mxu0 %v2676_v48  ;;  %22079 = vmatprep.subr.bf16.mxu1 %v22078_v8  ;;  %v22598_v48 = vpack.c.bf16 %v986_v41, %v474_v40  ;;  %v987_v7 = vld [vmem:[%s27385_s1 + $0x1a60] sm:$0x3]  ;;  %v22092_v14 = vpack.c.bf16 %v731_v5, %v219_v4  ;;  %v996_v4 = vld [vmem:[%s27385_s1 + $0x1aa8] sm:$0x3] }
 0x118   :  { %22589 = vmatpush1.bf16.xpose.msra.mxu0 %v22588_v6  ;;  %15394 = vmatprep.mubr.f32.mxu0 %v2694_v10  ;;  %v475_v6 = vld [vmem:[%s27385_s1 + $0xa60] sm:$0xff]  ;;  %v734_v10 = vld [vmem:[%s27385_s1 + $0x1278] sm:$0x3] }
 0x119   :  { %22591 = vmatprep.subr.bf16.mxu0 %v22590_v11  ;;  %v2720_v11 = vrot.slane %v98_v3, %v23691_v25  ;;  %v22604_v15 = vpack.c.bf16 %v987_v7, %v475_v6  ;;  %v99_v40 = vld [vmem:[%s27384_s0 + $0x2a0] sm:$0xff]  ;;  %v484_v3 = vld [vmem:[%s27385_s1 + $0xaa8] sm:$0xff] }
 0x11a   :  { %v223_v41 = vld [vmem:[%s27385_s1 + $0x280] sm:$0xff]  ;;  %v2730_v58 = vcombine.high %v99_v40, %v99_v40 }
 0x11b   :  { %v2728_v19 = vcombine.high %v2720_v11, %v2720_v11 }
 0x11d   :  { %6435 = vmatmul.mubr.f32.vlgmr.msra.gmra.mrb[0].mxu1 %v1598_v63  ;;  %v22090_v63 = vpack.c.bf16 %v732_v56, %v220_v55 }
 0x11e   :  { %22081 = vmatpush1.bf16.xpose.msra.mxu1 %v22080_v23  ;;  %6504 = vmatprep.mubr.f32.mxu1 %v1607_v26  ;;  %v733_v23 = vld [vmem:[%s27385_s1 + $0x1270] sm:$0x3] }
 0x11f   :  { %15395 = vmatmul.mubr.f32.vlgmr.msra.gmra.mrb[0].mxu0 %v2686_v2  ;;  %22083 = vmatprep.subr.bf16.mxu1 %v22082_v27  ;;  %v34_v2 = vld [vmem:[%s27384_s0 + $0x98] sm:$0xff]  ;;  %v989_v26 = vld [vmem:[%s27385_s1 + $0x1a70] sm:$0x3]  ;;  %v22096_v33 = vpack.c.bf16 %v733_v23, %v221_v22 }
 0x120   :  { %22593 = vmatpush1.bf16.xpose.msra.mxu0 %v22592_v24  ;;  %15464 = vmatprep.mubr.f32.mxu0 %v2695_v28  ;;  %v1632_v8 = vrot.slane %v34_v2, %v23691_v25  ;;  %v1625_v18 = vcombine.high %v34_v2, %v34_v2  ;;  %v477_v24 = vld [vmem:[%s27385_s1 + $0xa70] sm:$0xff]  ;;  %v224_v28 = vld [vmem:[%s27385_s1 + $0x288] sm:$0xff]  ;;  %v2744_v2 = vrot.slane %v2730_v58, %v23691_v25  ;;  %v998_v22 = vld [vmem:[%s27385_s1 + $0x1ab8] sm:$0x3] }
 0x121   :  { %22595 = vmatprep.subr.bf16.mxu0 %v22594_v29  ;;  %v736_v29 = vld [vmem:[%s27385_s1 + $0x1288] sm:$0x3]  ;;  %v22608_v34 = vpack.c.bf16 %v989_v26, %v477_v24  ;;  %v490_v58 = vld [vmem:[%s27385_s1 + $0xad8] sm:$0xff] }
 0x122   :  { %v1640_v16 = vcombine.high %v1632_v8, %v1632_v8  ;;  %v1639_v27 = vrot.slane %v1625_v18, %v23691_v25  ;;  %v230_v18 = vld [vmem:[%s27385_s1 + $0x2b8] sm:$0xff] }
 0x124   :  { %v1641_v35 = vcombine.high %v1639_v27, %v1639_v27 }
 0x125   :  { %6505 = vmatmul.mubr.f32.vlgmr.msra.gmra.mrb[0].mxu1 %v1605_v17  ;;  %v22094_v17 = vpack.c.bf16 %v734_v10, %v222_v9  ;;  %v2746_v9 = vcombine.high %v2744_v2, %v2744_v2  ;;  %v22618_v10 = vpack.c.bf16 %v996_v4, %v484_v3  ;;  %v233_v4 = vld [vmem:[%s27385_s1 + $0x2d0] sm:$0xff] }
 0x126   :  { %22085 = vmatpush1.bf16.xpose.msra.mxu1 %v22084_v42  ;;  %6574 = vmatprep.mubr.f32.mxu1 %v1623_v44  ;;  %v735_v42 = vld [vmem:[%s27385_s1 + $0x1280] sm:$0x3] }
 0x127   :  { %15465 = vmatmul.mubr.f32.vlgmr.msra.gmra.mrb[0].mxu0 %v2693_v20  ;;  %22087 = vmatprep.subr.bf16.mxu1 %v22086_v45  ;;  %v22606_v20 = vpack.c.bf16 %v990_v13, %v478_v12  ;;  %v991_v44 = vld [vmem:[%s27385_s1 + $0x1a80] sm:$0x3]  ;;  %v22100_v51 = vpack.c.bf16 %v735_v42, %v223_v41  ;;  %v100_v12 = vld [vmem:[%s27384_s0 + $0x2a8] sm:$0xff] }
 0x128   :  { %22597 = vmatpush1.bf16.xpose.msra.mxu0 %v22596_v43  ;;  %15534 = vmatprep.mubr.f32.mxu0 %v2711_v47  ;;  %v479_v43 = vld [vmem:[%s27385_s1 + $0xa80] sm:$0xff]  ;;  %v738_v47 = vld [vmem:[%s27385_s1 + $0x1298] sm:$0x3]  ;;  %v2747_v31 = vcombine.high %v100_v12, %v100_v12  ;;  %v1000_v41 = vld [vmem:[%s27385_s1 + $0x1ac8] sm:$0x3] }
 0x129   :  { %22599 = vmatprep.subr.bf16.mxu0 %v22598_v48  ;;  %v2737_v48 = vrot.slane %v99_v40, %v23691_v25  ;;  %v22612_v52 = vpack.c.bf16 %v991_v44, %v479_v43  ;;  %v227_v13 = vld [vmem:[%s27385_s1 + $0x2a0] sm:$0xff]  ;;  %v488_v40 = vld [vmem:[%s27385_s1 + $0xac8] sm:$0xff] }
 0x12b   :  { %v2745_v56 = vcombine.high %v2737_v48, %v2737_v48 }
 0x12d   :  { %6575 = vmatmul.mubr.f32.vlgmr.msra.gmra.mrb[0].mxu1 %v1615_v36  ;;  %v22098_v36 = vpack.c.bf16 %v736_v29, %v224_v28 }
 0x12e   :  { %22089 = vmatpush1.bf16.xpose.msra.mxu1 %v22088_v60  ;;  %6644 = vmatprep.mubr.f32.mxu1 %v1624_v62  ;;  %v737_v60 = vld [vmem:[%s27385_s1 + $0x1290] sm:$0x3] }
 0x12f   :  { %15535 = vmatmul.mubr.f32.vlgmr.msra.gmra.mrb[0].mxu0 %v2703_v39  ;;  %22091 = vmatprep.subr.bf16.mxu1 %v22090_v63  ;;  %v35_v39 = vld [vmem:[%s27384_s0 + $0xa0] sm:$0xff]  ;;  %v993_v62 = vld [vmem:[%s27385_s1 + $0x1a90] sm:$0x3]  ;;  %v22104_v5 = vpack.c.bf16 %v737_v60, %v225_v59  ;;  %v1002_v59 = vld [vmem:[%s27385_s1 + $0x1ad8] sm:$0x3] }
 0x130   :  { %22601 = vmatpush1.bf16.xpose.msra.mxu0 %v22600_v61  ;;  %15604 = vmatprep.mubr.f32.mxu0 %v2712_v0  ;;  %v1649_v45 = vrot.slane %v35_v39, %v23691_v25  ;;  %v1642_v55 = vcombine.high %v35_v39, %v35_v39  ;;  %v481_v61 = vld [vmem:[%s27385_s1 + $0xa90] sm:$0xff]  ;;  %v228_v0 = vld [vmem:[%s27385_s1 + $0x2a8] sm:$0xff]  ;;  %v2761_v39 = vrot.slane %v2747_v31, %v23691_v25  ;;  %v494_v31 = vld [vmem:[%s27385_s1 + $0xaf8] sm:$0xff] }
 0x131   :  { %22603 = vmatprep.subr.bf16.mxu0 %v22602_v1  ;;  %v740_v1 = vld [vmem:[%s27385_s1 + $0x12a8] sm:$0x3]  ;;  %v22616_v6 = vpack.c.bf16 %v993_v62, %v481_v61 }
 0x132   :  { %v1657_v53 = vcombine.high %v1649_v45, %v1649_v45  ;;  %v1656_v63 = vrot.slane %v1642_v55, %v23691_v25  ;;  %v234_v55 = vld [vmem:[%s27385_s1 + $0x2d8] sm:$0xff] }
 0x134   :  { %v1658_v7 = vcombine.high %v1656_v63, %v1656_v63 }
 0x135   :  { %6645 = vmatmul.mubr.f32.vlgmr.msra.gmra.mrb[0].mxu1 %v1622_v54  ;;  %v22102_v54 = vpack.c.bf16 %v738_v47, %v226_v46  ;;  %v2763_v46 = vcombine.high %v2761_v39, %v2761_v39  ;;  %v22626_v47 = vpack.c.bf16 %v1000_v41, %v488_v40  ;;  %v237_v41 = vld [vmem:[%s27385_s1 + $0x2f0] sm:$0xff] }
 0x136   :  { %22093 = vmatpush1.bf16.xpose.msra.mxu1 %v22092_v14  ;;  %6714 = vmatprep.mubr.f32.mxu1 %v1640_v16  ;;  %v739_v14 = vld [vmem:[%s27385_s1 + $0x12a0] sm:$0x3] }
 0x137   :  { %15605 = vmatmul.mubr.f32.vlgmr.msra.gmra.mrb[0].mxu0 %v2710_v57  ;;  %22095 = vmatprep.subr.bf16.mxu1 %v22094_v17  ;;  %v22614_v57 = vpack.c.bf16 %v994_v50, %v482_v49  ;;  %v995_v16 = vld [vmem:[%s27385_s1 + $0x1aa0] sm:$0x3]  ;;  %v22108_v23 = vpack.c.bf16 %v739_v14, %v227_v13  ;;  %v101_v49 = vld [vmem:[%s27384_s0 + $0x2b0] sm:$0xff]  ;;  %v1004_v13 = vld [vmem:[%s27385_s1 + $0x1ae8] sm:$0x3] }
 0x138   :  { %22605 = vmatpush1.bf16.xpose.msra.mxu0 %v22604_v15  ;;  %15674 = vmatprep.mubr.f32.mxu0 %v2728_v19  ;;  %v483_v15 = vld [vmem:[%s27385_s1 + $0xaa0] sm:$0xff]  ;;  %v742_v19 = vld [vmem:[%s27385_s1 + $0x12b8] sm:$0x3]  ;;  %v2764_v3 = vcombine.high %v101_v49, %v101_v49 }
 0x139   :  { %22607 = vmatprep.subr.bf16.mxu0 %v22606_v20  ;;  %v2754_v20 = vrot.slane %v100_v12, %v23691_v25  ;;  %v22620_v24 = vpack.c.bf16 %v995_v16, %v483_v15  ;;  %v231_v50 = vld [vmem:[%s27385_s1 + $0x2c0] sm:$0xff]  ;;  %v492_v12 = vld [vmem:[%s27385_s1 + $0xae8] sm:$0xff] }
 0x13b   :  { %v2762_v29 = vcombine.high %v2754_v20, %v2754_v20 }
 0x13d   :  { %6715 = vmatmul.mubr.f32.vlgmr.msra.gmra.mrb[0].mxu1 %v1632_v8  ;;  %v22106_v8 = vpack.c.bf16 %v740_v1, %v228_v0 }
 0x13e   :  { %22097 = vmatpush1.bf16.xpose.msra.mxu1 %v22096_v33  ;;  %6784 = vmatprep.mubr.f32.mxu1 %v1641_v35  ;;  %v741_v33 = vld [vmem:[%s27385_s1 + $0x12b0] sm:$0x3] }
 0x13f   :  { %15675 = vmatmul.mubr.f32.vlgmr.msra.gmra.mrb[0].mxu0 %v2720_v11  ;;  %22099 = vmatprep.subr.bf16.mxu1 %v22098_v36  ;;  %v36_v11 = vld [vmem:[%s27384_s0 + $0xa8] sm:$0xff]  ;;  %v997_v35 = vld [vmem:[%s27385_s1 + $0x1ab0] sm:$0x3]  ;;  %v22112_v42 = vpack.c.bf16 %v741_v33, %v229_v32  ;;  %v1006_v32 = vld [vmem:[%s27385_s1 + $0x1af8] sm:$0x3] }
 0x140   :  { %22609 = vmatpush1.bf16.xpose.msra.mxu0 %v22608_v34  ;;  %15744 = vmatprep.mubr.f32.mxu0 %v2729_v37  ;;  %v1666_v17 = vrot.slane %v36_v11, %v23691_v25  ;;  %v1659_v28 = vcombine.high %v36_v11, %v36_v11  ;;  %v485_v34 = vld [vmem:[%s27385_s1 + $0xab0] sm:$0xff]  ;;  %v232_v37 = vld [vmem:[%s27385_s1 + $0x2c8] sm:$0xff]  ;;  %v2778_v11 = vrot.slane %v2764_v3, %v23691_v25  ;;  %v498_v3 = vld [vmem:[%s27385_s1 + $0xb18] sm:$0xff] }
 0x141   :  { %22611 = vmatprep.subr.bf16.mxu0 %v22610_v38  ;;  %v744_v38 = vld [vmem:[%s27385_s1 + $0x12c8] sm:$0x3]  ;;  %v22624_v43 = vpack.c.bf16 %v997_v35, %v485_v34 }
 0x142   :  { %v1674_v26 = vcombine.high %v1666_v17, %v1666_v17  ;;  %v1673_v36 = vrot.slane %v1659_v28, %v23691_v25  ;;  %v238_v28 = vld [vmem:[%s27385_s1 + $0x2f8] sm:$0xff] }
 0x144   :  { %v1675_v44 = vcombine.high %v1673_v36, %v1673_v36 }
 0x145   :  { %6785 = vmatmul.mubr.f32.vlgmr.msra.gmra.mrb[0].mxu1 %v1639_v27  ;;  %v22110_v27 = vpack.c.bf16 %v742_v19, %v230_v18  ;;  %v2780_v18 = vcombine.high %v2778_v11, %v2778_v11  ;;  %v22634_v19 = vpack.c.bf16 %v1004_v13, %v492_v12  ;;  %v241_v13 = vld [vmem:[%s27385_s1 + $0x310] sm:$0xff] }
 0x146   :  { %22101 = vmatpush1.bf16.xpose.msra.mxu1 %v22100_v51  ;;  %6854 = vmatprep.mubr.f32.mxu1 %v1657_v53  ;;  %v743_v51 = vld [vmem:[%s27385_s1 + $0x12c0] sm:$0x3] }
 0x147   :  { %15745 = vmatmul.mubr.f32.vlgmr.msra.gmra.mrb[0].mxu0 %v2727_v30  ;;  %22103 = vmatprep.subr.bf16.mxu1 %v22102_v54  ;;  %v22622_v30 = vpack.c.bf16 %v998_v22, %v486_v21  ;;  %v999_v53 = vld [vmem:[%s27385_s1 + $0x1ac0] sm:$0x3]  ;;  %v22116_v60 = vpack.c.bf16 %v743_v51, %v231_v50  ;;  %v102_v21 = vld [vmem:[%s27384_s0 + $0x2b8] sm:$0xff]  ;;  %v1008_v50 = vld [vmem:[%s27385_s1 + $0x1b08] sm:$0x3] }
 0x148   :  { %22613 = vmatpush1.bf16.xpose.msra.mxu0 %v22612_v52  ;;  %15814 = vmatprep.mubr.f32.mxu0 %v2745_v56  ;;  %v487_v52 = vld [vmem:[%s27385_s1 + $0xac0] sm:$0xff]  ;;  %v746_v56 = vld [vmem:[%s27385_s1 + $0x12d8] sm:$0x3]  ;;  %v2781_v40 = vcombine.high %v102_v21, %v102_v21 }
 0x149   :  { %22615 = vmatprep.subr.bf16.mxu0 %v22614_v57  ;;  %v2771_v57 = vrot.slane %v101_v49, %v23691_v25  ;;  %v22628_v61 = vpack.c.bf16 %v999_v53, %v487_v52  ;;  %v235_v22 = vld [vmem:[%s27385_s1 + $0x2e0] sm:$0xff]  ;;  %v496_v49 = vld [vmem:[%s27385_s1 + $0xb08] sm:$0xff] }
 0x14b   :  { %v2779_v1 = vcombine.high %v2771_v57, %v2771_v57 }
 0x14d   :  { %6855 = vmatmul.mubr.f32.vlgmr.msra.gmra.mrb[0].mxu1 %v1649_v45  ;;  %v22114_v45 = vpack.c.bf16 %v744_v38, %v232_v37 }
 0x14e   :  { %22105 = vmatpush1.bf16.xpose.msra.mxu1 %v22104_v5  ;;  %6924 = vmatprep.mubr.f32.mxu1 %v1658_v7  ;;  %v745_v5 = vld [vmem:[%s27385_s1 + $0x12d0] sm:$0x3] }
 0x14f   :  { %15815 = vmatmul.mubr.f32.vlgmr.msra.gmra.mrb[0].mxu0 %v2737_v48  ;;  %22107 = vmatprep.subr.bf16.mxu1 %v22106_v8  ;;  %v37_v48 = vld [vmem:[%s27384_s0 + $0xb0] sm:$0xff]  ;;  %v22120_v14 = vpack.c.bf16 %v745_v5, %v233_v4  ;;  %v1010_v4 = vld [vmem:[%s27385_s1 + $0x1b18] sm:$0x3] }
 0x150   :  { %22617 = vmatpush1.bf16.xpose.msra.mxu0 %v22616_v6  ;;  %15884 = vmatprep.mubr.f32.mxu0 %v2746_v9  ;;  %v1683_v54 = vrot.slane %v37_v48, %v23691_v25  ;;  %v1676_v0 = vcombine.high %v37_v48, %v37_v48  ;;  %v489_v6 = vld [vmem:[%s27385_s1 + $0xad0] sm:$0xff]  ;;  %v236_v9 = vld [vmem:[%s27385_s1 + $0x2e8] sm:$0xff]  ;;  %v2795_v48 = vrot.slane %v2781_v40, %v23691_v25  ;;  %v502_v40 = vld [vmem:[%s27385_s1 + $0xb38] sm:$0xff] }
 0x151   :  { %22619 = vmatprep.subr.bf16.mxu0 %v22618_v10  ;;  %v1001_v7 = vld [vmem:[%s27385_s1 + $0x1ad0] sm:$0x3]  ;;  %v748_v10 = vld [vmem:[%s27385_s1 + $0x12e8] sm:$0x3] }
 0x152   :  { %v1691_v62 = vcombine.high %v1683_v54, %v1683_v54  ;;  %v1690_v8 = vrot.slane %v1676_v0, %v23691_v25  ;;  %v22632_v15 = vpack.c.bf16 %v1001_v7, %v489_v6  ;;  %v242_v0 = vld [vmem:[%s27385_s1 + $0x318] sm:$0xff] }
 0x154   :  { %v1692_v16 = vcombine.high %v1690_v8, %v1690_v8 }
 0x155   :  { %6925 = vmatmul.mubr.f32.vlgmr.msra.gmra.mrb[0].mxu1 %v1656_v63  ;;  %v22118_v63 = vpack.c.bf16 %v746_v56, %v234_v55  ;;  %v2797_v55 = vcombine.high %v2795_v48, %v2795_v48  ;;  %v22642_v56 = vpack.c.bf16 %v1008_v50, %v496_v49  ;;  %v245_v50 = vld [vmem:[%s27385_s1 + $0x330] sm:$0xff] }
 0x156   :  { %22109 = vmatpush1.bf16.xpose.msra.mxu1 %v22108_v23  ;;  %6994 = vmatprep.mubr.f32.mxu1 %v1674_v26  ;;  %v747_v23 = vld [vmem:[%s27385_s1 + $0x12e0] sm:$0x3] }
 0x157   :  { %15885 = vmatmul.mubr.f32.vlgmr.msra.gmra.mrb[0].mxu0 %v2744_v2  ;;  %22111 = vmatprep.subr.bf16.mxu1 %v22110_v27  ;;  %v22630_v2 = vpack.c.bf16 %v1002_v59, %v490_v58  ;;  %v1003_v26 = vld [vmem:[%s27385_s1 + $0x1ae0] sm:$0x3]  ;;  %v22124_v33 = vpack.c.bf16 %v747_v23, %v235_v22  ;;  %v1012_v22 = vld [vmem:[%s27385_s1 + $0x1b28] sm:$0x3] }
 0x158   :  { %22621 = vmatpush1.bf16.xpose.msra.mxu0 %v22620_v24  ;;  %15954 = vmatprep.mubr.f32.mxu0 %v2762_v29  ;;  %v491_v24 = vld [vmem:[%s27385_s1 + $0xae0] sm:$0xff]  ;;  %v750_v29 = vld [vmem:[%s27385_s1 + $0x12f8] sm:$0x3] }
 0x159   :  { %22623 = vmatprep.subr.bf16.mxu0 %v22622_v30  ;;  %v2788_v30 = vrot.slane %v102_v21, %v23691_v25  ;;  %v22636_v34 = vpack.c.bf16 %v1003_v26, %v491_v24  ;;  %v103_v58 = vld [vmem:[%s27384_s0 + $0x2c0] sm:$0xff]  ;;  %v500_v21 = vld [vmem:[%s27385_s1 + $0xb28] sm:$0xff] }
 0x15a   :  { %v239_v59 = vld [vmem:[%s27385_s1 + $0x300] sm:$0xff]  ;;  %v2798_v12 = vcombine.high %v103_v58, %v103_v58 }
 0x15b   :  { %v2796_v38 = vcombine.high %v2788_v30, %v2788_v30 }
 0x15d   :  { %6995 = vmatmul.mubr.f32.vlgmr.msra.gmra.mrb[0].mxu1 %v1666_v17  ;;  %v22122_v17 = vpack.c.bf16 %v748_v10, %v236_v9 }
 0x15e   :  { %22113 = vmatpush1.bf16.xpose.msra.mxu1 %v22112_v42  ;;  %7064 = vmatprep.mubr.f32.mxu1 %v1675_v44  ;;  %v749_v42 = vld [vmem:[%s27385_s1 + $0x12f0] sm:$0x3] }
 0x15f   :  { %15955 = vmatmul.mubr.f32.vlgmr.msra.gmra.mrb[0].mxu0 %v2754_v20  ;;  %22115 = vmatprep.subr.bf16.mxu1 %v22114_v45  ;;  %v38_v20 = vld [vmem:[%s27384_s0 + $0xb8] sm:$0xff]  ;;  %v1005_v44 = vld [vmem:[%s27385_s1 + $0x1af0] sm:$0x3]  ;;  %v22128_v51 = vpack.c.bf16 %v749_v42, %v237_v41 }
 0x160   :  { %22625 = vmatpush1.bf16.xpose.msra.mxu0 %v22624_v43  ;;  %16024 = vmatprep.mubr.f32.mxu0 %v2763_v46  ;;  %v1700_v27 = vrot.slane %v38_v20, %v23691_v25  ;;  %v1693_v37 = vcombine.high %v38_v20, %v38_v20  ;;  %v493_v43 = vld [vmem:[%s27385_s1 + $0xaf0] sm:$0xff]  ;;  %v240_v46 = vld [vmem:[%s27385_s1 + $0x308] sm:$0xff]  ;;  %v2812_v20 = vrot.slane %v2798_v12, %v23691_v25  ;;  %v1014_v41 = vld [vmem:[%s27385_s1 + $0x1b38] sm:$0x3] }
 0x161   :  { %22627 = vmatprep.subr.bf16.mxu0 %v22626_v47  ;;  %v752_v47 = vld [vmem:[%s27385_s1 + $0x1308] sm:$0x3]  ;;  %v22640_v52 = vpack.c.bf16 %v1005_v44, %v493_v43  ;;  %v506_v12 = vld [vmem:[%s27385_s1 + $0xb58] sm:$0xff] }
 0x162   :  { %v1708_v35 = vcombine.high %v1700_v27, %v1700_v27  ;;  %v1707_v45 = vrot.slane %v1693_v37, %v23691_v25  ;;  %v246_v37 = vld [vmem:[%s27385_s1 + $0x338] sm:$0xff] }
 0x164   :  { %v1709_v53 = vcombine.high %v1707_v45, %v1707_v45 }
 0x165   :  { %7065 = vmatmul.mubr.f32.vlgmr.msra.gmra.mrb[0].mxu1 %v1673_v36  ;;  %v22126_v36 = vpack.c.bf16 %v750_v29, %v238_v28  ;;  %v2814_v28 = vcombine.high %v2812_v20, %v2812_v20  ;;  %v22650_v29 = vpack.c.bf16 %v1012_v22, %v500_v21  ;;  %v249_v22 = vld [vmem:[%s27385_s1 + $0x350] sm:$0xff] }
 0x166   :  { %22117 = vmatpush1.bf16.xpose.msra.mxu1 %v22116_v60  ;;  %7134 = vmatprep.mubr.f32.mxu1 %v1691_v62  ;;  %v751_v60 = vld [vmem:[%s27385_s1 + $0x1300] sm:$0x3] }
 0x167   :  { %16025 = vmatmul.mubr.f32.vlgmr.msra.gmra.mrb[0].mxu0 %v2761_v39  ;;  %22119 = vmatprep.subr.bf16.mxu1 %v22118_v63  ;;  %v22638_v39 = vpack.c.bf16 %v1006_v32, %v494_v31  ;;  %v1007_v62 = vld [vmem:[%s27385_s1 + $0x1b00] sm:$0x3]  ;;  %v22132_v5 = vpack.c.bf16 %v751_v60, %v239_v59  ;;  %v104_v31 = vld [vmem:[%s27384_s0 + $0x2c8] sm:$0xff] }
 0x168   :  { %22629 = vmatpush1.bf16.xpose.msra.mxu0 %v22628_v61  ;;  %16094 = vmatprep.mubr.f32.mxu0 %v2779_v1  ;;  %v495_v61 = vld [vmem:[%s27385_s1 + $0xb00] sm:$0xff]  ;;  %v754_v1 = vld [vmem:[%s27385_s1 + $0x1318] sm:$0x3]  ;;  %v2815_v49 = vcombine.high %v104_v31, %v104_v31  ;;  %v1016_v59 = vld [vmem:[%s27385_s1 + $0x1b48] sm:$0x3] }
 0x169   :  { %22631 = vmatprep.subr.bf16.mxu0 %v22630_v2  ;;  %v2805_v2 = vrot.slane %v103_v58, %v23691_v25  ;;  %v22644_v6 = vpack.c.bf16 %v1007_v62, %v495_v61  ;;  %v243_v32 = vld [vmem:[%s27385_s1 + $0x320] sm:$0xff]  ;;  %v504_v58 = vld [vmem:[%s27385_s1 + $0xb48] sm:$0xff] }
 0x16b   :  { %v2813_v10 = vcombine.high %v2805_v2, %v2805_v2 }
 0x16d   :  { %7135 = vmatmul.mubr.f32.vlgmr.msra.gmra.mrb[0].mxu1 %v1683_v54  ;;  %v22130_v54 = vpack.c.bf16 %v752_v47, %v240_v46 }
 0x16e   :  { %22121 = vmatpush1.bf16.xpose.msra.mxu1 %v22120_v14  ;;  %7204 = vmatprep.mubr.f32.mxu1 %v1692_v16  ;;  %v753_v14 = vld [vmem:[%s27385_s1 + $0x1310] sm:$0x3] }
 0x16f   :  { %16095 = vmatmul.mubr.f32.vlgmr.msra.gmra.mrb[0].mxu0 %v2771_v57  ;;  %22123 = vmatprep.subr.bf16.mxu1 %v22122_v17  ;;  %v39_v57 = vld [vmem:[%s27384_s0 + $0xc0] sm:$0xff]  ;;  %v1009_v16 = vld [vmem:[%s27385_s1 + $0x1b10] sm:$0x3]  ;;  %v22136_v23 = vpack.c.bf16 %v753_v14, %v241_v13  ;;  %v1018_v13 = vld [vmem:[%s27385_s1 + $0x1b58] sm:$0x3] }
 0x170   :  { %22633 = vmatpush1.bf16.xpose.msra.mxu0 %v22632_v15  ;;  %16164 = vmatprep.mubr.f32.mxu0 %v2780_v18  ;;  %v1717_v63 = vrot.slane %v39_v57, %v23691_v25  ;;  %v1710_v9 = vcombine.high %v39_v57, %v39_v57  ;;  %v497_v15 = vld [vmem:[%s27385_s1 + $0xb10] sm:$0xff]  ;;  %v244_v18 = vld [vmem:[%s27385_s1 + $0x328] sm:$0xff]  ;;  %v2829_v57 = vrot.slane %v2815_v49, %v23691_v25  ;;  %v510_v49 = vld [vmem:[%s27385_s1 + $0xb78] sm:$0xff] }
 0x171   :  { %22635 = vmatprep.subr.bf16.mxu0 %v22634_v19  ;;  %v756_v19 = vld [vmem:[%s27385_s1 + $0x1328] sm:$0x3]  ;;  %v22648_v24 = vpack.c.bf16 %v1009_v16, %v497_v15 }
 0x172   :  { %v1725_v7 = vcombine.high %v1717_v63, %v1717_v63  ;;  %v1724_v17 = vrot.slane %v1710_v9, %v23691_v25  ;;  %v250_v9 = vld [vmem:[%s27385_s1 + $0x358] sm:$0xff] }
 0x174   :  { %v1726_v26 = vcombine.high %v1724_v17, %v1724_v17 }
 0x175   :  { %7205 = vmatmul.mubr.f32.vlgmr.msra.gmra.mrb[0].mxu1 %v1690_v8  ;;  %v22134_v8 = vpack.c.bf16 %v754_v1, %v242_v0  ;;  %v2831_v0 = vcombine.high %v2829_v57, %v2829_v57  ;;  %v22658_v1 = vpack.c.bf16 %v1016_v59, %v504_v58  ;;  %v253_v59 = vld [vmem:[%s27385_s1 + $0x370] sm:$0xff] }
 0x176   :  { %22125 = vmatpush1.bf16.xpose.msra.mxu1 %v22124_v33  ;;  %7274 = vmatprep.mubr.f32.mxu1 %v1708_v35  ;;  %v755_v33 = vld [vmem:[%s27385_s1 + $0x1320] sm:$0x3] }
 0x177   :  { %16165 = vmatmul.mubr.f32.vlgmr.msra.gmra.mrb[0].mxu0 %v2778_v11  ;;  %22127 = vmatprep.subr.bf16.mxu1 %v22126_v36  ;;  %v22646_v11 = vpack.c.bf16 %v1010_v4, %v498_v3  ;;  %v1011_v35 = vld [vmem:[%s27385_s1 + $0x1b20] sm:$0x3]  ;;  %v22140_v42 = vpack.c.bf16 %v755_v33, %v243_v32  ;;  %v105_v3 = vld [vmem:[%s27384_s0 + $0x2d0] sm:$0xff]  ;;  %v1020_v32 = vld [vmem:[%s27385_s1 + $0x1b68] sm:$0x3] }
 0x178   :  { %22637 = vmatpush1.bf16.xpose.msra.mxu0 %v22636_v34  ;;  %16234 = vmatprep.mubr.f32.mxu0 %v2796_v38  ;;  %v499_v34 = vld [vmem:[%s27385_s1 + $0xb20] sm:$0xff]  ;;  %v758_v38 = vld [vmem:[%s27385_s1 + $0x1338] sm:$0x3]  ;;  %v2832_v21 = vcombine.high %v105_v3, %v105_v3 }
 0x179   :  { %22639 = vmatprep.subr.bf16.mxu0 %v22638_v39  ;;  %v2822_v39 = vrot.slane %v104_v31, %v23691_v25  ;;  %v22652_v43 = vpack.c.bf16 %v1011_v35, %v499_v34  ;;  %v247_v4 = vld [vmem:[%s27385_s1 + $0x340] sm:$0xff]  ;;  %v508_v31 = vld [vmem:[%s27385_s1 + $0xb68] sm:$0xff] }
 0x17b   :  { %v2830_v47 = vcombine.high %v2822_v39, %v2822_v39 }
 0x17d   :  { %7275 = vmatmul.mubr.f32.vlgmr.msra.gmra.mrb[0].mxu1 %v1700_v27  ;;  %v22138_v27 = vpack.c.bf16 %v756_v19, %v244_v18 }
 0x17e   :  { %22129 = vmatpush1.bf16.xpose.msra.mxu1 %v22128_v51  ;;  %7344 = vmatprep.mubr.f32.mxu1 %v1709_v53  ;;  %v757_v51 = vld [vmem:[%s27385_s1 + $0x1330] sm:$0x3] }
 0x17f   :  { %16235 = vmatmul.mubr.f32.vlgmr.msra.gmra.mrb[0].mxu0 %v2788_v30  ;;  %22131 = vmatprep.subr.bf16.mxu1 %v22130_v54  ;;  %v40_v30 = vld [vmem:[%s27384_s0 + $0xc8] sm:$0xff]  ;;  %v1013_v53 = vld [vmem:[%s27385_s1 + $0x1b30] sm:$0x3]  ;;  %v22144_v60 = vpack.c.bf16 %v757_v51, %v245_v50  ;;  %v1022_v50 = vld [vmem:[%s27385_s1 + $0x1b78] sm:$0x3] }
 0x180   :  { %22641 = vmatpush1.bf16.xpose.msra.mxu0 %v22640_v52  ;;  %16304 = vmatprep.mubr.f32.mxu0 %v2797_v55  ;;  %v1734_v36 = vrot.slane %v40_v30, %v23691_v25  ;;  %v1727_v46 = vcombine.high %v40_v30, %v40_v30  ;;  %v501_v52 = vld [vmem:[%s27385_s1 + $0xb30] sm:$0xff]  ;;  %v248_v55 = vld [vmem:[%s27385_s1 + $0x348] sm:$0xff]  ;;  %v2846_v30 = vrot.slane %v2832_v21, %v23691_v25  ;;  %v514_v21 = vld [vmem:[%s27385_s1 + $0xb98] sm:$0xff] }
 0x181   :  { %22643 = vmatprep.subr.bf16.mxu0 %v22642_v56  ;;  %v760_v56 = vld [vmem:[%s27385_s1 + $0x1348] sm:$0x3]  ;;  %v22656_v61 = vpack.c.bf16 %v1013_v53, %v501_v52 }
 0x182   :  { %v1742_v44 = vcombine.high %v1734_v36, %v1734_v36  ;;  %v1741_v54 = vrot.slane %v1727_v46, %v23691_v25  ;;  %v254_v46 = vld [vmem:[%s27385_s1 + $0x378] sm:$0xff] }
 0x184   :  { %v1743_v62 = vcombine.high %v1741_v54, %v1741_v54 }
 0x185   :  { %7345 = vmatmul.mubr.f32.vlgmr.msra.gmra.mrb[0].mxu1 %v1707_v45  ;;  %v22142_v45 = vpack.c.bf16 %v758_v38, %v246_v37  ;;  %v2848_v37 = vcombine.high %v2846_v30, %v2846_v30  ;;  %v22666_v38 = vpack.c.bf16 %v1020_v32, %v508_v31  ;;  %v257_v32 = vld [vmem:[%s27385_s1 + $0x390] sm:$0xff] }
 0x186   :  { %22133 = vmatpush1.bf16.xpose.msra.mxu1 %v22132_v5  ;;  %7414 = vmatprep.mubr.f32.mxu1 %v1725_v7  ;;  %v759_v5 = vld [vmem:[%s27385_s1 + $0x1340] sm:$0x3] }
 0x187   :  { %16305 = vmatmul.mubr.f32.vlgmr.msra.gmra.mrb[0].mxu0 %v2795_v48  ;;  %22135 = vmatprep.subr.bf16.mxu1 %v22134_v8  ;;  %v22654_v48 = vpack.c.bf16 %v1014_v41, %v502_v40  ;;  %v1015_v7 = vld [vmem:[%s27385_s1 + $0x1b40] sm:$0x3]  ;;  %v22148_v14 = vpack.c.bf16 %v759_v5, %v247_v4  ;;  %v106_v40 = vld [vmem:[%s27384_s0 + $0x2d8] sm:$0xff]  ;;  %v1024_v4 = vld [vmem:[%s27385_s1 + $0x1b88] sm:$0x3] }
 0x188   :  { %22645 = vmatpush1.bf16.xpose.msra.mxu0 %v22644_v6  ;;  %16374 = vmatprep.mubr.f32.mxu0 %v2813_v10  ;;  %v503_v6 = vld [vmem:[%s27385_s1 + $0xb40] sm:$0xff]  ;;  %v762_v10 = vld [vmem:[%s27385_s1 + $0x1358] sm:$0x3]  ;;  %v2849_v58 = vcombine.high %v106_v40, %v106_v40 }
 0x189   :  { %22647 = vmatprep.subr.bf16.mxu0 %v22646_v11  ;;  %v2839_v11 = vrot.slane %v105_v3, %v23691_v25  ;;  %v22660_v15 = vpack.c.bf16 %v1015_v7, %v503_v6  ;;  %v251_v41 = vld [vmem:[%s27385_s1 + $0x360] sm:$0xff]  ;;  %v512_v3 = vld [vmem:[%s27385_s1 + $0xb88] sm:$0xff] }
 0x18b   :  { %v2847_v19 = vcombine.high %v2839_v11, %v2839_v11 }
 0x18d   :  { %7415 = vmatmul.mubr.f32.vlgmr.msra.gmra.mrb[0].mxu1 %v1717_v63  ;;  %v22146_v63 = vpack.c.bf16 %v760_v56, %v248_v55 }
 0x18e   :  { %22137 = vmatpush1.bf16.xpose.msra.mxu1 %v22136_v23  ;;  %7484 = vmatprep.mubr.f32.mxu1 %v1726_v26  ;;  %v761_v23 = vld [vmem:[%s27385_s1 + $0x1350] sm:$0x3] }
 0x18f   :  { %16375 = vmatmul.mubr.f32.vlgmr.msra.gmra.mrb[0].mxu0 %v2805_v2  ;;  %22139 = vmatprep.subr.bf16.mxu1 %v22138_v27  ;;  %v41_v2 = vld [vmem:[%s27384_s0 + $0xd0] sm:$0xff]  ;;  %v22152_v33 = vpack.c.bf16 %v761_v23, %v249_v22  ;;  %v1026_v22 = vld [vmem:[%s27385_s1 + $0x1b98] sm:$0x3] }
 0x190   :  { %22649 = vmatpush1.bf16.xpose.msra.mxu0 %v22648_v24  ;;  %16444 = vmatprep.mubr.f32.mxu0 %v2814_v28  ;;  %v1751_v8 = vrot.slane %v41_v2, %v23691_v25  ;;  %v1744_v18 = vcombine.high %v41_v2, %v41_v2  ;;  %v505_v24 = vld [vmem:[%s27385_s1 + $0xb50] sm:$0xff]  ;;  %v252_v28 = vld [vmem:[%s27385_s1 + $0x368] sm:$0xff]  ;;  %v2863_v2 = vrot.slane %v2849_v58, %v23691_v25  ;;  %v518_v58 = vld [vmem:[%s27385_s1 + $0xbb8] sm:$0xff] }
 0x191   :  { %22651 = vmatprep.subr.bf16.mxu0 %v22650_v29  ;;  %v1017_v26 = vld [vmem:[%s27385_s1 + $0x1b50] sm:$0x3]  ;;  %v764_v29 = vld [vmem:[%s27385_s1 + $0x1368] sm:$0x3] }
 0x192   :  { %v1759_v16 = vcombine.high %v1751_v8, %v1751_v8  ;;  %v1758_v27 = vrot.slane %v1744_v18, %v23691_v25  ;;  %v22664_v34 = vpack.c.bf16 %v1017_v26, %v505_v24  ;;  %v258_v18 = vld [vmem:[%s27385_s1 + $0x398] sm:$0xff] }
 0x194   :  { %v1760_v35 = vcombine.high %v1758_v27, %v1758_v27 }
 0x195   :  { %7485 = vmatmul.mubr.f32.vlgmr.msra.gmra.mrb[0].mxu1 %v1724_v17  ;;  %v22150_v17 = vpack.c.bf16 %v762_v10, %v250_v9  ;;  %v2865_v9 = vcombine.high %v2863_v2, %v2863_v2  ;;  %v22674_v10 = vpack.c.bf16 %v1024_v4, %v512_v3  ;;  %v261_v4 = vld [vmem:[%s27385_s1 + $0x3b0] sm:$0xff] }
 0x196   :  { %22141 = vmatpush1.bf16.xpose.msra.mxu1 %v22140_v42  ;;  %7554 = vmatprep.mubr.f32.mxu1 %v1742_v44  ;;  %v763_v42 = vld [vmem:[%s27385_s1 + $0x1360] sm:$0x3] }
 0x197   :  { %16445 = vmatmul.mubr.f32.vlgmr.msra.gmra.mrb[0].mxu0 %v2812_v20  ;;  %22143 = vmatprep.subr.bf16.mxu1 %v22142_v45  ;;  %v22662_v20 = vpack.c.bf16 %v1018_v13, %v506_v12  ;;  %v1019_v44 = vld [vmem:[%s27385_s1 + $0x1b60] sm:$0x3]  ;;  %v22156_v51 = vpack.c.bf16 %v763_v42, %v251_v41  ;;  %v1028_v41 = vld [vmem:[%s27385_s1 + $0x1ba8] sm:$0x3] }
 0x198   :  { %22653 = vmatpush1.bf16.xpose.msra.mxu0 %v22652_v43  ;;  %16514 = vmatprep.mubr.f32.mxu0 %v2830_v47  ;;  %v507_v43 = vld [vmem:[%s27385_s1 + $0xb60] sm:$0xff]  ;;  %v766_v47 = vld [vmem:[%s27385_s1 + $0x1378] sm:$0x3] }
 0x199   :  { %22655 = vmatprep.subr.bf16.mxu0 %v22654_v48  ;;  %v2856_v48 = vrot.slane %v106_v40, %v23691_v25  ;;  %v22668_v52 = vpack.c.bf16 %v1019_v44, %v507_v43  ;;  %v107_v12 = vld [vmem:[%s27384_s0 + $0x2e0] sm:$0xff]  ;;  %v516_v40 = vld [vmem:[%s27385_s1 + $0xba8] sm:$0xff] }
 0x19a   :  { %v255_v13 = vld [vmem:[%s27385_s1 + $0x380] sm:$0xff]  ;;  %v2866_v31 = vcombine.high %v107_v12, %v107_v12 }
 0x19b   :  { %v2864_v56 = vcombine.high %v2856_v48, %v2856_v48 }
 0x19d   :  { %7555 = vmatmul.mubr.f32.vlgmr.msra.gmra.mrb[0].mxu1 %v1734_v36  ;;  %v22154_v36 = vpack.c.bf16 %v764_v29, %v252_v28 }
 0x19e   :  { %22145 = vmatpush1.bf16.xpose.msra.mxu1 %v22144_v60  ;;  %7624 = vmatprep.mubr.f32.mxu1 %v1743_v62  ;;  %v765_v60 = vld [vmem:[%s27385_s1 + $0x1370] sm:$0x3] }
 0x19f   :  { %16515 = vmatmul.mubr.f32.vlgmr.msra.gmra.mrb[0].mxu0 %v2822_v39  ;;  %22147 = vmatprep.subr.bf16.mxu1 %v22146_v63  ;;  %v42_v39 = vld [vmem:[%s27384_s0 + $0xd8] sm:$0xff]  ;;  %v1021_v62 = vld [vmem:[%s27385_s1 + $0x1b70] sm:$0x3]  ;;  %v22160_v5 = vpack.c.bf16 %v765_v60, %v253_v59 }
 0x1a0   :  { %22657 = vmatpush1.bf16.xpose.msra.mxu0 %v22656_v61  ;;  %16584 = vmatprep.mubr.f32.mxu0 %v2831_v0  ;;  %v1768_v45 = vrot.slane %v42_v39, %v23691_v25  ;;  %v1761_v55 = vcombine.high %v42_v39, %v42_v39  ;;  %v509_v61 = vld [vmem:[%s27385_s1 + $0xb70] sm:$0xff]  ;;  %v256_v0 = vld [vmem:[%s27385_s1 + $0x388] sm:$0xff]  ;;  %v2880_v39 = vrot.slane %v2866_v31, %v23691_v25  ;;  %v1030_v59 = vld [vmem:[%s27385_s1 + $0x1bb8] sm:$0x3] }
 0x1a1   :  { %22659 = vmatprep.subr.bf16.mxu0 %v22658_v1  ;;  %v768_v1 = vld [vmem:[%s27385_s1 + $0x1388] sm:$0x3]  ;;  %v22672_v6 = vpack.c.bf16 %v1021_v62, %v509_v61  ;;  %v522_v31 = vld [vmem:[%s27385_s1 + $0xbd8] sm:$0xff] }
 0x1a2   :  { %v1776_v53 = vcombine.high %v1768_v45, %v1768_v45  ;;  %v1775_v63 = vrot.slane %v1761_v55, %v23691_v25  ;;  %v262_v55 = vld [vmem:[%s27385_s1 + $0x3b8] sm:$0xff] }
 0x1a4   :  { %v1777_v7 = vcombine.high %v1775_v63, %v1775_v63 }
 0x1a5   :  { %7625 = vmatmul.mubr.f32.vlgmr.msra.gmra.mrb[0].mxu1 %v1741_v54  ;;  %v22158_v54 = vpack.c.bf16 %v766_v47, %v254_v46  ;;  %v2882_v46 = vcombine.high %v2880_v39, %v2880_v39  ;;  %v22682_v47 = vpack.c.bf16 %v1028_v41, %v516_v40  ;;  %v265_v41 = vld [vmem:[%s27385_s1 + $0x3d0] sm:$0xff] }
 0x1a6   :  { %22149 = vmatpush1.bf16.xpose.msra.mxu1 %v22148_v14  ;;  %7694 = vmatprep.mubr.f32.mxu1 %v1759_v16  ;;  %v767_v14 = vld [vmem:[%s27385_s1 + $0x1380] sm:$0x3] }
 0x1a7   :  { %16585 = vmatmul.mubr.f32.vlgmr.msra.gmra.mrb[0].mxu0 %v2829_v57  ;;  %22151 = vmatprep.subr.bf16.mxu1 %v22150_v17  ;;  %v22670_v57 = vpack.c.bf16 %v1022_v50, %v510_v49  ;;  %v1023_v16 = vld [vmem:[%s27385_s1 + $0x1b80] sm:$0x3]  ;;  %v22164_v23 = vpack.c.bf16 %v767_v14, %v255_v13  ;;  %v108_v49 = vld [vmem:[%s27384_s0 + $0x2e8] sm:$0xff] }
 0x1a8   :  { %22661 = vmatpush1.bf16.xpose.msra.mxu0 %v22660_v15  ;;  %16654 = vmatprep.mubr.f32.mxu0 %v2847_v19  ;;  %v511_v15 = vld [vmem:[%s27385_s1 + $0xb80] sm:$0xff]  ;;  %v770_v19 = vld [vmem:[%s27385_s1 + $0x1398] sm:$0x3]  ;;  %v2883_v3 = vcombine.high %v108_v49, %v108_v49  ;;  %v1032_v13 = vld [vmem:[%s27385_s1 + $0x1bc8] sm:$0x3] }
 0x1a9   :  { %22663 = vmatprep.subr.bf16.mxu0 %v22662_v20  ;;  %v2873_v20 = vrot.slane %v107_v12, %v23691_v25  ;;  %v22676_v24 = vpack.c.bf16 %v1023_v16, %v511_v15  ;;  %v259_v50 = vld [vmem:[%s27385_s1 + $0x3a0] sm:$0xff]  ;;  %v520_v12 = vld [vmem:[%s27385_s1 + $0xbc8] sm:$0xff] }
 0x1ab   :  { %v2881_v29 = vcombine.high %v2873_v20, %v2873_v20 }
 0x1ad   :  { %7695 = vmatmul.mubr.f32.vlgmr.msra.gmra.mrb[0].mxu1 %v1751_v8  ;;  %v22162_v8 = vpack.c.bf16 %v768_v1, %v256_v0 }
 0x1ae   :  { %22153 = vmatpush1.bf16.xpose.msra.mxu1 %v22152_v33  ;;  %7764 = vmatprep.mubr.f32.mxu1 %v1760_v35  ;;  %v769_v33 = vld [vmem:[%s27385_s1 + $0x1390] sm:$0x3] }
 0x1af   :  { %16655 = vmatmul.mubr.f32.vlgmr.msra.gmra.mrb[0].mxu0 %v2839_v11  ;;  %22155 = vmatprep.subr.bf16.mxu1 %v22154_v36  ;;  %v43_v11 = vld [vmem:[%s27384_s0 + $0xe0] sm:$0xff]  ;;  %v1025_v35 = vld [vmem:[%s27385_s1 + $0x1b90] sm:$0x3]  ;;  %v22168_v42 = vpack.c.bf16 %v769_v33, %v257_v32  ;;  %v1034_v32 = vld [vmem:[%s27385_s1 + $0x1bd8] sm:$0x3] }
 0x1b0   :  { %22665 = vmatpush1.bf16.xpose.msra.mxu0 %v22664_v34  ;;  %16724 = vmatprep.mubr.f32.mxu0 %v2848_v37  ;;  %v1785_v17 = vrot.slane %v43_v11, %v23691_v25  ;;  %v1778_v28 = vcombine.high %v43_v11, %v43_v11  ;;  %v513_v34 = vld [vmem:[%s27385_s1 + $0xb90] sm:$0xff]  ;;  %v260_v37 = vld [vmem:[%s27385_s1 + $0x3a8] sm:$0xff]  ;;  %v2897_v11 = vrot.slane %v2883_v3, %v23691_v25  ;;  %v526_v3 = vld [vmem:[%s27385_s1 + $0xbf8] sm:$0xff] }
 0x1b1   :  { %22667 = vmatprep.subr.bf16.mxu0 %v22666_v38  ;;  %v772_v38 = vld [vmem:[%s27385_s1 + $0x13a8] sm:$0x3]  ;;  %v22680_v43 = vpack.c.bf16 %v1025_v35, %v513_v34 }
 0x1b2   :  { %v1793_v26 = vcombine.high %v1785_v17, %v1785_v17  ;;  %v1792_v36 = vrot.slane %v1778_v28, %v23691_v25  ;;  %v266_v28 = vld [vmem:[%s27385_s1 + $0x3d8] sm:$0xff] }
 0x1b4   :  { %v1794_v44 = vcombine.high %v1792_v36, %v1792_v36 }
 0x1b5   :  { %7765 = vmatmul.mubr.f32.vlgmr.msra.gmra.mrb[0].mxu1 %v1758_v27  ;;  %v22166_v27 = vpack.c.bf16 %v770_v19, %v258_v18  ;;  %v2899_v18 = vcombine.high %v2897_v11, %v2897_v11  ;;  %v22690_v19 = vpack.c.bf16 %v1032_v13, %v520_v12  ;;  %v269_v13 = vld [vmem:[%s27385_s1 + $0x3f0] sm:$0xff] }
 0x1b6   :  { %22157 = vmatpush1.bf16.xpose.msra.mxu1 %v22156_v51  ;;  %7834 = vmatprep.mubr.f32.mxu1 %v1776_v53  ;;  %v771_v51 = vld [vmem:[%s27385_s1 + $0x13a0] sm:$0x3] }
 0x1b7   :  { %16725 = vmatmul.mubr.f32.vlgmr.msra.gmra.mrb[0].mxu0 %v2846_v30  ;;  %22159 = vmatprep.subr.bf16.mxu1 %v22158_v54  ;;  %v22678_v30 = vpack.c.bf16 %v1026_v22, %v514_v21  ;;  %v1027_v53 = vld [vmem:[%s27385_s1 + $0x1ba0] sm:$0x3]  ;;  %v22172_v60 = vpack.c.bf16 %v771_v51, %v259_v50  ;;  %v109_v21 = vld [vmem:[%s27384_s0 + $0x2f0] sm:$0xff]  ;;  %v1036_v50 = vld [vmem:[%s27385_s1 + $0x1be8] sm:$0x3] }
 0x1b8   :  { %22669 = vmatpush1.bf16.xpose.msra.mxu0 %v22668_v52  ;;  %16794 = vmatprep.mubr.f32.mxu0 %v2864_v56  ;;  %v515_v52 = vld [vmem:[%s27385_s1 + $0xba0] sm:$0xff]  ;;  %v774_v56 = vld [vmem:[%s27385_s1 + $0x13b8] sm:$0x3]  ;;  %v2900_v40 = vcombine.high %v109_v21, %v109_v21 }
 0x1b9   :  { %22671 = vmatprep.subr.bf16.mxu0 %v22670_v57  ;;  %v2890_v57 = vrot.slane %v108_v49, %v23691_v25  ;;  %v22684_v61 = vpack.c.bf16 %v1027_v53, %v515_v52  ;;  %v263_v22 = vld [vmem:[%s27385_s1 + $0x3c0] sm:$0xff]  ;;  %v524_v49 = vld [vmem:[%s27385_s1 + $0xbe8] sm:$0xff] }
 0x1bb   :  { %v2898_v1 = vcombine.high %v2890_v57, %v2890_v57 }
 0x1bd   :  { %7835 = vmatmul.mubr.f32.vlgmr.msra.gmra.mrb[0].mxu1 %v1768_v45  ;;  %v22170_v45 = vpack.c.bf16 %v772_v38, %v260_v37 }
 0x1be   :  { %22161 = vmatpush1.bf16.xpose.msra.mxu1 %v22160_v5  ;;  %7904 = vmatprep.mubr.f32.mxu1 %v1777_v7  ;;  %v773_v5 = vld [vmem:[%s27385_s1 + $0x13b0] sm:$0x3] }
 0x1bf   :  { %16795 = vmatmul.mubr.f32.vlgmr.msra.gmra.mrb[0].mxu0 %v2856_v48  ;;  %22163 = vmatprep.subr.bf16.mxu1 %v22162_v8  ;;  %v44_v48 = vld [vmem:[%s27384_s0 + $0xe8] sm:$0xff]  ;;  %v1029_v7 = vld [vmem:[%s27385_s1 + $0x1bb0] sm:$0x3]  ;;  %v22176_v14 = vpack.c.bf16 %v773_v5, %v261_v4  ;;  %v1038_v4 = vld [vmem:[%s27385_s1 + $0x1bf8] sm:$0x3] }
 0x1c0   :  { %22673 = vmatpush1.bf16.xpose.msra.mxu0 %v22672_v6  ;;  %16864 = vmatprep.mubr.f32.mxu0 %v2865_v9  ;;  %v1802_v54 = vrot.slane %v44_v48, %v23691_v25  ;;  %v1795_v0 = vcombine.high %v44_v48, %v44_v48  ;;  %v517_v6 = vld [vmem:[%s27385_s1 + $0xbb0] sm:$0xff]  ;;  %v264_v9 = vld [vmem:[%s27385_s1 + $0x3c8] sm:$0xff]  ;;  %v2914_v48 = vrot.slane %v2900_v40, %v23691_v25  ;;  %v530_v40 = vld [vmem:[%s27385_s1 + $0xc18] sm:$0xff] }
 0x1c1   :  { %22675 = vmatprep.subr.bf16.mxu0 %v22674_v10  ;;  %v776_v10 = vld [vmem:[%s27385_s1 + $0x13c8] sm:$0x3]  ;;  %v22688_v15 = vpack.c.bf16 %v1029_v7, %v517_v6 }
 0x1c2   :  { %v1810_v62 = vcombine.high %v1802_v54, %v1802_v54  ;;  %v1809_v8 = vrot.slane %v1795_v0, %v23691_v25  ;;  %v270_v0 = vld [vmem:[%s27385_s1 + $0x3f8] sm:$0xff] }
 0x1c4   :  { %v1811_v16 = vcombine.high %v1809_v8, %v1809_v8 }
 0x1c5   :  { %7905 = vmatmul.mubr.f32.vlgmr.msra.gmra.mrb[0].mxu1 %v1775_v63  ;;  %v22174_v63 = vpack.c.bf16 %v774_v56, %v262_v55  ;;  %v2916_v55 = vcombine.high %v2914_v48, %v2914_v48  ;;  %v22698_v56 = vpack.c.bf16 %v1036_v50, %v524_v49  ;;  %v273_v50 = vld [vmem:[%s27385_s1 + $0x410] sm:$0xff] }
 0x1c6   :  { %22165 = vmatpush1.bf16.xpose.msra.mxu1 %v22164_v23  ;;  %7974 = vmatprep.mubr.f32.mxu1 %v1793_v26  ;;  %v775_v23 = vld [vmem:[%s27385_s1 + $0x13c0] sm:$0x3] }
 0x1c7   :  { %16865 = vmatmul.mubr.f32.vlgmr.msra.gmra.mrb[0].mxu0 %v2863_v2  ;;  %22167 = vmatprep.subr.bf16.mxu1 %v22166_v27  ;;  %v22686_v2 = vpack.c.bf16 %v1030_v59, %v518_v58  ;;  %v1031_v26 = vld [vmem:[%s27385_s1 + $0x1bc0] sm:$0x3]  ;;  %v22180_v33 = vpack.c.bf16 %v775_v23, %v263_v22  ;;  %v110_v58 = vld [vmem:[%s27384_s0 + $0x2f8] sm:$0xff]  ;;  %v1040_v22 = vld [vmem:[%s27385_s1 + $0x1c08] sm:$0x3] }
 0x1c8   :  { %22677 = vmatpush1.bf16.xpose.msra.mxu0 %v22676_v24  ;;  %16934 = vmatprep.mubr.f32.mxu0 %v2881_v29  ;;  %v519_v24 = vld [vmem:[%s27385_s1 + $0xbc0] sm:$0xff]  ;;  %v778_v29 = vld [vmem:[%s27385_s1 + $0x13d8] sm:$0x3]  ;;  %v2917_v12 = vcombine.high %v110_v58, %v110_v58 }
 0x1c9   :  { %22679 = vmatprep.subr.bf16.mxu0 %v22678_v30  ;;  %v2907_v30 = vrot.slane %v109_v21, %v23691_v25  ;;  %v22692_v34 = vpack.c.bf16 %v1031_v26, %v519_v24  ;;  %v267_v59 = vld [vmem:[%s27385_s1 + $0x3e0] sm:$0xff]  ;;  %v528_v21 = vld [vmem:[%s27385_s1 + $0xc08] sm:$0xff] }
 0x1cb   :  { %v2915_v38 = vcombine.high %v2907_v30, %v2907_v30 }
 0x1cd   :  { %7975 = vmatmul.mubr.f32.vlgmr.msra.gmra.mrb[0].mxu1 %v1785_v17  ;;  %v22178_v17 = vpack.c.bf16 %v776_v10, %v264_v9 }
 0x1ce   :  { %22169 = vmatpush1.bf16.xpose.msra.mxu1 %v22168_v42  ;;  %8044 = vmatprep.mubr.f32.mxu1 %v1794_v44  ;;  %v777_v42 = vld [vmem:[%s27385_s1 + $0x13d0] sm:$0x3] }
 0x1cf   :  { %16935 = vmatmul.mubr.f32.vlgmr.msra.gmra.mrb[0].mxu0 %v2873_v20  ;;  %22171 = vmatprep.subr.bf16.mxu1 %v22170_v45  ;;  %v45_v20 = vld [vmem:[%s27384_s0 + $0xf0] sm:$0xff]  ;;  %v22184_v51 = vpack.c.bf16 %v777_v42, %v265_v41  ;;  %v1042_v41 = vld [vmem:[%s27385_s1 + $0x1c18] sm:$0x3] }
 0x1d0   :  { %22681 = vmatpush1.bf16.xpose.msra.mxu0 %v22680_v43  ;;  %17004 = vmatprep.mubr.f32.mxu0 %v2882_v46  ;;  %v1819_v27 = vrot.slane %v45_v20, %v23691_v25  ;;  %v1812_v37 = vcombine.high %v45_v20, %v45_v20  ;;  %v521_v43 = vld [vmem:[%s27385_s1 + $0xbd0] sm:$0xff]  ;;  %v268_v46 = vld [vmem:[%s27385_s1 + $0x3e8] sm:$0xff]  ;;  %v2931_v20 = vrot.slane %v2917_v12, %v23691_v25  ;;  %v534_v12 = vld [vmem:[%s27385_s1 + $0xc38] sm:$0xff] }
 0x1d1   :  { %22683 = vmatprep.subr.bf16.mxu0 %v22682_v47  ;;  %v1033_v44 = vld [vmem:[%s27385_s1 + $0x1bd0] sm:$0x3]  ;;  %v780_v47 = vld [vmem:[%s27385_s1 + $0x13e8] sm:$0x3] }
 0x1d2   :  { %v1827_v35 = vcombine.high %v1819_v27, %v1819_v27  ;;  %v1826_v45 = vrot.slane %v1812_v37, %v23691_v25  ;;  %v22696_v52 = vpack.c.bf16 %v1033_v44, %v521_v43  ;;  %v274_v37 = vld [vmem:[%s27385_s1 + $0x418] sm:$0xff] }
 0x1d4   :  { %v1828_v53 = vcombine.high %v1826_v45, %v1826_v45 }
 0x1d5   :  { %8045 = vmatmul.mubr.f32.vlgmr.msra.gmra.mrb[0].mxu1 %v1792_v36  ;;  %v22182_v36 = vpack.c.bf16 %v778_v29, %v266_v28  ;;  %v2933_v28 = vcombine.high %v2931_v20, %v2931_v20  ;;  %v22706_v29 = vpack.c.bf16 %v1040_v22, %v528_v21  ;;  %v277_v22 = vld [vmem:[%s27385_s1 + $0x430] sm:$0xff] }
 0x1d6   :  { %22173 = vmatpush1.bf16.xpose.msra.mxu1 %v22172_v60  ;;  %8114 = vmatprep.mubr.f32.mxu1 %v1810_v62  ;;  %v779_v60 = vld [vmem:[%s27385_s1 + $0x13e0] sm:$0x3] }
 0x1d7   :  { %17005 = vmatmul.mubr.f32.vlgmr.msra.gmra.mrb[0].mxu0 %v2880_v39  ;;  %22175 = vmatprep.subr.bf16.mxu1 %v22174_v63  ;;  %v22694_v39 = vpack.c.bf16 %v1034_v32, %v522_v31  ;;  %v1035_v62 = vld [vmem:[%s27385_s1 + $0x1be0] sm:$0x3]  ;;  %v22188_v5 = vpack.c.bf16 %v779_v60, %v267_v59  ;;  %v1044_v59 = vld [vmem:[%s27385_s1 + $0x1c28] sm:$0x3] }
 0x1d8   :  { %22685 = vmatpush1.bf16.xpose.msra.mxu0 %v22684_v61  ;;  %17074 = vmatprep.mubr.f32.mxu0 %v2898_v1  ;;  %v523_v61 = vld [vmem:[%s27385_s1 + $0xbe0] sm:$0xff]  ;;  %v782_v1 = vld [vmem:[%s27385_s1 + $0x13f8] sm:$0x3] }
 0x1d9   :  { %22687 = vmatprep.subr.bf16.mxu0 %v22686_v2  ;;  %v2924_v2 = vrot.slane %v110_v58, %v23691_v25  ;;  %v22700_v6 = vpack.c.bf16 %v1035_v62, %v523_v61  ;;  %v111_v31 = vld [vmem:[%s27384_s0 + $0x300] sm:$0xff]  ;;  %v532_v58 = vld [vmem:[%s27385_s1 + $0xc28] sm:$0xff] }
 0x1da   :  { %v271_v32 = vld [vmem:[%s27385_s1 + $0x400] sm:$0xff]  ;;  %v2934_v49 = vcombine.high %v111_v31, %v111_v31 }
 0x1db   :  { %v2932_v10 = vcombine.high %v2924_v2, %v2924_v2 }
 0x1dd   :  { %8115 = vmatmul.mubr.f32.vlgmr.msra.gmra.mrb[0].mxu1 %v1802_v54  ;;  %v22186_v54 = vpack.c.bf16 %v780_v47, %v268_v46 }
 0x1de   :  { %22177 = vmatpush1.bf16.xpose.msra.mxu1 %v22176_v14  ;;  %8184 = vmatprep.mubr.f32.mxu1 %v1811_v16  ;;  %v781_v14 = vld [vmem:[%s27385_s1 + $0x13f0] sm:$0x3] }
 0x1df   :  { %17075 = vmatmul.mubr.f32.vlgmr.msra.gmra.mrb[0].mxu0 %v2890_v57  ;;  %22179 = vmatprep.subr.bf16.mxu1 %v22178_v17  ;;  %v46_v57 = vld [vmem:[%s27384_s0 + $0xf8] sm:$0xff]  ;;  %v1037_v16 = vld [vmem:[%s27385_s1 + $0x1bf0] sm:$0x3]  ;;  %v22192_v23 = vpack.c.bf16 %v781_v14, %v269_v13 }
 0x1e0   :  { %22689 = vmatpush1.bf16.xpose.msra.mxu0 %v22688_v15  ;;  %17144 = vmatprep.mubr.f32.mxu0 %v2899_v18  ;;  %v1836_v63 = vrot.slane %v46_v57, %v23691_v25  ;;  %v1829_v9 = vcombine.high %v46_v57, %v46_v57  ;;  %v525_v15 = vld [vmem:[%s27385_s1 + $0xbf0] sm:$0xff]  ;;  %v272_v18 = vld [vmem:[%s27385_s1 + $0x408] sm:$0xff]  ;;  %v2948_v57 = vrot.slane %v2934_v49, %v23691_v25  ;;  %v1046_v13 = vld [vmem:[%s27385_s1 + $0x1c38] sm:$0x3] }
 0x1e1   :  { %22691 = vmatprep.subr.bf16.mxu0 %v22690_v19  ;;  %v784_v19 = vld [vmem:[%s27385_s1 + $0x1408] sm:$0x3]  ;;  %v22704_v24 = vpack.c.bf16 %v1037_v16, %v525_v15  ;;  %v538_v49 = vld [vmem:[%s27385_s1 + $0xc58] sm:$0xff] }
 0x1e2   :  { %v1844_v7 = vcombine.high %v1836_v63, %v1836_v63  ;;  %v1843_v17 = vrot.slane %v1829_v9, %v23691_v25  ;;  %v278_v9 = vld [vmem:[%s27385_s1 + $0x438] sm:$0xff] }
 0x1e4   :  { %v1845_v26 = vcombine.high %v1843_v17, %v1843_v17 }
 0x1e5   :  { %8185 = vmatmul.mubr.f32.vlgmr.msra.gmra.mrb[0].mxu1 %v1809_v8  ;;  %v22190_v8 = vpack.c.bf16 %v782_v1, %v270_v0  ;;  %v2950_v0 = vcombine.high %v2948_v57, %v2948_v57  ;;  %v22714_v1 = vpack.c.bf16 %v1044_v59, %v532_v58  ;;  %v281_v59 = vld [vmem:[%s27385_s1 + $0x450] sm:$0xff] }
 0x1e6   :  { %22181 = vmatpush1.bf16.xpose.msra.mxu1 %v22180_v33  ;;  %8254 = vmatprep.mubr.f32.mxu1 %v1827_v35  ;;  %v783_v33 = vld [vmem:[%s27385_s1 + $0x1400] sm:$0x3] }
 0x1e7   :  { %17145 = vmatmul.mubr.f32.vlgmr.msra.gmra.mrb[0].mxu0 %v2897_v11  ;;  %22183 = vmatprep.subr.bf16.mxu1 %v22182_v36  ;;  %v22702_v11 = vpack.c.bf16 %v1038_v4, %v526_v3  ;;  %v1039_v35 = vld [vmem:[%s27385_s1 + $0x1c00] sm:$0x3]  ;;  %v22196_v42 = vpack.c.bf16 %v783_v33, %v271_v32  ;;  %v112_v3 = vld [vmem:[%s27384_s0 + $0x308] sm:$0xff] }
 0x1e8   :  { %22693 = vmatpush1.bf16.xpose.msra.mxu0 %v22692_v34  ;;  %17214 = vmatprep.mubr.f32.mxu0 %v2915_v38  ;;  %v527_v34 = vld [vmem:[%s27385_s1 + $0xc00] sm:$0xff]  ;;  %v786_v38 = vld [vmem:[%s27385_s1 + $0x1418] sm:$0x3]  ;;  %v2951_v21 = vcombine.high %v112_v3, %v112_v3  ;;  %v1048_v32 = vld [vmem:[%s27385_s1 + $0x1c48] sm:$0x3] }
 0x1e9   :  { %22695 = vmatprep.subr.bf16.mxu0 %v22694_v39  ;;  %v2941_v39 = vrot.slane %v111_v31, %v23691_v25  ;;  %v22708_v43 = vpack.c.bf16 %v1039_v35, %v527_v34  ;;  %v275_v4 = vld [vmem:[%s27385_s1 + $0x420] sm:$0xff]  ;;  %v536_v31 = vld [vmem:[%s27385_s1 + $0xc48] sm:$0xff] }
 0x1eb   :  { %v2949_v47 = vcombine.high %v2941_v39, %v2941_v39 }
 0x1ed   :  { %8255 = vmatmul.mubr.f32.vlgmr.msra.gmra.mrb[0].mxu1 %v1819_v27  ;;  %v22194_v27 = vpack.c.bf16 %v784_v19, %v272_v18 }
 0x1ee   :  { %22185 = vmatpush1.bf16.xpose.msra.mxu1 %v22184_v51  ;;  %8324 = vmatprep.mubr.f32.mxu1 %v1828_v53  ;;  %v785_v51 = vld [vmem:[%s27385_s1 + $0x1410] sm:$0x3] }
 0x1ef   :  { %17215 = vmatmul.mubr.f32.vlgmr.msra.gmra.mrb[0].mxu0 %v2907_v30  ;;  %22187 = vmatprep.subr.bf16.mxu1 %v22186_v54  ;;  %v47_v30 = vld [vmem:[%s27384_s0 + $0x100] sm:$0xff]  ;;  %v1041_v53 = vld [vmem:[%s27385_s1 + $0x1c10] sm:$0x3]  ;;  %v22200_v60 = vpack.c.bf16 %v785_v51, %v273_v50  ;;  %v1050_v50 = vld [vmem:[%s27385_s1 + $0x1c58] sm:$0x3] }
 0x1f0   :  { %22697 = vmatpush1.bf16.xpose.msra.mxu0 %v22696_v52  ;;  %17284 = vmatprep.mubr.f32.mxu0 %v2916_v55  ;;  %v1853_v36 = vrot.slane %v47_v30, %v23691_v25  ;;  %v1846_v46 = vcombine.high %v47_v30, %v47_v30  ;;  %v529_v52 = vld [vmem:[%s27385_s1 + $0xc10] sm:$0xff]  ;;  %v276_v55 = vld [vmem:[%s27385_s1 + $0x428] sm:$0xff]  ;;  %v2965_v30 = vrot.slane %v2951_v21, %v23691_v25  ;;  %v542_v21 = vld [vmem:[%s27385_s1 + $0xc78] sm:$0xff] }
 0x1f1   :  { %22699 = vmatprep.subr.bf16.mxu0 %v22698_v56  ;;  %v788_v56 = vld [vmem:[%s27385_s1 + $0x1428] sm:$0x3]  ;;  %v22712_v61 = vpack.c.bf16 %v1041_v53, %v529_v52 }
 0x1f2   :  { %v1861_v44 = vcombine.high %v1853_v36, %v1853_v36  ;;  %v1860_v54 = vrot.slane %v1846_v46, %v23691_v25  ;;  %v282_v46 = vld [vmem:[%s27385_s1 + $0x458] sm:$0xff] }
 0x1f4   :  { %v1862_v62 = vcombine.high %v1860_v54, %v1860_v54 }
 0x1f5   :  { %8325 = vmatmul.mubr.f32.vlgmr.msra.gmra.mrb[0].mxu1 %v1826_v45  ;;  %v22198_v45 = vpack.c.bf16 %v786_v38, %v274_v37  ;;  %v2967_v37 = vcombine.high %v2965_v30, %v2965_v30  ;;  %v22722_v38 = vpack.c.bf16 %v1048_v32, %v536_v31  ;;  %v285_v32 = vld [vmem:[%s27385_s1 + $0x470] sm:$0xff] }
 0x1f6   :  { %22189 = vmatpush1.bf16.xpose.msra.mxu1 %v22188_v5  ;;  %8394 = vmatprep.mubr.f32.mxu1 %v1844_v7  ;;  %v787_v5 = vld [vmem:[%s27385_s1 + $0x1420] sm:$0x3] }
 0x1f7   :  { %17285 = vmatmul.mubr.f32.vlgmr.msra.gmra.mrb[0].mxu0 %v2914_v48  ;;  %22191 = vmatprep.subr.bf16.mxu1 %v22190_v8  ;;  %v22710_v48 = vpack.c.bf16 %v1042_v41, %v530_v40  ;;  %v1043_v7 = vld [vmem:[%s27385_s1 + $0x1c20] sm:$0x3]  ;;  %v22204_v14 = vpack.c.bf16 %v787_v5, %v275_v4  ;;  %v113_v40 = vld [vmem:[%s27384_s0 + $0x310] sm:$0xff]  ;;  %v1052_v4 = vld [vmem:[%s27385_s1 + $0x1c68] sm:$0x3] }
 0x1f8   :  { %22701 = vmatpush1.bf16.xpose.msra.mxu0 %v22700_v6  ;;  %17354 = vmatprep.mubr.f32.mxu0 %v2932_v10  ;;  %v531_v6 = vld [vmem:[%s27385_s1 + $0xc20] sm:$0xff]  ;;  %v790_v10 = vld [vmem:[%s27385_s1 + $0x1438] sm:$0x3]  ;;  %v2968_v58 = vcombine.high %v113_v40, %v113_v40 }
 0x1f9   :  { %22703 = vmatprep.subr.bf16.mxu0 %v22702_v11  ;;  %v2958_v11 = vrot.slane %v112_v3, %v23691_v25  ;;  %v22716_v15 = vpack.c.bf16 %v1043_v7, %v531_v6  ;;  %v279_v41 = vld [vmem:[%s27385_s1 + $0x440] sm:$0xff]  ;;  %v540_v3 = vld [vmem:[%s27385_s1 + $0xc68] sm:$0xff] }
 0x1fb   :  { %v2966_v19 = vcombine.high %v2958_v11, %v2958_v11 }
 0x1fd   :  { %8395 = vmatmul.mubr.f32.vlgmr.msra.gmra.mrb[0].mxu1 %v1836_v63  ;;  %v22202_v63 = vpack.c.bf16 %v788_v56, %v276_v55 }
 0x1fe   :  { %22193 = vmatpush1.bf16.xpose.msra.mxu1 %v22192_v23  ;;  %8464 = vmatprep.mubr.f32.mxu1 %v1845_v26  ;;  %v789_v23 = vld [vmem:[%s27385_s1 + $0x1430] sm:$0x3] }
 0x1ff   :  { %17355 = vmatmul.mubr.f32.vlgmr.msra.gmra.mrb[0].mxu0 %v2924_v2  ;;  %22195 = vmatprep.subr.bf16.mxu1 %v22194_v27  ;;  %v48_v2 = vld [vmem:[%s27384_s0 + $0x108] sm:$0xff]  ;;  %v1045_v26 = vld [vmem:[%s27385_s1 + $0x1c30] sm:$0x3]  ;;  %v22208_v33 = vpack.c.bf16 %v789_v23, %v277_v22  ;;  %v1054_v22 = vld [vmem:[%s27385_s1 + $0x1c78] sm:$0x3] }
 0x200   :  { %22705 = vmatpush1.bf16.xpose.msra.mxu0 %v22704_v24  ;;  %17424 = vmatprep.mubr.f32.mxu0 %v2933_v28  ;;  %v1870_v8 = vrot.slane %v48_v2, %v23691_v25  ;;  %v1863_v18 = vcombine.high %v48_v2, %v48_v2  ;;  %v533_v24 = vld [vmem:[%s27385_s1 + $0xc30] sm:$0xff]  ;;  %v280_v28 = vld [vmem:[%s27385_s1 + $0x448] sm:$0xff]  ;;  %v2982_v2 = vrot.slane %v2968_v58, %v23691_v25  ;;  %v546_v58 = vld [vmem:[%s27385_s1 + $0xc98] sm:$0xff] }
 0x201   :  { %22707 = vmatprep.subr.bf16.mxu0 %v22706_v29  ;;  %v792_v29 = vld [vmem:[%s27385_s1 + $0x1448] sm:$0x3]  ;;  %v22720_v34 = vpack.c.bf16 %v1045_v26, %v533_v24 }
 0x202   :  { %v1878_v16 = vcombine.high %v1870_v8, %v1870_v8  ;;  %v1877_v27 = vrot.slane %v1863_v18, %v23691_v25  ;;  %v286_v18 = vld [vmem:[%s27385_s1 + $0x478] sm:$0xff] }
 0x204   :  { %v1879_v35 = vcombine.high %v1877_v27, %v1877_v27 }
 0x205   :  { %8465 = vmatmul.mubr.f32.vlgmr.msra.gmra.mrb[0].mxu1 %v1843_v17  ;;  %v22206_v17 = vpack.c.bf16 %v790_v10, %v278_v9  ;;  %v2984_v9 = vcombine.high %v2982_v2, %v2982_v2  ;;  %v22730_v10 = vpack.c.bf16 %v1052_v4, %v540_v3  ;;  %v289_v4 = vld [vmem:[%s27385_s1 + $0x490] sm:$0xff] }
 0x206   :  { %22197 = vmatpush1.bf16.xpose.msra.mxu1 %v22196_v42  ;;  %8534 = vmatprep.mubr.f32.mxu1 %v1861_v44  ;;  %v791_v42 = vld [vmem:[%s27385_s1 + $0x1440] sm:$0x3] }
 0x207   :  { %17425 = vmatmul.mubr.f32.vlgmr.msra.gmra.mrb[0].mxu0 %v2931_v20  ;;  %22199 = vmatprep.subr.bf16.mxu1 %v22198_v45  ;;  %v22718_v20 = vpack.c.bf16 %v1046_v13, %v534_v12  ;;  %v1047_v44 = vld [vmem:[%s27385_s1 + $0x1c40] sm:$0x3]  ;;  %v22212_v51 = vpack.c.bf16 %v791_v42, %v279_v41  ;;  %v114_v12 = vld [vmem:[%s27384_s0 + $0x318] sm:$0xff]  ;;  %v1056_v41 = vld [vmem:[%s27385_s1 + $0x1c88] sm:$0x3] }
 0x208   :  { %22709 = vmatpush1.bf16.xpose.msra.mxu0 %v22708_v43  ;;  %17494 = vmatprep.mubr.f32.mxu0 %v2949_v47  ;;  %v535_v43 = vld [vmem:[%s27385_s1 + $0xc40] sm:$0xff]  ;;  %v794_v47 = vld [vmem:[%s27385_s1 + $0x1458] sm:$0x3]  ;;  %v2985_v31 = vcombine.high %v114_v12, %v114_v12 }
 0x209   :  { %22711 = vmatprep.subr.bf16.mxu0 %v22710_v48  ;;  %v2975_v48 = vrot.slane %v113_v40, %v23691_v25  ;;  %v22724_v52 = vpack.c.bf16 %v1047_v44, %v535_v43  ;;  %v283_v13 = vld [vmem:[%s27385_s1 + $0x460] sm:$0xff]  ;;  %v544_v40 = vld [vmem:[%s27385_s1 + $0xc88] sm:$0xff] }
 0x20b   :  { %v2983_v56 = vcombine.high %v2975_v48, %v2975_v48 }
 0x20d   :  { %8535 = vmatmul.mubr.f32.vlgmr.msra.gmra.mrb[0].mxu1 %v1853_v36  ;;  %v22210_v36 = vpack.c.bf16 %v792_v29, %v280_v28 }
 0x20e   :  { %22201 = vmatpush1.bf16.xpose.msra.mxu1 %v22200_v60  ;;  %8604 = vmatprep.mubr.f32.mxu1 %v1862_v62  ;;  %v793_v60 = vld [vmem:[%s27385_s1 + $0x1450] sm:$0x3] }
 0x20f   :  { %17495 = vmatmul.mubr.f32.vlgmr.msra.gmra.mrb[0].mxu0 %v2941_v39  ;;  %22203 = vmatprep.subr.bf16.mxu1 %v22202_v63  ;;  %v49_v39 = vld [vmem:[%s27384_s0 + $0x110] sm:$0xff]  ;;  %v22216_v5 = vpack.c.bf16 %v793_v60, %v281_v59  ;;  %v1058_v59 = vld [vmem:[%s27385_s1 + $0x1c98] sm:$0x3] }
 0x210   :  { %22713 = vmatpush1.bf16.xpose.msra.mxu0 %v22712_v61  ;;  %17564 = vmatprep.mubr.f32.mxu0 %v2950_v0  ;;  %v1887_v45 = vrot.slane %v49_v39, %v23691_v25  ;;  %v1880_v55 = vcombine.high %v49_v39, %v49_v39  ;;  %v537_v61 = vld [vmem:[%s27385_s1 + $0xc50] sm:$0xff]  ;;  %v284_v0 = vld [vmem:[%s27385_s1 + $0x468] sm:$0xff]  ;;  %v2999_v39 = vrot.slane %v2985_v31, %v23691_v25  ;;  %v550_v31 = vld [vmem:[%s27385_s1 + $0xcb8] sm:$0xff] }
 0x211   :  { %22715 = vmatprep.subr.bf16.mxu0 %v22714_v1  ;;  %v1049_v62 = vld [vmem:[%s27385_s1 + $0x1c50] sm:$0x3]  ;;  %v796_v1 = vld [vmem:[%s27385_s1 + $0x1468] sm:$0x3] }
 0x212   :  { %v1895_v53 = vcombine.high %v1887_v45, %v1887_v45  ;;  %v1894_v63 = vrot.slane %v1880_v55, %v23691_v25  ;;  %v22728_v6 = vpack.c.bf16 %v1049_v62, %v537_v61  ;;  %v290_v55 = vld [vmem:[%s27385_s1 + $0x498] sm:$0xff] }
 0x214   :  { %v1896_v7 = vcombine.high %v1894_v63, %v1894_v63 }
 0x215   :  { %8605 = vmatmul.mubr.f32.vlgmr.msra.gmra.mrb[0].mxu1 %v1860_v54  ;;  %v22214_v54 = vpack.c.bf16 %v794_v47, %v282_v46  ;;  %v3001_v46 = vcombine.high %v2999_v39, %v2999_v39  ;;  %v22738_v47 = vpack.c.bf16 %v1056_v41, %v544_v40  ;;  %v293_v41 = vld [vmem:[%s27385_s1 + $0x4b0] sm:$0xff] }
 0x216   :  { %22205 = vmatpush1.bf16.xpose.msra.mxu1 %v22204_v14  ;;  %8674 = vmatprep.mubr.f32.mxu1 %v1878_v16  ;;  %v795_v14 = vld [vmem:[%s27385_s1 + $0x1460] sm:$0x3] }
 0x217   :  { %17565 = vmatmul.mubr.f32.vlgmr.msra.gmra.mrb[0].mxu0 %v2948_v57  ;;  %22207 = vmatprep.subr.bf16.mxu1 %v22206_v17  ;;  %v22726_v57 = vpack.c.bf16 %v1050_v50, %v538_v49  ;;  %v1051_v16 = vld [vmem:[%s27385_s1 + $0x1c60] sm:$0x3]  ;;  %v22220_v23 = vpack.c.bf16 %v795_v14, %v283_v13  ;;  %v1060_v13 = vld [vmem:[%s27385_s1 + $0x1ca8] sm:$0x3] }
 0x218   :  { %22717 = vmatpush1.bf16.xpose.msra.mxu0 %v22716_v15  ;;  %17634 = vmatprep.mubr.f32.mxu0 %v2966_v19  ;;  %v539_v15 = vld [vmem:[%s27385_s1 + $0xc60] sm:$0xff]  ;;  %v798_v19 = vld [vmem:[%s27385_s1 + $0x1478] sm:$0x3] }
 0x219   :  { %22719 = vmatprep.subr.bf16.mxu0 %v22718_v20  ;;  %v2992_v20 = vrot.slane %v114_v12, %v23691_v25  ;;  %v22732_v24 = vpack.c.bf16 %v1051_v16, %v539_v15  ;;  %v115_v49 = vld [vmem:[%s27384_s0 + $0x320] sm:$0xff]  ;;  %v548_v12 = vld [vmem:[%s27385_s1 + $0xca8] sm:$0xff] }
 0x21a   :  { %v287_v50 = vld [vmem:[%s27385_s1 + $0x480] sm:$0xff]  ;;  %v3002_v3 = vcombine.high %v115_v49, %v115_v49 }
 0x21b   :  { %v3000_v29 = vcombine.high %v2992_v20, %v2992_v20 }
 0x21d   :  { %8675 = vmatmul.mubr.f32.vlgmr.msra.gmra.mrb[0].mxu1 %v1870_v8  ;;  %v22218_v8 = vpack.c.bf16 %v796_v1, %v284_v0 }
 0x21e   :  { %22209 = vmatpush1.bf16.xpose.msra.mxu1 %v22208_v33  ;;  %8744 = vmatprep.mubr.f32.mxu1 %v1879_v35  ;;  %v797_v33 = vld [vmem:[%s27385_s1 + $0x1470] sm:$0x3] }
 0x21f   :  { %17635 = vmatmul.mubr.f32.vlgmr.msra.gmra.mrb[0].mxu0 %v2958_v11  ;;  %22211 = vmatprep.subr.bf16.mxu1 %v22210_v36  ;;  %v50_v11 = vld [vmem:[%s27384_s0 + $0x118] sm:$0xff]  ;;  %v1053_v35 = vld [vmem:[%s27385_s1 + $0x1c70] sm:$0x3]  ;;  %v22224_v42 = vpack.c.bf16 %v797_v33, %v285_v32 }
 0x220   :  { %22721 = vmatpush1.bf16.xpose.msra.mxu0 %v22720_v34  ;;  %17704 = vmatprep.mubr.f32.mxu0 %v2967_v37  ;;  %v1904_v17 = vrot.slane %v50_v11, %v23691_v25  ;;  %v1897_v28 = vcombine.high %v50_v11, %v50_v11  ;;  %v541_v34 = vld [vmem:[%s27385_s1 + $0xc70] sm:$0xff]  ;;  %v288_v37 = vld [vmem:[%s27385_s1 + $0x488] sm:$0xff]  ;;  %v3016_v11 = vrot.slane %v3002_v3, %v23691_v25  ;;  %v1062_v32 = vld [vmem:[%s27385_s1 + $0x1cb8] sm:$0x3] }
 0x221   :  { %22723 = vmatprep.subr.bf16.mxu0 %v22722_v38  ;;  %v800_v38 = vld [vmem:[%s27385_s1 + $0x1488] sm:$0x3]  ;;  %v22736_v43 = vpack.c.bf16 %v1053_v35, %v541_v34  ;;  %v554_v3 = vld [vmem:[%s27385_s1 + $0xcd8] sm:$0xff] }
 0x222   :  { %v1912_v26 = vcombine.high %v1904_v17, %v1904_v17  ;;  %v1911_v36 = vrot.slane %v1897_v28, %v23691_v25  ;;  %v294_v28 = vld [vmem:[%s27385_s1 + $0x4b8] sm:$0xff] }
 0x224   :  { %v1913_v44 = vcombine.high %v1911_v36, %v1911_v36 }
 0x225   :  { %8745 = vmatmul.mubr.f32.vlgmr.msra.gmra.mrb[0].mxu1 %v1877_v27  ;;  %v22222_v27 = vpack.c.bf16 %v798_v19, %v286_v18  ;;  %v3018_v18 = vcombine.high %v3016_v11, %v3016_v11  ;;  %v22746_v19 = vpack.c.bf16 %v1060_v13, %v548_v12  ;;  %v297_v13 = vld [vmem:[%s27385_s1 + $0x4d0] sm:$0xff] }
 0x226   :  { %22213 = vmatpush1.bf16.xpose.msra.mxu1 %v22212_v51  ;;  %8814 = vmatprep.mubr.f32.mxu1 %v1895_v53  ;;  %v799_v51 = vld [vmem:[%s27385_s1 + $0x1480] sm:$0x3] }
 0x227   :  { %17705 = vmatmul.mubr.f32.vlgmr.msra.gmra.mrb[0].mxu0 %v2965_v30  ;;  %22215 = vmatprep.subr.bf16.mxu1 %v22214_v54  ;;  %v22734_v30 = vpack.c.bf16 %v1054_v22, %v542_v21  ;;  %v1055_v53 = vld [vmem:[%s27385_s1 + $0x1c80] sm:$0x3]  ;;  %v22228_v60 = vpack.c.bf16 %v799_v51, %v287_v50  ;;  %v116_v21 = vld [vmem:[%s27384_s0 + $0x328] sm:$0xff] }
 0x228   :  { %22725 = vmatpush1.bf16.xpose.msra.mxu0 %v22724_v52  ;;  %17774 = vmatprep.mubr.f32.mxu0 %v2983_v56  ;;  %v543_v52 = vld [vmem:[%s27385_s1 + $0xc80] sm:$0xff]  ;;  %v802_v56 = vld [vmem:[%s27385_s1 + $0x1498] sm:$0x3]  ;;  %v3019_v40 = vcombine.high %v116_v21, %v116_v21  ;;  %v1064_v50 = vld [vmem:[%s27385_s1 + $0x1cc8] sm:$0x3] }
 0x229   :  { %22727 = vmatprep.subr.bf16.mxu0 %v22726_v57  ;;  %v3009_v57 = vrot.slane %v115_v49, %v23691_v25  ;;  %v22740_v61 = vpack.c.bf16 %v1055_v53, %v543_v52  ;;  %v291_v22 = vld [vmem:[%s27385_s1 + $0x4a0] sm:$0xff]  ;;  %v552_v49 = vld [vmem:[%s27385_s1 + $0xcc8] sm:$0xff] }
 0x22b   :  { %v3017_v1 = vcombine.high %v3009_v57, %v3009_v57 }
 0x22d   :  { %8815 = vmatmul.mubr.f32.vlgmr.msra.gmra.mrb[0].mxu1 %v1887_v45  ;;  %v22226_v45 = vpack.c.bf16 %v800_v38, %v288_v37 }
 0x22e   :  { %22217 = vmatpush1.bf16.xpose.msra.mxu1 %v22216_v5  ;;  %8884 = vmatprep.mubr.f32.mxu1 %v1896_v7  ;;  %v801_v5 = vld [vmem:[%s27385_s1 + $0x1490] sm:$0x3] }
 0x22f   :  { %17775 = vmatmul.mubr.f32.vlgmr.msra.gmra.mrb[0].mxu0 %v2975_v48  ;;  %22219 = vmatprep.subr.bf16.mxu1 %v22218_v8  ;;  %v51_v48 = vld [vmem:[%s27384_s0 + $0x120] sm:$0xff]  ;;  %v1057_v7 = vld [vmem:[%s27385_s1 + $0x1c90] sm:$0x3]  ;;  %v22232_v14 = vpack.c.bf16 %v801_v5, %v289_v4  ;;  %v1066_v4 = vld [vmem:[%s27385_s1 + $0x1cd8] sm:$0x3] }
 0x230   :  { %22729 = vmatpush1.bf16.xpose.msra.mxu0 %v22728_v6  ;;  %17844 = vmatprep.mubr.f32.mxu0 %v2984_v9  ;;  %v1921_v54 = vrot.slane %v51_v48, %v23691_v25  ;;  %v1914_v0 = vcombine.high %v51_v48, %v51_v48  ;;  %v545_v6 = vld [vmem:[%s27385_s1 + $0xc90] sm:$0xff]  ;;  %v292_v9 = vld [vmem:[%s27385_s1 + $0x4a8] sm:$0xff]  ;;  %v3033_v48 = vrot.slane %v3019_v40, %v23691_v25  ;;  %v558_v40 = vld [vmem:[%s27385_s1 + $0xcf8] sm:$0xff] }
 0x231   :  { %22731 = vmatprep.subr.bf16.mxu0 %v22730_v10  ;;  %v804_v10 = vld [vmem:[%s27385_s1 + $0x14a8] sm:$0x3]  ;;  %v22744_v15 = vpack.c.bf16 %v1057_v7, %v545_v6 }
 0x232   :  { %v1929_v62 = vcombine.high %v1921_v54, %v1921_v54  ;;  %v1928_v8 = vrot.slane %v1914_v0, %v23691_v25  ;;  %v298_v0 = vld [vmem:[%s27385_s1 + $0x4d8] sm:$0xff] }
 0x234   :  { %v1930_v16 = vcombine.high %v1928_v8, %v1928_v8 }
 0x235   :  { %8885 = vmatmul.mubr.f32.vlgmr.msra.gmra.mrb[0].mxu1 %v1894_v63  ;;  %v22230_v63 = vpack.c.bf16 %v802_v56, %v290_v55  ;;  %v3035_v55 = vcombine.high %v3033_v48, %v3033_v48  ;;  %v22754_v56 = vpack.c.bf16 %v1064_v50, %v552_v49  ;;  %v301_v50 = vld [vmem:[%s27385_s1 + $0x4f0] sm:$0xff] }
 0x236   :  { %22221 = vmatpush1.bf16.xpose.msra.mxu1 %v22220_v23  ;;  %8954 = vmatprep.mubr.f32.mxu1 %v1912_v26  ;;  %v803_v23 = vld [vmem:[%s27385_s1 + $0x14a0] sm:$0x3] }
 0x237   :  { %17845 = vmatmul.mubr.f32.vlgmr.msra.gmra.mrb[0].mxu0 %v2982_v2  ;;  %22223 = vmatprep.subr.bf16.mxu1 %v22222_v27  ;;  %v22742_v2 = vpack.c.bf16 %v1058_v59, %v546_v58  ;;  %v1059_v26 = vld [vmem:[%s27385_s1 + $0x1ca0] sm:$0x3]  ;;  %v22236_v33 = vpack.c.bf16 %v803_v23, %v291_v22  ;;  %v117_v58 = vld [vmem:[%s27384_s0 + $0x330] sm:$0xff]  ;;  %v1068_v22 = vld [vmem:[%s27385_s1 + $0x1ce8] sm:$0x3] }
 0x238   :  { %22733 = vmatpush1.bf16.xpose.msra.mxu0 %v22732_v24  ;;  %17914 = vmatprep.mubr.f32.mxu0 %v3000_v29  ;;  %v547_v24 = vld [vmem:[%s27385_s1 + $0xca0] sm:$0xff]  ;;  %v806_v29 = vld [vmem:[%s27385_s1 + $0x14b8] sm:$0x3]  ;;  %v3036_v12 = vcombine.high %v117_v58, %v117_v58 }
 0x239   :  { %22735 = vmatprep.subr.bf16.mxu0 %v22734_v30  ;;  %v3026_v30 = vrot.slane %v116_v21, %v23691_v25  ;;  %v22748_v34 = vpack.c.bf16 %v1059_v26, %v547_v24  ;;  %v295_v59 = vld [vmem:[%s27385_s1 + $0x4c0] sm:$0xff]  ;;  %v556_v21 = vld [vmem:[%s27385_s1 + $0xce8] sm:$0xff] }
 0x23b   :  { %v3034_v38 = vcombine.high %v3026_v30, %v3026_v30 }
 0x23d   :  { %8955 = vmatmul.mubr.f32.vlgmr.msra.gmra.mrb[0].mxu1 %v1904_v17  ;;  %v22234_v17 = vpack.c.bf16 %v804_v10, %v292_v9 }
 0x23e   :  { %22225 = vmatpush1.bf16.xpose.msra.mxu1 %v22224_v42  ;;  %9024 = vmatprep.mubr.f32.mxu1 %v1913_v44  ;;  %v805_v42 = vld [vmem:[%s27385_s1 + $0x14b0] sm:$0x3] }
 0x23f   :  { %17915 = vmatmul.mubr.f32.vlgmr.msra.gmra.mrb[0].mxu0 %v2992_v20  ;;  %22227 = vmatprep.subr.bf16.mxu1 %v22226_v45  ;;  %v52_v20 = vld [vmem:[%s27384_s0 + $0x128] sm:$0xff]  ;;  %v1061_v44 = vld [vmem:[%s27385_s1 + $0x1cb0] sm:$0x3]  ;;  %v22240_v51 = vpack.c.bf16 %v805_v42, %v293_v41  ;;  %v1070_v41 = vld [vmem:[%s27385_s1 + $0x1cf8] sm:$0x3] }
 0x240   :  { %22737 = vmatpush1.bf16.xpose.msra.mxu0 %v22736_v43  ;;  %17984 = vmatprep.mubr.f32.mxu0 %v3001_v46  ;;  %v1938_v27 = vrot.slane %v52_v20, %v23691_v25  ;;  %v1931_v37 = vcombine.high %v52_v20, %v52_v20  ;;  %v549_v43 = vld [vmem:[%s27385_s1 + $0xcb0] sm:$0xff]  ;;  %v296_v46 = vld [vmem:[%s27385_s1 + $0x4c8] sm:$0xff]  ;;  %v3050_v20 = vrot.slane %v3036_v12, %v23691_v25  ;;  %v562_v12 = vld [vmem:[%s27385_s1 + $0xd18] sm:$0xff] }
 0x241   :  { %22739 = vmatprep.subr.bf16.mxu0 %v22738_v47  ;;  %v808_v47 = vld [vmem:[%s27385_s1 + $0x14c8] sm:$0x3]  ;;  %v22752_v52 = vpack.c.bf16 %v1061_v44, %v549_v43 }
 0x242   :  { %v1946_v35 = vcombine.high %v1938_v27, %v1938_v27  ;;  %v1945_v45 = vrot.slane %v1931_v37, %v23691_v25  ;;  %v302_v37 = vld [vmem:[%s27385_s1 + $0x4f8] sm:$0xff] }
 0x244   :  { %v1947_v53 = vcombine.high %v1945_v45, %v1945_v45 }
 0x245   :  { %9025 = vmatmul.mubr.f32.vlgmr.msra.gmra.mrb[0].mxu1 %v1911_v36  ;;  %v22238_v36 = vpack.c.bf16 %v806_v29, %v294_v28  ;;  %v3052_v28 = vcombine.high %v3050_v20, %v3050_v20  ;;  %v22762_v29 = vpack.c.bf16 %v1068_v22, %v556_v21  ;;  %v305_v22 = vld [vmem:[%s27385_s1 + $0x510] sm:$0xff] }
 0x246   :  { %22229 = vmatpush1.bf16.xpose.msra.mxu1 %v22228_v60  ;;  %9094 = vmatprep.mubr.f32.mxu1 %v1929_v62  ;;  %v807_v60 = vld [vmem:[%s27385_s1 + $0x14c0] sm:$0x3] }
 0x247   :  { %17985 = vmatmul.mubr.f32.vlgmr.msra.gmra.mrb[0].mxu0 %v2999_v39  ;;  %22231 = vmatprep.subr.bf16.mxu1 %v22230_v63  ;;  %v22750_v39 = vpack.c.bf16 %v1062_v32, %v550_v31  ;;  %v1063_v62 = vld [vmem:[%s27385_s1 + $0x1cc0] sm:$0x3]  ;;  %v22244_v5 = vpack.c.bf16 %v807_v60, %v295_v59  ;;  %v118_v31 = vld [vmem:[%s27384_s0 + $0x338] sm:$0xff]  ;;  %v1072_v59 = vld [vmem:[%s27385_s1 + $0x1d08] sm:$0x3] }
 0x248   :  { %22741 = vmatpush1.bf16.xpose.msra.mxu0 %v22740_v61  ;;  %18054 = vmatprep.mubr.f32.mxu0 %v3017_v1  ;;  %v551_v61 = vld [vmem:[%s27385_s1 + $0xcc0] sm:$0xff]  ;;  %v810_v1 = vld [vmem:[%s27385_s1 + $0x14d8] sm:$0x3]  ;;  %v3053_v49 = vcombine.high %v118_v31, %v118_v31 }
 0x249   :  { %22743 = vmatprep.subr.bf16.mxu0 %v22742_v2  ;;  %v3043_v2 = vrot.slane %v117_v58, %v23691_v25  ;;  %v22756_v6 = vpack.c.bf16 %v1063_v62, %v551_v61  ;;  %v299_v32 = vld [vmem:[%s27385_s1 + $0x4e0] sm:$0xff]  ;;  %v560_v58 = vld [vmem:[%s27385_s1 + $0xd08] sm:$0xff] }
 0x24b   :  { %v3051_v10 = vcombine.high %v3043_v2, %v3043_v2 }
 0x24d   :  { %9095 = vmatmul.mubr.f32.vlgmr.msra.gmra.mrb[0].mxu1 %v1921_v54  ;;  %v22242_v54 = vpack.c.bf16 %v808_v47, %v296_v46 }
 0x24e   :  { %22233 = vmatpush1.bf16.xpose.msra.mxu1 %v22232_v14  ;;  %9164 = vmatprep.mubr.f32.mxu1 %v1930_v16  ;;  %v809_v14 = vld [vmem:[%s27385_s1 + $0x14d0] sm:$0x3] }
 0x24f   :  { %18055 = vmatmul.mubr.f32.vlgmr.msra.gmra.mrb[0].mxu0 %v3009_v57  ;;  %22235 = vmatprep.subr.bf16.mxu1 %v22234_v17  ;;  %v53_v57 = vld [vmem:[%s27384_s0 + $0x130] sm:$0xff]  ;;  %v22248_v23 = vpack.c.bf16 %v809_v14, %v297_v13  ;;  %v1074_v13 = vld [vmem:[%s27385_s1 + $0x1d18] sm:$0x3] }
 0x250   :  { %22745 = vmatpush1.bf16.xpose.msra.mxu0 %v22744_v15  ;;  %18124 = vmatprep.mubr.f32.mxu0 %v3018_v18  ;;  %v1955_v63 = vrot.slane %v53_v57, %v23691_v25  ;;  %v1948_v9 = vcombine.high %v53_v57, %v53_v57  ;;  %v553_v15 = vld [vmem:[%s27385_s1 + $0xcd0] sm:$0xff]  ;;  %v300_v18 = vld [vmem:[%s27385_s1 + $0x4e8] sm:$0xff]  ;;  %v3067_v57 = vrot.slane %v3053_v49, %v23691_v25  ;;  %v566_v49 = vld [vmem:[%s27385_s1 + $0xd38] sm:$0xff] }
 0x251   :  { %22747 = vmatprep.subr.bf16.mxu0 %v22746_v19  ;;  %v1065_v16 = vld [vmem:[%s27385_s1 + $0x1cd0] sm:$0x3]  ;;  %v812_v19 = vld [vmem:[%s27385_s1 + $0x14e8] sm:$0x3] }
 0x252   :  { %v1963_v7 = vcombine.high %v1955_v63, %v1955_v63  ;;  %v1962_v17 = vrot.slane %v1948_v9, %v23691_v25  ;;  %v22760_v24 = vpack.c.bf16 %v1065_v16, %v553_v15  ;;  %v306_v9 = vld [vmem:[%s27385_s1 + $0x518] sm:$0xff] }
 0x254   :  { %v1964_v26 = vcombine.high %v1962_v17, %v1962_v17 }
 0x255   :  { %9165 = vmatmul.mubr.f32.vlgmr.msra.gmra.mrb[0].mxu1 %v1928_v8  ;;  %v22246_v8 = vpack.c.bf16 %v810_v1, %v298_v0  ;;  %v3069_v0 = vcombine.high %v3067_v57, %v3067_v57  ;;  %v22770_v1 = vpack.c.bf16 %v1072_v59, %v560_v58  ;;  %v309_v59 = vld [vmem:[%s27385_s1 + $0x530] sm:$0xff] }
 0x256   :  { %22237 = vmatpush1.bf16.xpose.msra.mxu1 %v22236_v33  ;;  %9234 = vmatprep.mubr.f32.mxu1 %v1946_v35  ;;  %v811_v33 = vld [vmem:[%s27385_s1 + $0x14e0] sm:$0x3] }
 0x257   :  { %18125 = vmatmul.mubr.f32.vlgmr.msra.gmra.mrb[0].mxu0 %v3016_v11  ;;  %22239 = vmatprep.subr.bf16.mxu1 %v22238_v36  ;;  %v22758_v11 = vpack.c.bf16 %v1066_v4, %v554_v3  ;;  %v1067_v35 = vld [vmem:[%s27385_s1 + $0x1ce0] sm:$0x3]  ;;  %v22252_v42 = vpack.c.bf16 %v811_v33, %v299_v32  ;;  %v1076_v32 = vld [vmem:[%s27385_s1 + $0x1d28] sm:$0x3] }
 0x258   :  { %22749 = vmatpush1.bf16.xpose.msra.mxu0 %v22748_v34  ;;  %18194 = vmatprep.mubr.f32.mxu0 %v3034_v38  ;;  %v555_v34 = vld [vmem:[%s27385_s1 + $0xce0] sm:$0xff]  ;;  %v814_v38 = vld [vmem:[%s27385_s1 + $0x14f8] sm:$0x3] }
 0x259   :  { %22751 = vmatprep.subr.bf16.mxu0 %v22750_v39  ;;  %v3060_v39 = vrot.slane %v118_v31, %v23691_v25  ;;  %v22764_v43 = vpack.c.bf16 %v1067_v35, %v555_v34  ;;  %v119_v3 = vld [vmem:[%s27384_s0 + $0x340] sm:$0xff]  ;;  %v564_v31 = vld [vmem:[%s27385_s1 + $0xd28] sm:$0xff] }
 0x25a   :  { %v303_v4 = vld [vmem:[%s27385_s1 + $0x500] sm:$0xff]  ;;  %v3070_v21 = vcombine.high %v119_v3, %v119_v3 }
 0x25b   :  { %v3068_v47 = vcombine.high %v3060_v39, %v3060_v39 }
 0x25d   :  { %9235 = vmatmul.mubr.f32.vlgmr.msra.gmra.mrb[0].mxu1 %v1938_v27  ;;  %v22250_v27 = vpack.c.bf16 %v812_v19, %v300_v18 }
 0x25e   :  { %22241 = vmatpush1.bf16.xpose.msra.mxu1 %v22240_v51  ;;  %9304 = vmatprep.mubr.f32.mxu1 %v1947_v53  ;;  %v813_v51 = vld [vmem:[%s27385_s1 + $0x14f0] sm:$0x3] }
 0x25f   :  { %18195 = vmatmul.mubr.f32.vlgmr.msra.gmra.mrb[0].mxu0 %v3026_v30  ;;  %22243 = vmatprep.subr.bf16.mxu1 %v22242_v54  ;;  %v54_v30 = vld [vmem:[%s27384_s0 + $0x138] sm:$0xff]  ;;  %v1069_v53 = vld [vmem:[%s27385_s1 + $0x1cf0] sm:$0x3]  ;;  %v22256_v60 = vpack.c.bf16 %v813_v51, %v301_v50 }
 0x260   :  { %22753 = vmatpush1.bf16.xpose.msra.mxu0 %v22752_v52  ;;  %18264 = vmatprep.mubr.f32.mxu0 %v3035_v55  ;;  %v1972_v36 = vrot.slane %v54_v30, %v23691_v25  ;;  %v1965_v46 = vcombine.high %v54_v30, %v54_v30  ;;  %v557_v52 = vld [vmem:[%s27385_s1 + $0xcf0] sm:$0xff]  ;;  %v304_v55 = vld [vmem:[%s27385_s1 + $0x508] sm:$0xff]  ;;  %v3084_v30 = vrot.slane %v3070_v21, %v23691_v25  ;;  %v1078_v50 = vld [vmem:[%s27385_s1 + $0x1d38] sm:$0x3] }
 0x261   :  { %22755 = vmatprep.subr.bf16.mxu0 %v22754_v56  ;;  %v816_v56 = vld [vmem:[%s27385_s1 + $0x1508] sm:$0x3]  ;;  %v22768_v61 = vpack.c.bf16 %v1069_v53, %v557_v52  ;;  %v570_v21 = vld [vmem:[%s27385_s1 + $0xd58] sm:$0xff] }
 0x262   :  { %v1980_v44 = vcombine.high %v1972_v36, %v1972_v36  ;;  %v1979_v54 = vrot.slane %v1965_v46, %v23691_v25  ;;  %v310_v46 = vld [vmem:[%s27385_s1 + $0x538] sm:$0xff] }
 0x264   :  { %v1981_v62 = vcombine.high %v1979_v54, %v1979_v54 }
 0x265   :  { %9305 = vmatmul.mubr.f32.vlgmr.msra.gmra.mrb[0].mxu1 %v1945_v45  ;;  %v22254_v45 = vpack.c.bf16 %v814_v38, %v302_v37  ;;  %v3086_v37 = vcombine.high %v3084_v30, %v3084_v30  ;;  %v22778_v38 = vpack.c.bf16 %v1076_v32, %v564_v31  ;;  %v313_v32 = vld [vmem:[%s27385_s1 + $0x550] sm:$0xff] }
 0x266   :  { %22245 = vmatpush1.bf16.xpose.msra.mxu1 %v22244_v5  ;;  %9374 = vmatprep.mubr.f32.mxu1 %v1963_v7  ;;  %v815_v5 = vld [vmem:[%s27385_s1 + $0x1500] sm:$0x3] }
 0x267   :  { %18265 = vmatmul.mubr.f32.vlgmr.msra.gmra.mrb[0].mxu0 %v3033_v48  ;;  %22247 = vmatprep.subr.bf16.mxu1 %v22246_v8  ;;  %v22766_v48 = vpack.c.bf16 %v1070_v41, %v558_v40  ;;  %v1071_v7 = vld [vmem:[%s27385_s1 + $0x1d00] sm:$0x3]  ;;  %v22260_v14 = vpack.c.bf16 %v815_v5, %v303_v4  ;;  %v120_v40 = vld [vmem:[%s27384_s0 + $0x348] sm:$0xff] }
 0x268   :  { %22757 = vmatpush1.bf16.xpose.msra.mxu0 %v22756_v6  ;;  %18334 = vmatprep.mubr.f32.mxu0 %v3051_v10  ;;  %v559_v6 = vld [vmem:[%s27385_s1 + $0xd00] sm:$0xff]  ;;  %v818_v10 = vld [vmem:[%s27385_s1 + $0x1518] sm:$0x3]  ;;  %v3087_v58 = vcombine.high %v120_v40, %v120_v40  ;;  %v1080_v4 = vld [vmem:[%s27385_s1 + $0x1d48] sm:$0x3] }
 0x269   :  { %22759 = vmatprep.subr.bf16.mxu0 %v22758_v11  ;;  %v3077_v11 = vrot.slane %v119_v3, %v23691_v25  ;;  %v22772_v15 = vpack.c.bf16 %v1071_v7, %v559_v6  ;;  %v307_v41 = vld [vmem:[%s27385_s1 + $0x520] sm:$0xff]  ;;  %v568_v3 = vld [vmem:[%s27385_s1 + $0xd48] sm:$0xff] }
 0x26b   :  { %v3085_v19 = vcombine.high %v3077_v11, %v3077_v11 }
 0x26d   :  { %9375 = vmatmul.mubr.f32.vlgmr.msra.gmra.mrb[0].mxu1 %v1955_v63  ;;  %v22258_v63 = vpack.c.bf16 %v816_v56, %v304_v55 }
 0x26e   :  { %22249 = vmatpush1.bf16.xpose.msra.mxu1 %v22248_v23  ;;  %9444 = vmatprep.mubr.f32.mxu1 %v1964_v26  ;;  %v817_v23 = vld [vmem:[%s27385_s1 + $0x1510] sm:$0x3] }
 0x26f   :  { %18335 = vmatmul.mubr.f32.vlgmr.msra.gmra.mrb[0].mxu0 %v3043_v2  ;;  %22251 = vmatprep.subr.bf16.mxu1 %v22250_v27  ;;  %v55_v2 = vld [vmem:[%s27384_s0 + $0x140] sm:$0xff]  ;;  %v1073_v26 = vld [vmem:[%s27385_s1 + $0x1d10] sm:$0x3]  ;;  %v22264_v33 = vpack.c.bf16 %v817_v23, %v305_v22  ;;  %v1082_v22 = vld [vmem:[%s27385_s1 + $0x1d58] sm:$0x3] }
 0x270   :  { %22761 = vmatpush1.bf16.xpose.msra.mxu0 %v22760_v24  ;;  %18404 = vmatprep.mubr.f32.mxu0 %v3052_v28  ;;  %v1989_v8 = vrot.slane %v55_v2, %v23691_v25  ;;  %v1982_v18 = vcombine.high %v55_v2, %v55_v2  ;;  %v561_v24 = vld [vmem:[%s27385_s1 + $0xd10] sm:$0xff]  ;;  %v308_v28 = vld [vmem:[%s27385_s1 + $0x528] sm:$0xff]  ;;  %v3101_v2 = vrot.slane %v3087_v58, %v23691_v25  ;;  %v574_v58 = vld [vmem:[%s27385_s1 + $0xd78] sm:$0xff] }
 0x271   :  { %22763 = vmatprep.subr.bf16.mxu0 %v22762_v29  ;;  %v820_v29 = vld [vmem:[%s27385_s1 + $0x1528] sm:$0x3]  ;;  %v22776_v34 = vpack.c.bf16 %v1073_v26, %v561_v24 }
 0x272   :  { %v1997_v16 = vcombine.high %v1989_v8, %v1989_v8  ;;  %v1996_v27 = vrot.slane %v1982_v18, %v23691_v25  ;;  %v314_v18 = vld [vmem:[%s27385_s1 + $0x558] sm:$0xff] }
 0x274   :  { %v1998_v35 = vcombine.high %v1996_v27, %v1996_v27 }
 0x275   :  { %9445 = vmatmul.mubr.f32.vlgmr.msra.gmra.mrb[0].mxu1 %v1962_v17  ;;  %v22262_v17 = vpack.c.bf16 %v818_v10, %v306_v9  ;;  %v3103_v9 = vcombine.high %v3101_v2, %v3101_v2  ;;  %v22786_v10 = vpack.c.bf16 %v1080_v4, %v568_v3  ;;  %v317_v4 = vld [vmem:[%s27385_s1 + $0x570] sm:$0xff] }
 0x276   :  { %22253 = vmatpush1.bf16.xpose.msra.mxu1 %v22252_v42  ;;  %9514 = vmatprep.mubr.f32.mxu1 %v1980_v44  ;;  %v819_v42 = vld [vmem:[%s27385_s1 + $0x1520] sm:$0x3] }
 0x277   :  { %18405 = vmatmul.mubr.f32.vlgmr.msra.gmra.mrb[0].mxu0 %v3050_v20  ;;  %22255 = vmatprep.subr.bf16.mxu1 %v22254_v45  ;;  %v22774_v20 = vpack.c.bf16 %v1074_v13, %v562_v12  ;;  %v1075_v44 = vld [vmem:[%s27385_s1 + $0x1d20] sm:$0x3]  ;;  %v22268_v51 = vpack.c.bf16 %v819_v42, %v307_v41  ;;  %v121_v12 = vld [vmem:[%s27384_s0 + $0x350] sm:$0xff]  ;;  %v1084_v41 = vld [vmem:[%s27385_s1 + $0x1d68] sm:$0x3] }
 0x278   :  { %22765 = vmatpush1.bf16.xpose.msra.mxu0 %v22764_v43  ;;  %18474 = vmatprep.mubr.f32.mxu0 %v3068_v47  ;;  %v563_v43 = vld [vmem:[%s27385_s1 + $0xd20] sm:$0xff]  ;;  %v822_v47 = vld [vmem:[%s27385_s1 + $0x1538] sm:$0x3]  ;;  %v3104_v31 = vcombine.high %v121_v12, %v121_v12 }
 0x279   :  { %22767 = vmatprep.subr.bf16.mxu0 %v22766_v48  ;;  %v3094_v48 = vrot.slane %v120_v40, %v23691_v25  ;;  %v22780_v52 = vpack.c.bf16 %v1075_v44, %v563_v43  ;;  %v311_v13 = vld [vmem:[%s27385_s1 + $0x540] sm:$0xff]  ;;  %v572_v40 = vld [vmem:[%s27385_s1 + $0xd68] sm:$0xff] }
 0x27b   :  { %v3102_v56 = vcombine.high %v3094_v48, %v3094_v48 }
 0x27d   :  { %9515 = vmatmul.mubr.f32.vlgmr.msra.gmra.mrb[0].mxu1 %v1972_v36  ;;  %v22266_v36 = vpack.c.bf16 %v820_v29, %v308_v28 }
 0x27e   :  { %22257 = vmatpush1.bf16.xpose.msra.mxu1 %v22256_v60  ;;  %9584 = vmatprep.mubr.f32.mxu1 %v1981_v62  ;;  %v821_v60 = vld [vmem:[%s27385_s1 + $0x1530] sm:$0x3] }
 0x27f   :  { %18475 = vmatmul.mubr.f32.vlgmr.msra.gmra.mrb[0].mxu0 %v3060_v39  ;;  %22259 = vmatprep.subr.bf16.mxu1 %v22258_v63  ;;  %v56_v39 = vld [vmem:[%s27384_s0 + $0x148] sm:$0xff]  ;;  %v1077_v62 = vld [vmem:[%s27385_s1 + $0x1d30] sm:$0x3]  ;;  %v22272_v5 = vpack.c.bf16 %v821_v60, %v309_v59  ;;  %v1086_v59 = vld [vmem:[%s27385_s1 + $0x1d78] sm:$0x3] }
 0x280   :  { %22769 = vmatpush1.bf16.xpose.msra.mxu0 %v22768_v61  ;;  %18544 = vmatprep.mubr.f32.mxu0 %v3069_v0  ;;  %v2006_v45 = vrot.slane %v56_v39, %v23691_v25  ;;  %v1999_v55 = vcombine.high %v56_v39, %v56_v39  ;;  %v565_v61 = vld [vmem:[%s27385_s1 + $0xd30] sm:$0xff]  ;;  %v312_v0 = vld [vmem:[%s27385_s1 + $0x548] sm:$0xff]  ;;  %v3118_v39 = vrot.slane %v3104_v31, %v23691_v25  ;;  %v578_v31 = vld [vmem:[%s27385_s1 + $0xd98] sm:$0xff] }
 0x281   :  { %22771 = vmatprep.subr.bf16.mxu0 %v22770_v1  ;;  %v824_v1 = vld [vmem:[%s27385_s1 + $0x1548] sm:$0x3]  ;;  %v22784_v6 = vpack.c.bf16 %v1077_v62, %v565_v61 }
 0x282   :  { %v2014_v53 = vcombine.high %v2006_v45, %v2006_v45  ;;  %v2013_v63 = vrot.slane %v1999_v55, %v23691_v25  ;;  %v318_v55 = vld [vmem:[%s27385_s1 + $0x578] sm:$0xff] }
 0x284   :  { %v2015_v7 = vcombine.high %v2013_v63, %v2013_v63 }
 0x285   :  { %9585 = vmatmul.mubr.f32.vlgmr.msra.gmra.mrb[0].mxu1 %v1979_v54  ;;  %v22270_v54 = vpack.c.bf16 %v822_v47, %v310_v46  ;;  %v3120_v46 = vcombine.high %v3118_v39, %v3118_v39  ;;  %v22794_v47 = vpack.c.bf16 %v1084_v41, %v572_v40  ;;  %v321_v41 = vld [vmem:[%s27385_s1 + $0x590] sm:$0xff] }
 0x286   :  { %22261 = vmatpush1.bf16.xpose.msra.mxu1 %v22260_v14  ;;  %9654 = vmatprep.mubr.f32.mxu1 %v1997_v16  ;;  %v823_v14 = vld [vmem:[%s27385_s1 + $0x1540] sm:$0x3] }
 0x287   :  { %18545 = vmatmul.mubr.f32.vlgmr.msra.gmra.mrb[0].mxu0 %v3067_v57  ;;  %22263 = vmatprep.subr.bf16.mxu1 %v22262_v17  ;;  %v22782_v57 = vpack.c.bf16 %v1078_v50, %v566_v49  ;;  %v1079_v16 = vld [vmem:[%s27385_s1 + $0x1d40] sm:$0x3]  ;;  %v22276_v23 = vpack.c.bf16 %v823_v14, %v311_v13  ;;  %v122_v49 = vld [vmem:[%s27384_s0 + $0x358] sm:$0xff]  ;;  %v1088_v13 = vld [vmem:[%s27385_s1 + $0x1d88] sm:$0x3] }
 0x288   :  { %22773 = vmatpush1.bf16.xpose.msra.mxu0 %v22772_v15  ;;  %18614 = vmatprep.mubr.f32.mxu0 %v3085_v19  ;;  %v567_v15 = vld [vmem:[%s27385_s1 + $0xd40] sm:$0xff]  ;;  %v826_v19 = vld [vmem:[%s27385_s1 + $0x1558] sm:$0x3]  ;;  %v3121_v3 = vcombine.high %v122_v49, %v122_v49 }
 0x289   :  { %22775 = vmatprep.subr.bf16.mxu0 %v22774_v20  ;;  %v3111_v20 = vrot.slane %v121_v12, %v23691_v25  ;;  %v22788_v24 = vpack.c.bf16 %v1079_v16, %v567_v15  ;;  %v315_v50 = vld [vmem:[%s27385_s1 + $0x560] sm:$0xff]  ;;  %v576_v12 = vld [vmem:[%s27385_s1 + $0xd88] sm:$0xff] }
 0x28b   :  { %v3119_v29 = vcombine.high %v3111_v20, %v3111_v20 }
 0x28d   :  { %9655 = vmatmul.mubr.f32.vlgmr.msra.gmra.mrb[0].mxu1 %v1989_v8  ;;  %v22274_v8 = vpack.c.bf16 %v824_v1, %v312_v0 }
 0x28e   :  { %22265 = vmatpush1.bf16.xpose.msra.mxu1 %v22264_v33  ;;  %9724 = vmatprep.mubr.f32.mxu1 %v1998_v35  ;;  %v825_v33 = vld [vmem:[%s27385_s1 + $0x1550] sm:$0x3] }
 0x28f   :  { %18615 = vmatmul.mubr.f32.vlgmr.msra.gmra.mrb[0].mxu0 %v3077_v11  ;;  %22267 = vmatprep.subr.bf16.mxu1 %v22266_v36  ;;  %v57_v11 = vld [vmem:[%s27384_s0 + $0x150] sm:$0xff]  ;;  %v22280_v42 = vpack.c.bf16 %v825_v33, %v313_v32  ;;  %v1090_v32 = vld [vmem:[%s27385_s1 + $0x1d98] sm:$0x3] }
 0x290   :  { %22777 = vmatpush1.bf16.xpose.msra.mxu0 %v22776_v34  ;;  %18684 = vmatprep.mubr.f32.mxu0 %v3086_v37  ;;  %v2023_v17 = vrot.slane %v57_v11, %v23691_v25  ;;  %v2016_v28 = vcombine.high %v57_v11, %v57_v11  ;;  %v569_v34 = vld [vmem:[%s27385_s1 + $0xd50] sm:$0xff]  ;;  %v316_v37 = vld [vmem:[%s27385_s1 + $0x568] sm:$0xff]  ;;  %v3135_v11 = vrot.slane %v3121_v3, %v23691_v25  ;;  %v582_v3 = vld [vmem:[%s27385_s1 + $0xdb8] sm:$0xff] }
 0x291   :  { %22779 = vmatprep.subr.bf16.mxu0 %v22778_v38  ;;  %v1081_v35 = vld [vmem:[%s27385_s1 + $0x1d50] sm:$0x3]  ;;  %v828_v38 = vld [vmem:[%s27385_s1 + $0x1568] sm:$0x3] }
 0x292   :  { %v2031_v26 = vcombine.high %v2023_v17, %v2023_v17  ;;  %v2030_v36 = vrot.slane %v2016_v28, %v23691_v25  ;;  %v22792_v43 = vpack.c.bf16 %v1081_v35, %v569_v34  ;;  %v322_v28 = vld [vmem:[%s27385_s1 + $0x598] sm:$0xff] }
 0x294   :  { %v2032_v44 = vcombine.high %v2030_v36, %v2030_v36 }
 0x295   :  { %9725 = vmatmul.mubr.f32.vlgmr.msra.gmra.mrb[0].mxu1 %v1996_v27  ;;  %v22278_v27 = vpack.c.bf16 %v826_v19, %v314_v18  ;;  %v3137_v18 = vcombine.high %v3135_v11, %v3135_v11  ;;  %v22802_v19 = vpack.c.bf16 %v1088_v13, %v576_v12  ;;  %v325_v13 = vld [vmem:[%s27385_s1 + $0x5b0] sm:$0xff] }
 0x296   :  { %22269 = vmatpush1.bf16.xpose.msra.mxu1 %v22268_v51  ;;  %9794 = vmatprep.mubr.f32.mxu1 %v2014_v53  ;;  %v827_v51 = vld [vmem:[%s27385_s1 + $0x1560] sm:$0x3] }
 0x297   :  { %18685 = vmatmul.mubr.f32.vlgmr.msra.gmra.mrb[0].mxu0 %v3084_v30  ;;  %22271 = vmatprep.subr.bf16.mxu1 %v22270_v54  ;;  %v22790_v30 = vpack.c.bf16 %v1082_v22, %v570_v21  ;;  %v1083_v53 = vld [vmem:[%s27385_s1 + $0x1d60] sm:$0x3]  ;;  %v22284_v60 = vpack.c.bf16 %v827_v51, %v315_v50  ;;  %v1092_v50 = vld [vmem:[%s27385_s1 + $0x1da8] sm:$0x3] }
 0x298   :  { %22781 = vmatpush1.bf16.xpose.msra.mxu0 %v22780_v52  ;;  %18754 = vmatprep.mubr.f32.mxu0 %v3102_v56  ;;  %v571_v52 = vld [vmem:[%s27385_s1 + $0xd60] sm:$0xff]  ;;  %v830_v56 = vld [vmem:[%s27385_s1 + $0x1578] sm:$0x3] }
 0x299   :  { %22783 = vmatprep.subr.bf16.mxu0 %v22782_v57  ;;  %v3128_v57 = vrot.slane %v122_v49, %v23691_v25  ;;  %v22796_v61 = vpack.c.bf16 %v1083_v53, %v571_v52  ;;  %v123_v21 = vld [vmem:[%s27384_s0 + $0x360] sm:$0xff]  ;;  %v580_v49 = vld [vmem:[%s27385_s1 + $0xda8] sm:$0xff] }
 0x29a   :  { %v319_v22 = vld [vmem:[%s27385_s1 + $0x580] sm:$0xff]  ;;  %v3138_v40 = vcombine.high %v123_v21, %v123_v21 }
 0x29b   :  { %v3136_v1 = vcombine.high %v3128_v57, %v3128_v57 }
 0x29d   :  { %9795 = vmatmul.mubr.f32.vlgmr.msra.gmra.mrb[0].mxu1 %v2006_v45  ;;  %v22282_v45 = vpack.c.bf16 %v828_v38, %v316_v37 }
 0x29e   :  { %22273 = vmatpush1.bf16.xpose.msra.mxu1 %v22272_v5  ;;  %9864 = vmatprep.mubr.f32.mxu1 %v2015_v7  ;;  %v829_v5 = vld [vmem:[%s27385_s1 + $0x1570] sm:$0x3] }
 0x29f   :  { %18755 = vmatmul.mubr.f32.vlgmr.msra.gmra.mrb[0].mxu0 %v3094_v48  ;;  %22275 = vmatprep.subr.bf16.mxu1 %v22274_v8  ;;  %v58_v48 = vld [vmem:[%s27384_s0 + $0x158] sm:$0xff]  ;;  %v1085_v7 = vld [vmem:[%s27385_s1 + $0x1d70] sm:$0x3]  ;;  %v22288_v14 = vpack.c.bf16 %v829_v5, %v317_v4 }
 0x2a0   :  { %22785 = vmatpush1.bf16.xpose.msra.mxu0 %v22784_v6  ;;  %18824 = vmatprep.mubr.f32.mxu0 %v3103_v9  ;;  %v2040_v54 = vrot.slane %v58_v48, %v23691_v25  ;;  %v2033_v0 = vcombine.high %v58_v48, %v58_v48  ;;  %v573_v6 = vld [vmem:[%s27385_s1 + $0xd70] sm:$0xff]  ;;  %v320_v9 = vld [vmem:[%s27385_s1 + $0x588] sm:$0xff]  ;;  %v3152_v48 = vrot.slane %v3138_v40, %v23691_v25  ;;  %v1094_v4 = vld [vmem:[%s27385_s1 + $0x1db8] sm:$0x3] }
 0x2a1   :  { %22787 = vmatprep.subr.bf16.mxu0 %v22786_v10  ;;  %v832_v10 = vld [vmem:[%s27385_s1 + $0x1588] sm:$0x3]  ;;  %v22800_v15 = vpack.c.bf16 %v1085_v7, %v573_v6  ;;  %v586_v40 = vld [vmem:[%s27385_s1 + $0xdd8] sm:$0xff] }
 0x2a2   :  { %v2048_v62 = vcombine.high %v2040_v54, %v2040_v54  ;;  %v2047_v8 = vrot.slane %v2033_v0, %v23691_v25  ;;  %v326_v0 = vld [vmem:[%s27385_s1 + $0x5b8] sm:$0xff] }
 0x2a4   :  { %v2049_v16 = vcombine.high %v2047_v8, %v2047_v8 }
 0x2a5   :  { %9865 = vmatmul.mubr.f32.vlgmr.msra.gmra.mrb[0].mxu1 %v2013_v63  ;;  %v22286_v63 = vpack.c.bf16 %v830_v56, %v318_v55  ;;  %v3154_v55 = vcombine.high %v3152_v48, %v3152_v48  ;;  %v22810_v56 = vpack.c.bf16 %v1092_v50, %v580_v49  ;;  %v329_v50 = vld [vmem:[%s27385_s1 + $0x5d0] sm:$0xff] }
 0x2a6   :  { %22277 = vmatpush1.bf16.xpose.msra.mxu1 %v22276_v23  ;;  %9934 = vmatprep.mubr.f32.mxu1 %v2031_v26  ;;  %v831_v23 = vld [vmem:[%s27385_s1 + $0x1580] sm:$0x3] }
 0x2a7   :  { %18825 = vmatmul.mubr.f32.vlgmr.msra.gmra.mrb[0].mxu0 %v3101_v2  ;;  %22279 = vmatprep.subr.bf16.mxu1 %v22278_v27  ;;  %v22798_v2 = vpack.c.bf16 %v1086_v59, %v574_v58  ;;  %v1087_v26 = vld [vmem:[%s27385_s1 + $0x1d80] sm:$0x3]  ;;  %v22292_v33 = vpack.c.bf16 %v831_v23, %v319_v22  ;;  %v124_v58 = vld [vmem:[%s27384_s0 + $0x368] sm:$0xff] }
 0x2a8   :  { %22789 = vmatpush1.bf16.xpose.msra.mxu0 %v22788_v24  ;;  %18894 = vmatprep.mubr.f32.mxu0 %v3119_v29  ;;  %v575_v24 = vld [vmem:[%s27385_s1 + $0xd80] sm:$0xff]  ;;  %v834_v29 = vld [vmem:[%s27385_s1 + $0x1598] sm:$0x3]  ;;  %v3155_v12 = vcombine.high %v124_v58, %v124_v58  ;;  %v1096_v22 = vld [vmem:[%s27385_s1 + $0x1dc8] sm:$0x3] }
 0x2a9   :  { %22791 = vmatprep.subr.bf16.mxu0 %v22790_v30  ;;  %v3145_v30 = vrot.slane %v123_v21, %v23691_v25  ;;  %v22804_v34 = vpack.c.bf16 %v1087_v26, %v575_v24  ;;  %v323_v59 = vld [vmem:[%s27385_s1 + $0x5a0] sm:$0xff]  ;;  %v584_v21 = vld [vmem:[%s27385_s1 + $0xdc8] sm:$0xff] }
 0x2ab   :  { %v3153_v38 = vcombine.high %v3145_v30, %v3145_v30 }
 0x2ad   :  { %9935 = vmatmul.mubr.f32.vlgmr.msra.gmra.mrb[0].mxu1 %v2023_v17  ;;  %v22290_v17 = vpack.c.bf16 %v832_v10, %v320_v9 }
 0x2ae   :  { %22281 = vmatpush1.bf16.xpose.msra.mxu1 %v22280_v42  ;;  %10004 = vmatprep.mubr.f32.mxu1 %v2032_v44  ;;  %v833_v42 = vld [vmem:[%s27385_s1 + $0x1590] sm:$0x3] }
 0x2af   :  { %18895 = vmatmul.mubr.f32.vlgmr.msra.gmra.mrb[0].mxu0 %v3111_v20  ;;  %22283 = vmatprep.subr.bf16.mxu1 %v22282_v45  ;;  %v59_v20 = vld [vmem:[%s27384_s0 + $0x160] sm:$0xff]  ;;  %v1089_v44 = vld [vmem:[%s27385_s1 + $0x1d90] sm:$0x3]  ;;  %v22296_v51 = vpack.c.bf16 %v833_v42, %v321_v41  ;;  %v1098_v41 = vld [vmem:[%s27385_s1 + $0x1dd8] sm:$0x3] }
 0x2b0   :  { %22793 = vmatpush1.bf16.xpose.msra.mxu0 %v22792_v43  ;;  %18964 = vmatprep.mubr.f32.mxu0 %v3120_v46  ;;  %v2057_v27 = vrot.slane %v59_v20, %v23691_v25  ;;  %v2050_v37 = vcombine.high %v59_v20, %v59_v20  ;;  %v577_v43 = vld [vmem:[%s27385_s1 + $0xd90] sm:$0xff]  ;;  %v324_v46 = vld [vmem:[%s27385_s1 + $0x5a8] sm:$0xff]  ;;  %v3169_v20 = vrot.slane %v3155_v12, %v23691_v25  ;;  %v590_v12 = vld [vmem:[%s27385_s1 + $0xdf8] sm:$0xff] }
 0x2b1   :  { %22795 = vmatprep.subr.bf16.mxu0 %v22794_v47  ;;  %v836_v47 = vld [vmem:[%s27385_s1 + $0x15a8] sm:$0x3]  ;;  %v22808_v52 = vpack.c.bf16 %v1089_v44, %v577_v43 }
 0x2b2   :  { %v2065_v35 = vcombine.high %v2057_v27, %v2057_v27  ;;  %v2064_v45 = vrot.slane %v2050_v37, %v23691_v25  ;;  %v330_v37 = vld [vmem:[%s27385_s1 + $0x5d8] sm:$0xff] }
 0x2b4   :  { %v2066_v53 = vcombine.high %v2064_v45, %v2064_v45 }
 0x2b5   :  { %10005 = vmatmul.mubr.f32.vlgmr.msra.gmra.mrb[0].mxu1 %v2030_v36  ;;  %v22294_v36 = vpack.c.bf16 %v834_v29, %v322_v28  ;;  %v3171_v28 = vcombine.high %v3169_v20, %v3169_v20  ;;  %v22818_v29 = vpack.c.bf16 %v1096_v22, %v584_v21  ;;  %v333_v22 = vld [vmem:[%s27385_s1 + $0x5f0] sm:$0xff] }
 0x2b6   :  { %22285 = vmatpush1.bf16.xpose.msra.mxu1 %v22284_v60  ;;  %10074 = vmatprep.mubr.f32.mxu1 %v2048_v62  ;;  %v835_v60 = vld [vmem:[%s27385_s1 + $0x15a0] sm:$0x3] }
 0x2b7   :  { %18965 = vmatmul.mubr.f32.vlgmr.msra.gmra.mrb[0].mxu0 %v3118_v39  ;;  %22287 = vmatprep.subr.bf16.mxu1 %v22286_v63  ;;  %v22806_v39 = vpack.c.bf16 %v1090_v32, %v578_v31  ;;  %v1091_v62 = vld [vmem:[%s27385_s1 + $0x1da0] sm:$0x3]  ;;  %v22300_v5 = vpack.c.bf16 %v835_v60, %v323_v59  ;;  %v125_v31 = vld [vmem:[%s27384_s0 + $0x370] sm:$0xff]  ;;  %v1100_v59 = vld [vmem:[%s27385_s1 + $0x1de8] sm:$0x3] }
 0x2b8   :  { %22797 = vmatpush1.bf16.xpose.msra.mxu0 %v22796_v61  ;;  %19034 = vmatprep.mubr.f32.mxu0 %v3136_v1  ;;  %v579_v61 = vld [vmem:[%s27385_s1 + $0xda0] sm:$0xff]  ;;  %v838_v1 = vld [vmem:[%s27385_s1 + $0x15b8] sm:$0x3]  ;;  %v3172_v49 = vcombine.high %v125_v31, %v125_v31 }
 0x2b9   :  { %22799 = vmatprep.subr.bf16.mxu0 %v22798_v2  ;;  %v3162_v2 = vrot.slane %v124_v58, %v23691_v25  ;;  %v22812_v6 = vpack.c.bf16 %v1091_v62, %v579_v61  ;;  %v327_v32 = vld [vmem:[%s27385_s1 + $0x5c0] sm:$0xff]  ;;  %v588_v58 = vld [vmem:[%s27385_s1 + $0xde8] sm:$0xff] }
 0x2bb   :  { %v3170_v10 = vcombine.high %v3162_v2, %v3162_v2 }
 0x2bd   :  { %10075 = vmatmul.mubr.f32.vlgmr.msra.gmra.mrb[0].mxu1 %v2040_v54  ;;  %v22298_v54 = vpack.c.bf16 %v836_v47, %v324_v46 }
 0x2be   :  { %22289 = vmatpush1.bf16.xpose.msra.mxu1 %v22288_v14  ;;  %10144 = vmatprep.mubr.f32.mxu1 %v2049_v16  ;;  %v837_v14 = vld [vmem:[%s27385_s1 + $0x15b0] sm:$0x3] }
 0x2bf   :  { %19035 = vmatmul.mubr.f32.vlgmr.msra.gmra.mrb[0].mxu0 %v3128_v57  ;;  %22291 = vmatprep.subr.bf16.mxu1 %v22290_v17  ;;  %v60_v57 = vld [vmem:[%s27384_s0 + $0x168] sm:$0xff]  ;;  %v1093_v16 = vld [vmem:[%s27385_s1 + $0x1db0] sm:$0x3]  ;;  %v22304_v23 = vpack.c.bf16 %v837_v14, %v325_v13  ;;  %v1102_v13 = vld [vmem:[%s27385_s1 + $0x1df8] sm:$0x3] }
 0x2c0   :  { %22801 = vmatpush1.bf16.xpose.msra.mxu0 %v22800_v15  ;;  %19104 = vmatprep.mubr.f32.mxu0 %v3137_v18  ;;  %v2074_v63 = vrot.slane %v60_v57, %v23691_v25  ;;  %v2067_v9 = vcombine.high %v60_v57, %v60_v57  ;;  %v581_v15 = vld [vmem:[%s27385_s1 + $0xdb0] sm:$0xff]  ;;  %v328_v18 = vld [vmem:[%s27385_s1 + $0x5c8] sm:$0xff]  ;;  %v3186_v57 = vrot.slane %v3172_v49, %v23691_v25  ;;  %v594_v49 = vld [vmem:[%s27385_s1 + $0xe18] sm:$0xff] }
 0x2c1   :  { %22803 = vmatprep.subr.bf16.mxu0 %v22802_v19  ;;  %v840_v19 = vld [vmem:[%s27385_s1 + $0x15c8] sm:$0x3]  ;;  %v22816_v24 = vpack.c.bf16 %v1093_v16, %v581_v15 }
 0x2c2   :  { %v2082_v7 = vcombine.high %v2074_v63, %v2074_v63  ;;  %v2081_v17 = vrot.slane %v2067_v9, %v23691_v25  ;;  %v334_v9 = vld [vmem:[%s27385_s1 + $0x5f8] sm:$0xff] }
 0x2c4   :  { %v2083_v26 = vcombine.high %v2081_v17, %v2081_v17 }
 0x2c5   :  { %10145 = vmatmul.mubr.f32.vlgmr.msra.gmra.mrb[0].mxu1 %v2047_v8  ;;  %v22302_v8 = vpack.c.bf16 %v838_v1, %v326_v0  ;;  %v3188_v0 = vcombine.high %v3186_v57, %v3186_v57  ;;  %v22826_v1 = vpack.c.bf16 %v1100_v59, %v588_v58  ;;  %v337_v59 = vld [vmem:[%s27385_s1 + $0x610] sm:$0xff] }
 0x2c6   :  { %22293 = vmatpush1.bf16.xpose.msra.mxu1 %v22292_v33  ;;  %10214 = vmatprep.mubr.f32.mxu1 %v2065_v35  ;;  %v839_v33 = vld [vmem:[%s27385_s1 + $0x15c0] sm:$0x3] }
 0x2c7   :  { %19105 = vmatmul.mubr.f32.vlgmr.msra.gmra.mrb[0].mxu0 %v3135_v11  ;;  %22295 = vmatprep.subr.bf16.mxu1 %v22294_v36  ;;  %v22814_v11 = vpack.c.bf16 %v1094_v4, %v582_v3  ;;  %v1095_v35 = vld [vmem:[%s27385_s1 + $0x1dc0] sm:$0x3]  ;;  %v22308_v42 = vpack.c.bf16 %v839_v33, %v327_v32  ;;  %v126_v3 = vld [vmem:[%s27384_s0 + $0x378] sm:$0xff]  ;;  %v1104_v32 = vld [vmem:[%s27385_s1 + $0x1e08] sm:$0x3] }
 0x2c8   :  { %22805 = vmatpush1.bf16.xpose.msra.mxu0 %v22804_v34  ;;  %19174 = vmatprep.mubr.f32.mxu0 %v3153_v38  ;;  %v583_v34 = vld [vmem:[%s27385_s1 + $0xdc0] sm:$0xff]  ;;  %v842_v38 = vld [vmem:[%s27385_s1 + $0x15d8] sm:$0x3]  ;;  %v3189_v21 = vcombine.high %v126_v3, %v126_v3 }
 0x2c9   :  { %22807 = vmatprep.subr.bf16.mxu0 %v22806_v39  ;;  %v3179_v39 = vrot.slane %v125_v31, %v23691_v25  ;;  %v22820_v43 = vpack.c.bf16 %v1095_v35, %v583_v34  ;;  %v331_v4 = vld [vmem:[%s27385_s1 + $0x5e0] sm:$0xff]  ;;  %v592_v31 = vld [vmem:[%s27385_s1 + $0xe08] sm:$0xff] }
 0x2cb   :  { %v3187_v47 = vcombine.high %v3179_v39, %v3179_v39 }
 0x2cd   :  { %10215 = vmatmul.mubr.f32.vlgmr.msra.gmra.mrb[0].mxu1 %v2057_v27  ;;  %v22306_v27 = vpack.c.bf16 %v840_v19, %v328_v18 }
 0x2ce   :  { %22297 = vmatpush1.bf16.xpose.msra.mxu1 %v22296_v51  ;;  %10284 = vmatprep.mubr.f32.mxu1 %v2066_v53  ;;  %v841_v51 = vld [vmem:[%s27385_s1 + $0x15d0] sm:$0x3] }
 0x2cf   :  { %19175 = vmatmul.mubr.f32.vlgmr.msra.gmra.mrb[0].mxu0 %v3145_v30  ;;  %22299 = vmatprep.subr.bf16.mxu1 %v22298_v54  ;;  %v61_v30 = vld [vmem:[%s27384_s0 + $0x170] sm:$0xff]  ;;  %v22312_v60 = vpack.c.bf16 %v841_v51, %v329_v50  ;;  %v1106_v50 = vld [vmem:[%s27385_s1 + $0x1e18] sm:$0x3] }
 0x2d0   :  { %22809 = vmatpush1.bf16.xpose.msra.mxu0 %v22808_v52  ;;  %19244 = vmatprep.mubr.f32.mxu0 %v3154_v55  ;;  %v2091_v36 = vrot.slane %v61_v30, %v23691_v25  ;;  %v2084_v46 = vcombine.high %v61_v30, %v61_v30  ;;  %v585_v52 = vld [vmem:[%s27385_s1 + $0xdd0] sm:$0xff]  ;;  %v332_v55 = vld [vmem:[%s27385_s1 + $0x5e8] sm:$0xff]  ;;  %v3203_v30 = vrot.slane %v3189_v21, %v23691_v25  ;;  %v598_v21 = vld [vmem:[%s27385_s1 + $0xe38] sm:$0xff] }
 0x2d1   :  { %22811 = vmatprep.subr.bf16.mxu0 %v22810_v56  ;;  %v1097_v53 = vld [vmem:[%s27385_s1 + $0x1dd0] sm:$0x3]  ;;  %v844_v56 = vld [vmem:[%s27385_s1 + $0x15e8] sm:$0x3] }
 0x2d2   :  { %v2099_v44 = vcombine.high %v2091_v36, %v2091_v36  ;;  %v2098_v54 = vrot.slane %v2084_v46, %v23691_v25  ;;  %v22824_v61 = vpack.c.bf16 %v1097_v53, %v585_v52  ;;  %v338_v46 = vld [vmem:[%s27385_s1 + $0x618] sm:$0xff] }
 0x2d4   :  { %v2100_v62 = vcombine.high %v2098_v54, %v2098_v54 }
 0x2d5   :  { %10285 = vmatmul.mubr.f32.vlgmr.msra.gmra.mrb[0].mxu1 %v2064_v45  ;;  %v22310_v45 = vpack.c.bf16 %v842_v38, %v330_v37  ;;  %v3205_v37 = vcombine.high %v3203_v30, %v3203_v30  ;;  %v22834_v38 = vpack.c.bf16 %v1104_v32, %v592_v31  ;;  %v341_v32 = vld [vmem:[%s27385_s1 + $0x630] sm:$0xff] }
 0x2d6   :  { %22301 = vmatpush1.bf16.xpose.msra.mxu1 %v22300_v5  ;;  %10354 = vmatprep.mubr.f32.mxu1 %v2082_v7  ;;  %v843_v5 = vld [vmem:[%s27385_s1 + $0x15e0] sm:$0x3] }
 0x2d7   :  { %19245 = vmatmul.mubr.f32.vlgmr.msra.gmra.mrb[0].mxu0 %v3152_v48  ;;  %22303 = vmatprep.subr.bf16.mxu1 %v22302_v8  ;;  %v22822_v48 = vpack.c.bf16 %v1098_v41, %v586_v40  ;;  %v1099_v7 = vld [vmem:[%s27385_s1 + $0x1de0] sm:$0x3]  ;;  %v22316_v14 = vpack.c.bf16 %v843_v5, %v331_v4  ;;  %v1108_v4 = vld [vmem:[%s27385_s1 + $0x1e28] sm:$0x3] }
 0x2d8   :  { %22813 = vmatpush1.bf16.xpose.msra.mxu0 %v22812_v6  ;;  %19314 = vmatprep.mubr.f32.mxu0 %v3170_v10  ;;  %v587_v6 = vld [vmem:[%s27385_s1 + $0xde0] sm:$0xff]  ;;  %v846_v10 = vld [vmem:[%s27385_s1 + $0x15f8] sm:$0x3] }
 0x2d9   :  { %22815 = vmatprep.subr.bf16.mxu0 %v22814_v11  ;;  %v3196_v11 = vrot.slane %v126_v3, %v23691_v25  ;;  %v22828_v15 = vpack.c.bf16 %v1099_v7, %v587_v6  ;;  %v127_v40 = vld [vmem:[%s27384_s0 + $0x380] sm:$0xff]  ;;  %v596_v3 = vld [vmem:[%s27385_s1 + $0xe28] sm:$0xff] }
 0x2da   :  { %v335_v41 = vld [vmem:[%s27385_s1 + $0x600] sm:$0xff]  ;;  %v3206_v58 = vcombine.high %v127_v40, %v127_v40 }
 0x2db   :  { %v3204_v19 = vcombine.high %v3196_v11, %v3196_v11 }
 0x2dd   :  { %10355 = vmatmul.mubr.f32.vlgmr.msra.gmra.mrb[0].mxu1 %v2074_v63  ;;  %v22314_v63 = vpack.c.bf16 %v844_v56, %v332_v55 }
 0x2de   :  { %22305 = vmatpush1.bf16.xpose.msra.mxu1 %v22304_v23  ;;  %10424 = vmatprep.mubr.f32.mxu1 %v2083_v26  ;;  %v845_v23 = vld [vmem:[%s27385_s1 + $0x15f0] sm:$0x3] }
 0x2df   :  { %19315 = vmatmul.mubr.f32.vlgmr.msra.gmra.mrb[0].mxu0 %v3162_v2  ;;  %22307 = vmatprep.subr.bf16.mxu1 %v22306_v27  ;;  %v62_v2 = vld [vmem:[%s27384_s0 + $0x178] sm:$0xff]  ;;  %v1101_v26 = vld [vmem:[%s27385_s1 + $0x1df0] sm:$0x3]  ;;  %v22320_v33 = vpack.c.bf16 %v845_v23, %v333_v22 }
 0x2e0   :  { %22817 = vmatpush1.bf16.xpose.msra.mxu0 %v22816_v24  ;;  %19384 = vmatprep.mubr.f32.mxu0 %v3171_v28  ;;  %v2108_v8 = vrot.slane %v62_v2, %v23691_v25  ;;  %v2101_v18 = vcombine.high %v62_v2, %v62_v2  ;;  %v589_v24 = vld [vmem:[%s27385_s1 + $0xdf0] sm:$0xff]  ;;  %v336_v28 = vld [vmem:[%s27385_s1 + $0x608] sm:$0xff]  ;;  %v3220_v2 = vrot.slane %v3206_v58, %v23691_v25  ;;  %v1110_v22 = vld [vmem:[%s27385_s1 + $0x1e38] sm:$0x3] }
 0x2e1   :  { %22819 = vmatprep.subr.bf16.mxu0 %v22818_v29  ;;  %v848_v29 = vld [vmem:[%s27385_s1 + $0x1608] sm:$0x3]  ;;  %v22832_v34 = vpack.c.bf16 %v1101_v26, %v589_v24  ;;  %v602_v58 = vld [vmem:[%s27385_s1 + $0xe58] sm:$0xff] }
 0x2e2   :  { %v2116_v16 = vcombine.high %v2108_v8, %v2108_v8  ;;  %v2115_v27 = vrot.slane %v2101_v18, %v23691_v25  ;;  %v342_v18 = vld [vmem:[%s27385_s1 + $0x638] sm:$0xff] }
 0x2e4   :  { %v2117_v35 = vcombine.high %v2115_v27, %v2115_v27 }
 0x2e5   :  { %10425 = vmatmul.mubr.f32.vlgmr.msra.gmra.mrb[0].mxu1 %v2081_v17  ;;  %v22318_v17 = vpack.c.bf16 %v846_v10, %v334_v9  ;;  %v3222_v9 = vcombine.high %v3220_v2, %v3220_v2  ;;  %v22842_v10 = vpack.c.bf16 %v1108_v4, %v596_v3  ;;  %v345_v4 = vld [vmem:[%s27385_s1 + $0x650] sm:$0xff] }
 0x2e6   :  { %22309 = vmatpush1.bf16.xpose.msra.mxu1 %v22308_v42  ;;  %10494 = vmatprep.mubr.f32.mxu1 %v2099_v44  ;;  %v847_v42 = vld [vmem:[%s27385_s1 + $0x1600] sm:$0x3] }
 0x2e7   :  { %19385 = vmatmul.mubr.f32.vlgmr.msra.gmra.mrb[0].mxu0 %v3169_v20  ;;  %22311 = vmatprep.subr.bf16.mxu1 %v22310_v45  ;;  %v22830_v20 = vpack.c.bf16 %v1102_v13, %v590_v12  ;;  %v1103_v44 = vld [vmem:[%s27385_s1 + $0x1e00] sm:$0x3]  ;;  %v22324_v51 = vpack.c.bf16 %v847_v42, %v335_v41  ;;  %v128_v12 = vld [vmem:[%s27384_s0 + $0x388] sm:$0xff] }
 0x2e8   :  { %22821 = vmatpush1.bf16.xpose.msra.mxu0 %v22820_v43  ;;  %19454 = vmatprep.mubr.f32.mxu0 %v3187_v47  ;;  %v591_v43 = vld [vmem:[%s27385_s1 + $0xe00] sm:$0xff]  ;;  %v850_v47 = vld [vmem:[%s27385_s1 + $0x1618] sm:$0x3]  ;;  %v3223_v31 = vcombine.high %v128_v12, %v128_v12  ;;  %v1112_v41 = vld [vmem:[%s27385_s1 + $0x1e48] sm:$0x3] }
 0x2e9   :  { %22823 = vmatprep.subr.bf16.mxu0 %v22822_v48  ;;  %v3213_v48 = vrot.slane %v127_v40, %v23691_v25  ;;  %v22836_v52 = vpack.c.bf16 %v1103_v44, %v591_v43  ;;  %v339_v13 = vld [vmem:[%s27385_s1 + $0x620] sm:$0xff]  ;;  %v600_v40 = vld [vmem:[%s27385_s1 + $0xe48] sm:$0xff] }
 0x2eb   :  { %v3221_v56 = vcombine.high %v3213_v48, %v3213_v48 }
 0x2ed   :  { %10495 = vmatmul.mubr.f32.vlgmr.msra.gmra.mrb[0].mxu1 %v2091_v36  ;;  %v22322_v36 = vpack.c.bf16 %v848_v29, %v336_v28 }
 0x2ee   :  { %22313 = vmatpush1.bf16.xpose.msra.mxu1 %v22312_v60  ;;  %10564 = vmatprep.mubr.f32.mxu1 %v2100_v62  ;;  %v849_v60 = vld [vmem:[%s27385_s1 + $0x1610] sm:$0x3] }
 0x2ef   :  { %19455 = vmatmul.mubr.f32.vlgmr.msra.gmra.mrb[0].mxu0 %v3179_v39  ;;  %22315 = vmatprep.subr.bf16.mxu1 %v22314_v63  ;;  %v63_v39 = vld [vmem:[%s27384_s0 + $0x180] sm:$0xff]  ;;  %v1105_v62 = vld [vmem:[%s27385_s1 + $0x1e10] sm:$0x3]  ;;  %v22328_v5 = vpack.c.bf16 %v849_v60, %v337_v59  ;;  %v1114_v59 = vld [vmem:[%s27385_s1 + $0x1e58] sm:$0x3] }
 0x2f0   :  { %22825 = vmatpush1.bf16.xpose.msra.mxu0 %v22824_v61  ;;  %19524 = vmatprep.mubr.f32.mxu0 %v3188_v0  ;;  %v2125_v45 = vrot.slane %v63_v39, %v23691_v25  ;;  %v2118_v55 = vcombine.high %v63_v39, %v63_v39  ;;  %v593_v61 = vld [vmem:[%s27385_s1 + $0xe10] sm:$0xff]  ;;  %v340_v0 = vld [vmem:[%s27385_s1 + $0x628] sm:$0xff]  ;;  %v3237_v39 = vrot.slane %v3223_v31, %v23691_v25  ;;  %v606_v31 = vld [vmem:[%s27385_s1 + $0xe78] sm:$0xff] }
 0x2f1   :  { %22827 = vmatprep.subr.bf16.mxu0 %v22826_v1  ;;  %v852_v1 = vld [vmem:[%s27385_s1 + $0x1628] sm:$0x3]  ;;  %v22840_v6 = vpack.c.bf16 %v1105_v62, %v593_v61 }
 0x2f2   :  { %v2133_v53 = vcombine.high %v2125_v45, %v2125_v45  ;;  %v2132_v63 = vrot.slane %v2118_v55, %v23691_v25  ;;  %v346_v55 = vld [vmem:[%s27385_s1 + $0x658] sm:$0xff] }
 0x2f4   :  { %v2134_v7 = vcombine.high %v2132_v63, %v2132_v63 }
 0x2f5   :  { %10565 = vmatmul.mubr.f32.vlgmr.msra.gmra.mrb[0].mxu1 %v2098_v54  ;;  %v22326_v54 = vpack.c.bf16 %v850_v47, %v338_v46  ;;  %v3239_v46 = vcombine.high %v3237_v39, %v3237_v39  ;;  %v22850_v47 = vpack.c.bf16 %v1112_v41, %v600_v40  ;;  %v349_v41 = vld [vmem:[%s27385_s1 + $0x670] sm:$0xff] }
 0x2f6   :  { %22317 = vmatpush1.bf16.xpose.msra.mxu1 %v22316_v14  ;;  %10634 = vmatprep.mubr.f32.mxu1 %v2116_v16  ;;  %v851_v14 = vld [vmem:[%s27385_s1 + $0x1620] sm:$0x3] }
 0x2f7   :  { %19525 = vmatmul.mubr.f32.vlgmr.msra.gmra.mrb[0].mxu0 %v3186_v57  ;;  %22319 = vmatprep.subr.bf16.mxu1 %v22318_v17  ;;  %v22838_v57 = vpack.c.bf16 %v1106_v50, %v594_v49  ;;  %v1107_v16 = vld [vmem:[%s27385_s1 + $0x1e20] sm:$0x3]  ;;  %v22332_v23 = vpack.c.bf16 %v851_v14, %v339_v13  ;;  %v129_v49 = vld [vmem:[%s27384_s0 + $0x390] sm:$0xff]  ;;  %v1116_v13 = vld [vmem:[%s27385_s1 + $0x1e68] sm:$0x3] }
 0x2f8   :  { %22829 = vmatpush1.bf16.xpose.msra.mxu0 %v22828_v15  ;;  %19594 = vmatprep.mubr.f32.mxu0 %v3204_v19  ;;  %v595_v15 = vld [vmem:[%s27385_s1 + $0xe20] sm:$0xff]  ;;  %v854_v19 = vld [vmem:[%s27385_s1 + $0x1638] sm:$0x3]  ;;  %v3240_v3 = vcombine.high %v129_v49, %v129_v49 }
 0x2f9   :  { %22831 = vmatprep.subr.bf16.mxu0 %v22830_v20  ;;  %v3230_v20 = vrot.slane %v128_v12, %v23691_v25  ;;  %v22844_v24 = vpack.c.bf16 %v1107_v16, %v595_v15  ;;  %v343_v50 = vld [vmem:[%s27385_s1 + $0x640] sm:$0xff]  ;;  %v604_v12 = vld [vmem:[%s27385_s1 + $0xe68] sm:$0xff] }
 0x2fb   :  { %v3238_v29 = vcombine.high %v3230_v20, %v3230_v20 }
 0x2fd   :  { %10635 = vmatmul.mubr.f32.vlgmr.msra.gmra.mrb[0].mxu1 %v2108_v8  ;;  %v22330_v8 = vpack.c.bf16 %v852_v1, %v340_v0 }
 0x2fe   :  { %22321 = vmatpush1.bf16.xpose.msra.mxu1 %v22320_v33  ;;  %10704 = vmatprep.mubr.f32.mxu1 %v2117_v35  ;;  %v853_v33 = vld [vmem:[%s27385_s1 + $0x1630] sm:$0x3] }
 0x2ff   :  { %19595 = vmatmul.mubr.f32.vlgmr.msra.gmra.mrb[0].mxu0 %v3196_v11  ;;  %22323 = vmatprep.subr.bf16.mxu1 %v22322_v36  ;;  %v64_v11 = vld [vmem:[%s27384_s0 + $0x188] sm:$0xff]  ;;  %v1109_v35 = vld [vmem:[%s27385_s1 + $0x1e30] sm:$0x3]  ;;  %v22336_v42 = vpack.c.bf16 %v853_v33, %v341_v32  ;;  %v1118_v32 = vld [vmem:[%s27385_s1 + $0x1e78] sm:$0x3] }
 0x300   :  { %22833 = vmatpush1.bf16.xpose.msra.mxu0 %v22832_v34  ;;  %19664 = vmatprep.mubr.f32.mxu0 %v3205_v37  ;;  %v2142_v17 = vrot.slane %v64_v11, %v23691_v25  ;;  %v2135_v28 = vcombine.high %v64_v11, %v64_v11  ;;  %v597_v34 = vld [vmem:[%s27385_s1 + $0xe30] sm:$0xff]  ;;  %v344_v37 = vld [vmem:[%s27385_s1 + $0x648] sm:$0xff]  ;;  %v3254_v11 = vrot.slane %v3240_v3, %v23691_v25  ;;  %v610_v3 = vld [vmem:[%s27385_s1 + $0xe98] sm:$0xff] }
 0x301   :  { %22835 = vmatprep.subr.bf16.mxu0 %v22834_v38  ;;  %v856_v38 = vld [vmem:[%s27385_s1 + $0x1648] sm:$0x3]  ;;  %v22848_v43 = vpack.c.bf16 %v1109_v35, %v597_v34 }
 0x302   :  { %v2150_v26 = vcombine.high %v2142_v17, %v2142_v17  ;;  %v2149_v36 = vrot.slane %v2135_v28, %v23691_v25  ;;  %v350_v28 = vld [vmem:[%s27385_s1 + $0x678] sm:$0xff] }
 0x304   :  { %v2151_v44 = vcombine.high %v2149_v36, %v2149_v36 }
 0x305   :  { %10705 = vmatmul.mubr.f32.vlgmr.msra.gmra.mrb[0].mxu1 %v2115_v27  ;;  %v22334_v27 = vpack.c.bf16 %v854_v19, %v342_v18  ;;  %v3256_v18 = vcombine.high %v3254_v11, %v3254_v11  ;;  %v22858_v19 = vpack.c.bf16 %v1116_v13, %v604_v12  ;;  %v353_v13 = vld [vmem:[%s27385_s1 + $0x690] sm:$0xff] }
 0x306   :  { %22325 = vmatpush1.bf16.xpose.msra.mxu1 %v22324_v51  ;;  %10774 = vmatprep.mubr.f32.mxu1 %v2133_v53  ;;  %v855_v51 = vld [vmem:[%s27385_s1 + $0x1640] sm:$0x3] }
 0x307   :  { %19665 = vmatmul.mubr.f32.vlgmr.msra.gmra.mrb[0].mxu0 %v3203_v30  ;;  %22327 = vmatprep.subr.bf16.mxu1 %v22326_v54  ;;  %v22846_v30 = vpack.c.bf16 %v1110_v22, %v598_v21  ;;  %v1111_v53 = vld [vmem:[%s27385_s1 + $0x1e40] sm:$0x3]  ;;  %v22340_v60 = vpack.c.bf16 %v855_v51, %v343_v50  ;;  %v130_v21 = vld [vmem:[%s27384_s0 + $0x398] sm:$0xff]  ;;  %v1120_v50 = vld [vmem:[%s27385_s1 + $0x1e88] sm:$0x3] }
 0x308   :  { %22837 = vmatpush1.bf16.xpose.msra.mxu0 %v22836_v52  ;;  %19734 = vmatprep.mubr.f32.mxu0 %v3221_v56  ;;  %v599_v52 = vld [vmem:[%s27385_s1 + $0xe40] sm:$0xff]  ;;  %v858_v56 = vld [vmem:[%s27385_s1 + $0x1658] sm:$0x3]  ;;  %v3257_v40 = vcombine.high %v130_v21, %v130_v21 }
 0x309   :  { %22839 = vmatprep.subr.bf16.mxu0 %v22838_v57  ;;  %v3247_v57 = vrot.slane %v129_v49, %v23691_v25  ;;  %v22852_v61 = vpack.c.bf16 %v1111_v53, %v599_v52  ;;  %v347_v22 = vld [vmem:[%s27385_s1 + $0x660] sm:$0xff]  ;;  %v608_v49 = vld [vmem:[%s27385_s1 + $0xe88] sm:$0xff] }
 0x30b   :  { %v3255_v1 = vcombine.high %v3247_v57, %v3247_v57 }
 0x30d   :  { %10775 = vmatmul.mubr.f32.vlgmr.msra.gmra.mrb[0].mxu1 %v2125_v45  ;;  %v22338_v45 = vpack.c.bf16 %v856_v38, %v344_v37 }
 0x30e   :  { %22329 = vmatpush1.bf16.xpose.msra.mxu1 %v22328_v5  ;;  %10844 = vmatprep.mubr.f32.mxu1 %v2134_v7  ;;  %v857_v5 = vld [vmem:[%s27385_s1 + $0x1650] sm:$0x3] }
 0x30f   :  { %19735 = vmatmul.mubr.f32.vlgmr.msra.gmra.mrb[0].mxu0 %v3213_v48  ;;  %22331 = vmatprep.subr.bf16.mxu1 %v22330_v8  ;;  %v65_v48 = vld [vmem:[%s27384_s0 + $0x190] sm:$0xff]  ;;  %v22344_v14 = vpack.c.bf16 %v857_v5, %v345_v4  ;;  %v1122_v4 = vld [vmem:[%s27385_s1 + $0x1e98] sm:$0x3] }
 0x310   :  { %22841 = vmatpush1.bf16.xpose.msra.mxu0 %v22840_v6  ;;  %19804 = vmatprep.mubr.f32.mxu0 %v3222_v9  ;;  %v2159_v54 = vrot.slane %v65_v48, %v23691_v25  ;;  %v2152_v0 = vcombine.high %v65_v48, %v65_v48  ;;  %v601_v6 = vld [vmem:[%s27385_s1 + $0xe50] sm:$0xff]  ;;  %v348_v9 = vld [vmem:[%s27385_s1 + $0x668] sm:$0xff]  ;;  %v3271_v48 = vrot.slane %v3257_v40, %v23691_v25  ;;  %v614_v40 = vld [vmem:[%s27385_s1 + $0xeb8] sm:$0xff] }
 0x311   :  { %22843 = vmatprep.subr.bf16.mxu0 %v22842_v10  ;;  %v1113_v7 = vld [vmem:[%s27385_s1 + $0x1e50] sm:$0x3]  ;;  %v860_v10 = vld [vmem:[%s27385_s1 + $0x1668] sm:$0x3] }
 0x312   :  { %v2167_v62 = vcombine.high %v2159_v54, %v2159_v54  ;;  %v2166_v8 = vrot.slane %v2152_v0, %v23691_v25  ;;  %v22856_v15 = vpack.c.bf16 %v1113_v7, %v601_v6  ;;  %v354_v0 = vld [vmem:[%s27385_s1 + $0x698] sm:$0xff] }
 0x314   :  { %v2168_v16 = vcombine.high %v2166_v8, %v2166_v8 }
 0x315   :  { %10845 = vmatmul.mubr.f32.vlgmr.msra.gmra.mrb[0].mxu1 %v2132_v63  ;;  %v22342_v63 = vpack.c.bf16 %v858_v56, %v346_v55  ;;  %v3273_v55 = vcombine.high %v3271_v48, %v3271_v48  ;;  %v22866_v56 = vpack.c.bf16 %v1120_v50, %v608_v49  ;;  %v357_v50 = vld [vmem:[%s27385_s1 + $0x6b0] sm:$0xff] }
 0x316   :  { %22333 = vmatpush1.bf16.xpose.msra.mxu1 %v22332_v23  ;;  %10914 = vmatprep.mubr.f32.mxu1 %v2150_v26  ;;  %v859_v23 = vld [vmem:[%s27385_s1 + $0x1660] sm:$0x3] }
 0x317   :  { %19805 = vmatmul.mubr.f32.vlgmr.msra.gmra.mrb[0].mxu0 %v3220_v2  ;;  %22335 = vmatprep.subr.bf16.mxu1 %v22334_v27  ;;  %v22854_v2 = vpack.c.bf16 %v1114_v59, %v602_v58  ;;  %v1115_v26 = vld [vmem:[%s27385_s1 + $0x1e60] sm:$0x3]  ;;  %v22348_v33 = vpack.c.bf16 %v859_v23, %v347_v22  ;;  %v1124_v22 = vld [vmem:[%s27385_s1 + $0x1ea8] sm:$0x3] }
 0x318   :  { %22845 = vmatpush1.bf16.xpose.msra.mxu0 %v22844_v24  ;;  %19874 = vmatprep.mubr.f32.mxu0 %v3238_v29  ;;  %v603_v24 = vld [vmem:[%s27385_s1 + $0xe60] sm:$0xff]  ;;  %v862_v29 = vld [vmem:[%s27385_s1 + $0x1678] sm:$0x3] }
 0x319   :  { %22847 = vmatprep.subr.bf16.mxu0 %v22846_v30  ;;  %v3264_v30 = vrot.slane %v130_v21, %v23691_v25  ;;  %v22860_v34 = vpack.c.bf16 %v1115_v26, %v603_v24  ;;  %v131_v58 = vld [vmem:[%s27384_s0 + $0x3a0] sm:$0xff]  ;;  %v612_v21 = vld [vmem:[%s27385_s1 + $0xea8] sm:$0xff] }
 0x31a   :  { %v351_v59 = vld [vmem:[%s27385_s1 + $0x680] sm:$0xff]  ;;  %v3274_v12 = vcombine.high %v131_v58, %v131_v58 }
 0x31b   :  { %v3272_v38 = vcombine.high %v3264_v30, %v3264_v30 }
 0x31d   :  { %10915 = vmatmul.mubr.f32.vlgmr.msra.gmra.mrb[0].mxu1 %v2142_v17  ;;  %v22346_v17 = vpack.c.bf16 %v860_v10, %v348_v9 }
 0x31e   :  { %22337 = vmatpush1.bf16.xpose.msra.mxu1 %v22336_v42  ;;  %10984 = vmatprep.mubr.f32.mxu1 %v2151_v44  ;;  %v861_v42 = vld [vmem:[%s27385_s1 + $0x1670] sm:$0x3] }
 0x31f   :  { %19875 = vmatmul.mubr.f32.vlgmr.msra.gmra.mrb[0].mxu0 %v3230_v20  ;;  %22339 = vmatprep.subr.bf16.mxu1 %v22338_v45  ;;  %v66_v20 = vld [vmem:[%s27384_s0 + $0x198] sm:$0xff]  ;;  %v1117_v44 = vld [vmem:[%s27385_s1 + $0x1e70] sm:$0x3]  ;;  %v22352_v51 = vpack.c.bf16 %v861_v42, %v349_v41 }
 0x320   :  { %22849 = vmatpush1.bf16.xpose.msra.mxu0 %v22848_v43  ;;  %19944 = vmatprep.mubr.f32.mxu0 %v3239_v46  ;;  %v2176_v27 = vrot.slane %v66_v20, %v23691_v25  ;;  %v2169_v37 = vcombine.high %v66_v20, %v66_v20  ;;  %v605_v43 = vld [vmem:[%s27385_s1 + $0xe70] sm:$0xff]  ;;  %v352_v46 = vld [vmem:[%s27385_s1 + $0x688] sm:$0xff]  ;;  %v3288_v20 = vrot.slane %v3274_v12, %v23691_v25  ;;  %v1126_v41 = vld [vmem:[%s27385_s1 + $0x1eb8] sm:$0x3] }
 0x321   :  { %22851 = vmatprep.subr.bf16.mxu0 %v22850_v47  ;;  %v864_v47 = vld [vmem:[%s27385_s1 + $0x1688] sm:$0x3]  ;;  %v22864_v52 = vpack.c.bf16 %v1117_v44, %v605_v43  ;;  %v618_v12 = vld [vmem:[%s27385_s1 + $0xed8] sm:$0xff] }
 0x322   :  { %v2184_v35 = vcombine.high %v2176_v27, %v2176_v27  ;;  %v2183_v45 = vrot.slane %v2169_v37, %v23691_v25  ;;  %v358_v37 = vld [vmem:[%s27385_s1 + $0x6b8] sm:$0xff] }
 0x324   :  { %v2185_v53 = vcombine.high %v2183_v45, %v2183_v45 }
 0x325   :  { %10985 = vmatmul.mubr.f32.vlgmr.msra.gmra.mrb[0].mxu1 %v2149_v36  ;;  %v22350_v36 = vpack.c.bf16 %v862_v29, %v350_v28  ;;  %v3290_v28 = vcombine.high %v3288_v20, %v3288_v20  ;;  %v22874_v29 = vpack.c.bf16 %v1124_v22, %v612_v21  ;;  %v361_v22 = vld [vmem:[%s27385_s1 + $0x6d0] sm:$0xff] }
 0x326   :  { %22341 = vmatpush1.bf16.xpose.msra.mxu1 %v22340_v60  ;;  %11054 = vmatprep.mubr.f32.mxu1 %v2167_v62  ;;  %v863_v60 = vld [vmem:[%s27385_s1 + $0x1680] sm:$0x3] }
 0x327   :  { %19945 = vmatmul.mubr.f32.vlgmr.msra.gmra.mrb[0].mxu0 %v3237_v39  ;;  %22343 = vmatprep.subr.bf16.mxu1 %v22342_v63  ;;  %v22862_v39 = vpack.c.bf16 %v1118_v32, %v606_v31  ;;  %v1119_v62 = vld [vmem:[%s27385_s1 + $0x1e80] sm:$0x3]  ;;  %v22356_v5 = vpack.c.bf16 %v863_v60, %v351_v59  ;;  %v132_v31 = vld [vmem:[%s27384_s0 + $0x3a8] sm:$0xff] }
 0x328   :  { %22853 = vmatpush1.bf16.xpose.msra.mxu0 %v22852_v61  ;;  %20014 = vmatprep.mubr.f32.mxu0 %v3255_v1  ;;  %v607_v61 = vld [vmem:[%s27385_s1 + $0xe80] sm:$0xff]  ;;  %v866_v1 = vld [vmem:[%s27385_s1 + $0x1698] sm:$0x3]  ;;  %v3291_v49 = vcombine.high %v132_v31, %v132_v31  ;;  %v1128_v59 = vld [vmem:[%s27385_s1 + $0x1ec8] sm:$0x3] }
 0x329   :  { %22855 = vmatprep.subr.bf16.mxu0 %v22854_v2  ;;  %v3281_v2 = vrot.slane %v131_v58, %v23691_v25  ;;  %v22868_v6 = vpack.c.bf16 %v1119_v62, %v607_v61  ;;  %v355_v32 = vld [vmem:[%s27385_s1 + $0x6a0] sm:$0xff]  ;;  %v616_v58 = vld [vmem:[%s27385_s1 + $0xec8] sm:$0xff] }
 0x32b   :  { %v3289_v10 = vcombine.high %v3281_v2, %v3281_v2 }
 0x32d   :  { %11055 = vmatmul.mubr.f32.vlgmr.msra.gmra.mrb[0].mxu1 %v2159_v54  ;;  %v22354_v54 = vpack.c.bf16 %v864_v47, %v352_v46 }
 0x32e   :  { %22345 = vmatpush1.bf16.xpose.msra.mxu1 %v22344_v14  ;;  %11124 = vmatprep.mubr.f32.mxu1 %v2168_v16  ;;  %v865_v14 = vld [vmem:[%s27385_s1 + $0x1690] sm:$0x3] }
 0x32f   :  { %20015 = vmatmul.mubr.f32.vlgmr.msra.gmra.mrb[0].mxu0 %v3247_v57  ;;  %22347 = vmatprep.subr.bf16.mxu1 %v22346_v17  ;;  %v67_v57 = vld [vmem:[%s27384_s0 + $0x1a0] sm:$0xff]  ;;  %v1121_v16 = vld [vmem:[%s27385_s1 + $0x1e90] sm:$0x3]  ;;  %v22360_v23 = vpack.c.bf16 %v865_v14, %v353_v13  ;;  %v1130_v13 = vld [vmem:[%s27385_s1 + $0x1ed8] sm:$0x3] }
 0x330   :  { %22857 = vmatpush1.bf16.xpose.msra.mxu0 %v22856_v15  ;;  %20084 = vmatprep.mubr.f32.mxu0 %v3256_v18  ;;  %v2193_v63 = vrot.slane %v67_v57, %v23691_v25  ;;  %v2186_v9 = vcombine.high %v67_v57, %v67_v57  ;;  %v609_v15 = vld [vmem:[%s27385_s1 + $0xe90] sm:$0xff]  ;;  %v356_v18 = vld [vmem:[%s27385_s1 + $0x6a8] sm:$0xff]  ;;  %v3305_v57 = vrot.slane %v3291_v49, %v23691_v25  ;;  %v622_v49 = vld [vmem:[%s27385_s1 + $0xef8] sm:$0xff] }
 0x331   :  { %22859 = vmatprep.subr.bf16.mxu0 %v22858_v19  ;;  %v868_v19 = vld [vmem:[%s27385_s1 + $0x16a8] sm:$0x3]  ;;  %v22872_v24 = vpack.c.bf16 %v1121_v16, %v609_v15 }
 0x332   :  { %v2201_v7 = vcombine.high %v2193_v63, %v2193_v63  ;;  %v2200_v17 = vrot.slane %v2186_v9, %v23691_v25  ;;  %v362_v9 = vld [vmem:[%s27385_s1 + $0x6d8] sm:$0xff] }
 0x334   :  { %v2202_v26 = vcombine.high %v2200_v17, %v2200_v17 }
 0x335   :  { %11125 = vmatmul.mubr.f32.vlgmr.msra.gmra.mrb[0].mxu1 %v2166_v8  ;;  %v22358_v8 = vpack.c.bf16 %v866_v1, %v354_v0  ;;  %v3307_v0 = vcombine.high %v3305_v57, %v3305_v57  ;;  %v22882_v1 = vpack.c.bf16 %v1128_v59, %v616_v58  ;;  %v365_v59 = vld [vmem:[%s27385_s1 + $0x6f0] sm:$0xff] }
 0x336   :  { %22349 = vmatpush1.bf16.xpose.msra.mxu1 %v22348_v33  ;;  %11194 = vmatprep.mubr.f32.mxu1 %v2184_v35  ;;  %v867_v33 = vld [vmem:[%s27385_s1 + $0x16a0] sm:$0x3] }
 0x337   :  { %20085 = vmatmul.mubr.f32.vlgmr.msra.gmra.mrb[0].mxu0 %v3254_v11  ;;  %22351 = vmatprep.subr.bf16.mxu1 %v22350_v36  ;;  %v22870_v11 = vpack.c.bf16 %v1122_v4, %v610_v3  ;;  %v1123_v35 = vld [vmem:[%s27385_s1 + $0x1ea0] sm:$0x3]  ;;  %v22364_v42 = vpack.c.bf16 %v867_v33, %v355_v32  ;;  %v133_v3 = vld [vmem:[%s27384_s0 + $0x3b0] sm:$0xff]  ;;  %v1132_v32 = vld [vmem:[%s27385_s1 + $0x1ee8] sm:$0x3] }
 0x338   :  { %22861 = vmatpush1.bf16.xpose.msra.mxu0 %v22860_v34  ;;  %20154 = vmatprep.mubr.f32.mxu0 %v3272_v38  ;;  %v611_v34 = vld [vmem:[%s27385_s1 + $0xea0] sm:$0xff]  ;;  %v870_v38 = vld [vmem:[%s27385_s1 + $0x16b8] sm:$0x3]  ;;  %v3308_v21 = vcombine.high %v133_v3, %v133_v3 }
 0x339   :  { %22863 = vmatprep.subr.bf16.mxu0 %v22862_v39  ;;  %v3298_v39 = vrot.slane %v132_v31, %v23691_v25  ;;  %v22876_v43 = vpack.c.bf16 %v1123_v35, %v611_v34  ;;  %v359_v4 = vld [vmem:[%s27385_s1 + $0x6c0] sm:$0xff]  ;;  %v620_v31 = vld [vmem:[%s27385_s1 + $0xee8] sm:$0xff] }
 0x33b   :  { %v3306_v47 = vcombine.high %v3298_v39, %v3298_v39 }
 0x33d   :  { %11195 = vmatmul.mubr.f32.vlgmr.msra.gmra.mrb[0].mxu1 %v2176_v27  ;;  %v22362_v27 = vpack.c.bf16 %v868_v19, %v356_v18 }
 0x33e   :  { %22353 = vmatpush1.bf16.xpose.msra.mxu1 %v22352_v51  ;;  %11264 = vmatprep.mubr.f32.mxu1 %v2185_v53  ;;  %v869_v51 = vld [vmem:[%s27385_s1 + $0x16b0] sm:$0x3] }
 0x33f   :  { %20155 = vmatmul.mubr.f32.vlgmr.msra.gmra.mrb[0].mxu0 %v3264_v30  ;;  %22355 = vmatprep.subr.bf16.mxu1 %v22354_v54  ;;  %v68_v30 = vld [vmem:[%s27384_s0 + $0x1a8] sm:$0xff]  ;;  %v1125_v53 = vld [vmem:[%s27385_s1 + $0x1eb0] sm:$0x3]  ;;  %v22368_v60 = vpack.c.bf16 %v869_v51, %v357_v50  ;;  %v1134_v50 = vld [vmem:[%s27385_s1 + $0x1ef8] sm:$0x3] }
 0x340   :  { %22865 = vmatpush1.bf16.xpose.msra.mxu0 %v22864_v52  ;;  %20224 = vmatprep.mubr.f32.mxu0 %v3273_v55  ;;  %v2210_v36 = vrot.slane %v68_v30, %v23691_v25  ;;  %v2203_v46 = vcombine.high %v68_v30, %v68_v30  ;;  %v613_v52 = vld [vmem:[%s27385_s1 + $0xeb0] sm:$0xff]  ;;  %v360_v55 = vld [vmem:[%s27385_s1 + $0x6c8] sm:$0xff]  ;;  %v3322_v30 = vrot.slane %v3308_v21, %v23691_v25  ;;  %v626_v21 = vld [vmem:[%s27385_s1 + $0xf18] sm:$0xff] }
 0x341   :  { %22867 = vmatprep.subr.bf16.mxu0 %v22866_v56  ;;  %v872_v56 = vld [vmem:[%s27385_s1 + $0x16c8] sm:$0x3]  ;;  %v22880_v61 = vpack.c.bf16 %v1125_v53, %v613_v52 }
 0x342   :  { %v2218_v44 = vcombine.high %v2210_v36, %v2210_v36  ;;  %v2217_v54 = vrot.slane %v2203_v46, %v23691_v25  ;;  %v366_v46 = vld [vmem:[%s27385_s1 + $0x6f8] sm:$0xff] }
 0x344   :  { %v2219_v62 = vcombine.high %v2217_v54, %v2217_v54 }
 0x345   :  { %11265 = vmatmul.mubr.f32.vlgmr.msra.gmra.mrb[0].mxu1 %v2183_v45  ;;  %v22366_v45 = vpack.c.bf16 %v870_v38, %v358_v37  ;;  %v3324_v37 = vcombine.high %v3322_v30, %v3322_v30  ;;  %v22890_v38 = vpack.c.bf16 %v1132_v32, %v620_v31  ;;  %v369_v32 = vld [vmem:[%s27385_s1 + $0x710] sm:$0xff] }
 0x346   :  { %22357 = vmatpush1.bf16.xpose.msra.mxu1 %v22356_v5  ;;  %11334 = vmatprep.mubr.f32.mxu1 %v2201_v7  ;;  %v871_v5 = vld [vmem:[%s27385_s1 + $0x16c0] sm:$0x3] }
 0x347   :  { %20225 = vmatmul.mubr.f32.vlgmr.msra.gmra.mrb[0].mxu0 %v3271_v48  ;;  %22359 = vmatprep.subr.bf16.mxu1 %v22358_v8  ;;  %v22878_v48 = vpack.c.bf16 %v1126_v41, %v614_v40  ;;  %v1127_v7 = vld [vmem:[%s27385_s1 + $0x1ec0] sm:$0x3]  ;;  %v22372_v14 = vpack.c.bf16 %v871_v5, %v359_v4  ;;  %v134_v40 = vld [vmem:[%s27384_s0 + $0x3b8] sm:$0xff]  ;;  %v1136_v4 = vld [vmem:[%s27385_s1 + $0x1f08] sm:$0x3] }
 0x348   :  { %22869 = vmatpush1.bf16.xpose.msra.mxu0 %v22868_v6  ;;  %20294 = vmatprep.mubr.f32.mxu0 %v3289_v10  ;;  %v615_v6 = vld [vmem:[%s27385_s1 + $0xec0] sm:$0xff]  ;;  %v874_v10 = vld [vmem:[%s27385_s1 + $0x16d8] sm:$0x3]  ;;  %v3325_v58 = vcombine.high %v134_v40, %v134_v40 }
 0x349   :  { %22871 = vmatprep.subr.bf16.mxu0 %v22870_v11  ;;  %v3315_v11 = vrot.slane %v133_v3, %v23691_v25  ;;  %v22884_v15 = vpack.c.bf16 %v1127_v7, %v615_v6  ;;  %v363_v41 = vld [vmem:[%s27385_s1 + $0x6e0] sm:$0xff]  ;;  %v624_v3 = vld [vmem:[%s27385_s1 + $0xf08] sm:$0xff] }
 0x34b   :  { %v3323_v19 = vcombine.high %v3315_v11, %v3315_v11 }
 0x34d   :  { %11335 = vmatmul.mubr.f32.vlgmr.msra.gmra.mrb[0].mxu1 %v2193_v63  ;;  %v22370_v63 = vpack.c.bf16 %v872_v56, %v360_v55 }
 0x34e   :  { %22361 = vmatpush1.bf16.xpose.msra.mxu1 %v22360_v23  ;;  %11404 = vmatprep.mubr.f32.mxu1 %v2202_v26  ;;  %v873_v23 = vld [vmem:[%s27385_s1 + $0x16d0] sm:$0x3] }
 0x34f   :  { %20295 = vmatmul.mubr.f32.vlgmr.msra.gmra.mrb[0].mxu0 %v3281_v2  ;;  %22363 = vmatprep.subr.bf16.mxu1 %v22362_v27  ;;  %v69_v2 = vld [vmem:[%s27384_s0 + $0x1b0] sm:$0xff]  ;;  %v22376_v33 = vpack.c.bf16 %v873_v23, %v361_v22  ;;  %v1138_v22 = vld [vmem:[%s27385_s1 + $0x1f18] sm:$0x3] }
 0x350   :  { %22873 = vmatpush1.bf16.xpose.msra.mxu0 %v22872_v24  ;;  %20364 = vmatprep.mubr.f32.mxu0 %v3290_v28  ;;  %v2227_v8 = vrot.slane %v69_v2, %v23691_v25  ;;  %v2220_v18 = vcombine.high %v69_v2, %v69_v2  ;;  %v617_v24 = vld [vmem:[%s27385_s1 + $0xed0] sm:$0xff]  ;;  %v364_v28 = vld [vmem:[%s27385_s1 + $0x6e8] sm:$0xff]  ;;  %v3339_v2 = vrot.slane %v3325_v58, %v23691_v25  ;;  %v630_v58 = vld [vmem:[%s27385_s1 + $0xf38] sm:$0xff] }
 0x351   :  { %22875 = vmatprep.subr.bf16.mxu0 %v22874_v29  ;;  %v1129_v26 = vld [vmem:[%s27385_s1 + $0x1ed0] sm:$0x3]  ;;  %v876_v29 = vld [vmem:[%s27385_s1 + $0x16e8] sm:$0x3] }
 0x352   :  { %v2235_v16 = vcombine.high %v2227_v8, %v2227_v8  ;;  %v2234_v27 = vrot.slane %v2220_v18, %v23691_v25  ;;  %v22888_v34 = vpack.c.bf16 %v1129_v26, %v617_v24  ;;  %v370_v18 = vld [vmem:[%s27385_s1 + $0x718] sm:$0xff] }
 0x354   :  { %v2236_v35 = vcombine.high %v2234_v27, %v2234_v27 }
 0x355   :  { %11405 = vmatmul.mubr.f32.vlgmr.msra.gmra.mrb[0].mxu1 %v2200_v17  ;;  %v22374_v17 = vpack.c.bf16 %v874_v10, %v362_v9  ;;  %v3341_v9 = vcombine.high %v3339_v2, %v3339_v2  ;;  %v22898_v10 = vpack.c.bf16 %v1136_v4, %v624_v3  ;;  %v373_v4 = vld [vmem:[%s27385_s1 + $0x730] sm:$0xff] }
 0x356   :  { %22365 = vmatpush1.bf16.xpose.msra.mxu1 %v22364_v42  ;;  %11474 = vmatprep.mubr.f32.mxu1 %v2218_v44  ;;  %v875_v42 = vld [vmem:[%s27385_s1 + $0x16e0] sm:$0x3] }
 0x357   :  { %20365 = vmatmul.mubr.f32.vlgmr.msra.gmra.mrb[0].mxu0 %v3288_v20  ;;  %22367 = vmatprep.subr.bf16.mxu1 %v22366_v45  ;;  %v22886_v20 = vpack.c.bf16 %v1130_v13, %v618_v12  ;;  %v1131_v44 = vld [vmem:[%s27385_s1 + $0x1ee0] sm:$0x3]  ;;  %v22380_v51 = vpack.c.bf16 %v875_v42, %v363_v41  ;;  %v1140_v41 = vld [vmem:[%s27385_s1 + $0x1f28] sm:$0x3] }
 0x358   :  { %22877 = vmatpush1.bf16.xpose.msra.mxu0 %v22876_v43  ;;  %20434 = vmatprep.mubr.f32.mxu0 %v3306_v47  ;;  %v619_v43 = vld [vmem:[%s27385_s1 + $0xee0] sm:$0xff]  ;;  %v878_v47 = vld [vmem:[%s27385_s1 + $0x16f8] sm:$0x3] }
 0x359   :  { %22879 = vmatprep.subr.bf16.mxu0 %v22878_v48  ;;  %v3332_v48 = vrot.slane %v134_v40, %v23691_v25  ;;  %v22892_v52 = vpack.c.bf16 %v1131_v44, %v619_v43  ;;  %v135_v12 = vld [vmem:[%s27384_s0 + $0x3c0] sm:$0xff]  ;;  %v628_v40 = vld [vmem:[%s27385_s1 + $0xf28] sm:$0xff] }
 0x35a   :  { %v367_v13 = vld [vmem:[%s27385_s1 + $0x700] sm:$0xff]  ;;  %v3342_v31 = vcombine.high %v135_v12, %v135_v12 }
 0x35b   :  { %v3340_v56 = vcombine.high %v3332_v48, %v3332_v48 }
 0x35d   :  { %11475 = vmatmul.mubr.f32.vlgmr.msra.gmra.mrb[0].mxu1 %v2210_v36  ;;  %v22378_v36 = vpack.c.bf16 %v876_v29, %v364_v28 }
 0x35e   :  { %22369 = vmatpush1.bf16.xpose.msra.mxu1 %v22368_v60  ;;  %11544 = vmatprep.mubr.f32.mxu1 %v2219_v62  ;;  %v877_v60 = vld [vmem:[%s27385_s1 + $0x16f0] sm:$0x3] }
 0x35f   :  { %20435 = vmatmul.mubr.f32.vlgmr.msra.gmra.mrb[0].mxu0 %v3298_v39  ;;  %22371 = vmatprep.subr.bf16.mxu1 %v22370_v63  ;;  %v70_v39 = vld [vmem:[%s27384_s0 + $0x1b8] sm:$0xff]  ;;  %v1133_v62 = vld [vmem:[%s27385_s1 + $0x1ef0] sm:$0x3]  ;;  %v22384_v5 = vpack.c.bf16 %v877_v60, %v365_v59 }
 0x360   :  { %22881 = vmatpush1.bf16.xpose.msra.mxu0 %v22880_v61  ;;  %20504 = vmatprep.mubr.f32.mxu0 %v3307_v0  ;;  %v2244_v45 = vrot.slane %v70_v39, %v23691_v25  ;;  %v2237_v55 = vcombine.high %v70_v39, %v70_v39  ;;  %v621_v61 = vld [vmem:[%s27385_s1 + $0xef0] sm:$0xff]  ;;  %v368_v0 = vld [vmem:[%s27385_s1 + $0x708] sm:$0xff]  ;;  %v3356_v39 = vrot.slane %v3342_v31, %v23691_v25  ;;  %v1142_v59 = vld [vmem:[%s27385_s1 + $0x1f38] sm:$0x3] }
 0x361   :  { %22883 = vmatprep.subr.bf16.mxu0 %v22882_v1  ;;  %v880_v1 = vld [vmem:[%s27385_s1 + $0x1708] sm:$0x3]  ;;  %v22896_v6 = vpack.c.bf16 %v1133_v62, %v621_v61  ;;  %v634_v31 = vld [vmem:[%s27385_s1 + $0xf58] sm:$0xff] }
 0x362   :  { %v2252_v53 = vcombine.high %v2244_v45, %v2244_v45  ;;  %v2251_v63 = vrot.slane %v2237_v55, %v23691_v25  ;;  %v374_v55 = vld [vmem:[%s27385_s1 + $0x738] sm:$0xff] }
 0x364   :  { %v2253_v7 = vcombine.high %v2251_v63, %v2251_v63 }
 0x365   :  { %11545 = vmatmul.mubr.f32.vlgmr.msra.gmra.mrb[0].mxu1 %v2217_v54  ;;  %v22382_v54 = vpack.c.bf16 %v878_v47, %v366_v46  ;;  %v3358_v46 = vcombine.high %v3356_v39, %v3356_v39  ;;  %v22906_v47 = vpack.c.bf16 %v1140_v41, %v628_v40  ;;  %v377_v41 = vld [vmem:[%s27385_s1 + $0x750] sm:$0xff] }
 0x366   :  { %22373 = vmatpush1.bf16.xpose.msra.mxu1 %v22372_v14  ;;  %11614 = vmatprep.mubr.f32.mxu1 %v2235_v16  ;;  %v879_v14 = vld [vmem:[%s27385_s1 + $0x1700] sm:$0x3] }
 0x367   :  { %20505 = vmatmul.mubr.f32.vlgmr.msra.gmra.mrb[0].mxu0 %v3305_v57  ;;  %22375 = vmatprep.subr.bf16.mxu1 %v22374_v17  ;;  %v22894_v57 = vpack.c.bf16 %v1134_v50, %v622_v49  ;;  %v1135_v16 = vld [vmem:[%s27385_s1 + $0x1f00] sm:$0x3]  ;;  %v22388_v23 = vpack.c.bf16 %v879_v14, %v367_v13  ;;  %v136_v49 = vld [vmem:[%s27384_s0 + $0x3c8] sm:$0xff] }
 0x368   :  { %22885 = vmatpush1.bf16.xpose.msra.mxu0 %v22884_v15  ;;  %20574 = vmatprep.mubr.f32.mxu0 %v3323_v19  ;;  %v623_v15 = vld [vmem:[%s27385_s1 + $0xf00] sm:$0xff]  ;;  %v882_v19 = vld [vmem:[%s27385_s1 + $0x1718] sm:$0x3]  ;;  %v3359_v3 = vcombine.high %v136_v49, %v136_v49  ;;  %v1144_v13 = vld [vmem:[%s27385_s1 + $0x1f48] sm:$0x3] }
 0x369   :  { %22887 = vmatprep.subr.bf16.mxu0 %v22886_v20  ;;  %v3349_v20 = vrot.slane %v135_v12, %v23691_v25  ;;  %v22900_v24 = vpack.c.bf16 %v1135_v16, %v623_v15  ;;  %v371_v50 = vld [vmem:[%s27385_s1 + $0x720] sm:$0xff]  ;;  %v632_v12 = vld [vmem:[%s27385_s1 + $0xf48] sm:$0xff] }
 0x36b   :  { %v3357_v29 = vcombine.high %v3349_v20, %v3349_v20 }
 0x36d   :  { %11615 = vmatmul.mubr.f32.vlgmr.msra.gmra.mrb[0].mxu1 %v2227_v8  ;;  %v22386_v8 = vpack.c.bf16 %v880_v1, %v368_v0 }
 0x36e   :  { %22377 = vmatpush1.bf16.xpose.msra.mxu1 %v22376_v33  ;;  %11684 = vmatprep.mubr.f32.mxu1 %v2236_v35  ;;  %v881_v33 = vld [vmem:[%s27385_s1 + $0x1710] sm:$0x3] }
 0x36f   :  { %20575 = vmatmul.mubr.f32.vlgmr.msra.gmra.mrb[0].mxu0 %v3315_v11  ;;  %22379 = vmatprep.subr.bf16.mxu1 %v22378_v36  ;;  %v71_v11 = vld [vmem:[%s27384_s0 + $0x1c0] sm:$0xff]  ;;  %v1137_v35 = vld [vmem:[%s27385_s1 + $0x1f10] sm:$0x3]  ;;  %v22392_v42 = vpack.c.bf16 %v881_v33, %v369_v32  ;;  %v1146_v32 = vld [vmem:[%s27385_s1 + $0x1f58] sm:$0x3] }
 0x370   :  { %22889 = vmatpush1.bf16.xpose.msra.mxu0 %v22888_v34  ;;  %20644 = vmatprep.mubr.f32.mxu0 %v3324_v37  ;;  %v2261_v17 = vrot.slane %v71_v11, %v23691_v25  ;;  %v2254_v28 = vcombine.high %v71_v11, %v71_v11  ;;  %v625_v34 = vld [vmem:[%s27385_s1 + $0xf10] sm:$0xff]  ;;  %v372_v37 = vld [vmem:[%s27385_s1 + $0x728] sm:$0xff]  ;;  %v3373_v11 = vrot.slane %v3359_v3, %v23691_v25  ;;  %v638_v3 = vld [vmem:[%s27385_s1 + $0xf78] sm:$0xff] }
 0x371   :  { %22891 = vmatprep.subr.bf16.mxu0 %v22890_v38  ;;  %v884_v38 = vld [vmem:[%s27385_s1 + $0x1728] sm:$0x3]  ;;  %v22904_v43 = vpack.c.bf16 %v1137_v35, %v625_v34 }
 0x372   :  { %v2269_v26 = vcombine.high %v2261_v17, %v2261_v17  ;;  %v2268_v36 = vrot.slane %v2254_v28, %v23691_v25  ;;  %v378_v28 = vld [vmem:[%s27385_s1 + $0x758] sm:$0xff] }
 0x374   :  { %v2270_v44 = vcombine.high %v2268_v36, %v2268_v36 }
 0x375   :  { %11685 = vmatmul.mubr.f32.vlgmr.msra.gmra.mrb[0].mxu1 %v2234_v27  ;;  %v22390_v27 = vpack.c.bf16 %v882_v19, %v370_v18  ;;  %v3375_v18 = vcombine.high %v3373_v11, %v3373_v11  ;;  %v22914_v19 = vpack.c.bf16 %v1144_v13, %v632_v12  ;;  %v381_v13 = vld [vmem:[%s27385_s1 + $0x770] sm:$0xff] }
 0x376   :  { %22381 = vmatpush1.bf16.xpose.msra.mxu1 %v22380_v51  ;;  %11754 = vmatprep.mubr.f32.mxu1 %v2252_v53  ;;  %v883_v51 = vld [vmem:[%s27385_s1 + $0x1720] sm:$0x3] }
 0x377   :  { %20645 = vmatmul.mubr.f32.vlgmr.msra.gmra.mrb[0].mxu0 %v3322_v30  ;;  %22383 = vmatprep.subr.bf16.mxu1 %v22382_v54  ;;  %v22902_v30 = vpack.c.bf16 %v1138_v22, %v626_v21  ;;  %v1139_v53 = vld [vmem:[%s27385_s1 + $0x1f20] sm:$0x3]  ;;  %v22396_v60 = vpack.c.bf16 %v883_v51, %v371_v50  ;;  %v137_v21 = vld [vmem:[%s27384_s0 + $0x3d0] sm:$0xff]  ;;  %v1148_v50 = vld [vmem:[%s27385_s1 + $0x1f68] sm:$0x3] }
 0x378   :  { %22893 = vmatpush1.bf16.xpose.msra.mxu0 %v22892_v52  ;;  %20714 = vmatprep.mubr.f32.mxu0 %v3340_v56  ;;  %v627_v52 = vld [vmem:[%s27385_s1 + $0xf20] sm:$0xff]  ;;  %v886_v56 = vld [vmem:[%s27385_s1 + $0x1738] sm:$0x3]  ;;  %v3376_v40 = vcombine.high %v137_v21, %v137_v21 }
 0x379   :  { %22895 = vmatprep.subr.bf16.mxu0 %v22894_v57  ;;  %v3366_v57 = vrot.slane %v136_v49, %v23691_v25  ;;  %v22908_v61 = vpack.c.bf16 %v1139_v53, %v627_v52  ;;  %v375_v22 = vld [vmem:[%s27385_s1 + $0x740] sm:$0xff]  ;;  %v636_v49 = vld [vmem:[%s27385_s1 + $0xf68] sm:$0xff] }
 0x37b   :  { %v3374_v1 = vcombine.high %v3366_v57, %v3366_v57 }
 0x37d   :  { %11755 = vmatmul.mubr.f32.vlgmr.msra.gmra.mrb[0].mxu1 %v2244_v45  ;;  %v22394_v45 = vpack.c.bf16 %v884_v38, %v372_v37 }
 0x37e   :  { %22385 = vmatpush1.bf16.xpose.msra.mxu1 %v22384_v5  ;;  %11824 = vmatprep.mubr.f32.mxu1 %v2253_v7  ;;  %v885_v5 = vld [vmem:[%s27385_s1 + $0x1730] sm:$0x3] }
 0x37f   :  { %20715 = vmatmul.mubr.f32.vlgmr.msra.gmra.mrb[0].mxu0 %v3332_v48  ;;  %22387 = vmatprep.subr.bf16.mxu1 %v22386_v8  ;;  %v72_v48 = vld [vmem:[%s27384_s0 + $0x1c8] sm:$0xff]  ;;  %v1141_v7 = vld [vmem:[%s27385_s1 + $0x1f30] sm:$0x3]  ;;  %v22400_v14 = vpack.c.bf16 %v885_v5, %v373_v4  ;;  %v1150_v4 = vld [vmem:[%s27385_s1 + $0x1f78] sm:$0x3] }
 0x380   :  { %22897 = vmatpush1.bf16.xpose.msra.mxu0 %v22896_v6  ;;  %20784 = vmatprep.mubr.f32.mxu0 %v3341_v9  ;;  %v2278_v54 = vrot.slane %v72_v48, %v23691_v25  ;;  %v2271_v0 = vcombine.high %v72_v48, %v72_v48  ;;  %v629_v6 = vld [vmem:[%s27385_s1 + $0xf30] sm:$0xff]  ;;  %v376_v9 = vld [vmem:[%s27385_s1 + $0x748] sm:$0xff]  ;;  %v3390_v48 = vrot.slane %v3376_v40, %v23691_v25  ;;  %v642_v40 = vld [vmem:[%s27385_s1 + $0xf98] sm:$0xff] }
 0x381   :  { %22899 = vmatprep.subr.bf16.mxu0 %v22898_v10  ;;  %v888_v10 = vld [vmem:[%s27385_s1 + $0x1748] sm:$0x3]  ;;  %v22912_v15 = vpack.c.bf16 %v1141_v7, %v629_v6 }
 0x382   :  { %v2286_v62 = vcombine.high %v2278_v54, %v2278_v54  ;;  %v2285_v8 = vrot.slane %v2271_v0, %v23691_v25  ;;  %v382_v0 = vld [vmem:[%s27385_s1 + $0x778] sm:$0xff] }
 0x384   :  { %v2287_v16 = vcombine.high %v2285_v8, %v2285_v8 }
 0x385   :  { %11825 = vmatmul.mubr.f32.vlgmr.msra.gmra.mrb[0].mxu1 %v2251_v63  ;;  %v22398_v63 = vpack.c.bf16 %v886_v56, %v374_v55  ;;  %v3392_v55 = vcombine.high %v3390_v48, %v3390_v48  ;;  %v22922_v56 = vpack.c.bf16 %v1148_v50, %v636_v49  ;;  %v385_v50 = vld [vmem:[%s27385_s1 + $0x790] sm:$0xff] }
 0x386   :  { %22389 = vmatpush1.bf16.xpose.msra.mxu1 %v22388_v23  ;;  %11894 = vmatprep.mubr.f32.mxu1 %v2269_v26  ;;  %v887_v23 = vld [vmem:[%s27385_s1 + $0x1740] sm:$0x3] }
 0x387   :  { %20785 = vmatmul.mubr.f32.vlgmr.msra.gmra.mrb[0].mxu0 %v3339_v2  ;;  %22391 = vmatprep.subr.bf16.mxu1 %v22390_v27  ;;  %v22910_v2 = vpack.c.bf16 %v1142_v59, %v630_v58  ;;  %v1143_v26 = vld [vmem:[%s27385_s1 + $0x1f40] sm:$0x3]  ;;  %v22404_v33 = vpack.c.bf16 %v887_v23, %v375_v22  ;;  %v138_v58 = vld [vmem:[%s27384_s0 + $0x3d8] sm:$0xff]  ;;  %v1152_v22 = vld [vmem:[%s27385_s1 + $0x1f88] sm:$0x3] }
 0x388   :  { %22901 = vmatpush1.bf16.xpose.msra.mxu0 %v22900_v24  ;;  %20854 = vmatprep.mubr.f32.mxu0 %v3357_v29  ;;  %v631_v24 = vld [vmem:[%s27385_s1 + $0xf40] sm:$0xff]  ;;  %v890_v29 = vld [vmem:[%s27385_s1 + $0x1758] sm:$0x3]  ;;  %v3393_v12 = vcombine.high %v138_v58, %v138_v58 }
 0x389   :  { %22903 = vmatprep.subr.bf16.mxu0 %v22902_v30  ;;  %v3383_v30 = vrot.slane %v137_v21, %v23691_v25  ;;  %v22916_v34 = vpack.c.bf16 %v1143_v26, %v631_v24  ;;  %v379_v59 = vld [vmem:[%s27385_s1 + $0x760] sm:$0xff]  ;;  %v640_v21 = vld [vmem:[%s27385_s1 + $0xf88] sm:$0xff] }
 0x38b   :  { %v3391_v38 = vcombine.high %v3383_v30, %v3383_v30 }
 0x38d   :  { %11895 = vmatmul.mubr.f32.vlgmr.msra.gmra.mrb[0].mxu1 %v2261_v17  ;;  %v22402_v17 = vpack.c.bf16 %v888_v10, %v376_v9 }
 0x38e   :  { %22393 = vmatpush1.bf16.xpose.msra.mxu1 %v22392_v42  ;;  %11964 = vmatprep.mubr.f32.mxu1 %v2270_v44  ;;  %v889_v42 = vld [vmem:[%s27385_s1 + $0x1750] sm:$0x3] }
 0x38f   :  { %20855 = vmatmul.mubr.f32.vlgmr.msra.gmra.mrb[0].mxu0 %v3349_v20  ;;  %22395 = vmatprep.subr.bf16.mxu1 %v22394_v45  ;;  %v73_v20 = vld [vmem:[%s27384_s0 + $0x1d0] sm:$0xff]  ;;  %v22408_v51 = vpack.c.bf16 %v889_v42, %v377_v41  ;;  %v1154_v41 = vld [vmem:[%s27385_s1 + $0x1f98] sm:$0x3] }
 0x390   :  { %22905 = vmatpush1.bf16.xpose.msra.mxu0 %v22904_v43  ;;  %20924 = vmatprep.mubr.f32.mxu0 %v3358_v46  ;;  %v2295_v27 = vrot.slane %v73_v20, %v23691_v25  ;;  %v2288_v37 = vcombine.high %v73_v20, %v73_v20  ;;  %v633_v43 = vld [vmem:[%s27385_s1 + $0xf50] sm:$0xff]  ;;  %v380_v46 = vld [vmem:[%s27385_s1 + $0x768] sm:$0xff]  ;;  %v3407_v20 = vrot.slane %v3393_v12, %v23691_v25  ;;  %v646_v12 = vld [vmem:[%s27385_s1 + $0xfb8] sm:$0xff] }
 0x391   :  { %22907 = vmatprep.subr.bf16.mxu0 %v22906_v47  ;;  %v1145_v44 = vld [vmem:[%s27385_s1 + $0x1f50] sm:$0x3]  ;;  %v892_v47 = vld [vmem:[%s27385_s1 + $0x1768] sm:$0x3] }
 0x392   :  { %v2303_v35 = vcombine.high %v2295_v27, %v2295_v27  ;;  %v2302_v45 = vrot.slane %v2288_v37, %v23691_v25  ;;  %v22920_v52 = vpack.c.bf16 %v1145_v44, %v633_v43  ;;  %v386_v37 = vld [vmem:[%s27385_s1 + $0x798] sm:$0xff] }
 0x394   :  { %v2304_v53 = vcombine.high %v2302_v45, %v2302_v45 }
 0x395   :  { %11965 = vmatmul.mubr.f32.vlgmr.msra.gmra.mrb[0].mxu1 %v2268_v36  ;;  %v22406_v36 = vpack.c.bf16 %v890_v29, %v378_v28  ;;  %v3409_v28 = vcombine.high %v3407_v20, %v3407_v20  ;;  %v22930_v29 = vpack.c.bf16 %v1152_v22, %v640_v21  ;;  %v389_v22 = vld [vmem:[%s27385_s1 + $0x7b0] sm:$0xff] }
 0x396   :  { %22397 = vmatpush1.bf16.xpose.msra.mxu1 %v22396_v60  ;;  %12034 = vmatprep.mubr.f32.mxu1 %v2286_v62  ;;  %v891_v60 = vld [vmem:[%s27385_s1 + $0x1760] sm:$0x3] }
 0x397   :  { %20925 = vmatmul.mubr.f32.vlgmr.msra.gmra.mrb[0].mxu0 %v3356_v39  ;;  %22399 = vmatprep.subr.bf16.mxu1 %v22398_v63  ;;  %v22918_v39 = vpack.c.bf16 %v1146_v32, %v634_v31  ;;  %v1147_v62 = vld [vmem:[%s27385_s1 + $0x1f60] sm:$0x3]  ;;  %v22412_v5 = vpack.c.bf16 %v891_v60, %v379_v59  ;;  %v1156_v59 = vld [vmem:[%s27385_s1 + $0x1fa8] sm:$0x3] }
 0x398   :  { %22909 = vmatpush1.bf16.xpose.msra.mxu0 %v22908_v61  ;;  %20994 = vmatprep.mubr.f32.mxu0 %v3374_v1  ;;  %v635_v61 = vld [vmem:[%s27385_s1 + $0xf60] sm:$0xff]  ;;  %v894_v1 = vld [vmem:[%s27385_s1 + $0x1778] sm:$0x3] }
 0x399   :  { %22911 = vmatprep.subr.bf16.mxu0 %v22910_v2  ;;  %v3400_v2 = vrot.slane %v138_v58, %v23691_v25  ;;  %v22924_v6 = vpack.c.bf16 %v1147_v62, %v635_v61  ;;  %v139_v31 = vld [vmem:[%s27384_s0 + $0x3e0] sm:$0xff]  ;;  %v644_v58 = vld [vmem:[%s27385_s1 + $0xfa8] sm:$0xff] }
 0x39a   :  { %v383_v32 = vld [vmem:[%s27385_s1 + $0x780] sm:$0xff]  ;;  %v3410_v49 = vcombine.high %v139_v31, %v139_v31 }
 0x39b   :  { %v3408_v10 = vcombine.high %v3400_v2, %v3400_v2 }
 0x39d   :  { %12035 = vmatmul.mubr.f32.vlgmr.msra.gmra.mrb[0].mxu1 %v2278_v54  ;;  %v22410_v54 = vpack.c.bf16 %v892_v47, %v380_v46 }
 0x39e   :  { %22401 = vmatpush1.bf16.xpose.msra.mxu1 %v22400_v14  ;;  %12104 = vmatprep.mubr.f32.mxu1 %v2287_v16  ;;  %v893_v14 = vld [vmem:[%s27385_s1 + $0x1770] sm:$0x3] }
 0x39f   :  { %20995 = vmatmul.mubr.f32.vlgmr.msra.gmra.mrb[0].mxu0 %v3366_v57  ;;  %22403 = vmatprep.subr.bf16.mxu1 %v22402_v17  ;;  %v74_v57 = vld [vmem:[%s27384_s0 + $0x1d8] sm:$0xff]  ;;  %v1149_v16 = vld [vmem:[%s27385_s1 + $0x1f70] sm:$0x3]  ;;  %v22416_v23 = vpack.c.bf16 %v893_v14, %v381_v13 }
 0x3a0   :  { %22913 = vmatpush1.bf16.xpose.msra.mxu0 %v22912_v15  ;;  %21064 = vmatprep.mubr.f32.mxu0 %v3375_v18  ;;  %v2312_v63 = vrot.slane %v74_v57, %v23691_v25  ;;  %v2305_v9 = vcombine.high %v74_v57, %v74_v57  ;;  %v637_v15 = vld [vmem:[%s27385_s1 + $0xf70] sm:$0xff]  ;;  %v384_v18 = vld [vmem:[%s27385_s1 + $0x788] sm:$0xff]  ;;  %v3424_v57 = vrot.slane %v3410_v49, %v23691_v25  ;;  %v1158_v13 = vld [vmem:[%s27385_s1 + $0x1fb8] sm:$0x3] }
 0x3a1   :  { %22915 = vmatprep.subr.bf16.mxu0 %v22914_v19  ;;  %v896_v19 = vld [vmem:[%s27385_s1 + $0x1788] sm:$0x3]  ;;  %v22928_v24 = vpack.c.bf16 %v1149_v16, %v637_v15  ;;  %v650_v49 = vld [vmem:[%s27385_s1 + $0xfd8] sm:$0xff] }
 0x3a2   :  { %v2320_v7 = vcombine.high %v2312_v63, %v2312_v63  ;;  %v2319_v17 = vrot.slane %v2305_v9, %v23691_v25  ;;  %v390_v9 = vld [vmem:[%s27385_s1 + $0x7b8] sm:$0xff] }
 0x3a4   :  { %v2321_v26 = vcombine.high %v2319_v17, %v2319_v17 }
 0x3a5   :  { %12105 = vmatmul.mubr.f32.vlgmr.msra.gmra.mrb[0].mxu1 %v2285_v8  ;;  %v22414_v8 = vpack.c.bf16 %v894_v1, %v382_v0  ;;  %v3426_v0 = vcombine.high %v3424_v57, %v3424_v57  ;;  %v22938_v1 = vpack.c.bf16 %v1156_v59, %v644_v58  ;;  %v393_v59 = vld [vmem:[%s27385_s1 + $0x7d0] sm:$0xff] }
 0x3a6   :  { %22405 = vmatpush1.bf16.xpose.msra.mxu1 %v22404_v33  ;;  %12174 = vmatprep.mubr.f32.mxu1 %v2303_v35  ;;  %v895_v33 = vld [vmem:[%s27385_s1 + $0x1780] sm:$0x3] }
 0x3a7   :  { %21065 = vmatmul.mubr.f32.vlgmr.msra.gmra.mrb[0].mxu0 %v3373_v11  ;;  %22407 = vmatprep.subr.bf16.mxu1 %v22406_v36  ;;  %v22926_v11 = vpack.c.bf16 %v1150_v4, %v638_v3  ;;  %v1151_v35 = vld [vmem:[%s27385_s1 + $0x1f80] sm:$0x3]  ;;  %v22420_v42 = vpack.c.bf16 %v895_v33, %v383_v32  ;;  %v140_v3 = vld [vmem:[%s27384_s0 + $0x3e8] sm:$0xff] }
 0x3a8   :  { %22917 = vmatpush1.bf16.xpose.msra.mxu0 %v22916_v34  ;;  %21134 = vmatprep.mubr.f32.mxu0 %v3391_v38  ;;  %v639_v34 = vld [vmem:[%s27385_s1 + $0xf80] sm:$0xff]  ;;  %v898_v38 = vld [vmem:[%s27385_s1 + $0x1798] sm:$0x3]  ;;  %v3427_v21 = vcombine.high %v140_v3, %v140_v3  ;;  %v1160_v32 = vld [vmem:[%s27385_s1 + $0x1fc8] sm:$0x3] }
 0x3a9   :  { %22919 = vmatprep.subr.bf16.mxu0 %v22918_v39  ;;  %v3417_v39 = vrot.slane %v139_v31, %v23691_v25  ;;  %v22932_v43 = vpack.c.bf16 %v1151_v35, %v639_v34  ;;  %v387_v4 = vld [vmem:[%s27385_s1 + $0x7a0] sm:$0xff]  ;;  %v648_v31 = vld [vmem:[%s27385_s1 + $0xfc8] sm:$0xff] }
 0x3ab   :  { %v3425_v47 = vcombine.high %v3417_v39, %v3417_v39 }
 0x3ad   :  { %12175 = vmatmul.mubr.f32.vlgmr.msra.gmra.mrb[0].mxu1 %v2295_v27  ;;  %v22418_v27 = vpack.c.bf16 %v896_v19, %v384_v18 }
 0x3ae   :  { %22409 = vmatpush1.bf16.xpose.msra.mxu1 %v22408_v51  ;;  %12244 = vmatprep.mubr.f32.mxu1 %v2304_v53  ;;  %v897_v51 = vld [vmem:[%s27385_s1 + $0x1790] sm:$0x3] }
 0x3af   :  { %21135 = vmatmul.mubr.f32.vlgmr.msra.gmra.mrb[0].mxu0 %v3383_v30  ;;  %22411 = vmatprep.subr.bf16.mxu1 %v22410_v54  ;;  %v75_v30 = vld [vmem:[%s27384_s0 + $0x1e0] sm:$0xff]  ;;  %v1153_v53 = vld [vmem:[%s27385_s1 + $0x1f90] sm:$0x3]  ;;  %v22424_v60 = vpack.c.bf16 %v897_v51, %v385_v50  ;;  %v1162_v50 = vld [vmem:[%s27385_s1 + $0x1fd8] sm:$0x3] }
 0x3b0   :  { %22921 = vmatpush1.bf16.xpose.msra.mxu0 %v22920_v52  ;;  %21204 = vmatprep.mubr.f32.mxu0 %v3392_v55  ;;  %v2329_v36 = vrot.slane %v75_v30, %v23691_v25  ;;  %v2322_v46 = vcombine.high %v75_v30, %v75_v30  ;;  %v641_v52 = vld [vmem:[%s27385_s1 + $0xf90] sm:$0xff]  ;;  %v388_v55 = vld [vmem:[%s27385_s1 + $0x7a8] sm:$0xff]  ;;  %v3441_v30 = vrot.slane %v3427_v21, %v23691_v25  ;;  %v654_v21 = vld [vmem:[%s27385_s1 + $0xff8] sm:$0xff] }
 0x3b1   :  { %22923 = vmatprep.subr.bf16.mxu0 %v22922_v56  ;;  %v900_v56 = vld [vmem:[%s27385_s1 + $0x17a8] sm:$0x3]  ;;  %v22936_v61 = vpack.c.bf16 %v1153_v53, %v641_v52 }
 0x3b2   :  { %v2337_v44 = vcombine.high %v2329_v36, %v2329_v36  ;;  %v2336_v54 = vrot.slane %v2322_v46, %v23691_v25  ;;  %v394_v46 = vld [vmem:[%s27385_s1 + $0x7d8] sm:$0xff] }
 0x3b4   :  { %v2338_v62 = vcombine.high %v2336_v54, %v2336_v54 }
 0x3b5   :  { %12245 = vmatmul.mubr.f32.vlgmr.msra.gmra.mrb[0].mxu1 %v2302_v45  ;;  %v22422_v45 = vpack.c.bf16 %v898_v38, %v386_v37  ;;  %v3443_v37 = vcombine.high %v3441_v30, %v3441_v30  ;;  %v22946_v38 = vpack.c.bf16 %v1160_v32, %v648_v31  ;;  %v397_v32 = vld [vmem:[%s27385_s1 + $0x7f0] sm:$0xff] }
 0x3b6   :  { %22413 = vmatpush1.bf16.xpose.msra.mxu1 %v22412_v5  ;;  %12314 = vmatprep.mubr.f32.mxu1 %v2320_v7  ;;  %v899_v5 = vld [vmem:[%s27385_s1 + $0x17a0] sm:$0x3] }
 0x3b7   :  { %21205 = vmatmul.mubr.f32.vlgmr.msra.gmra.mrb[0].mxu0 %v3390_v48  ;;  %22415 = vmatprep.subr.bf16.mxu1 %v22414_v8  ;;  %v22934_v48 = vpack.c.bf16 %v1154_v41, %v642_v40  ;;  %v1155_v7 = vld [vmem:[%s27385_s1 + $0x1fa0] sm:$0x3]  ;;  %v22428_v14 = vpack.c.bf16 %v899_v5, %v387_v4  ;;  %v141_v40 = vld [vmem:[%s27384_s0 + $0x3f0] sm:$0xff]  ;;  %v1164_v4 = vld [vmem:[%s27385_s1 + $0x1fe8] sm:$0x3] }
 0x3b8   :  { %22925 = vmatpush1.bf16.xpose.msra.mxu0 %v22924_v6  ;;  %21274 = vmatprep.mubr.f32.mxu0 %v3408_v10  ;;  %v643_v6 = vld [vmem:[%s27385_s1 + $0xfa0] sm:$0xff]  ;;  %v902_v10 = vld [vmem:[%s27385_s1 + $0x17b8] sm:$0x3]  ;;  %v3444_v58 = vcombine.high %v141_v40, %v141_v40 }
 0x3b9   :  { %22927 = vmatprep.subr.bf16.mxu0 %v22926_v11  ;;  %v3434_v11 = vrot.slane %v140_v3, %v23691_v25  ;;  %v22940_v15 = vpack.c.bf16 %v1155_v7, %v643_v6  ;;  %v391_v41 = vld [vmem:[%s27385_s1 + $0x7c0] sm:$0xff]  ;;  %v652_v3 = vld [vmem:[%s27385_s1 + $0xfe8] sm:$0xff] }
 0x3bb   :  { %v3442_v19 = vcombine.high %v3434_v11, %v3434_v11 }
 0x3bd   :  { %12315 = vmatmul.mubr.f32.vlgmr.msra.gmra.mrb[0].mxu1 %v2312_v63  ;;  %v22426_v63 = vpack.c.bf16 %v900_v56, %v388_v55 }
 0x3be   :  { %22417 = vmatpush1.bf16.xpose.msra.mxu1 %v22416_v23  ;;  %12384 = vmatprep.mubr.f32.mxu1 %v2321_v26  ;;  %v901_v23 = vld [vmem:[%s27385_s1 + $0x17b0] sm:$0x3] }
 0x3bf   :  { %21275 = vmatmul.mubr.f32.vlgmr.msra.gmra.mrb[0].mxu0 %v3400_v2  ;;  %22419 = vmatprep.subr.bf16.mxu1 %v22418_v27  ;;  %v76_v2 = vld [vmem:[%s27384_s0 + $0x1e8] sm:$0xff]  ;;  %v1157_v26 = vld [vmem:[%s27385_s1 + $0x1fb0] sm:$0x3]  ;;  %v22432_v33 = vpack.c.bf16 %v901_v23, %v389_v22  ;;  %v1166_v22 = vld [vmem:[%s27385_s1 + $0x1ff8] sm:$0x3] }
 0x3c0   :  { %22929 = vmatpush1.bf16.xpose.msra.mxu0 %v22928_v24  ;;  %21344 = vmatprep.mubr.f32.mxu0 %v3409_v28  ;;  %v2346_v8 = vrot.slane %v76_v2, %v23691_v25  ;;  %v2339_v18 = vcombine.high %v76_v2, %v76_v2  ;;  %v645_v24 = vld [vmem:[%s27385_s1 + $0xfb0] sm:$0xff]  ;;  %v392_v28 = vld [vmem:[%s27385_s1 + $0x7c8] sm:$0xff]  ;;  %v3458_v2 = vrot.slane %v3444_v58, %v23691_v25 }
 0x3c1   :  { %22931 = vmatprep.subr.bf16.mxu0 %v22930_v29  ;;  %v904_v29 = vld [vmem:[%s27385_s1 + $0x17c8] sm:$0x3]  ;;  %v22944_v34 = vpack.c.bf16 %v1157_v26, %v645_v24  ;;  %v22958_v31 = vpack.c.bf16 %v1166_v22, %v654_v21 }
 0x3c2   :  { %v2354_v16 = vcombine.high %v2346_v8, %v2346_v8  ;;  %v2353_v27 = vrot.slane %v2339_v18, %v23691_v25  ;;  %v398_v18 = vld [vmem:[%s27385_s1 + $0x7f8] sm:$0xff] }
 0x3c4   :  { %v2355_v35 = vcombine.high %v2353_v27, %v2353_v27 }
 0x3c5   :  { %12385 = vmatmul.mubr.f32.vlgmr.msra.gmra.mrb[0].mxu1 %v2319_v17  ;;  %v22430_v17 = vpack.c.bf16 %v902_v10, %v390_v9  ;;  %v3460_v9 = vcombine.high %v3458_v2, %v3458_v2  ;;  %v22954_v10 = vpack.c.bf16 %v1164_v4, %v652_v3 }
 0x3c6   :  { %22421 = vmatpush1.bf16.xpose.msra.mxu1 %v22420_v42  ;;  %12454 = vmatprep.mubr.f32.mxu1 %v2337_v44  ;;  %v903_v42 = vld [vmem:[%s27385_s1 + $0x17c0] sm:$0x3] }
 0x3c7   :  { %21345 = vmatmul.mubr.f32.vlgmr.msra.gmra.mrb[0].mxu0 %v3407_v20  ;;  %22423 = vmatprep.subr.bf16.mxu1 %v22422_v45  ;;  %v22942_v20 = vpack.c.bf16 %v1158_v13, %v646_v12  ;;  %v1159_v44 = vld [vmem:[%s27385_s1 + $0x1fc0] sm:$0x3]  ;;  %v22436_v51 = vpack.c.bf16 %v903_v42, %v391_v41  ;;  %v142_v12 = vld [vmem:[%s27384_s0 + $0x3f8] sm:$0xff] }
 0x3c8   :  { %22933 = vmatpush1.bf16.xpose.msra.mxu0 %v22932_v43  ;;  %21414 = vmatprep.mubr.f32.mxu0 %v3425_v47  ;;  %v647_v43 = vld [vmem:[%s27385_s1 + $0xfc0] sm:$0xff]  ;;  %v906_v47 = vld [vmem:[%s27385_s1 + $0x17d8] sm:$0x3] }
 0x3c9   :  { %22935 = vmatprep.subr.bf16.mxu0 %v22934_v48  ;;  %v3451_v48 = vrot.slane %v141_v40, %v23691_v25  ;;  %v22948_v52 = vpack.c.bf16 %v1159_v44, %v647_v43  ;;  %v395_v13 = vld [vmem:[%s27385_s1 + $0x7e0] sm:$0xff] }
 0x3ca   :  { %v21937_v42 = vld [vmem:[%s27386_s2] ss:$0 sm:$0xff]  ;;  %s23631_s2 = smov [#allocation2]  }
 0x3cb   :  { %v3459_v56 = vcombine.high %v3451_v48, %v3451_v48  ;;  %s21929_s21 = sshll.u32 %s23631_s2, 4  ;;  %s21930_s21 = int_to_ptr.vmem [resolvable:$true] %s21929_s21 }
 0x3cc   :  { %s23606_s22 = scalar_lea.vmem %s21930_s21, 32  ;;  %p23611_p1 = scmp.lt.s32.totalorder %s21930_s21, %s21930_s21 }
 0x3cd   :  { %12455 = vmatmul.mubr.f32.vlgmr.msra.gmra.mrb[0].mxu1 %v2329_v36  ;;  %v22434_v36 = vpack.c.bf16 %v904_v29, %v392_v28  ;;  %v3461_v29 = vcombine.high %v142_v12, %v142_v12  ;;  %p23607_p0 = scmp.ne.s32.totalorder %s21930_s21, %s23606_s22  ;;  %p23612_p2 = scmp.lt.s32.totalorder %s23606_s22, %s23606_s22 }
 0x3ce   :  { %22425 = vmatpush1.bf16.xpose.msra.mxu1 %v22424_v60  ;;  %12524 = vmatprep.mubr.f32.mxu1 %v2338_v62  ;;  %v905_v60 = vld [vmem:[%s27385_s1 + $0x17d0] sm:$0x3] }
 0x3cf   :  { %21415 = vmatmul.mubr.f32.vlgmr.msra.gmra.mrb[0].mxu0 %v3417_v39  ;;  %22427 = vmatprep.subr.bf16.mxu1 %v22426_v63  ;;  %v77_v39 = vld [vmem:[%s27384_s0 + $0x1f0] sm:$0xff]  ;;  %v22440_v5 = vpack.c.bf16 %v905_v60, %v393_v59  ;;  %p23613_p3 = por %p23612_p2, %p23611_p1 }
 0x3d0   :  { %22937 = vmatpush1.bf16.xpose.msra.mxu0 %v22936_v61  ;;  %21484 = vmatprep.mubr.f32.mxu0 %v3426_v0  ;;  %v2363_v45 = vrot.slane %v77_v39, %v23691_v25  ;;  %v2356_v55 = vcombine.high %v77_v39, %v77_v39  ;;  %v649_v61 = vld [vmem:[%s27385_s1 + $0xfd0] sm:$0xff]  ;;  %v396_v0 = vld [vmem:[%s27385_s1 + $0x7e8] sm:$0xff] }
 0x3d1   :  { %22939 = vmatprep.subr.bf16.mxu0 %v22938_v1  ;;  %v1161_v62 = vld [vmem:[%s27385_s1 + $0x1fd0] sm:$0x3]  ;;  %v908_v1 = vld [vmem:[%s27385_s1 + $0x17e8] sm:$0x3]  ;;  %p23614_p4 = pnand %p23613_p3, %p23607_p0 }
 0x3d2   :  { %v2371_v53 = vcombine.high %v2363_v45, %v2363_v45  ;;  %v2370_v63 = vrot.slane %v2356_v55, %v23691_v25  ;;  %v22952_v6 = vpack.c.bf16 %v1161_v62, %v649_v61 }
 0x3d4   :  { %v2372_v7 = vcombine.high %v2370_v63, %v2370_v63 }
 0x3d5   :  { %12525 = vmatmul.mubr.f32.vlgmr.msra.gmra.mrb[0].mxu1 %v2336_v54  ;;  %v22438_v54 = vpack.c.bf16 %v906_v47, %v394_v46 }
 0x3d6   :  { %22429 = vmatpush1.bf16.xpose.msra.mxu1 %v22428_v14  ;;  %12594 = vmatprep.mubr.f32.mxu1 %v2354_v16  ;;  %v907_v14 = vld [vmem:[%s27385_s1 + $0x17e0] sm:$0x3] }
 0x3d7   :  { %21485 = vmatmul.mubr.f32.vlgmr.msra.gmra.mrb[0].mxu0 %v3424_v57  ;;  %22431 = vmatprep.subr.bf16.mxu1 %v22430_v17  ;;  %v22950_v57 = vpack.c.bf16 %v1162_v50, %v650_v49  ;;  %v1163_v16 = vld [vmem:[%s27385_s1 + $0x1fe0] sm:$0x3]  ;;  %v22444_v23 = vpack.c.bf16 %v907_v14, %v395_v13 }
 0x3d8   :  { %22941 = vmatpush1.bf16.xpose.msra.mxu0 %v22940_v15  ;;  %21554 = vmatprep.mubr.f32.mxu0 %v3442_v19  ;;  %v651_v15 = vld [vmem:[%s27385_s1 + $0xfe0] sm:$0xff]  ;;  %v910_v19 = vld [vmem:[%s27385_s1 + $0x17f8] sm:$0x3] }
 0x3d9   :  { %22943 = vmatprep.subr.bf16.mxu0 %v22942_v20  ;;  %v3468_v20 = vrot.slane %v142_v12, %v23691_v25  ;;  %v22956_v24 = vpack.c.bf16 %v1163_v16, %v651_v15 }
 0x3dd   :  { %12595 = vmatmul.mubr.f32.vlgmr.msra.gmra.mrb[0].mxu1 %v2346_v8  ;;  %v22442_v8 = vpack.c.bf16 %v908_v1, %v396_v0 }
 0x3de   :  { %22433 = vmatpush1.bf16.xpose.msra.mxu1 %v22432_v33  ;;  %12664 = vmatprep.mubr.f32.mxu1 %v2355_v35  ;;  %v909_v33 = vld [vmem:[%s27385_s1 + $0x17f0] sm:$0x3] }
 0x3df   :  { %21555 = vmatmul.mubr.f32.vlgmr.msra.gmra.mrb[0].mxu0 %v3434_v11  ;;  %22435 = vmatprep.subr.bf16.mxu1 %v22434_v36  ;;  %v78_v11 = vld [vmem:[%s27384_s0 + $0x1f8] sm:$0xff]  ;;  %v1165_v35 = vld [vmem:[%s27385_s1 + $0x1ff0] sm:$0x3] }
 0x3e0   :  { %22945 = vmatpush1.bf16.xpose.msra.mxu0 %v22944_v34  ;;  %21624 = vmatprep.mubr.f32.mxu0 %v3443_v37  ;;  %v2380_v17 = vrot.slane %v78_v11, %v23691_v25  ;;  %v2373_v28 = vcombine.high %v78_v11, %v78_v11  ;;  %v653_v34 = vld [vmem:[%s27385_s1 + $0xff0] sm:$0xff]  ;;  %v3475_v37 = vrot.slane %v3461_v29, %v23691_v25 }
 0x3e1   :  { %22947 = vmatprep.subr.bf16.mxu0 %v22946_v38  ;;  %v22448_v38 = vpack.c.bf16 %v909_v33, %v397_v32  ;;  %v22960_v39 = vpack.c.bf16 %v1165_v35, %v653_v34 }
 0x3e2   :  { %v2388_v26 = vcombine.high %v2380_v17, %v2380_v17  ;;  %v2387_v36 = vrot.slane %v2373_v28, %v23691_v25  ;;  %v3477_v41 = vcombine.high %v3475_v37, %v3475_v37 }
 0x3e4   :  { %v2389_v40 = vcombine.high %v2387_v36, %v2387_v36 }
 0x3e5   :  { %12665 = vmatmul.mubr.f32.vlgmr.msra.gmra.mrb[0].mxu1 %v2353_v27  ;;  %v22446_v27 = vpack.c.bf16 %v910_v19, %v398_v18 }
 0x3e6   :  { %22437 = vmatpush1.bf16.xpose.msra.mxu1 %v22436_v51  ;;  %12734 = vmatprep.mubr.f32.mxu1 %v2371_v53 }
 0x3e7   :  { %21625 = vmatmul.mubr.f32.vlgmr.msra.gmra.mrb[0].mxu0 %v3441_v30  ;;  %22439 = vmatprep.subr.bf16.mxu1 %v22438_v54  ;;  %v3476_v30 = vcombine.high %v3468_v20, %v3468_v20 }
 0x3e8   :  { %22949 = vmatpush1.bf16.xpose.msra.mxu0 %v22948_v52  ;;  %21694 = vmatprep.mubr.f32.mxu0 %v3459_v56 }
 0x3e9   :  { %22951 = vmatprep.subr.bf16.mxu0 %v22950_v57 }
 0x3ed   :  { %12735 = vmatmul.mubr.f32.vlgmr.msra.gmra.mrb[0].mxu1 %v2363_v45 }
 0x3ee   :  { %22441 = vmatpush1.bf16.xpose.msra.mxu1 %v22440_v5  ;;  %12804 = vmatprep.mubr.f32.mxu1 %v2372_v7 }
 0x3ef   :  { %21695 = vmatmul.mubr.f32.vlgmr.msra.gmra.mrb[0].mxu0 %v3451_v48  ;;  %22443 = vmatprep.subr.bf16.mxu1 %v22442_v8 }
 0x3f0   :  { %22953 = vmatpush1.bf16.xpose.msra.mxu0 %v22952_v6  ;;  %21764 = vmatprep.mubr.f32.mxu0 %v3460_v9 }
 0x3f1   :  { %22955 = vmatprep.subr.bf16.mxu0 %v22954_v10 }
 0x3f5   :  { %12805 = vmatmul.mubr.f32.vlgmr.msra.gmra.mrb[0].mxu1 %v2370_v63 }
 0x3f6   :  { %22445 = vmatpush1.bf16.xpose.msra.mxu1 %v22444_v23  ;;  %12874 = vmatprep.mubr.f32.mxu1 %v2388_v26 }
 0x3f7   :  { %21765 = vmatmul.mubr.f32.vlgmr.msra.gmra.mrb[0].mxu0 %v3458_v2  ;;  %22447 = vmatprep.subr.bf16.mxu1 %v22446_v27 }
 0x3f8   :  { %22957 = vmatpush1.bf16.xpose.msra.mxu0 %v22956_v24  ;;  %21834 = vmatprep.mubr.f32.mxu0 %v3476_v30 }
 0x3f9   :  { %22959 = vmatprep.subr.bf16.mxu0 %v22958_v31 }
 0x3fd   :  { %12875 = vmatmul.mubr.f32.vlgmr.msra.gmra.mrb[0].mxu1 %v2380_v17 }
 0x3fe   :  { %22449 = vmatpush1.bf16.xpose.msra.mxu1 %v22448_v38  ;;  %12944 = vmatprep.mubr.f32.mxu1 %v2389_v40 }
 0x3ff   :  { %21835 = vmatmul.mubr.f32.vlgmr.msra.gmra.mrb[0].mxu0 %v3468_v20 }
 0x400   :  { %22961 = vmatpush1.bf16.xpose.msra.mxu0 %v22960_v39  ;;  %21904 = vmatprep.mubr.f32.mxu0 %v3477_v41 }
 0x405   :  { %12945 = vmatmul.mubr.f32.vlgmr.msra.gmra.mrb[0].mxu1 %v2387_v36 }
 0x407   :  { %21905 = vmatmul.mubr.f32.vlgmr.msra.gmra.mrb[0].mxu0 %v3475_v37 }
 0x4d8   :  { %v12946_v43 = vpop.f32.mrb[0].mxu1 }
 0x4d9   :  { %v22962_v44 = vadd.f32 %v21937_v42, %v12946_v43  ;;  %v12948_v45 = vpop.f32.mrb[1].mxu1 }
 0x4da   :  { %v21906_v25 = vpop.f32.mrb[0].mxu0 }
 0x4db   :  { %v21908_v46 = vpop.f32.mrb[1].mxu0  ;;  %v22963_v47 = vadd.f32 %v22962_v44, %v21906_v25 }
 0x4dd   :  { %v21911_v48 = vsel %vm21910_vm0, %v22963_v47, -inf }
 0x4de   :  { %21912 = vmax.xlane.f32.xlu0 %v21911_v48 }
 0x56b   :  { %v21913_v49 = vpop.xlane.xlu0 %21912 }
 0x56c   :  { %v21914_v50 = vsub.f32 %v22963_v47, %v21913_v49 }
 0x56e   :  { %v21915_v51 = vmul.f32 1.442695, %v21914_v50 }
 0x570   :  { %23602 = vpow2.f32 %v21915_v51 }
 0x57a   :  { %v23603_v52 = vpop.eup %23602 }
 0x57b   :  { %v21917_v53 = vsel %vm21910_vm0, %v23603_v52, 0.0 }
 0x57c   :  { %21918 = vadd.xlane.f32.xlu0 %v21917_v53 }
 0x609   :  { %v21919_v54 = vpop.xlane.xlu0 %21918 }
 0x60a   :  { %23604 = vrcp.f32 %v21919_v54 }
 0x614   :  { %v23605_v55 = vpop.eup %23604 }
 0x615   :  { %v21921_v56 = vmul.f32 %v23605_v55, %v23603_v52 }
 0x617   :  { %21922 = vst.msk [vmem:[#allocation2] sm:$0x3] %vm21910_vm0, %v21921_v56 }
 0x618   :  { %23617 = shalt.err (!%p23614_p4)
}
 0x619   :  { %s23618_s25 = scalar_lea.hbm %s27387_s3, 32 }
 0x61a   :  { %p23619_p5 = scmp.ne.s32.totalorder %s27387_s3, %s23618_s25  ;;  %p23622_p6 = scmp.lt.u32.totalorder %s23618_s25, %s27387_s3 }
 0x61c   :  { %p23624_p7 = pnand %p23622_p6, %p23619_p5 }
 0x61e   :  { %23627 = shalt.err (!%p23624_p7)
}
 0x61f   :  { %21932 = dma.vmem_to_hbm [thread:$0]  %s21930_s21, 32, %s27387_s3, [#allocation3]  }
 0x620   :  { %23628 = dma.done.wait [#allocation3], 32  }
 0x621   :  { %23629 = vsyncadd [#allocation3], 4294967264 }
 0x622   :  { %21936 = vsyncpa [#allocation3], 1 }

</bundles_post_ra>
